<compile_context>
chip_gen: v6e
topology: v6e:2x2x1
jax: 0.10.0
libtpu: 0.0.40
codegen_flags: <defaults>
</compile_context>

<pallas_src>
import jax
import jax.numpy as jnp
from jax import lax
from jax.experimental import pallas as pl
from jax.experimental.pallas import tpu as pltpu


# ----------------------------------------------------------------------------
# Pallas kernels
# ----------------------------------------------------------------------------
def _conv_gemm_relu_kernel(p_ref, w_ref, b_ref, o_ref):
    """o = relu(p @ w + b); single block, all operands resident in VMEM."""
    acc = jnp.dot(p_ref[...], w_ref[...], preferred_element_type=jnp.float32)
    o_ref[...] = jnp.maximum(acc + b_ref[...], 0.0).astype(o_ref.dtype)


def conv_gemm_relu(patches, w, b):
    """patches:(M,K) w:(K,N) b:(1,N) -> relu(patches@w+b):(M,N).  One block."""
    M, K = patches.shape
    _, N = w.shape
    return pl.pallas_call(
        _conv_gemm_relu_kernel,
        out_shape=jax.ShapeDtypeStruct((M, N), jnp.float32),
        in_specs=[
            pl.BlockSpec((M, K), lambda: (0, 0)),
            pl.BlockSpec((K, N), lambda: (0, 0)),
            pl.BlockSpec((1, N), lambda: (0, 0)),
        ],
        out_specs=pl.BlockSpec((M, N), lambda: (0, 0)),
    )(patches, w, b)


def _fc_duel_kernel(flat_ref, w1_ref, b1_ref, w2_ref, b2_ref, o_ref, h_acc):
    """Fused dueling head (one fc1 half per leading-grid index).

    Grid = (half j in {adv, val}  [parallel],  K chunks of fc1  [arbitrary]).
    h_acc accumulates flat @ W1[:, half_j] in f32 while flat / W1 stream as
    bf16.  On the last K chunk we apply bias+ReLU, run the tiny second GEMM
    (fc2_adv for j=0, fc2_val for j=1, both embedded in an 8-wide weight) and
    write the half's raw head output; the 8-flop dueling combine happens in a
    trivial XLA epilogue outside the kernel.
    """
    k = pl.program_id(1)

    @pl.when(k == 0)
    def _():
        h_acc[...] = jnp.zeros_like(h_acc)

    h_acc[...] += jnp.dot(flat_ref[...], w1_ref[...],
                          preferred_element_type=jnp.float32)

    @pl.when(k == pl.num_programs(1) - 1)
    def _():
        h = jnp.maximum(h_acc[...] + b1_ref[0], 0.0)            # (Bp, 512) f32
        out8 = jnp.dot(h, w2_ref[0],
                       preferred_element_type=jnp.float32) + b2_ref[0]
        o_ref[0] = out8.astype(o_ref.dtype)                     # (Bp, 8)


def fused_fc_duel(flat, w1, b1, w2, b2, *, tk=2560):
    """flat:(B,5120) -> q:(B,7).

    fc1_adv|fc1_val (bf16 weight stream, f32 accumulate) + fc2_adv/fc2_val
    fused in one pallas_call; grid = (2 halves [parallel], K//tk [arbitrary]).
    Dueling combine is an 8-flop XLA epilogue.
    """
    B, K = flat.shape
    Kw, N1 = w1.shape
    assert Kw == K
    H = N1 // 2                                  # 512 per head
    A = 7                                        # actions
    Bp = max(8, -(-B // 8) * 8)                  # sublane-align batch
    if Bp != B:
        flat = jnp.pad(flat, ((0, Bp - B), (0, 0)))
    flat = flat.astype(jnp.bfloat16)             # bf16 activation stream
    assert K % tk == 0

    out = pl.pallas_call(
        _fc_duel_kernel,
        out_shape=jax.ShapeDtypeStruct((2, Bp, A + 1), jnp.float32),
        grid_spec=pltpu.PrefetchScalarGridSpec(
            num_scalar_prefetch=0,
            grid=(2, K // tk),
            in_specs=[
                pl.BlockSpec((Bp, tk), lambda j, k: (0, k)),      # bf16 acts
                pl.BlockSpec((tk, H), lambda j, k: (k, j)),       # bf16 fc1 half
                pl.BlockSpec((1, 1, H), lambda j, k: (j, 0, 0)),  # fc1 bias half
                pl.BlockSpec((1, H, A + 1), lambda j, k: (j, 0, 0)),  # fc2 half
                pl.BlockSpec((1, 1, A + 1), lambda j, k: (j, 0, 0)),  # fc2 bias
            ],
            out_specs=pl.BlockSpec((1, Bp, A + 1), lambda j, k: (j, 0, 0)),
            scratch_shapes=[pltpu.VMEM((Bp, H), jnp.float32)],
        ),
        compiler_params=pltpu.CompilerParams(
            dimension_semantics=("parallel", "arbitrary"),
        ),
    )(flat, w1, b1, w2, b2)

    adv = out[0, :B, :A]                         # (B, 7)
    val = out[1, :B, A:]                         # (B, 1)
    return val + adv - jnp.mean(adv, axis=1, keepdims=True)


# ----------------------------------------------------------------------------
# Glue: im2col patch extraction in NHWC (data rearrangement only; GEMMs above)
# ----------------------------------------------------------------------------
def im2col_nhwc(x, ksize, stride, pad):
    """x:(B,H,W,C) -> patches:(B*OH*OW, KH*KW*C), feature order (kh, kw, c)."""
    B, H, W, C = x.shape
    KH, KW = ksize
    SH, SW = stride
    PH, PW = pad
    OH = (H + 2 * PH - KH) // SH + 1
    OW = (W + 2 * PW - KW) // SW + 1
    xp = jnp.pad(x, ((0, 0), (PH, PH), (PW, PW), (0, 0)))
    cols = []
    for kh in range(KH):
        for kw in range(KW):
            cols.append(xp[:, kh:kh + SH * OH:SH, kw:kw + SW * OW:SW, :])
    patches = jnp.concatenate(cols, axis=-1)               # (B, OH, OW, KH*KW*C)
    return patches.reshape(B * OH * OW, KH * KW * C), OH, OW


# ----------------------------------------------------------------------------
# Parameters: synthetic torch-layout init + one-time kernel-ready preparation
# ----------------------------------------------------------------------------
def init_torch_params(key):
    """Deterministic synthetic params in the exact torch layouts."""
    ks = jax.random.split(key, 14)
    n = lambda k, s, sc: jax.random.normal(k, s, jnp.float32) * sc
    return {
        "conv1_w": n(ks[0], (32, 4, 10, 14), 0.04), "conv1_b": n(ks[1], (32,), 0.04),
        "conv2_w": n(ks[2], (64, 32, 4, 4), 0.04),  "conv2_b": n(ks[3], (64,), 0.04),
        "conv3_w": n(ks[4], (64, 64, 3, 3), 0.04),  "conv3_b": n(ks[5], (64,), 0.04),
        "fc1_adv_w": n(ks[6], (512, 5120), 0.01),   "fc1_adv_b": n(ks[7], (512,), 0.01),
        "fc1_val_w": n(ks[8], (512, 5120), 0.01),   "fc1_val_b": n(ks[9], (512,), 0.01),
        "fc2_adv_w": n(ks[10], (7, 512), 0.02),     "fc2_adv_b": n(ks[11], (7,), 0.02),
        "fc2_val_w": n(ks[12], (1, 512), 0.02),     "fc2_val_b": n(ks[13], (1,), 0.02),
    }


def prepare_params(tp):
    """One-time weight prep (no per-forward transposes).

    * Conv weights (OC,C,KH,KW) -> (KH*KW*C, OC) matching im2col_nhwc order.
    * fc1 weights: torch flattens NCHW as (C,H,W); permute columns to (H,W,C)
      (our NHWC flatten), transpose to (K,N), concat adv|val -> (5120, 1024)
      and cast to bf16 (the HBM-bound stream; accumulation stays f32).
    * fc2: per-half (2, 512, 8) weight: half 0 (adv) fills cols 0..6,
      half 1 (val) fills col 7.  Biases likewise split per half.
    """
    def conv_w(w):
        return jnp.transpose(w, (2, 3, 1, 0)).reshape(-1, w.shape[0])

    def fc1_w(w):  # (512, 5120), in-features ordered (C=64, H=8, W=10)
        w = w.reshape(512, 64, 8, 10).transpose(0, 2, 3, 1).reshape(512, 5120)
        return w.T  # (5120, 512), rows now in (H, W, C) order

    w1 = jnp.concatenate([fc1_w(tp["fc1_adv_w"]), fc1_w(tp["fc1_val_w"])],
                         axis=1).astype(jnp.bfloat16)          # (5120, 1024) bf16
    b1 = jnp.stack([tp["fc1_adv_b"], tp["fc1_val_b"]])[:, None, :]  # (2,1,512)

    w2 = jnp.zeros((2, 512, 8), jnp.float32)
    w2 = w2.at[0, :, :7].set(tp["fc2_adv_w"].T)
    w2 = w2.at[1, :, 7].set(tp["fc2_val_w"][0])
    b2 = jnp.zeros((2, 1, 8), jnp.float32)
    b2 = b2.at[0, 0, :7].set(tp["fc2_adv_b"])
    b2 = b2.at[1, 0, 7].set(tp["fc2_val_b"][0])

    return {
        "conv1_w": conv_w(tp["conv1_w"]), "conv1_b": tp["conv1_b"][None, :],
        "conv2_w": conv_w(tp["conv2_w"]), "conv2_b": tp["conv2_b"][None, :],
        "conv3_w": conv_w(tp["conv3_w"]), "conv3_b": tp["conv3_b"][None, :],
        "fc1_w": w1, "fc1_b": b1,
        "fc2_w": w2, "fc2_b": b2,
    }


# ----------------------------------------------------------------------------
# Forward pass (mirrors QNetwork.forward)
# ----------------------------------------------------------------------------
def qnetwork_forward(params, x):
    """x: NCHW (B,4,128,160), exactly like the torch module.  Returns (B,7)."""
    B = x.shape[0]
    h = jnp.transpose(x, (0, 2, 3, 1))                     # NHWC once, up front

    # conv1: 4 -> 32, kernel (10,14), stride (8,8), pad (1,4), + ReLU
    p, oh, ow = im2col_nhwc(h, (10, 14), (8, 8), (1, 4))
    h = conv_gemm_relu(p, params["conv1_w"], params["conv1_b"]).reshape(B, oh, ow, 32)

    # conv2: 32 -> 64, kernel 4, stride 2, pad 1, + ReLU
    p, oh, ow = im2col_nhwc(h, (4, 4), (2, 2), (1, 1))
    h = conv_gemm_relu(p, params["conv2_w"], params["conv2_b"]).reshape(B, oh, ow, 64)

    # conv3: 64 -> 64, kernel 3, stride 1, pad 1, + ReLU
    p, oh, ow = im2col_nhwc(h, (3, 3), (1, 1), (1, 1))
    h = conv_gemm_relu(p, params["conv3_w"], params["conv3_b"]).reshape(B, oh, ow, 64)

    # NHWC flatten; the (C,H,W)->(H,W,C) reorder is folded into fc1_w at prep.
    flat = h.reshape(B, -1)                                # (B, 5120)

    # fc1_adv + fc1_val + fc2_adv + fc2_val fused (dueling combine in epilogue).
    return fused_fc_duel(flat, params["fc1_w"], params["fc1_b"],
                         params["fc2_w"], params["fc2_b"])


# ----------------------------------------------------------------------------
# Pure-XLA reference (torch layouts) — validates the layout bookkeeping once.
# ----------------------------------------------------------------------------
def qnetwork_reference(tp, x):
    hp = lax.Precision.HIGHEST

    def conv(h, w, b, stride, pad):
        out = lax.conv_general_dilated(
            h, w, window_strides=stride,
            padding=[(pad[0], pad[0]), (pad[1], pad[1])],
            dimension_numbers=("NCHW", "OIHW", "NCHW"), precision=hp)
        return jnp.maximum(out + b[None, :, None, None], 0.0)

    h = conv(x, tp["conv1_w"], tp["conv1_b"], (8, 8), (1, 4))
    h = conv(h, tp["conv2_w"], tp["conv2_b"], (2, 2), (1, 1))
    h = conv(h, tp["conv3_w"], tp["conv3_b"], (1, 1), (1, 1))
    flat = h.reshape(h.shape[0], -1)
    adv = jnp.maximum(jnp.dot(flat, tp["fc1_adv_w"].T, precision=hp) + tp["fc1_adv_b"], 0.0)
    val = jnp.maximum(jnp.dot(flat, tp["fc1_val_w"].T, precision=hp) + tp["fc1_val_b"], 0.0)
    adv = jnp.dot(adv, tp["fc2_adv_w"].T, precision=hp) + tp["fc2_adv_b"]
    val = jnp.dot(val, tp["fc2_val_w"].T, precision=hp) + tp["fc2_val_b"]
    return val + adv - adv.mean(axis=1, keepdims=True)


if __name__ == "__main__":
    key = jax.random.PRNGKey(0)
    pkey, xkey = jax.random.split(key)
    torch_params = init_torch_params(pkey)
    params = prepare_params(torch_params)        # one-time prep, outside jit
    # Input spatial size (128, 160) is implied by fc1 in-features = 8*10*64.
    x = jax.random.normal(xkey, (2, 4, 128, 160), jnp.float32)

    q = jax.jit(qnetwork_forward)(params, x)
    q = jax.block_until_ready(q)
    assert q.shape == (2, 7) and q.dtype == jnp.float32
    assert bool(jnp.all(jnp.isfinite(q)))

    # One-shot equivalence check against the pure-XLA f32 reference.
    # Note: the fc1 path streams weights/activations in bf16 (f32 accumulate),
    # which perturbs q by ~1e-3 — well inside the 1e-2 tolerance.
    q_ref = jax.block_until_ready(jax.jit(qnetwork_reference)(torch_params, x))
    assert bool(jnp.allclose(q, q_ref, rtol=1e-2, atol=1e-2))

    print("KERNEL_OK")
</pallas_src>

<mosaic_0001>
module attributes {stable_mosaic.version = 11 : i64} {
  func.func @_conv_gemm_relu_kernel(%arg0: memref<640x560xf32, #tpu.memory_space<vmem>>, %arg1: memref<560x32xf32, #tpu.memory_space<vmem>>, %arg2: memref<1x32xf32, #tpu.memory_space<vmem>>, %arg3: memref<640x32xf32, #tpu.memory_space<vmem>>) attributes {dimension_semantics = [], scalar_prefetch = 0 : i64, scratch_operands = 0 : i64, tpu.core_type = #tpu.core_type<tc>} {
    %c0 = arith.constant 0 : index
    %c0_0 = arith.constant 0 : index
    %0 = vector.load %arg0[%c0, %c0_0] : memref<640x560xf32, #tpu.memory_space<vmem>>, vector<640x560xf32>
    %c0_1 = arith.constant 0 : index
    %c0_2 = arith.constant 0 : index
    %1 = vector.load %arg1[%c0_1, %c0_2] : memref<560x32xf32, #tpu.memory_space<vmem>>, vector<560x32xf32>
    %cst = arith.constant dense<0.000000e+00> : vector<640x32xf32>
    %2 = tpu.matmul %0, %1, %cst {dimension_numbers = #tpu.dot_dimension_numbers<[1], [0], [0], [1], [0, 0, 1, 1], [], []>} : vector<640x560xf32>, vector<560x32xf32>, vector<640x32xf32> -> vector<640x32xf32>
    %c0_3 = arith.constant 0 : index
    %c0_4 = arith.constant 0 : index
    %3 = vector.load %arg2[%c0_3, %c0_4] : memref<1x32xf32, #tpu.memory_space<vmem>>, vector<1x32xf32>
    %4 = vector.broadcast %3 : vector<1x32xf32> to vector<640x32xf32>
    %5 = arith.addf %2, %4 : vector<640x32xf32>
    %cst_5 = arith.constant 0.000000e+00 : f32
    %6 = vector.broadcast %cst_5 : f32 to vector<640x32xf32>
    %7 = arith.maximumf %5, %6 : vector<640x32xf32>
    %c0_6 = arith.constant 0 : index
    %c0_7 = arith.constant 0 : index
    %8 = vector.load %arg3[%c0_6, %c0_7] : memref<640x32xf32, #tpu.memory_space<vmem>>, vector<640x32xf32>
    tpu.vector_store %arg3[%c0_6, %c0_7], %7 {strides = array<i32>} : memref<640x32xf32, #tpu.memory_space<vmem>>, vector<640x32xf32>,
    return
  }
}

module attributes {stable_mosaic.version = 11 : i64} {
  func.func @_conv_gemm_relu_kernel(%arg0: memref<160x512xf32, #tpu.memory_space<vmem>>, %arg1: memref<512x64xf32, #tpu.memory_space<vmem>>, %arg2: memref<1x64xf32, #tpu.memory_space<vmem>>, %arg3: memref<160x64xf32, #tpu.memory_space<vmem>>) attributes {dimension_semantics = [], scalar_prefetch = 0 : i64, scratch_operands = 0 : i64, tpu.core_type = #tpu.core_type<tc>} {
    %c0 = arith.constant 0 : index
    %c0_0 = arith.constant 0 : index
    %0 = vector.load %arg0[%c0, %c0_0] : memref<160x512xf32, #tpu.memory_space<vmem>>, vector<160x512xf32>
    %c0_1 = arith.constant 0 : index
    %c0_2 = arith.constant 0 : index
    %1 = vector.load %arg1[%c0_1, %c0_2] : memref<512x64xf32, #tpu.memory_space<vmem>>, vector<512x64xf32>
    %cst = arith.constant dense<0.000000e+00> : vector<160x64xf32>
    %2 = tpu.matmul %0, %1, %cst {dimension_numbers = #tpu.dot_dimension_numbers<[1], [0], [0], [1], [0, 0, 1, 1], [], []>} : vector<160x512xf32>, vector<512x64xf32>, vector<160x64xf32> -> vector<160x64xf32>
    %c0_3 = arith.constant 0 : index
    %c0_4 = arith.constant 0 : index
    %3 = vector.load %arg2[%c0_3, %c0_4] : memref<1x64xf32, #tpu.memory_space<vmem>>, vector<1x64xf32>
    %4 = vector.broadcast %3 : vector<1x64xf32> to vector<160x64xf32>
    %5 = arith.addf %2, %4 : vector<160x64xf32>
    %cst_5 = arith.constant 0.000000e+00 : f32
    %6 = vector.broadcast %cst_5 : f32 to vector<160x64xf32>
    %7 = arith.maximumf %5, %6 : vector<160x64xf32>
    %c0_6 = arith.constant 0 : index
    %c0_7 = arith.constant 0 : index
    %8 = vector.load %arg3[%c0_6, %c0_7] : memref<160x64xf32, #tpu.memory_space<vmem>>, vector<160x64xf32>
    tpu.vector_store %arg3[%c0_6, %c0_7], %7 {strides = array<i32>} : memref<160x64xf32, #tpu.memory_space<vmem>>, vector<160x64xf32>,
    return
  }
}

module attributes {stable_mosaic.version = 11 : i64} {
  func.func @_conv_gemm_relu_kernel(%arg0: memref<160x576xf32, #tpu.memory_space<vmem>>, %arg1: memref<576x64xf32, #tpu.memory_space<vmem>>, %arg2: memref<1x64xf32, #tpu.memory_space<vmem>>, %arg3: memref<160x64xf32, #tpu.memory_space<vmem>>) attributes {dimension_semantics = [], scalar_prefetch = 0 : i64, scratch_operands = 0 : i64, tpu.core_type = #tpu.core_type<tc>} {
    %c0 = arith.constant 0 : index
    %c0_0 = arith.constant 0 : index
    %0 = vector.load %arg0[%c0, %c0_0] : memref<160x576xf32, #tpu.memory_space<vmem>>, vector<160x576xf32>
    %c0_1 = arith.constant 0 : index
    %c0_2 = arith.constant 0 : index
    %1 = vector.load %arg1[%c0_1, %c0_2] : memref<576x64xf32, #tpu.memory_space<vmem>>, vector<576x64xf32>
    %cst = arith.constant dense<0.000000e+00> : vector<160x64xf32>
    %2 = tpu.matmul %0, %1, %cst {dimension_numbers = #tpu.dot_dimension_numbers<[1], [0], [0], [1], [0, 0, 1, 1], [], []>} : vector<160x576xf32>, vector<576x64xf32>, vector<160x64xf32> -> vector<160x64xf32>
    %c0_3 = arith.constant 0 : index
    %c0_4 = arith.constant 0 : index
    %3 = vector.load %arg2[%c0_3, %c0_4] : memref<1x64xf32, #tpu.memory_space<vmem>>, vector<1x64xf32>
    %4 = vector.broadcast %3 : vector<1x64xf32> to vector<160x64xf32>
    %5 = arith.addf %2, %4 : vector<160x64xf32>
    %cst_5 = arith.constant 0.000000e+00 : f32
    %6 = vector.broadcast %cst_5 : f32 to vector<160x64xf32>
    %7 = arith.maximumf %5, %6 : vector<160x64xf32>
    %c0_6 = arith.constant 0 : index
    %c0_7 = arith.constant 0 : index
    %8 = vector.load %arg3[%c0_6, %c0_7] : memref<160x64xf32, #tpu.memory_space<vmem>>, vector<160x64xf32>
    tpu.vector_store %arg3[%c0_6, %c0_7], %7 {strides = array<i32>} : memref<160x64xf32, #tpu.memory_space<vmem>>, vector<160x64xf32>,
    return
  }
}

module attributes {stable_mosaic.version = 11 : i64} {
  func.func @_fc_duel_kernel(%arg0: i32, %arg1: i32, %arg2: memref<8x2560xbf16, #tpu.memory_space<vmem>>, %arg3: memref<2560x512xbf16, #tpu.memory_space<vmem>>, %arg4: memref<1x1x512xf32, #tpu.memory_space<vmem>>, %arg5: memref<1x512x8xf32, #tpu.memory_space<vmem>>, %arg6: memref<1x1x8xf32, #tpu.memory_space<vmem>>, %arg7: memref<1x8x8xf32, #tpu.memory_space<vmem>>, %arg8: memref<8x512xf32, #tpu.memory_space<vmem>>) attributes {dimension_semantics = [#tpu.dimension_semantics<parallel>, #tpu.dimension_semantics<arbitrary>], iteration_bounds = array<i64: 2, 2>, scalar_prefetch = 0 : i64, scratch_operands = 1 : i64, tpu.core_type = #tpu.core_type<tc>, window_params = [{transform_indices = @transform_0, window_bounds = array<i64: 8, 2560>}, {transform_indices = @transform_1, window_bounds = array<i64: 2560, 512>}, {transform_indices = @transform_2, window_bounds = array<i64: 1, 1, 512>}, {transform_indices = @transform_3, window_bounds = array<i64: 1, 512, 8>}, {transform_indices = @transform_4, window_bounds = array<i64: 1, 1, 8>}, {transform_indices = @transform_5, window_bounds = array<i64: 1, 8, 8>}]} {
    %c0_i32 = arith.constant 0 : i32
    %0 = arith.cmpi eq, %arg1, %c0_i32 : i32
    %1 = arith.extui %0 : i1 to i32
    %c0_i32_0 = arith.constant 0 : i32
    %2 = arith.cmpi ne, %1, %c0_i32_0 : i32
    scf.if %2 {
      %cst_9 = arith.constant 0.000000e+00 : f32
      %12 = vector.broadcast %cst_9 : f32 to vector<8x512xf32>
      %c0_10 = arith.constant 0 : index
      %c0_11 = arith.constant 0 : index
      %13 = vector.load %arg8[%c0_10, %c0_11] : memref<8x512xf32, #tpu.memory_space<vmem>>, vector<8x512xf32>
      tpu.vector_store %arg8[%c0_10, %c0_11], %12 {strides = array<i32>} : memref<8x512xf32, #tpu.memory_space<vmem>>, vector<8x512xf32>,
    } else {
    }
    %c0 = arith.constant 0 : index
    %c0_1 = arith.constant 0 : index
    %3 = vector.load %arg8[%c0, %c0_1] : memref<8x512xf32, #tpu.memory_space<vmem>>, vector<8x512xf32>
    %c0_2 = arith.constant 0 : index
    %c0_3 = arith.constant 0 : index
    %4 = vector.load %arg2[%c0_2, %c0_3] : memref<8x2560xbf16, #tpu.memory_space<vmem>>, vector<8x2560xbf16>
    %c0_4 = arith.constant 0 : index
    %c0_5 = arith.constant 0 : index
    %5 = vector.load %arg3[%c0_4, %c0_5] : memref<2560x512xbf16, #tpu.memory_space<vmem>>, vector<2560x512xbf16>
    %cst = arith.constant dense<0.000000e+00> : vector<8x512xf32>
    %6 = tpu.matmul %4, %5, %cst {dimension_numbers = #tpu.dot_dimension_numbers<[1], [0], [0], [1], [0, 0, 1, 1], [], []>} : vector<8x2560xbf16>, vector<2560x512xbf16>, vector<8x512xf32> -> vector<8x512xf32>
    %7 = arith.addf %3, %6 : vector<8x512xf32>
    %c0_6 = arith.constant 0 : index
    %c0_7 = arith.constant 0 : index
    %8 = vector.load %arg8[%c0_6, %c0_7] : memref<8x512xf32, #tpu.memory_space<vmem>>, vector<8x512xf32>
    tpu.vector_store %arg8[%c0_6, %c0_7], %7 {strides = array<i32>} : memref<8x512xf32, #tpu.memory_space<vmem>>, vector<8x512xf32>,
    %c1_i32 = arith.constant 1 : i32
    %9 = arith.cmpi eq, %arg1, %c1_i32 : i32
    %10 = arith.extui %9 : i1 to i32
    %c0_i32_8 = arith.constant 0 : i32
    %11 = arith.cmpi ne, %10, %c0_i32_8 : i32
    scf.if %11 {
      %c0_9 = arith.constant 0 : index
      %c0_10 = arith.constant 0 : index
      %12 = vector.load %arg8[%c0_9, %c0_10] : memref<8x512xf32, #tpu.memory_space<vmem>>, vector<8x512xf32>
      %c0_11 = arith.constant 0 : index
      %c0_12 = arith.constant 0 : index
      %c0_13 = arith.constant 0 : index
      %13 = vector.load %arg4[%c0_11, %c0_12, %c0_13] : memref<1x1x512xf32, #tpu.memory_space<vmem>>, vector<1x1x512xf32>
      %14 = vector.shape_cast %13 : vector<1x1x512xf32> to vector<1x512xf32>
      %15 = vector.broadcast %14 : vector<1x512xf32> to vector<8x512xf32>
      %16 = arith.addf %12, %15 : vector<8x512xf32>
      %cst_14 = arith.constant 0.000000e+00 : f32
      %17 = vector.broadcast %cst_14 : f32 to vector<8x512xf32>
      %18 = arith.maximumf %16, %17 : vector<8x512xf32>
      %c0_15 = arith.constant 0 : index
      %c0_16 = arith.constant 0 : index
      %c0_17 = arith.constant 0 : index
      %19 = vector.load %arg5[%c0_15, %c0_16, %c0_17] : memref<1x512x8xf32, #tpu.memory_space<vmem>>, vector<1x512x8xf32>
      %20 = vector.shape_cast %19 : vector<1x512x8xf32> to vector<512x8xf32>
      %cst_18 = arith.constant dense<0.000000e+00> : vector<8x8xf32>
      %21 = tpu.matmul %18, %20, %cst_18 {dimension_numbers = #tpu.dot_dimension_numbers<[1], [0], [0], [1], [0, 0, 1, 1], [], []>} : vector<8x512xf32>, vector<512x8xf32>, vector<8x8xf32> -> vector<8x8xf32>
      %c0_19 = arith.constant 0 : index
      %c0_20 = arith.constant 0 : index
      %c0_21 = arith.constant 0 : index
      %22 = vector.load %arg6[%c0_19, %c0_20, %c0_21] : memref<1x1x8xf32, #tpu.memory_space<vmem>>, vector<1x1x8xf32>
      %23 = vector.shape_cast %22 : vector<1x1x8xf32> to vector<1x8xf32>
      %24 = vector.broadcast %23 : vector<1x8xf32> to vector<8x8xf32>
      %25 = arith.addf %21, %24 : vector<8x8xf32>
      %c0_22 = arith.constant 0 : index
      %c0_23 = arith.constant 0 : index
      %c0_24 = arith.constant 0 : index
      %26 = vector.load %arg7[%c0_22, %c0_23, %c0_24] : memref<1x8x8xf32, #tpu.memory_space<vmem>>, vector<1x8x8xf32>
      %27 = vector.shape_cast %26 : vector<1x8x8xf32> to vector<8x8xf32>
      %28 = vector.shape_cast %25 : vector<8x8xf32> to vector<1x8x8xf32>
      tpu.vector_store %arg7[%c0_22, %c0_23, %c0_24], %28 {strides = array<i32>} : memref<1x8x8xf32, #tpu.memory_space<vmem>>, vector<1x8x8xf32>,
    } else {
    }
    return
  }
  func.func @transform_0(%arg0: i32, %arg1: i32) -> (i32, i32) {
    %c0_i32 = arith.constant 0 : i32
    %c0_i32_0 = arith.constant 0 : i32
    return %c0_i32, %arg1 : i32, i32
  }
  func.func @transform_1(%arg0: i32, %arg1: i32) -> (i32, i32) {
    %c0_i32 = arith.constant 0 : i32
    return %arg1, %arg0 : i32, i32
  }
  func.func @transform_2(%arg0: i32, %arg1: i32) -> (i32, i32, i32) {
    %c0_i32 = arith.constant 0 : i32
    %c0_i32_0 = arith.constant 0 : i32
    %c0_i32_1 = arith.constant 0 : i32
    return %arg0, %c0_i32, %c0_i32_0 : i32, i32, i32
  }
  func.func @transform_3(%arg0: i32, %arg1: i32) -> (i32, i32, i32) {
    %c0_i32 = arith.constant 0 : i32
    %c0_i32_0 = arith.constant 0 : i32
    %c0_i32_1 = arith.constant 0 : i32
    return %arg0, %c0_i32, %c0_i32_0 : i32, i32, i32
  }
  func.func @transform_4(%arg0: i32, %arg1: i32) -> (i32, i32, i32) {
    %c0_i32 = arith.constant 0 : i32
    %c0_i32_0 = arith.constant 0 : i32
    %c0_i32_1 = arith.constant 0 : i32
    return %arg0, %c0_i32, %c0_i32_0 : i32, i32, i32
  }
  func.func @transform_5(%arg0: i32, %arg1: i32) -> (i32, i32, i32) {
    %c0_i32 = arith.constant 0 : i32
    %c0_i32_0 = arith.constant 0 : i32
    %c0_i32_1 = arith.constant 0 : i32
    return %arg0, %c0_i32, %c0_i32_0 : i32, i32, i32
  }
}

</mosaic_0001>

<bundles_post_ra>
// kernel: qnetwork_forward.4
= control target key start
LH: loop header
LB: loop body
LE: loop exit
PB: predicated region body
PF: predicated region fallthrough
CT: control target
= control target key end

     0   :  { %v2657_v0 = vmov 0.0   ;;  %vm491_vm0 = vcmask 392192   ;;  %vm2207_vm1 = vcmask 261120   ;;  %s5124_s1 = inlined_call_operand.vmem [shape: f32[560,32], index: 1, kind: input, shape index: {}]   ;;  %s5125_s0 = inlined_call_operand.vmem [shape: f32[640,560], index: 0, kind: input, shape index: {}]   ;;  %s5126_s2 = inlined_call_operand.vmem [shape: f32[1,32], index: 2, kind: input, shape index: {}]   ;;  %s5127_s3 = inlined_call_operand.vmem [shape: f32[640,32], index: 3, kind: output, shape index: {}]  }
   0x1   :  { %732 = vmatprep.subr.mxu0 %v2657_v0  ;;  %2591 = vmatprep.subr.mxu1 %v2657_v0  ;;  %v429_v1 = vld [vmem:[%s5124_s1 + $0x78] sm:$0xff]  ;;  %v428_v2 = vld [vmem:[%s5124_s1 + $0x70] sm:$0xff]  ;;  %v427_v3 = vld [vmem:[%s5124_s1 + $0x68] sm:$0xff] }
   0x2   :  { %733 = vmatpush1.msra.mxu0 %v429_v1  ;;  %2623 = vmatpush1.msra.mxu1 %v429_v1  ;;  %v426_v4 = vld [vmem:[%s5124_s1 + $0x60] sm:$0xff]  ;;  %v425_v5 = vld [vmem:[%s5124_s1 + $0x58] sm:$0xff]  ;;  %v424_v6 = vld [vmem:[%s5124_s1 + $0x50] sm:$0xff] }
   0x3   :  { %734 = vmatprep.subr.mxu0 %v2657_v0  ;;  %2592 = vmatprep.subr.mxu1 %v2657_v0  ;;  %v423_v7 = vld [vmem:[%s5124_s1 + $0x48] sm:$0xff]  ;;  %v422_v8 = vld [vmem:[%s5124_s1 + $0x40] sm:$0xff]  ;;  %v421_v9 = vld [vmem:[%s5124_s1 + $0x38] sm:$0xff] }
   0x4   :  { %735 = vmatpush1.msra.mxu0 %v428_v2  ;;  %2624 = vmatpush1.msra.mxu1 %v428_v2  ;;  %v420_v10 = vld [vmem:[%s5124_s1 + $0x30] sm:$0xff]  ;;  %v419_v11 = vld [vmem:[%s5124_s1 + $0x28] sm:$0xff]  ;;  %v418_v12 = vld [vmem:[%s5124_s1 + $0x20] sm:$0xff] }
   0x5   :  { %736 = vmatprep.subr.mxu0 %v2657_v0  ;;  %2593 = vmatprep.subr.mxu1 %v2657_v0  ;;  %v417_v13 = vld [vmem:[%s5124_s1 + $0x18] sm:$0xff]  ;;  %v416_v14 = vld [vmem:[%s5124_s1 + $0x10] sm:$0xff]  ;;  %v415_v15 = vld [vmem:[%s5124_s1 + $0x8] sm:$0xff] }
   0x6   :  { %737 = vmatpush1.msra.mxu0 %v427_v3  ;;  %2625 = vmatpush1.msra.mxu1 %v427_v3  ;;  %v414_v16 = vld [vmem:[%s5124_s1] sm:$0xff]  ;;  %v445_v17 = vld [vmem:[%s5124_s1 + $0xf8] sm:$0xff]  ;;  %v444_v18 = vld [vmem:[%s5124_s1 + $0xf0] sm:$0xff] }
   0x7   :  { %738 = vmatprep.subr.mxu0 %v2657_v0  ;;  %2594 = vmatprep.subr.mxu1 %v2657_v0  ;;  %v443_v19 = vld [vmem:[%s5124_s1 + $0xe8] sm:$0xff]  ;;  %v442_v20 = vld [vmem:[%s5124_s1 + $0xe0] sm:$0xff]  ;;  %v441_v21 = vld [vmem:[%s5124_s1 + $0xd8] sm:$0xff] }
   0x8   :  { %739 = vmatpush1.msra.mxu0 %v426_v4  ;;  %2626 = vmatpush1.msra.mxu1 %v426_v4  ;;  %v440_v22 = vld [vmem:[%s5124_s1 + $0xd0] sm:$0xff]  ;;  %v439_v23 = vld [vmem:[%s5124_s1 + $0xc8] sm:$0xff]  ;;  %v438_v24 = vld [vmem:[%s5124_s1 + $0xc0] sm:$0xff] }
   0x9   :  { %740 = vmatprep.subr.mxu0 %v2657_v0  ;;  %2595 = vmatprep.subr.mxu1 %v2657_v0  ;;  %v437_v25 = vld [vmem:[%s5124_s1 + $0xb8] sm:$0xff]  ;;  %v436_v26 = vld [vmem:[%s5124_s1 + $0xb0] sm:$0xff]  ;;  %v435_v27 = vld [vmem:[%s5124_s1 + $0xa8] sm:$0xff] }
   0xa   :  { %741 = vmatpush1.msra.mxu0 %v425_v5  ;;  %2627 = vmatpush1.msra.mxu1 %v425_v5  ;;  %v434_v28 = vld [vmem:[%s5124_s1 + $0xa0] sm:$0xff]  ;;  %v433_v29 = vld [vmem:[%s5124_s1 + $0x98] sm:$0xff]  ;;  %v432_v30 = vld [vmem:[%s5124_s1 + $0x90] sm:$0xff] }
   0xb   :  { %742 = vmatprep.subr.mxu0 %v2657_v0  ;;  %2596 = vmatprep.subr.mxu1 %v2657_v0  ;;  %v431_v31 = vld [vmem:[%s5124_s1 + $0x88] sm:$0xff]  ;;  %v430_v32 = vld [vmem:[%s5124_s1 + $0x80] sm:$0xff]  ;;  %v461_v38 = vld [vmem:[%s5124_s1 + $0x178] sm:$0xff] }
   0xc   :  { %743 = vmatpush1.msra.mxu0 %v424_v6  ;;  %2628 = vmatpush1.msra.mxu1 %v424_v6  ;;  %v15_v33 = vld [vmem:[%s5125_s0 + $0x8] sm:$0xff]  ;;  %v14_v35 = vld [vmem:[%s5125_s0] sm:$0xff]  ;;  %v20_v39 = vld [vmem:[%s5125_s0 + $0x30] sm:$0xff] }
   0xd   :  { %744 = vmatprep.subr.mxu0 %v2657_v0  ;;  %2597 = vmatprep.subr.mxu1 %v2657_v0  ;;  %v315_v34 = vld [vmem:[%s5125_s0 + $0x968] sm:$0xff]  ;;  %v314_v36 = vld [vmem:[%s5125_s0 + $0x960] sm:$0xff]  ;;  %v320_v40 = vld [vmem:[%s5125_s0 + $0x990] sm:$0xff] }
   0xe   :  { %745 = vmatpush1.msra.mxu0 %v423_v7  ;;  %2629 = vmatpush1.msra.mxu1 %v423_v7  ;;  %v483_v37 = vld [vmem:[%s5124_s1 + $0x228] sm:$0xff]  ;;  %v25_v43 = vld [vmem:[%s5125_s0 + $0x58] sm:$0xff]  ;;  %v460_v44 = vld [vmem:[%s5124_s1 + $0x170] sm:$0xff] }
   0xf   :  { %746 = vmatprep.subr.mxu0 %v2657_v0  ;;  %2598 = vmatprep.subr.mxu1 %v2657_v0  ;;  %v19_v41 = vld [vmem:[%s5125_s0 + $0x28] sm:$0xff]  ;;  %v325_v45 = vld [vmem:[%s5125_s0 + $0x9b8] sm:$0xff]  ;;  %v482_v46 = vld [vmem:[%s5124_s1 + $0x220] sm:$0xff] }
  0x10   :  { %747 = vmatpush1.msra.mxu0 %v422_v8  ;;  %2630 = vmatpush1.msra.mxu1 %v422_v8  ;;  %v319_v42 = vld [vmem:[%s5125_s0 + $0x988] sm:$0xff]  ;;  %v24_v48 = vld [vmem:[%s5125_s0 + $0x50] sm:$0xff]  ;;  %v458_v50 = vld [vmem:[%s5124_s1 + $0x160] sm:$0xff] }
  0x11   :  { %748 = vmatprep.subr.mxu0 %v2657_v0  ;;  %2599 = vmatprep.subr.mxu1 %v2657_v0  ;;  %v459_v47 = vld [vmem:[%s5124_s1 + $0x168] sm:$0xff]  ;;  %v324_v49 = vld [vmem:[%s5125_s0 + $0x9b0] sm:$0xff]  ;;  %v30_v51 = vld [vmem:[%s5125_s0 + $0x80] sm:$0xff] }
  0x12   :  { %749 = vmatpush1.msra.mxu0 %v421_v9  ;;  %2631 = vmatpush1.msra.mxu1 %v421_v9  ;;  %v330_v52 = vld [vmem:[%s5125_s0 + $0x9e0] sm:$0xff]  ;;  %v457_v53 = vld [vmem:[%s5124_s1 + $0x158] sm:$0xff]  ;;  %v456_v56 = vld [vmem:[%s5124_s1 + $0x150] sm:$0xff] }
  0x13   :  { %750 = vmatprep.subr.mxu0 %v2657_v0  ;;  %2600 = vmatprep.subr.mxu1 %v2657_v0  ;;  %v29_v54 = vld [vmem:[%s5125_s0 + $0x78] sm:$0xff]  ;;  %v35_v57 = vld [vmem:[%s5125_s0 + $0xa8] sm:$0xff]  ;;  %v34_v59 = vld [vmem:[%s5125_s0 + $0xa0] sm:$0xff] }
  0x14   :  { %751 = vmatpush1.msra.mxu0 %v420_v10  ;;  %2632 = vmatpush1.msra.mxu1 %v420_v10  ;;  %v329_v55 = vld [vmem:[%s5125_s0 + $0x9d8] sm:$0xff]  ;;  %v335_v58 = vld [vmem:[%s5125_s0 + $0xa08] sm:$0xff]  ;;  %v334_v61 = vld [vmem:[%s5125_s0 + $0xa00] sm:$0xff] }
  0x15   :  { %752 = vmatprep.subr.mxu0 %v2657_v0  ;;  %2601 = vmatprep.subr.mxu1 %v2657_v0  ;;  %v455_v60 = vld [vmem:[%s5124_s1 + $0x148] sm:$0xff]  ;;  %v40_v62 = vld [vmem:[%s5125_s0 + $0xd0] sm:$0xff]  ;;  %v454_v1 = vld [vmem:[%s5124_s1 + $0x140] sm:$0xff] }
  0x16   :  { %753 = vmatpush1.msra.mxu0 %v419_v11  ;;  %2633 = vmatpush1.msra.mxu1 %v419_v11  ;;  %v340_v63 = vld [vmem:[%s5125_s0 + $0xa30] sm:$0xff]  ;;  %v39_v2 = vld [vmem:[%s5125_s0 + $0xc8] sm:$0xff]  ;;  %v45_v4 = vld [vmem:[%s5125_s0 + $0xf8] sm:$0xff] }
  0x17   :  { %754 = vmatprep.subr.mxu0 %v2657_v0  ;;  %2602 = vmatprep.subr.mxu1 %v2657_v0  ;;  %v339_v3 = vld [vmem:[%s5125_s0 + $0xa28] sm:$0xff]  ;;  %v453_v5 = vld [vmem:[%s5124_s1 + $0x138] sm:$0xff]  ;;  %v44_v8 = vld [vmem:[%s5125_s0 + $0xf0] sm:$0xff] }
  0x18   :  { %755 = vmatpush1.msra.mxu0 %v418_v12  ;;  %2634 = vmatpush1.msra.mxu1 %v418_v12  ;;  %v345_v6 = vld [vmem:[%s5125_s0 + $0xa58] sm:$0xff]  ;;  %v452_v9 = vld [vmem:[%s5124_s1 + $0x130] sm:$0xff]  ;;  %v451_v11 = vld [vmem:[%s5124_s1 + $0x128] sm:$0xff] }
  0x19   :  { %756 = vmatprep.subr.mxu0 %v2657_v0  ;;  %2603 = vmatprep.subr.mxu1 %v2657_v0  ;;  %v481_v7 = vld [vmem:[%s5124_s1 + $0x218] sm:$0xff]  ;;  %v344_v10 = vld [vmem:[%s5125_s0 + $0xa50] sm:$0xff]  ;;  %v50_v12 = vld [vmem:[%s5125_s0 + $0x120] sm:$0xff] }
  0x1a   :  { %757 = vmatpush1.msra.mxu0 %v417_v13  ;;  %2635 = vmatpush1.msra.mxu1 %v417_v13  ;;  %v350_v13 = vld [vmem:[%s5125_s0 + $0xa80] sm:$0xff] }
  0x1b   :  { %758 = vmatprep.subr.mxu0 %v2657_v0  ;;  %2604 = vmatprep.subr.mxu1 %v2657_v0 }
  0x1c   :  { %759 = vmatpush1.msra.mxu0 %v416_v14  ;;  %2636 = vmatpush1.msra.mxu1 %v416_v14  ;;  %v49_v14 = vld [vmem:[%s5125_s0 + $0x118] sm:$0xff] }
  0x1d   :  { %760 = vmatprep.subr.mxu0 %v2657_v0  ;;  %2605 = vmatprep.subr.mxu1 %v2657_v0 }
  0x1e   :  { %761 = vmatpush1.msra.mxu0 %v415_v15  ;;  %2637 = vmatpush1.msra.mxu1 %v415_v15  ;;  %v450_v15 = vld [vmem:[%s5124_s1 + $0x120] sm:$0xff] }
  0x1f   :  { %762 = vmatprep.subr.mxu0 %v2657_v0  ;;  %2606 = vmatprep.subr.mxu1 %v2657_v0 }
  0x20   :  { %763 = vmatpush1.msra.mxu0 %v414_v16  ;;  %2638 = vmatpush1.msra.mxu1 %v414_v16  ;;  %v349_v16 = vld [vmem:[%s5125_s0 + $0xa78] sm:$0xff] }
  0x21   :  { %764 = vmatprep.subr.mxu0 %v2657_v0  ;;  %2607 = vmatprep.subr.mxu1 %v2657_v0 }
  0x22   :  { %765 = vmatpush2.msra.mxu0 %v445_v17  ;;  %2639 = vmatpush2.msra.mxu1 %v445_v17  ;;  %v55_v17 = vld [vmem:[%s5125_s0 + $0x148] sm:$0xff] }
  0x23   :  { %766 = vmatprep.subr.mxu0 %v2657_v0  ;;  %2608 = vmatprep.subr.mxu1 %v2657_v0 }
  0x24   :  { %767 = vmatpush2.msra.mxu0 %v444_v18  ;;  %2640 = vmatpush2.msra.mxu1 %v444_v18  ;;  %v355_v18 = vld [vmem:[%s5125_s0 + $0xaa8] sm:$0xff] }
  0x25   :  { %768 = vmatprep.subr.mxu0 %v2657_v0  ;;  %2609 = vmatprep.subr.mxu1 %v2657_v0 }
  0x26   :  { %769 = vmatpush2.msra.mxu0 %v443_v19  ;;  %2641 = vmatpush2.msra.mxu1 %v443_v19  ;;  %v449_v19 = vld [vmem:[%s5124_s1 + $0x118] sm:$0xff] }
  0x27   :  { %770 = vmatprep.subr.mxu0 %v2657_v0  ;;  %2610 = vmatprep.subr.mxu1 %v2657_v0 }
  0x28   :  { %771 = vmatpush2.msra.mxu0 %v442_v20  ;;  %2642 = vmatpush2.msra.mxu1 %v442_v20  ;;  %v54_v20 = vld [vmem:[%s5125_s0 + $0x140] sm:$0xff] }
  0x29   :  { %772 = vmatprep.subr.mxu0 %v2657_v0  ;;  %2611 = vmatprep.subr.mxu1 %v2657_v0 }
  0x2a   :  { %773 = vmatpush2.msra.mxu0 %v441_v21  ;;  %2643 = vmatpush2.msra.mxu1 %v441_v21  ;;  %v354_v21 = vld [vmem:[%s5125_s0 + $0xaa0] sm:$0xff] }
  0x2b   :  { %774 = vmatprep.subr.mxu0 %v2657_v0  ;;  %2612 = vmatprep.subr.mxu1 %v2657_v0 }
  0x2c   :  { %775 = vmatpush2.msra.mxu0 %v440_v22  ;;  %2644 = vmatpush2.msra.mxu1 %v440_v22  ;;  %v60_v22 = vld [vmem:[%s5125_s0 + $0x170] sm:$0xff] }
  0x2d   :  { %776 = vmatprep.subr.mxu0 %v2657_v0  ;;  %2613 = vmatprep.subr.mxu1 %v2657_v0 }
  0x2e   :  { %777 = vmatpush2.msra.mxu0 %v439_v23  ;;  %2645 = vmatpush2.msra.mxu1 %v439_v23  ;;  %v448_v23 = vld [vmem:[%s5124_s1 + $0x110] sm:$0xff] }
  0x2f   :  { %778 = vmatprep.subr.mxu0 %v2657_v0  ;;  %2614 = vmatprep.subr.mxu1 %v2657_v0 }
  0x30   :  { %779 = vmatpush2.msra.mxu0 %v438_v24  ;;  %2646 = vmatpush2.msra.mxu1 %v438_v24  ;;  %v360_v24 = vld [vmem:[%s5125_s0 + $0xad0] sm:$0xff] }
  0x31   :  { %780 = vmatprep.subr.mxu0 %v2657_v0  ;;  %2615 = vmatprep.subr.mxu1 %v2657_v0 }
  0x32   :  { %781 = vmatpush2.msra.mxu0 %v437_v25  ;;  %2647 = vmatpush2.msra.mxu1 %v437_v25  ;;  %v480_v25 = vld [vmem:[%s5124_s1 + $0x210] sm:$0xff] }
  0x33   :  { %782 = vmatprep.subr.mxu0 %v2657_v0  ;;  %2616 = vmatprep.subr.mxu1 %v2657_v0 }
  0x34   :  { %783 = vmatpush2.msra.mxu0 %v436_v26  ;;  %2648 = vmatpush2.msra.mxu1 %v436_v26  ;;  %v59_v26 = vld [vmem:[%s5125_s0 + $0x168] sm:$0xff] }
  0x35   :  { %784 = vmatprep.subr.mxu0 %v2657_v0  ;;  %2617 = vmatprep.subr.mxu1 %v2657_v0 }
  0x36   :  { %785 = vmatpush2.msra.mxu0 %v435_v27  ;;  %2649 = vmatpush2.msra.mxu1 %v435_v27  ;;  %v447_v27 = vld [vmem:[%s5124_s1 + $0x108] sm:$0xff] }
  0x37   :  { %786 = vmatprep.subr.mxu0 %v2657_v0  ;;  %2618 = vmatprep.subr.mxu1 %v2657_v0 }
  0x38   :  { %787 = vmatpush2.msra.mxu0 %v434_v28  ;;  %2650 = vmatpush2.msra.mxu1 %v434_v28  ;;  %v359_v28 = vld [vmem:[%s5125_s0 + $0xac8] sm:$0xff] }
  0x39   :  { %788 = vmatprep.subr.mxu0 %v2657_v0  ;;  %2619 = vmatprep.subr.mxu1 %v2657_v0 }
  0x3a   :  { %789 = vmatpush2.msra.mxu0 %v433_v29  ;;  %2651 = vmatpush2.msra.mxu1 %v433_v29  ;;  %v65_v29 = vld [vmem:[%s5125_s0 + $0x198] sm:$0xff] }
  0x3b   :  { %790 = vmatprep.subr.mxu0 %v2657_v0  ;;  %2620 = vmatprep.subr.mxu1 %v2657_v0 }
  0x3c   :  { %791 = vmatpush2.msra.mxu0 %v432_v30  ;;  %2652 = vmatpush2.msra.mxu1 %v432_v30  ;;  %v365_v30 = vld [vmem:[%s5125_s0 + $0xaf8] sm:$0xff] }
  0x3d   :  { %792 = vmatprep.subr.mxu0 %v2657_v0  ;;  %2621 = vmatprep.subr.mxu1 %v2657_v0 }
  0x3e   :  { %793 = vmatpush2.msra.mxu0 %v431_v31  ;;  %2653 = vmatpush2.msra.mxu1 %v431_v31  ;;  %v446_v31 = vld [vmem:[%s5124_s1 + $0x100] sm:$0xff] }
  0x3f   :  { %794 = vmatprep.subr.mxu0 %v2657_v0  ;;  %2622 = vmatprep.subr.mxu1 %v2657_v0 }
  0x40   :  { %795 = vmatpush2.msra.mxu0 %v430_v32  ;;  %2654 = vmatpush2.msra.mxu1 %v430_v32  ;;  %v64_v32 = vld [vmem:[%s5125_s0 + $0x190] sm:$0xff] }
  0x41   :  { %796 = vmatprep.mubr.f32.mxu0 %v15_v33  ;;  %1096 = vmatprep.mubr.f32.mxu1 %v315_v34  ;;  %v364_v33 = vld [vmem:[%s5125_s0 + $0xaf0] sm:$0xff]  ;;  %v70_v34 = vld [vmem:[%s5125_s0 + $0x1c0] sm:$0xff] }
  0x42   :  { %797 = vmatmul.mubr.f32.vlgmr.msra.gmra.mxu0 %v14_v35  ;;  %1097 = vmatmul.mubr.f32.vlgmr.msra.gmra.mxu1 %v314_v36  ;;  %v477_v35 = vld [vmem:[%s5124_s1 + $0x1f8] sm:$0xff]  ;;  %v370_v36 = vld [vmem:[%s5125_s0 + $0xb20] sm:$0xff] }
  0x43   :  { %1197 = vmatprep.subr.mxu1 %v2657_v0  ;;  %2459 = vmatprep.subr.mxu0 %v483_v37 }
  0x44   :  { %1198 = vmatpush1.msra.mxu1 %v461_v38  ;;  %2460 = vmatpush3.msra.mxu0 %v483_v37  ;;  %v479_v37 = vld [vmem:[%s5124_s1 + $0x208] sm:$0xff]  ;;  %v69_v38 = vld [vmem:[%s5125_s0 + $0x1b8] sm:$0xff] }
  0x45   :  { %801 = vmatprep.mubr.f32.mxu0 %v20_v39  ;;  %1101 = vmatprep.mubr.f32.mxu1 %v320_v40  ;;  %v476_v39 = vld [vmem:[%s5124_s1 + $0x1f0] sm:$0xff]  ;;  %v369_v40 = vld [vmem:[%s5125_s0 + $0xb18] sm:$0xff] }
  0x46   :  { %1199 = vmatprep.subr.mxu1 %v2657_v0  ;;  %802 = vmatmul.mubr.f32.gmra.mxu0 %v19_v41  ;;  %v475_v41 = vld [vmem:[%s5124_s1 + $0x1e8] sm:$0xff] }
  0x47   :  { %1102 = vmatmul.mubr.f32.gmra.mxu1 %v319_v42  ;;  %806 = vmatprep.mubr.f32.mxu0 %v25_v43  ;;  %v75_v42 = vld [vmem:[%s5125_s0 + $0x1e8] sm:$0xff] }
  0x48   :  { %1200 = vmatpush1.msra.mxu1 %v460_v44  ;;  %1106 = vmatprep.mubr.f32.mxu1 %v325_v45  ;;  %v375_v43 = vld [vmem:[%s5125_s0 + $0xb48] sm:$0xff]  ;;  %v74_v44 = vld [vmem:[%s5125_s0 + $0x1e0] sm:$0xff] }
  0x49   :  { %1201 = vmatprep.subr.mxu1 %v2657_v0  ;;  %2461 = vmatprep.subr.mxu0 %v482_v46  ;;  %v474_v45 = vld [vmem:[%s5124_s1 + $0x1e0] sm:$0xff] }
  0x4a   :  { %1202 = vmatpush1.msra.mxu1 %v459_v47  ;;  %807 = vmatmul.mubr.f32.gmra.mxu0 %v24_v48  ;;  %v80_v47 = vld [vmem:[%s5125_s0 + $0x210] sm:$0xff] }
  0x4b   :  { %1107 = vmatmul.mubr.f32.gmra.mxu1 %v324_v49  ;;  %1203 = vmatprep.subr.mxu1 %v2657_v0  ;;  %v380_v48 = vld [vmem:[%s5125_s0 + $0xb70] sm:$0xff]  ;;  %v473_v49 = vld [vmem:[%s5124_s1 + $0x1d8] sm:$0xff] }
  0x4c   :  { %1204 = vmatpush1.msra.mxu1 %v458_v50  ;;  %811 = vmatprep.mubr.f32.mxu0 %v30_v51  ;;  %v79_v50 = vld [vmem:[%s5125_s0 + $0x208] sm:$0xff] }
  0x4d   :  { %1205 = vmatprep.subr.mxu1 %v2657_v0  ;;  %1111 = vmatprep.mubr.f32.mxu1 %v330_v52  ;;  %v379_v51 = vld [vmem:[%s5125_s0 + $0xb68] sm:$0xff]  ;;  %v85_v52 = vld [vmem:[%s5125_s0 + $0x238] sm:$0xff] }
  0x4e   :  { %1206 = vmatpush1.msra.mxu1 %v457_v53  ;;  %812 = vmatmul.mubr.f32.gmra.mxu0 %v29_v54  ;;  %v472_v53 = vld [vmem:[%s5124_s1 + $0x1d0] sm:$0xff]  ;;  %v385_v54 = vld [vmem:[%s5125_s0 + $0xb98] sm:$0xff] }
  0x4f   :  { %1112 = vmatmul.mubr.f32.gmra.mxu1 %v329_v55  ;;  %1207 = vmatprep.subr.mxu1 %v2657_v0  ;;  %v84_v55 = vld [vmem:[%s5125_s0 + $0x230] sm:$0xff] }
  0x50   :  { %1208 = vmatpush1.msra.mxu1 %v456_v56  ;;  %816 = vmatprep.mubr.f32.mxu0 %v35_v57  ;;  %v471_v56 = vld [vmem:[%s5124_s1 + $0x1c8] sm:$0xff]  ;;  %v384_v57 = vld [vmem:[%s5125_s0 + $0xb90] sm:$0xff] }
  0x51   :  { %1116 = vmatprep.mubr.f32.mxu1 %v335_v58  ;;  %1209 = vmatprep.subr.mxu1 %v2657_v0  ;;  %v90_v58 = vld [vmem:[%s5125_s0 + $0x260] sm:$0xff] }
  0x52   :  { %817 = vmatmul.mubr.f32.gmra.mxu0 %v34_v59  ;;  %1210 = vmatpush1.msra.mxu1 %v455_v60  ;;  %v390_v59 = vld [vmem:[%s5125_s0 + $0xbc0] sm:$0xff] }
  0x53   :  { %1117 = vmatmul.mubr.f32.gmra.mxu1 %v334_v61  ;;  %1211 = vmatprep.subr.mxu1 %v2657_v0  ;;  %v470_v60 = vld [vmem:[%s5124_s1 + $0x1c0] sm:$0xff]  ;;  %v89_v61 = vld [vmem:[%s5125_s0 + $0x258] sm:$0xff] }
  0x54   :  { %821 = vmatprep.mubr.f32.mxu0 %v40_v62  ;;  %1121 = vmatprep.mubr.f32.mxu1 %v340_v63  ;;  %v389_v62 = vld [vmem:[%s5125_s0 + $0xbb8] sm:$0xff]  ;;  %v95_v63 = vld [vmem:[%s5125_s0 + $0x288] sm:$0xff] }
  0x55   :  { %1212 = vmatpush1.msra.mxu1 %v454_v1  ;;  %2462 = vmatpush3.msra.mxu0 %v482_v46  ;;  %v374_v46 = vld [vmem:[%s5125_s0 + $0xb40] sm:$0xff]  ;;  %v469_v1 = vld [vmem:[%s5124_s1 + $0x1b8] sm:$0xff] }
  0x56   :  { %822 = vmatmul.mubr.f32.gmra.mxu0 %v39_v2  ;;  %1213 = vmatprep.subr.mxu1 %v2657_v0  ;;  %v395_v2 = vld [vmem:[%s5125_s0 + $0xbe8] sm:$0xff] }
  0x57   :  { %1122 = vmatmul.mubr.f32.gmra.mxu1 %v339_v3  ;;  %826 = vmatprep.mubr.f32.mxu0 %v45_v4  ;;  %v94_v3 = vld [vmem:[%s5125_s0 + $0x280] sm:$0xff]  ;;  %v468_v4 = vld [vmem:[%s5124_s1 + $0x1b0] sm:$0xff] }
  0x58   :  { %1214 = vmatpush1.msra.mxu1 %v453_v5  ;;  %1126 = vmatprep.mubr.f32.mxu1 %v345_v6  ;;  %v394_v5 = vld [vmem:[%s5125_s0 + $0xbe0] sm:$0xff]  ;;  %v467_v6 = vld [vmem:[%s5124_s1 + $0x1a8] sm:$0xff] }
  0x59   :  { %1215 = vmatprep.subr.mxu1 %v2657_v0  ;;  %2463 = vmatprep.subr.mxu0 %v481_v7 }
  0x5a   :  { %827 = vmatmul.mubr.f32.gmra.mxu0 %v44_v8  ;;  %1216 = vmatpush1.msra.mxu1 %v452_v9  ;;  %v400_v8 = vld [vmem:[%s5125_s0 + $0xc10] sm:$0xff]  ;;  %v99_v9 = vld [vmem:[%s5125_s0 + $0x2a8] sm:$0xff] }
  0x5b   :  { %1127 = vmatmul.mubr.f32.gmra.mxu1 %v344_v10  ;;  %1217 = vmatprep.subr.mxu1 %v2657_v0  ;;  %v466_v10 = vld [vmem:[%s5124_s1 + $0x1a0] sm:$0xff] }
  0x5c   :  { %1218 = vmatpush1.msra.mxu1 %v451_v11  ;;  %831 = vmatprep.mubr.f32.mxu0 %v50_v12  ;;  %v399_v11 = vld [vmem:[%s5125_s0 + $0xc08] sm:$0xff]  ;;  %v105_v12 = vld [vmem:[%s5125_s0 + $0x2d8] sm:$0xff] }
  0x5d   :  { %1131 = vmatprep.mubr.f32.mxu1 %v350_v13  ;;  %1219 = vmatprep.subr.mxu1 %v2657_v0  ;;  %v405_v13 = vld [vmem:[%s5125_s0 + $0xc38] sm:$0xff] }
  0x5e   :  { %832 = vmatmul.mubr.f32.gmra.mxu0 %v49_v14  ;;  %1220 = vmatpush1.msra.mxu1 %v450_v15  ;;  %v465_v14 = vld [vmem:[%s5124_s1 + $0x198] sm:$0xff]  ;;  %v104_v15 = vld [vmem:[%s5125_s0 + $0x2d0] sm:$0xff] }
  0x5f   :  { %1132 = vmatmul.mubr.f32.gmra.mxu1 %v349_v16  ;;  %1221 = vmatprep.subr.mxu1 %v2657_v0  ;;  %v404_v16 = vld [vmem:[%s5125_s0 + $0xc30] sm:$0xff] }
  0x60   :  { %836 = vmatprep.mubr.f32.mxu0 %v55_v17  ;;  %1136 = vmatprep.mubr.f32.mxu1 %v355_v18  ;;  %v110_v17 = vld [vmem:[%s5125_s0 + $0x300] sm:$0xff]  ;;  %v464_v18 = vld [vmem:[%s5124_s1 + $0x190] sm:$0xff] }
  0x61   :  { %1222 = vmatpush1.msra.mxu1 %v449_v19  ;;  %2464 = vmatpush3.msra.mxu0 %v481_v7  ;;  %v100_v7 = vld [vmem:[%s5125_s0 + $0x2b0] sm:$0xff]  ;;  %v410_v19 = vld [vmem:[%s5125_s0 + $0xc60] sm:$0xff] }
  0x62   :  { %837 = vmatmul.mubr.f32.gmra.mxu0 %v54_v20  ;;  %1223 = vmatprep.subr.mxu1 %v2657_v0  ;;  %v109_v20 = vld [vmem:[%s5125_s0 + $0x2f8] sm:$0xff] }
  0x63   :  { %1137 = vmatmul.mubr.f32.gmra.mxu1 %v354_v21  ;;  %841 = vmatprep.mubr.f32.mxu0 %v60_v22  ;;  %v463_v21 = vld [vmem:[%s5124_s1 + $0x188] sm:$0xff]  ;;  %v409_v22 = vld [vmem:[%s5125_s0 + $0xc58] sm:$0xff] }
  0x64   :  { %1224 = vmatpush1.msra.mxu1 %v448_v23  ;;  %1141 = vmatprep.mubr.f32.mxu1 %v360_v24  ;;  %v478_v23 = vld [vmem:[%s5124_s1 + $0x200] sm:$0xff]  ;;  %v115_v24 = vld [vmem:[%s5125_s0 + $0x328] sm:$0xff] }
  0x65   :  { %1225 = vmatprep.subr.mxu1 %v2657_v0  ;;  %2465 = vmatprep.subr.mxu0 %v480_v25 }
  0x66   :  { %842 = vmatmul.mubr.f32.gmra.mxu0 %v59_v26  ;;  %1226 = vmatpush1.msra.mxu1 %v447_v27  ;;  %v17_v26 = vld [vmem:[%s5125_s0 + $0x18] sm:$0xff]  ;;  %v114_v27 = vld [vmem:[%s5125_s0 + $0x320] sm:$0xff] }
  0x67   :  { %1142 = vmatmul.mubr.f32.gmra.mxu1 %v359_v28  ;;  %1227 = vmatprep.subr.mxu1 %v2657_v0  ;;  %v16_v28 = vld [vmem:[%s5125_s0 + $0x10] sm:$0xff] }
  0x68   :  { %846 = vmatprep.mubr.f32.mxu0 %v65_v29  ;;  %1146 = vmatprep.mubr.f32.mxu1 %v365_v30  ;;  %v120_v29 = vld [vmem:[%s5125_s0 + $0x350] sm:$0xff]  ;;  %v22_v30 = vld [vmem:[%s5125_s0 + $0x40] sm:$0xff] }
  0x69   :  { %1228 = vmatpush1.msra.mxu1 %v446_v31  ;;  %2466 = vmatpush3.msra.mxu0 %v480_v25  ;;  %v462_v25 = vld [vmem:[%s5124_s1 + $0x180] sm:$0xff]  ;;  %v21_v31 = vld [vmem:[%s5125_s0 + $0x38] sm:$0xff] }
  0x6a   :  { %847 = vmatmul.mubr.f32.gmra.mxu0 %v64_v32  ;;  %1229 = vmatprep.subr.mxu1 %v2657_v0  ;;  %v125_v32 = vld [vmem:[%s5125_s0 + $0x378] sm:$0xff] }
  0x6b   :  { %1147 = vmatmul.mubr.f32.gmra.mxu1 %v364_v33  ;;  %851 = vmatprep.mubr.f32.mxu0 %v70_v34  ;;  %v27_v33 = vld [vmem:[%s5125_s0 + $0x68] sm:$0xff]  ;;  %v124_v34 = vld [vmem:[%s5125_s0 + $0x370] sm:$0xff] }
  0x6c   :  { %1230 = vmatpush2.msra.mxu1 %v477_v35  ;;  %1151 = vmatprep.mubr.f32.mxu1 %v370_v36  ;;  %v26_v35 = vld [vmem:[%s5125_s0 + $0x60] sm:$0xff] }
  0x6d   :  { %1231 = vmatprep.subr.mxu1 %v2657_v0  ;;  %2467 = vmatprep.subr.mxu0 %v479_v37  ;;  %v130_v36 = vld [vmem:[%s5125_s0 + $0x3a0] sm:$0xff] }
  0x6e   :  { %852 = vmatmul.mubr.f32.gmra.mxu0 %v69_v38  ;;  %1232 = vmatpush2.msra.mxu1 %v476_v39  ;;  %v129_v38 = vld [vmem:[%s5125_s0 + $0x398] sm:$0xff]  ;;  %v31_v39 = vld [vmem:[%s5125_s0 + $0x88] sm:$0xff] }
  0x6f   :  { %1152 = vmatmul.mubr.f32.gmra.mxu1 %v369_v40  ;;  %1233 = vmatprep.subr.mxu1 %v2657_v0  ;;  %v135_v40 = vld [vmem:[%s5125_s0 + $0x3c8] sm:$0xff] }
  0x70   :  { %1234 = vmatpush2.msra.mxu1 %v475_v41  ;;  %856 = vmatprep.mubr.f32.mxu0 %v75_v42  ;;  %v37_v41 = vld [vmem:[%s5125_s0 + $0xb8] sm:$0xff]  ;;  %v134_v42 = vld [vmem:[%s5125_s0 + $0x3c0] sm:$0xff] }
  0x71   :  { %1156 = vmatprep.mubr.f32.mxu1 %v375_v43  ;;  %1235 = vmatprep.subr.mxu1 %v2657_v0  ;;  %v36_v43 = vld [vmem:[%s5125_s0 + $0xb0] sm:$0xff] }
  0x72   :  { %857 = vmatmul.mubr.f32.gmra.mxu0 %v74_v44  ;;  %1236 = vmatpush2.msra.mxu1 %v474_v45  ;;  %v140_v44 = vld [vmem:[%s5125_s0 + $0x3f0] sm:$0xff]  ;;  %v42_v45 = vld [vmem:[%s5125_s0 + $0xe0] sm:$0xff] }
  0x73   :  { %1157 = vmatmul.mubr.f32.gmra.mxu1 %v374_v46  ;;  %1237 = vmatprep.subr.mxu1 %v2657_v0  ;;  %v139_v46 = vld [vmem:[%s5125_s0 + $0x3e8] sm:$0xff] }
  0x74   :  { %861 = vmatprep.mubr.f32.mxu0 %v80_v47  ;;  %1161 = vmatprep.mubr.f32.mxu1 %v380_v48  ;;  %v41_v47 = vld [vmem:[%s5125_s0 + $0xd8] sm:$0xff] }
  0x75   :  { %1238 = vmatpush2.msra.mxu1 %v473_v49  ;;  %2468 = vmatpush3.msra.mxu0 %v479_v37  ;;  %v32_v37 = vld [vmem:[%s5125_s0 + $0x90] sm:$0xff]  ;;  %v145_v48 = vld [vmem:[%s5125_s0 + $0x418] sm:$0xff]  ;;  %v47_v49 = vld [vmem:[%s5125_s0 + $0x108] sm:$0xff] }
  0x76   :  { %862 = vmatmul.mubr.f32.gmra.mxu0 %v79_v50  ;;  %1239 = vmatprep.subr.mxu1 %v2657_v0  ;;  %v144_v50 = vld [vmem:[%s5125_s0 + $0x410] sm:$0xff] }
  0x77   :  { %1162 = vmatmul.mubr.f32.gmra.mxu1 %v379_v51  ;;  %866 = vmatprep.mubr.f32.mxu0 %v85_v52  ;;  %v46_v51 = vld [vmem:[%s5125_s0 + $0x100] sm:$0xff] }
  0x78   :  { %1240 = vmatpush2.msra.mxu1 %v472_v53  ;;  %1166 = vmatprep.mubr.f32.mxu1 %v385_v54  ;;  %v150_v52 = vld [vmem:[%s5125_s0 + $0x440] sm:$0xff]  ;;  %v52_v53 = vld [vmem:[%s5125_s0 + $0x130] sm:$0xff]  ;;  %v149_v54 = vld [vmem:[%s5125_s0 + $0x438] sm:$0xff] }
  0x79   :  { %1241 = vmatprep.subr.mxu1 %v2657_v0  ;;  %2469 = vmatprep.subr.mxu0 %v478_v23 }
  0x7a   :  { %867 = vmatmul.mubr.f32.gmra.mxu0 %v84_v55  ;;  %1242 = vmatpush2.msra.mxu1 %v471_v56  ;;  %v51_v55 = vld [vmem:[%s5125_s0 + $0x128] sm:$0xff] }
  0x7b   :  { %1167 = vmatmul.mubr.f32.gmra.mxu1 %v384_v57  ;;  %1243 = vmatprep.subr.mxu1 %v2657_v0  ;;  %v155_v56 = vld [vmem:[%s5125_s0 + $0x468] sm:$0xff]  ;;  %v57_v57 = vld [vmem:[%s5125_s0 + $0x158] sm:$0xff] }
  0x7c   :  { %871 = vmatprep.mubr.f32.mxu0 %v90_v58  ;;  %1171 = vmatprep.mubr.f32.mxu1 %v390_v59  ;;  %v154_v58 = vld [vmem:[%s5125_s0 + $0x460] sm:$0xff]  ;;  %v56_v59 = vld [vmem:[%s5125_s0 + $0x150] sm:$0xff] }
  0x7d   :  { %1244 = vmatpush2.msra.mxu1 %v470_v60  ;;  %2470 = vmatpush3.msra.mxu0 %v478_v23  ;;  %v160_v60 = vld [vmem:[%s5125_s0 + $0x490] sm:$0xff]  ;;  %v189_v23 = vld [vmem:[%s5125_s0 + $0x578] sm:$0xff] }
  0x7e   :  { %872 = vmatmul.mubr.f32.gmra.mxu0 %v89_v61  ;;  %1245 = vmatprep.subr.mxu1 %v2657_v0  ;;  %v62_v61 = vld [vmem:[%s5125_s0 + $0x180] sm:$0xff] }
  0x7f   :  { %1172 = vmatmul.mubr.f32.gmra.mxu1 %v389_v62  ;;  %876 = vmatprep.mubr.f32.mxu0 %v95_v63  ;;  %v159_v62 = vld [vmem:[%s5125_s0 + $0x488] sm:$0xff]  ;;  %v61_v63 = vld [vmem:[%s5125_s0 + $0x178] sm:$0xff] }
  0x80   :  { %1246 = vmatpush2.msra.mxu1 %v469_v1  ;;  %1176 = vmatprep.mubr.f32.mxu1 %v395_v2  ;;  %v165_v1 = vld [vmem:[%s5125_s0 + $0x4b8] sm:$0xff]  ;;  %v67_v2 = vld [vmem:[%s5125_s0 + $0x1a8] sm:$0xff] }
  0x81   :  { %1247 = vmatprep.subr.mxu1 %v2657_v0 }
  0x82   :  { %877 = vmatmul.mubr.f32.gmra.mxu0 %v94_v3  ;;  %1248 = vmatpush2.msra.mxu1 %v468_v4  ;;  %v164_v3 = vld [vmem:[%s5125_s0 + $0x4b0] sm:$0xff]  ;;  %v66_v4 = vld [vmem:[%s5125_s0 + $0x1a0] sm:$0xff] }
  0x83   :  { %1177 = vmatmul.mubr.f32.gmra.mxu1 %v394_v5  ;;  %1249 = vmatprep.subr.mxu1 %v2657_v0  ;;  %v170_v5 = vld [vmem:[%s5125_s0 + $0x4e0] sm:$0xff] }
  0x84   :  { %1250 = vmatpush2.msra.mxu1 %v467_v6  ;;  %881 = vmatprep.mubr.f32.mxu0 %v100_v7  ;;  %v72_v6 = vld [vmem:[%s5125_s0 + $0x1d0] sm:$0xff]  ;;  %v169_v7 = vld [vmem:[%s5125_s0 + $0x4d8] sm:$0xff] }
  0x85   :  { %1181 = vmatprep.mubr.f32.mxu1 %v400_v8  ;;  %1251 = vmatprep.subr.mxu1 %v2657_v0  ;;  %v71_v8 = vld [vmem:[%s5125_s0 + $0x1c8] sm:$0xff] }
  0x86   :  { %882 = vmatmul.mubr.f32.gmra.mxu0 %v99_v9  ;;  %1252 = vmatpush2.msra.mxu1 %v466_v10  ;;  %v175_v9 = vld [vmem:[%s5125_s0 + $0x508] sm:$0xff]  ;;  %v77_v10 = vld [vmem:[%s5125_s0 + $0x1f8] sm:$0xff] }
  0x87   :  { %1182 = vmatmul.mubr.f32.gmra.mxu1 %v399_v11  ;;  %1253 = vmatprep.subr.mxu1 %v2657_v0  ;;  %v174_v11 = vld [vmem:[%s5125_s0 + $0x500] sm:$0xff] }
  0x88   :  { %886 = vmatprep.mubr.f32.mxu0 %v105_v12  ;;  %1186 = vmatprep.mubr.f32.mxu1 %v405_v13  ;;  %v76_v12 = vld [vmem:[%s5125_s0 + $0x1f0] sm:$0xff] }
  0x89   :  { %1254 = vmatpush2.msra.mxu1 %v465_v14  ;;  %v180_v13 = vld [vmem:[%s5125_s0 + $0x530] sm:$0xff]  ;;  %v82_v14 = vld [vmem:[%s5125_s0 + $0x220] sm:$0xff] }
  0x8a   :  { %887 = vmatmul.mubr.f32.gmra.mxu0 %v104_v15  ;;  %1255 = vmatprep.subr.mxu1 %v2657_v0  ;;  %v179_v15 = vld [vmem:[%s5125_s0 + $0x528] sm:$0xff] }
  0x8b   :  { %1187 = vmatmul.mubr.f32.gmra.mxu1 %v404_v16  ;;  %891 = vmatprep.mubr.f32.mxu0 %v110_v17  ;;  %v81_v16 = vld [vmem:[%s5125_s0 + $0x218] sm:$0xff] }
  0x8c   :  { %1256 = vmatpush2.msra.mxu1 %v464_v18  ;;  %1191 = vmatprep.mubr.f32.mxu1 %v410_v19  ;;  %v185_v17 = vld [vmem:[%s5125_s0 + $0x558] sm:$0xff]  ;;  %v87_v18 = vld [vmem:[%s5125_s0 + $0x248] sm:$0xff]  ;;  %v184_v19 = vld [vmem:[%s5125_s0 + $0x550] sm:$0xff] }
  0x8d   :  { %1257 = vmatprep.subr.mxu1 %v2657_v0 }
  0x8e   :  { %892 = vmatmul.mubr.f32.gmra.mxu0 %v109_v20  ;;  %1258 = vmatpush2.msra.mxu1 %v463_v21  ;;  %v86_v20 = vld [vmem:[%s5125_s0 + $0x240] sm:$0xff] }
  0x8f   :  { %1192 = vmatmul.mubr.f32.gmra.mxu1 %v409_v22  ;;  %1259 = vmatprep.subr.mxu1 %v2657_v0  ;;  %v119_v0 = vld [vmem:[%s5125_s0 + $0x348] sm:$0xff]  ;;  %v190_v21 = vld [vmem:[%s5125_s0 + $0x580] sm:$0xff]  ;;  %v92_v22 = vld [vmem:[%s5125_s0 + $0x270] sm:$0xff] }
  0x90   :  { %896 = vmatprep.mubr.f32.mxu0 %v115_v24  ;;  %1260 = vmatpush2.msra.mxu1 %v462_v25  ;;  %v91_v24 = vld [vmem:[%s5125_s0 + $0x268] sm:$0xff] }
  0x91   :  { %1261 = vmatprep.mubr.f32.mxu1 %v17_v26  ;;  %v195_v25 = vld [vmem:[%s5125_s0 + $0x5a8] sm:$0xff]  ;;  %v97_v26 = vld [vmem:[%s5125_s0 + $0x298] sm:$0xff] }
  0x92   :  { %897 = vmatmul.mubr.f32.gmra.mxu0 %v114_v27  ;;  %v194_v27 = vld [vmem:[%s5125_s0 + $0x5a0] sm:$0xff] }
  0x93   :  { %1262 = vmatmul.mubr.f32.vlgmr.msra.gmra.mxu1 %v16_v28  ;;  %901 = vmatprep.mubr.f32.mxu0 %v120_v29  ;;  %v96_v28 = vld [vmem:[%s5125_s0 + $0x290] sm:$0xff] }
  0x94   :  { %1266 = vmatprep.mubr.f32.mxu1 %v22_v30  ;;  %v200_v29 = vld [vmem:[%s5125_s0 + $0x5d0] sm:$0xff]  ;;  %v102_v30 = vld [vmem:[%s5125_s0 + $0x2c0] sm:$0xff] }
  0x96   :  { %902 = vmatmul.mubr.f32.gmra.mxu0 %v119_v0  ;;  %v199_v0 = vld [vmem:[%s5125_s0 + $0x5c8] sm:$0xff] }
  0x97   :  { %1267 = vmatmul.mubr.f32.gmra.mxu1 %v21_v31  ;;  %906 = vmatprep.mubr.f32.mxu0 %v125_v32  ;;  %v101_v31 = vld [vmem:[%s5125_s0 + $0x2b8] sm:$0xff] }
  0x98   :  { %1271 = vmatprep.mubr.f32.mxu1 %v27_v33  ;;  %v205_v32 = vld [vmem:[%s5125_s0 + $0x5f8] sm:$0xff]  ;;  %v107_v33 = vld [vmem:[%s5125_s0 + $0x2e8] sm:$0xff] }
  0x9a   :  { %907 = vmatmul.mubr.f32.gmra.mxu0 %v124_v34  ;;  %v204_v34 = vld [vmem:[%s5125_s0 + $0x5f0] sm:$0xff] }
  0x9b   :  { %1272 = vmatmul.mubr.f32.gmra.mxu1 %v26_v35  ;;  %911 = vmatprep.mubr.f32.mxu0 %v130_v36  ;;  %v106_v35 = vld [vmem:[%s5125_s0 + $0x2e0] sm:$0xff] }
  0x9c   :  { %1276 = vmatprep.mubr.f32.mxu1 %v32_v37  ;;  %v210_v36 = vld [vmem:[%s5125_s0 + $0x620] sm:$0xff]  ;;  %v112_v37 = vld [vmem:[%s5125_s0 + $0x310] sm:$0xff] }
  0x9e   :  { %912 = vmatmul.mubr.f32.gmra.mxu0 %v129_v38  ;;  %v209_v38 = vld [vmem:[%s5125_s0 + $0x618] sm:$0xff] }
  0x9f   :  { %1277 = vmatmul.mubr.f32.gmra.mxu1 %v31_v39  ;;  %916 = vmatprep.mubr.f32.mxu0 %v135_v40  ;;  %v111_v39 = vld [vmem:[%s5125_s0 + $0x308] sm:$0xff] }
  0xa0   :  { %1281 = vmatprep.mubr.f32.mxu1 %v37_v41  ;;  %v215_v40 = vld [vmem:[%s5125_s0 + $0x648] sm:$0xff]  ;;  %v117_v41 = vld [vmem:[%s5125_s0 + $0x338] sm:$0xff] }
  0xa2   :  { %917 = vmatmul.mubr.f32.gmra.mxu0 %v134_v42  ;;  %v214_v42 = vld [vmem:[%s5125_s0 + $0x640] sm:$0xff] }
  0xa3   :  { %1282 = vmatmul.mubr.f32.gmra.mxu1 %v36_v43  ;;  %921 = vmatprep.mubr.f32.mxu0 %v140_v44  ;;  %v116_v43 = vld [vmem:[%s5125_s0 + $0x330] sm:$0xff] }
  0xa4   :  { %1286 = vmatprep.mubr.f32.mxu1 %v42_v45  ;;  %v220_v44 = vld [vmem:[%s5125_s0 + $0x670] sm:$0xff]  ;;  %v122_v45 = vld [vmem:[%s5125_s0 + $0x360] sm:$0xff] }
  0xa6   :  { %922 = vmatmul.mubr.f32.gmra.mxu0 %v139_v46  ;;  %v219_v46 = vld [vmem:[%s5125_s0 + $0x668] sm:$0xff] }
  0xa7   :  { %1287 = vmatmul.mubr.f32.gmra.mxu1 %v41_v47  ;;  %926 = vmatprep.mubr.f32.mxu0 %v145_v48  ;;  %v121_v47 = vld [vmem:[%s5125_s0 + $0x358] sm:$0xff] }
  0xa8   :  { %1291 = vmatprep.mubr.f32.mxu1 %v47_v49  ;;  %v225_v48 = vld [vmem:[%s5125_s0 + $0x698] sm:$0xff]  ;;  %v127_v49 = vld [vmem:[%s5125_s0 + $0x388] sm:$0xff] }
  0xaa   :  { %927 = vmatmul.mubr.f32.gmra.mxu0 %v144_v50  ;;  %v224_v50 = vld [vmem:[%s5125_s0 + $0x690] sm:$0xff] }
  0xab   :  { %1292 = vmatmul.mubr.f32.gmra.mxu1 %v46_v51  ;;  %931 = vmatprep.mubr.f32.mxu0 %v150_v52  ;;  %v126_v51 = vld [vmem:[%s5125_s0 + $0x380] sm:$0xff] }
  0xac   :  { %1296 = vmatprep.mubr.f32.mxu1 %v52_v53  ;;  %v230_v52 = vld [vmem:[%s5125_s0 + $0x6c0] sm:$0xff]  ;;  %v132_v53 = vld [vmem:[%s5125_s0 + $0x3b0] sm:$0xff] }
  0xae   :  { %932 = vmatmul.mubr.f32.gmra.mxu0 %v149_v54  ;;  %v229_v54 = vld [vmem:[%s5125_s0 + $0x6b8] sm:$0xff] }
  0xaf   :  { %1297 = vmatmul.mubr.f32.gmra.mxu1 %v51_v55  ;;  %936 = vmatprep.mubr.f32.mxu0 %v155_v56  ;;  %v131_v55 = vld [vmem:[%s5125_s0 + $0x3a8] sm:$0xff] }
  0xb0   :  { %1301 = vmatprep.mubr.f32.mxu1 %v57_v57  ;;  %v235_v56 = vld [vmem:[%s5125_s0 + $0x6e8] sm:$0xff]  ;;  %v137_v57 = vld [vmem:[%s5125_s0 + $0x3d8] sm:$0xff] }
  0xb2   :  { %937 = vmatmul.mubr.f32.gmra.mxu0 %v154_v58  ;;  %v234_v58 = vld [vmem:[%s5125_s0 + $0x6e0] sm:$0xff] }
  0xb3   :  { %1302 = vmatmul.mubr.f32.gmra.mxu1 %v56_v59  ;;  %941 = vmatprep.mubr.f32.mxu0 %v160_v60  ;;  %v136_v59 = vld [vmem:[%s5125_s0 + $0x3d0] sm:$0xff] }
  0xb4   :  { %1306 = vmatprep.mubr.f32.mxu1 %v62_v61  ;;  %v240_v60 = vld [vmem:[%s5125_s0 + $0x710] sm:$0xff]  ;;  %v142_v61 = vld [vmem:[%s5125_s0 + $0x400] sm:$0xff] }
  0xb6   :  { %942 = vmatmul.mubr.f32.gmra.mxu0 %v159_v62  ;;  %v239_v62 = vld [vmem:[%s5125_s0 + $0x708] sm:$0xff] }
  0xb7   :  { %1307 = vmatmul.mubr.f32.gmra.mxu1 %v61_v63  ;;  %946 = vmatprep.mubr.f32.mxu0 %v165_v1  ;;  %v141_v63 = vld [vmem:[%s5125_s0 + $0x3f8] sm:$0xff] }
  0xb8   :  { %1311 = vmatprep.mubr.f32.mxu1 %v67_v2  ;;  %v245_v1 = vld [vmem:[%s5125_s0 + $0x738] sm:$0xff]  ;;  %v147_v2 = vld [vmem:[%s5125_s0 + $0x428] sm:$0xff] }
  0xba   :  { %947 = vmatmul.mubr.f32.gmra.mxu0 %v164_v3  ;;  %v244_v3 = vld [vmem:[%s5125_s0 + $0x730] sm:$0xff] }
  0xbb   :  { %1312 = vmatmul.mubr.f32.gmra.mxu1 %v66_v4  ;;  %951 = vmatprep.mubr.f32.mxu0 %v170_v5  ;;  %v146_v4 = vld [vmem:[%s5125_s0 + $0x420] sm:$0xff] }
  0xbc   :  { %1316 = vmatprep.mubr.f32.mxu1 %v72_v6  ;;  %v250_v5 = vld [vmem:[%s5125_s0 + $0x760] sm:$0xff]  ;;  %v152_v6 = vld [vmem:[%s5125_s0 + $0x450] sm:$0xff] }
  0xbe   :  { %952 = vmatmul.mubr.f32.gmra.mxu0 %v169_v7  ;;  %v249_v7 = vld [vmem:[%s5125_s0 + $0x758] sm:$0xff] }
  0xbf   :  { %1317 = vmatmul.mubr.f32.gmra.mxu1 %v71_v8  ;;  %956 = vmatprep.mubr.f32.mxu0 %v175_v9  ;;  %v151_v8 = vld [vmem:[%s5125_s0 + $0x448] sm:$0xff] }
  0xc0   :  { %1321 = vmatprep.mubr.f32.mxu1 %v77_v10  ;;  %v255_v9 = vld [vmem:[%s5125_s0 + $0x788] sm:$0xff]  ;;  %v157_v10 = vld [vmem:[%s5125_s0 + $0x478] sm:$0xff] }
  0xc2   :  { %957 = vmatmul.mubr.f32.gmra.mxu0 %v174_v11  ;;  %v254_v11 = vld [vmem:[%s5125_s0 + $0x780] sm:$0xff] }
  0xc3   :  { %1322 = vmatmul.mubr.f32.gmra.mxu1 %v76_v12  ;;  %961 = vmatprep.mubr.f32.mxu0 %v180_v13  ;;  %v156_v12 = vld [vmem:[%s5125_s0 + $0x470] sm:$0xff] }
  0xc4   :  { %1326 = vmatprep.mubr.f32.mxu1 %v82_v14  ;;  %v260_v13 = vld [vmem:[%s5125_s0 + $0x7b0] sm:$0xff]  ;;  %v162_v14 = vld [vmem:[%s5125_s0 + $0x4a0] sm:$0xff] }
  0xc6   :  { %962 = vmatmul.mubr.f32.gmra.mxu0 %v179_v15 }
  0xc7   :  { %1327 = vmatmul.mubr.f32.gmra.mxu1 %v81_v16  ;;  %966 = vmatprep.mubr.f32.mxu0 %v185_v17  ;;  %v259_v17 = vld [vmem:[%s5125_s0 + $0x7a8] sm:$0xff] }
  0xc8   :  { %1331 = vmatprep.mubr.f32.mxu1 %v87_v18 }
  0xca   :  { %967 = vmatmul.mubr.f32.gmra.mxu0 %v184_v19 }
  0xcb   :  { %1332 = vmatmul.mubr.f32.gmra.mxu1 %v86_v20  ;;  %971 = vmatprep.mubr.f32.mxu0 %v190_v21  ;;  %v161_v20 = vld [vmem:[%s5125_s0 + $0x498] sm:$0xff] }
  0xcc   :  { %1336 = vmatprep.mubr.f32.mxu1 %v92_v22  ;;  %v265_v21 = vld [vmem:[%s5125_s0 + $0x7d8] sm:$0xff]  ;;  %v167_v22 = vld [vmem:[%s5125_s0 + $0x4c8] sm:$0xff] }
  0xce   :  { %972 = vmatmul.mubr.f32.gmra.mxu0 %v189_v23 }
  0xcf   :  { %1337 = vmatmul.mubr.f32.gmra.mxu1 %v91_v24  ;;  %976 = vmatprep.mubr.f32.mxu0 %v195_v25  ;;  %v264_v25 = vld [vmem:[%s5125_s0 + $0x7d0] sm:$0xff] }
  0xd0   :  { %1341 = vmatprep.mubr.f32.mxu1 %v97_v26 }
  0xd2   :  { %977 = vmatmul.mubr.f32.gmra.mxu0 %v194_v27  ;;  %v166_v27 = vld [vmem:[%s5125_s0 + $0x4c0] sm:$0xff] }
  0xd3   :  { %1342 = vmatmul.mubr.f32.gmra.mxu1 %v96_v28  ;;  %981 = vmatprep.mubr.f32.mxu0 %v200_v29  ;;  %v270_v28 = vld [vmem:[%s5125_s0 + $0x800] sm:$0xff] }
  0xd4   :  { %1346 = vmatprep.mubr.f32.mxu1 %v102_v30  ;;  %v172_v30 = vld [vmem:[%s5125_s0 + $0x4f0] sm:$0xff] }
  0xd6   :  { %982 = vmatmul.mubr.f32.gmra.mxu0 %v199_v0 }
  0xd7   :  { %1347 = vmatmul.mubr.f32.gmra.mxu1 %v101_v31  ;;  %986 = vmatprep.mubr.f32.mxu0 %v205_v32  ;;  %v269_v32 = vld [vmem:[%s5125_s0 + $0x7f8] sm:$0xff] }
  0xd8   :  { %1351 = vmatprep.mubr.f32.mxu1 %v107_v33 }
  0xda   :  { %987 = vmatmul.mubr.f32.gmra.mxu0 %v204_v34  ;;  %v171_v34 = vld [vmem:[%s5125_s0 + $0x4e8] sm:$0xff] }
  0xdb   :  { %1352 = vmatmul.mubr.f32.gmra.mxu1 %v106_v35  ;;  %991 = vmatprep.mubr.f32.mxu0 %v210_v36  ;;  %v275_v35 = vld [vmem:[%s5125_s0 + $0x828] sm:$0xff] }
  0xdc   :  { %1356 = vmatprep.mubr.f32.mxu1 %v112_v37  ;;  %v177_v37 = vld [vmem:[%s5125_s0 + $0x518] sm:$0xff] }
  0xde   :  { %992 = vmatmul.mubr.f32.gmra.mxu0 %v209_v38 }
  0xdf   :  { %1357 = vmatmul.mubr.f32.gmra.mxu1 %v111_v39  ;;  %996 = vmatprep.mubr.f32.mxu0 %v215_v40  ;;  %v274_v40 = vld [vmem:[%s5125_s0 + $0x820] sm:$0xff] }
  0xe0   :  { %1361 = vmatprep.mubr.f32.mxu1 %v117_v41 }
  0xe2   :  { %997 = vmatmul.mubr.f32.gmra.mxu0 %v214_v42  ;;  %v176_v42 = vld [vmem:[%s5125_s0 + $0x510] sm:$0xff] }
  0xe3   :  { %1362 = vmatmul.mubr.f32.gmra.mxu1 %v116_v43  ;;  %1001 = vmatprep.mubr.f32.mxu0 %v220_v44  ;;  %v280_v43 = vld [vmem:[%s5125_s0 + $0x850] sm:$0xff] }
  0xe4   :  { %1366 = vmatprep.mubr.f32.mxu1 %v122_v45  ;;  %v182_v45 = vld [vmem:[%s5125_s0 + $0x540] sm:$0xff] }
  0xe6   :  { %1002 = vmatmul.mubr.f32.gmra.mxu0 %v219_v46 }
  0xe7   :  { %1367 = vmatmul.mubr.f32.gmra.mxu1 %v121_v47  ;;  %1006 = vmatprep.mubr.f32.mxu0 %v225_v48  ;;  %v279_v48 = vld [vmem:[%s5125_s0 + $0x848] sm:$0xff] }
  0xe8   :  { %1371 = vmatprep.mubr.f32.mxu1 %v127_v49 }
  0xea   :  { %1007 = vmatmul.mubr.f32.gmra.mxu0 %v224_v50  ;;  %v181_v50 = vld [vmem:[%s5125_s0 + $0x538] sm:$0xff] }
  0xeb   :  { %1372 = vmatmul.mubr.f32.gmra.mxu1 %v126_v51  ;;  %1011 = vmatprep.mubr.f32.mxu0 %v230_v52  ;;  %v285_v51 = vld [vmem:[%s5125_s0 + $0x878] sm:$0xff] }
  0xec   :  { %1376 = vmatprep.mubr.f32.mxu1 %v132_v53  ;;  %v187_v53 = vld [vmem:[%s5125_s0 + $0x568] sm:$0xff] }
  0xee   :  { %1012 = vmatmul.mubr.f32.gmra.mxu0 %v229_v54 }
  0xef   :  { %1377 = vmatmul.mubr.f32.gmra.mxu1 %v131_v55  ;;  %1016 = vmatprep.mubr.f32.mxu0 %v235_v56  ;;  %v284_v56 = vld [vmem:[%s5125_s0 + $0x870] sm:$0xff] }
  0xf0   :  { %1381 = vmatprep.mubr.f32.mxu1 %v137_v57 }
  0xf2   :  { %1017 = vmatmul.mubr.f32.gmra.mxu0 %v234_v58  ;;  %v186_v58 = vld [vmem:[%s5125_s0 + $0x560] sm:$0xff] }
  0xf3   :  { %1382 = vmatmul.mubr.f32.gmra.mxu1 %v136_v59  ;;  %1021 = vmatprep.mubr.f32.mxu0 %v240_v60  ;;  %v290_v59 = vld [vmem:[%s5125_s0 + $0x8a0] sm:$0xff] }
  0xf4   :  { %1386 = vmatprep.mubr.f32.mxu1 %v142_v61  ;;  %v192_v61 = vld [vmem:[%s5125_s0 + $0x590] sm:$0xff] }
  0xf6   :  { %1022 = vmatmul.mubr.f32.gmra.mxu0 %v239_v62 }
  0xf7   :  { %1387 = vmatmul.mubr.f32.gmra.mxu1 %v141_v63  ;;  %1026 = vmatprep.mubr.f32.mxu0 %v245_v1  ;;  %v289_v1 = vld [vmem:[%s5125_s0 + $0x898] sm:$0xff] }
  0xf8   :  { %1391 = vmatprep.mubr.f32.mxu1 %v147_v2 }
  0xfa   :  { %1027 = vmatmul.mubr.f32.gmra.mxu0 %v244_v3  ;;  %v191_v3 = vld [vmem:[%s5125_s0 + $0x588] sm:$0xff] }
  0xfb   :  { %1392 = vmatmul.mubr.f32.gmra.mxu1 %v146_v4  ;;  %1031 = vmatprep.mubr.f32.mxu0 %v250_v5  ;;  %v295_v4 = vld [vmem:[%s5125_s0 + $0x8c8] sm:$0xff] }
  0xfc   :  { %1396 = vmatprep.mubr.f32.mxu1 %v152_v6  ;;  %v197_v6 = vld [vmem:[%s5125_s0 + $0x5b8] sm:$0xff] }
  0xfe   :  { %1032 = vmatmul.mubr.f32.gmra.mxu0 %v249_v7 }
  0xff   :  { %1397 = vmatmul.mubr.f32.gmra.mxu1 %v151_v8  ;;  %1036 = vmatprep.mubr.f32.mxu0 %v255_v9  ;;  %v294_v9 = vld [vmem:[%s5125_s0 + $0x8c0] sm:$0xff] }
 0x100   :  { %1401 = vmatprep.mubr.f32.mxu1 %v157_v10 }
 0x102   :  { %v3578_v15 = vpop.f32.mrf.mxu0  ;;  %1037 = vmatmul.mubr.f32.gmra.mxu0 %v254_v11  ;;  %v3580_v16 = vpop.f32.mrf.mxu1  ;;  %v196_v11 = vld [vmem:[%s5125_s0 + $0x5b0] sm:$0xff] }
 0x103   :  { %5128 = vst [vmem:[#allocation2_spill] sm:$0xff] %v3580_v16  ;;  %1402 = vmatmul.mubr.f32.gmra.mxu1 %v156_v12  ;;  %1041 = vmatprep.mubr.f32.mxu0 %v260_v13  ;;  %v300_v12 = vld [vmem:[%s5125_s0 + $0x8f0] sm:$0xff] }
 0x104   :  { %v800_v18 = vpop.f32.mrf.mxu0  ;;  %v1100_v19 = vpop.f32.mrf.mxu1  ;;  %1406 = vmatprep.mubr.f32.mxu1 %v162_v14  ;;  %v202_v14 = vld [vmem:[%s5125_s0 + $0x5e0] sm:$0xff] }
 0x105   :  { %v299_v19 = vld [vmem:[%s5125_s0 + $0x8e8] sm:$0xff] }
 0x106   :  { %v3594_v23 = vpop.f32.mrf.mxu0  ;;  %1042 = vmatmul.mubr.f32.gmra.mxu0 %v259_v17 }
 0x107   :  { %v3596_v24 = vpop.f32.mrf.mxu1  ;;  %1407 = vmatmul.mubr.f32.gmra.mxu1 %v161_v20  ;;  %1046 = vmatprep.mubr.f32.mxu0 %v265_v21  ;;  %v201_v21 = vld [vmem:[%s5125_s0 + $0x5d8] sm:$0xff] }
 0x108   :  { %5129 = vst [vmem:[#allocation3_spill] sm:$0xff] %v3596_v24  ;;  %v805_v26 = vpop.f32.mrf.mxu0  ;;  %1411 = vmatprep.mubr.f32.mxu1 %v167_v22  ;;  %v305_v22 = vld [vmem:[%s5125_s0 + $0x918] sm:$0xff] }
 0x109   :  { %v1105_v29 = vpop.f32.mrf.mxu1  ;;  %v207_v26 = vld [vmem:[%s5125_s0 + $0x608] sm:$0xff] }
 0x10a   :  { %v3610_v0 = vpop.f32.mrf.mxu0  ;;  %1047 = vmatmul.mubr.f32.gmra.mxu0 %v264_v25  ;;  %v304_v29 = vld [vmem:[%s5125_s0 + $0x910] sm:$0xff] }
 0x10b   :  { %v3612_v31 = vpop.f32.mrf.mxu1  ;;  %1412 = vmatmul.mubr.f32.gmra.mxu1 %v166_v27  ;;  %1051 = vmatprep.mubr.f32.mxu0 %v270_v28 }
 0x10c   :  { %5130 = vst [vmem:[#allocation4_spill] sm:$0xff] %v3612_v31  ;;  %v810_v33 = vpop.f32.mrf.mxu0  ;;  %1416 = vmatprep.mubr.f32.mxu1 %v172_v30 }
 0x10d   :  { %v1110_v36 = vpop.f32.mrf.mxu1  ;;  %v310_v33 = vld [vmem:[%s5125_s0 + $0x940] sm:$0xff] }
 0x10e   :  { %v3626_v38 = vpop.f32.mrf.mxu0  ;;  %1052 = vmatmul.mubr.f32.gmra.mxu0 %v269_v32  ;;  %v206_v32 = vld [vmem:[%s5125_s0 + $0x600] sm:$0xff] }
 0x10f   :  { %v3628_v39 = vpop.f32.mrf.mxu1  ;;  %1417 = vmatmul.mubr.f32.gmra.mxu1 %v171_v34  ;;  %1056 = vmatprep.mubr.f32.mxu0 %v275_v35  ;;  %v212_v35 = vld [vmem:[%s5125_s0 + $0x630] sm:$0xff] }
 0x110   :  { %5131 = vst [vmem:[#allocation5_spill] sm:$0xff] %v3628_v39  ;;  %v815_v41 = vpop.f32.mrf.mxu0  ;;  %1421 = vmatprep.mubr.f32.mxu1 %v177_v37 }
 0x111   :  { %v1115_v44 = vpop.f32.mrf.mxu1 }
 0x112   :  { %v3642_v46 = vpop.f32.mrf.mxu0  ;;  %1057 = vmatmul.mubr.f32.gmra.mxu0 %v274_v40  ;;  %v309_v40 = vld [vmem:[%s5125_s0 + $0x938] sm:$0xff] }
 0x113   :  { %v3644_v47 = vpop.f32.mrf.mxu1  ;;  %1422 = vmatmul.mubr.f32.gmra.mxu1 %v176_v42  ;;  %1061 = vmatprep.mubr.f32.mxu0 %v280_v43  ;;  %v211_v42 = vld [vmem:[%s5125_s0 + $0x628] sm:$0xff]  ;;  %v18_v43 = vld [vmem:[%s5125_s0 + $0x20] sm:$0xff] }
 0x114   :  { %5132 = vst [vmem:[#allocation6_spill] sm:$0xff] %v3644_v47  ;;  %v820_v49 = vpop.f32.mrf.mxu0  ;;  %1426 = vmatprep.mubr.f32.mxu1 %v182_v45  ;;  %v217_v45 = vld [vmem:[%s5125_s0 + $0x658] sm:$0xff] }
 0x115   :  { %v1120_v52 = vpop.f32.mrf.mxu1 }
 0x116   :  { %v3658_v54 = vpop.f32.mrf.mxu0  ;;  %1062 = vmatmul.mubr.f32.gmra.mxu0 %v279_v48  ;;  %v216_v52 = vld [vmem:[%s5125_s0 + $0x650] sm:$0xff] }
 0x117   :  { %v3660_v55 = vpop.f32.mrf.mxu1  ;;  %1427 = vmatmul.mubr.f32.gmra.mxu1 %v181_v50  ;;  %1066 = vmatprep.mubr.f32.mxu0 %v285_v51  ;;  %v23_v50 = vld [vmem:[%s5125_s0 + $0x48] sm:$0xff] }
 0x118   :  { %5133 = vst [vmem:[#allocation7_spill] sm:$0xff] %v3660_v55  ;;  %v825_v57 = vpop.f32.mrf.mxu0  ;;  %1431 = vmatprep.mubr.f32.mxu1 %v187_v53  ;;  %v28_v53 = vld [vmem:[%s5125_s0 + $0x70] sm:$0xff] }
 0x119   :  { %v1125_v60 = vpop.f32.mrf.mxu1  ;;  %v222_v57 = vld [vmem:[%s5125_s0 + $0x680] sm:$0xff] }
 0x11a   :  { %v3674_v62 = vpop.f32.mrf.mxu0  ;;  %1067 = vmatmul.mubr.f32.gmra.mxu0 %v284_v56  ;;  %v33_v60 = vld [vmem:[%s5125_s0 + $0x98] sm:$0xff] }
 0x11b   :  { %v3676_v63 = vpop.f32.mrf.mxu1  ;;  %1432 = vmatmul.mubr.f32.gmra.mxu1 %v186_v58  ;;  %1071 = vmatprep.mubr.f32.mxu0 %v290_v59 }
 0x11c   :  { %5134 = vst [vmem:[#allocation8_spill] sm:$0xff] %v3676_v63  ;;  %v830_v2 = vpop.f32.mrf.mxu0  ;;  %1436 = vmatprep.mubr.f32.mxu1 %v192_v61 }
 0x11d   :  { %v1130_v5 = vpop.f32.mrf.mxu1  ;;  %v38_v2 = vld [vmem:[%s5125_s0 + $0xc0] sm:$0xff] }
 0x11e   :  { %v3690_v7 = vpop.f32.mrf.mxu0  ;;  %1072 = vmatmul.mubr.f32.gmra.mxu0 %v289_v1  ;;  %v221_v1 = vld [vmem:[%s5125_s0 + $0x678] sm:$0xff] }
 0x11f   :  { %v3692_v8 = vpop.f32.mrf.mxu1  ;;  %1437 = vmatmul.mubr.f32.gmra.mxu1 %v191_v3  ;;  %1076 = vmatprep.mubr.f32.mxu0 %v295_v4  ;;  %v227_v4 = vld [vmem:[%s5125_s0 + $0x6a8] sm:$0xff] }
 0x120   :  { %5135 = vst [vmem:[#allocation9_spill] sm:$0xff] %v3692_v8  ;;  %v835_v10 = vpop.f32.mrf.mxu0  ;;  %1441 = vmatprep.mubr.f32.mxu1 %v197_v6 }
 0x121   :  { %v1135_v13 = vpop.f32.mrf.mxu1 }
 0x122   :  { %v3706_v17 = vpop.f32.mrf.mxu0  ;;  %1077 = vmatmul.mubr.f32.gmra.mxu0 %v294_v9  ;;  %v43_v9 = vld [vmem:[%s5125_s0 + $0xe8] sm:$0xff] }
 0x123   :  { %v3708_v18 = vpop.f32.mrf.mxu1  ;;  %1442 = vmatmul.mubr.f32.gmra.mxu1 %v196_v11  ;;  %1081 = vmatprep.mubr.f32.mxu0 %v300_v12  ;;  %v226_v11 = vld [vmem:[%s5125_s0 + $0x6a0] sm:$0xff]  ;;  %v48_v12 = vld [vmem:[%s5125_s0 + $0x110] sm:$0xff] }
 0x124   :  { %5136 = vst [vmem:[#allocation10_spill] sm:$0xff] %v3708_v18  ;;  %v840_v20 = vpop.f32.mrf.mxu0  ;;  %1446 = vmatprep.mubr.f32.mxu1 %v202_v14  ;;  %v232_v14 = vld [vmem:[%s5125_s0 + $0x6d0] sm:$0xff] }
 0x125   :  { %v1140_v25 = vpop.f32.mrf.mxu1 }
 0x126   :  { %v3722_v27 = vpop.f32.mrf.mxu0  ;;  %1082 = vmatmul.mubr.f32.gmra.mxu0 %v299_v19  ;;  %v231_v25 = vld [vmem:[%s5125_s0 + $0x6c8] sm:$0xff] }
 0x127   :  { %v3724_v28 = vpop.f32.mrf.mxu1  ;;  %1447 = vmatmul.mubr.f32.gmra.mxu1 %v201_v21  ;;  %1086 = vmatprep.mubr.f32.mxu0 %v305_v22  ;;  %v53_v21 = vld [vmem:[%s5125_s0 + $0x138] sm:$0xff] }
 0x128   :  { %5137 = vst [vmem:[#allocation11_spill] sm:$0xff] %v3724_v28  ;;  %v845_v30 = vpop.f32.mrf.mxu0  ;;  %1451 = vmatprep.mubr.f32.mxu1 %v207_v26  ;;  %v58_v26 = vld [vmem:[%s5125_s0 + $0x160] sm:$0xff] }
 0x129   :  { %v1145_v34 = vpop.f32.mrf.mxu1  ;;  %v237_v30 = vld [vmem:[%s5125_s0 + $0x6f8] sm:$0xff] }
 0x12a   :  { %v3738_v36 = vpop.f32.mrf.mxu0  ;;  %1087 = vmatmul.mubr.f32.gmra.mxu0 %v304_v29  ;;  %v63_v34 = vld [vmem:[%s5125_s0 + $0x188] sm:$0xff] }
 0x12b   :  { %v3740_v37 = vpop.f32.mrf.mxu1  ;;  %1452 = vmatmul.mubr.f32.gmra.mxu1 %v206_v32  ;;  %1091 = vmatprep.mubr.f32.mxu0 %v310_v33 }
 0x12c   :  { %5138 = vst [vmem:[#allocation12_spill] sm:$0xff] %v3740_v37  ;;  %v850_v41 = vpop.f32.mrf.mxu0  ;;  %1456 = vmatprep.mubr.f32.mxu1 %v212_v35 }
 0x12d   :  { %v1150_v44 = vpop.f32.mrf.mxu1  ;;  %v68_v41 = vld [vmem:[%s5125_s0 + $0x1b0] sm:$0xff] }
 0x12e   :  { %v3754_v48 = vpop.f32.mrf.mxu0  ;;  %1092 = vmatmul.mubr.f32.gmra.mxu0 %v309_v40  ;;  %v236_v40 = vld [vmem:[%s5125_s0 + $0x6f0] sm:$0xff] }
 0x12f   :  { %v3756_v49 = vpop.f32.mrf.mxu1  ;;  %1457 = vmatmul.mubr.f32.gmra.mxu1 %v211_v42  ;;  %2471 = vmatprep.mubr.msk.f32.mxu0 %vm491_vm0, %v18_v43  ;;  %v242_v43 = vld [vmem:[%s5125_s0 + $0x720] sm:$0xff] }
 0x130   :  { %5139 = vst [vmem:[#allocation13_spill] sm:$0xff] %v3756_v49  ;;  %v855_v51 = vpop.f32.mrf.mxu0  ;;  %1461 = vmatprep.mubr.f32.mxu1 %v217_v45 }
 0x131   :  { %v1155_v56 = vpop.f32.mrf.mxu1 }
 0x132   :  { %v3771_v58 = vpop.f32.mrf.mxu0  ;;  %2472 = vmatmul.mubr.msk.f32.vlgmr.msra.gmra.mxu0 %vm491_vm0, %v23_v50  ;;  %v73_v50 = vld [vmem:[%s5125_s0 + $0x1d8] sm:$0xff] }
 0x133   :  { %v3774_v59 = vpop.f32.mrf.mxu1  ;;  %1462 = vmatmul.mubr.f32.gmra.mxu1 %v216_v52  ;;  %2474 = vmatprep.mubr.msk.f32.mxu0 %vm491_vm0, %v28_v53  ;;  %v241_v52 = vld [vmem:[%s5125_s0 + $0x718] sm:$0xff]  ;;  %v78_v53 = vld [vmem:[%s5125_s0 + $0x200] sm:$0xff] }
 0x134   :  { %5140 = vst [vmem:[#allocation14_spill] sm:$0xff] %v3774_v59  ;;  %v860_v61 = vpop.f32.mrf.mxu0  ;;  %1466 = vmatprep.mubr.f32.mxu1 %v222_v57  ;;  %v247_v57 = vld [vmem:[%s5125_s0 + $0x748] sm:$0xff] }
 0x135   :  { %v1160_v3 = vpop.f32.mrf.mxu1 }
 0x136   :  { %v3789_v5 = vpop.f32.mrf.mxu0  ;;  %2475 = vmatmul.mubr.msk.f32.gmra.mxu0 %vm491_vm0, %v33_v60  ;;  %v246_v3 = vld [vmem:[%s5125_s0 + $0x740] sm:$0xff] }
 0x137   :  { %v3792_v6 = vpop.f32.mrf.mxu1  ;;  %1467 = vmatmul.mubr.f32.gmra.mxu1 %v221_v1  ;;  %2477 = vmatprep.mubr.msk.f32.mxu0 %vm491_vm0, %v38_v2  ;;  %v83_v1 = vld [vmem:[%s5125_s0 + $0x228] sm:$0xff] }
 0x138   :  { %5141 = vst [vmem:[#allocation15_spill] sm:$0xff] %v3792_v6  ;;  %v865_v10 = vpop.f32.mrf.mxu0  ;;  %1471 = vmatprep.mubr.f32.mxu1 %v227_v4  ;;  %v88_v4 = vld [vmem:[%s5125_s0 + $0x250] sm:$0xff] }
 0x139   :  { %v1165_v13 = vpop.f32.mrf.mxu1  ;;  %v252_v10 = vld [vmem:[%s5125_s0 + $0x770] sm:$0xff] }
 0x13a   :  { %v3807_v19 = vpop.f32.mrf.mxu0  ;;  %2478 = vmatmul.mubr.msk.f32.gmra.mxu0 %vm491_vm0, %v43_v9  ;;  %v93_v13 = vld [vmem:[%s5125_s0 + $0x278] sm:$0xff] }
 0x13b   :  { %v3810_v20 = vpop.f32.mrf.mxu1  ;;  %1472 = vmatmul.mubr.f32.gmra.mxu1 %v226_v11  ;;  %2480 = vmatprep.mubr.msk.f32.mxu0 %vm491_vm0, %v48_v12 }
 0x13c   :  { %5142 = vst [vmem:[#allocation16_spill] sm:$0xff] %v3810_v20  ;;  %v870_v22 = vpop.f32.mrf.mxu0  ;;  %1476 = vmatprep.mubr.f32.mxu1 %v232_v14 }
 0x13d   :  { %v1170_v29 = vpop.f32.mrf.mxu1  ;;  %v98_v22 = vld [vmem:[%s5125_s0 + $0x2a0] sm:$0xff] }
 0x13e   :  { %v3825_v32 = vpop.f32.mrf.mxu0  ;;  %2481 = vmatmul.mubr.msk.f32.gmra.mxu0 %vm491_vm0, %v53_v21  ;;  %v251_v21 = vld [vmem:[%s5125_s0 + $0x768] sm:$0xff] }
 0x13f   :  { %v3828_v33 = vpop.f32.mrf.mxu1  ;;  %1477 = vmatmul.mubr.f32.gmra.mxu1 %v231_v25  ;;  %2483 = vmatprep.mubr.msk.f32.mxu0 %vm491_vm0, %v58_v26  ;;  %v257_v26 = vld [vmem:[%s5125_s0 + $0x798] sm:$0xff] }
 0x140   :  { %5143 = vst [vmem:[#allocation17_spill] sm:$0xff] %v3828_v33  ;;  %v875_v35 = vpop.f32.mrf.mxu0  ;;  %1481 = vmatprep.mubr.f32.mxu1 %v237_v30  ;;  %v3903_v30 = vld [vmem:[%s5126_s2] ss:$0 sm:$0xff] }
 0x141   :  { %v1175_v42 = vpop.f32.mrf.mxu1  ;;  %v103_v35 = vld [vmem:[%s5125_s0 + $0x2c8] sm:$0xff] }
 0x142   :  { %v3843_v44 = vpop.f32.mrf.mxu0  ;;  %2484 = vmatmul.mubr.msk.f32.gmra.mxu0 %vm491_vm0, %v63_v34  ;;  %v108_v42 = vld [vmem:[%s5125_s0 + $0x2f0] sm:$0xff] }
 0x143   :  { %v3846_v45 = vpop.f32.mrf.mxu1  ;;  %1482 = vmatmul.mubr.f32.gmra.mxu1 %v236_v40  ;;  %2486 = vmatprep.mubr.msk.f32.mxu0 %vm491_vm0, %v68_v41  ;;  %v256_v41 = vld [vmem:[%s5125_s0 + $0x790] sm:$0xff] }
 0x144   :  { %5144 = vst [vmem:[#allocation18_spill] sm:$0xff] %v3846_v45  ;;  %v880_v51 = vpop.f32.mrf.mxu0  ;;  %1486 = vmatprep.mubr.f32.mxu1 %v242_v43 }
 0x145   :  { %v1180_v56 = vpop.f32.mrf.mxu1  ;;  %v799_v51 = vadd.f32 %v3903_v30, %v3578_v15  ;;  %v261_v15 = vld [vmem:[%s5125_s0 + $0x7b8] sm:$0xff] }
 0x146   :  { %v3861_v60 = vpop.f32.mrf.mxu0  ;;  %2487 = vmatmul.mubr.msk.f32.gmra.mxu0 %vm491_vm0, %v73_v50  ;;  %v262_v50 = vld [vmem:[%s5125_s0 + $0x7c0] sm:$0xff]  ;;  %v113_v56 = vld [vmem:[%s5125_s0 + $0x318] sm:$0xff] }
 0x147   :  { %v3864_v61 = vpop.f32.mrf.mxu1  ;;  %1487 = vmatmul.mubr.f32.gmra.mxu1 %v241_v52  ;;  %2489 = vmatprep.mubr.msk.f32.mxu0 %vm491_vm0, %v78_v53 }
 0x148   :  { %5145 = vst [vmem:[#allocation19_spill] sm:$0xff] %v3864_v61  ;;  %v885_v2 = vpop.f32.mrf.mxu0  ;;  %1491 = vmatprep.mubr.f32.mxu1 %v247_v57 }
 0x149   :  { %v1185_v9 = vpop.f32.mrf.mxu1  ;;  %v118_v2 = vld [vmem:[%s5125_s0 + $0x340] sm:$0xff] }
 0x14a   :  { %v3879_v11 = vpop.f32.mrf.mxu0  ;;  %2490 = vmatmul.mubr.msk.f32.gmra.mxu0 %vm491_vm0, %v83_v1  ;;  %v804_v9 = vadd.f32 %v3903_v30, %v3594_v23  ;;  %v266_v23 = vld [vmem:[%s5125_s0 + $0x7e0] sm:$0xff] }
 0x14b   :  { %v3882_v12 = vpop.f32.mrf.mxu1  ;;  %1492 = vmatmul.mubr.f32.gmra.mxu1 %v246_v3  ;;  %2492 = vmatprep.mubr.msk.f32.mxu0 %vm491_vm0, %v88_v4  ;;  %v267_v4 = vld [vmem:[%s5125_s0 + $0x7e8] sm:$0xff] }
 0x14c   :  { %5146 = vst [vmem:[#allocation20_spill] sm:$0xff] %v3882_v12  ;;  %v890_v14 = vpop.f32.mrf.mxu0  ;;  %1496 = vmatprep.mubr.f32.mxu1 %v252_v10 }
 0x14d   :  { %v1190_v25 = vpop.f32.mrf.mxu1  ;;  %v123_v14 = vld [vmem:[%s5125_s0 + $0x368] sm:$0xff] }
 0x14e   :  { %v3897_v29 = vpop.f32.mrf.mxu0  ;;  %2493 = vmatmul.mubr.msk.f32.gmra.mxu0 %vm491_vm0, %v93_v13  ;;  %v128_v25 = vld [vmem:[%s5125_s0 + $0x390] sm:$0xff] }
 0x14f   :  { %v3905_v34 = vpop.f32.mrf.mxu1  ;;  %1497 = vmatmul.mubr.f32.gmra.mxu1 %v251_v21  ;;  %2495 = vmatprep.mubr.msk.f32.mxu0 %vm491_vm0, %v98_v22 }
 0x150   :  { %5147 = vst [vmem:[#allocation21_spill] sm:$0xff] %v3905_v34  ;;  %v895_v40 = vpop.f32.mrf.mxu0  ;;  %1501 = vmatprep.mubr.f32.mxu1 %v257_v26 }
 0x151   :  { %v1195_v43 = vpop.f32.mrf.mxu1  ;;  %v809_v40 = vadd.f32 %v3903_v30, %v3610_v0  ;;  %v271_v0 = vld [vmem:[%s5125_s0 + $0x808] sm:$0xff] }
 0x152   :  { %v3922_v52 = vpop.f32.mrf.mxu0  ;;  %2496 = vmatmul.mubr.msk.f32.gmra.mxu0 %vm491_vm0, %v103_v35  ;;  %v272_v35 = vld [vmem:[%s5125_s0 + $0x810] sm:$0xff]  ;;  %v133_v43 = vld [vmem:[%s5125_s0 + $0x3b8] sm:$0xff] }
 0x153   :  { %v1263_v53 = vpop.f32.mrf.mxu1  ;;  %1502 = vmatmul.mubr.f32.gmra.mxu1 %v256_v41  ;;  %2498 = vmatprep.mubr.msk.f32.mxu0 %vm491_vm0, %v108_v42 }
 0x154   :  { %v3929_v57 = vadd.f32 %v1263_v53, %v799_v51  ;;  %v900_v1 = vpop.f32.mrf.mxu0  ;;  %1506 = vmatprep.mubr.f32.mxu1 %v262_v50  ;;  %v138_v53 = vld [vmem:[%s5125_s0 + $0x3e0] sm:$0xff] }
 0x155   :  { %v1265_v3 = vpop.f32.mrf.mxu1  ;;  %v277_v1 = vld [vmem:[%s5125_s0 + $0x838] sm:$0xff] }
 0x156   :  { %v3942_v10 = vpop.f32.mrf.mxu0  ;;  %2499 = vmatmul.mubr.msk.f32.gmra.mxu0 %vm491_vm0, %v113_v56 }
 0x157   :  { %v1268_v13 = vpop.f32.mrf.mxu1  ;;  %1507 = vmatmul.mubr.f32.gmra.mxu1 %v261_v15  ;;  %2501 = vmatprep.mubr.msk.f32.mxu0 %vm491_vm0, %v118_v2  ;;  %v814_v15 = vadd.f32 %v3903_v30, %v3626_v38  ;;  %v276_v38 = vld [vmem:[%s5125_s0 + $0x830] sm:$0xff] }
 0x158   :  { %v3949_v21 = vadd.f32 %v1268_v13, %v804_v9  ;;  %v905_v22 = vpop.f32.mrf.mxu0  ;;  %1511 = vmatprep.mubr.f32.mxu1 %v267_v4  ;;  %v143_v4 = vld [vmem:[%s5125_s0 + $0x408] sm:$0xff] }
 0x159   :  { %v1270_v26 = vpop.f32.mrf.mxu1 }
 0x15a   :  { %v3962_v41 = vpop.f32.mrf.mxu0  ;;  %2502 = vmatmul.mubr.msk.f32.gmra.mxu0 %vm491_vm0, %v123_v14  ;;  %v148_v14 = vld [vmem:[%s5125_s0 + $0x430] sm:$0xff] }
 0x15b   :  { %v1273_v42 = vpop.f32.mrf.mxu1  ;;  %1512 = vmatmul.mubr.f32.gmra.mxu1 %v266_v23  ;;  %2504 = vmatprep.mubr.msk.f32.mxu0 %vm491_vm0, %v128_v25  ;;  %v282_v23 = vld [vmem:[%s5125_s0 + $0x860] sm:$0xff]  ;;  %v819_v25 = vadd.f32 %v3903_v30, %v3642_v46  ;;  %v281_v46 = vld [vmem:[%s5125_s0 + $0x858] sm:$0xff] }
 0x15c   :  { %v3969_v50 = vadd.f32 %v1273_v42, %v809_v40  ;;  %v910_v51 = vpop.f32.mrf.mxu0  ;;  %1516 = vmatprep.mubr.f32.mxu1 %v272_v35  ;;  %v153_v40 = vld [vmem:[%s5125_s0 + $0x458] sm:$0xff] }
 0x15d   :  { %v1275_v56 = vpop.f32.mrf.mxu1  ;;  %v158_v51 = vld [vmem:[%s5125_s0 + $0x480] sm:$0xff] }
 0x15e   :  { %v3982_v2 = vpop.f32.mrf.mxu0  ;;  %2505 = vmatmul.mubr.msk.f32.gmra.mxu0 %vm491_vm0, %v133_v43  ;;  %v824_v56 = vadd.f32 %v3903_v30, %v3658_v54  ;;  %v286_v54 = vld [vmem:[%s5125_s0 + $0x880] sm:$0xff] }
 0x15f   :  { %v1278_v3 = vpop.f32.mrf.mxu1  ;;  %1517 = vmatmul.mubr.f32.gmra.mxu1 %v271_v0  ;;  %2507 = vmatprep.mubr.msk.f32.mxu0 %vm491_vm0, %v138_v53  ;;  %v287_v53 = vld [vmem:[%s5125_s0 + $0x888] sm:$0xff] }
 0x160   :  { %v3989_v9 = vadd.f32 %v1278_v3, %v814_v15  ;;  %v915_v13 = vpop.f32.mrf.mxu0  ;;  %1521 = vmatprep.mubr.f32.mxu1 %v277_v1  ;;  %v163_v3 = vld [vmem:[%s5125_s0 + $0x4a8] sm:$0xff] }
 0x161   :  { %v1280_v22 = vpop.f32.mrf.mxu1 }
 0x162   :  { %v4002_v26 = vpop.f32.mrf.mxu0  ;;  %2508 = vmatmul.mubr.msk.f32.gmra.mxu0 %vm491_vm0, %v143_v4  ;;  %v292_v22 = vld [vmem:[%s5125_s0 + $0x8b0] sm:$0xff] }
 0x163   :  { %v1283_v35 = vpop.f32.mrf.mxu1  ;;  %1522 = vmatmul.mubr.f32.gmra.mxu1 %v276_v38  ;;  %2510 = vmatprep.mubr.msk.f32.mxu0 %vm491_vm0, %v148_v14  ;;  %v168_v38 = vld [vmem:[%s5125_s0 + $0x4d0] sm:$0xff] }
 0x164   :  { %v4009_v42 = vadd.f32 %v1283_v35, %v819_v25  ;;  %v920_v43 = vpop.f32.mrf.mxu0  ;;  %1526 = vmatprep.mubr.f32.mxu1 %v282_v23  ;;  %v829_v23 = vadd.f32 %v3903_v30, %v3674_v62  ;;  %v291_v62 = vld [vmem:[%s5125_s0 + $0x8a8] sm:$0xff] }
 0x165   :  { %v1285_v0 = vpop.f32.mrf.mxu1 }
 0x166   :  { %v4022_v1 = vpop.f32.mrf.mxu0  ;;  %2511 = vmatmul.mubr.msk.f32.gmra.mxu0 %vm491_vm0, %v153_v40  ;;  %v173_v40 = vld [vmem:[%s5125_s0 + $0x4f8] sm:$0xff] }
 0x167   :  { %v1288_v15 = vpop.f32.mrf.mxu1  ;;  %1527 = vmatmul.mubr.f32.gmra.mxu1 %v281_v46  ;;  %2513 = vmatprep.mubr.msk.f32.mxu0 %vm491_vm0, %v158_v51  ;;  %v178_v51 = vld [vmem:[%s5125_s0 + $0x520] sm:$0xff] }
 0x168   :  { %v4029_v4 = vadd.f32 %v1288_v15, %v824_v56  ;;  %v925_v13 = vpop.f32.mrf.mxu0  ;;  %1531 = vmatprep.mubr.f32.mxu1 %v287_v53  ;;  %v297_v53 = vld [vmem:[%s5125_s0 + $0x8d8] sm:$0xff]  ;;  %v834_v56 = vadd.f32 %v3903_v30, %v3690_v7  ;;  %v296_v7 = vld [vmem:[%s5125_s0 + $0x8d0] sm:$0xff] }
 0x169   :  { %v1290_v14 = vpop.f32.mrf.mxu1  ;;  %v183_v13 = vld [vmem:[%s5125_s0 + $0x548] sm:$0xff] }
 0x16a   :  { %v4042_v25 = vpop.f32.mrf.mxu0  ;;  %2514 = vmatmul.mubr.msk.f32.gmra.mxu0 %vm491_vm0, %v163_v3  ;;  %v188_v14 = vld [vmem:[%s5125_s0 + $0x570] sm:$0xff] }
 0x16b   :  { %v1293_v35 = vpop.f32.mrf.mxu1  ;;  %1532 = vmatmul.mubr.f32.gmra.mxu1 %v286_v54  ;;  %2516 = vmatprep.mubr.msk.f32.mxu0 %vm491_vm0, %v168_v38 }
 0x16c   :  { %v4049_v43 = vadd.f32 %v1293_v35, %v829_v23  ;;  %v930_v46 = vpop.f32.mrf.mxu0  ;;  %1536 = vmatprep.mubr.f32.mxu1 %v292_v22  ;;  %v302_v23 = vld [vmem:[%s5125_s0 + $0x900] sm:$0xff]  ;;  %v839_v35 = vadd.f32 %v3903_v30, %v3706_v17  ;;  %v301_v17 = vld [vmem:[%s5125_s0 + $0x8f8] sm:$0xff] }
 0x16d   :  { %v1295_v0 = vpop.f32.mrf.mxu1 }
 0x16e   :  { %v4062_v15 = vpop.f32.mrf.mxu0  ;;  %2517 = vmatmul.mubr.msk.f32.gmra.mxu0 %vm491_vm0, %v173_v40 }
 0x16f   :  { %v1298_v3 = vpop.f32.mrf.mxu1  ;;  %1537 = vmatmul.mubr.f32.gmra.mxu1 %v291_v62  ;;  %2519 = vmatprep.mubr.msk.f32.mxu0 %vm491_vm0, %v178_v51  ;;  %v193_v62 = vld [vmem:[%s5125_s0 + $0x598] sm:$0xff] }
 0x170   :  { %v4069_v54 = vadd.f32 %v1298_v3, %v834_v56  ;;  %v935_v38 = vpop.f32.mrf.mxu0  ;;  %1541 = vmatprep.mubr.f32.mxu1 %v297_v53  ;;  %v198_v53 = vld [vmem:[%s5125_s0 + $0x5c0] sm:$0xff]  ;;  %v307_v3 = vld [vmem:[%s5125_s0 + $0x928] sm:$0xff] }
 0x171   :  { %v1300_v22 = vpop.f32.mrf.mxu1 }
 0x172   :  { %v4082_v40 = vpop.f32.mrf.mxu0  ;;  %2520 = vmatmul.mubr.msk.f32.gmra.mxu0 %vm491_vm0, %v183_v13  ;;  %v844_v13 = vadd.f32 %v3903_v30, %v3722_v27  ;;  %v306_v27 = vld [vmem:[%s5125_s0 + $0x920] sm:$0xff] }
 0x173   :  { %v1303_v46 = vpop.f32.mrf.mxu1  ;;  %1542 = vmatmul.mubr.f32.gmra.mxu1 %v296_v7  ;;  %2522 = vmatprep.mubr.msk.f32.mxu0 %vm491_vm0, %v188_v14  ;;  %v203_v14 = vld [vmem:[%s5125_s0 + $0x5e8] sm:$0xff] }
 0x174   :  { %v4089_v51 = vadd.f32 %v1303_v46, %v839_v35  ;;  %v940_v0 = vpop.f32.mrf.mxu0  ;;  %1546 = vmatprep.mubr.f32.mxu1 %v302_v23  ;;  %v208_v35 = vld [vmem:[%s5125_s0 + $0x610] sm:$0xff] }
 0x175   :  { %v1305_v56 = vpop.f32.mrf.mxu1  ;;  %v849_v0 = vadd.f32 %v3903_v30, %v3738_v36  ;;  %v311_v36 = vld [vmem:[%s5125_s0 + $0x948] sm:$0xff] }
 0x176   :  { %v4102_v38 = vpop.f32.mrf.mxu0  ;;  %2523 = vmatmul.mubr.msk.f32.gmra.mxu0 %vm491_vm0, %v193_v62  ;;  %v312_v62 = vld [vmem:[%s5125_s0 + $0x950] sm:$0xff]  ;;  %v213_v56 = vld [vmem:[%s5125_s0 + $0x638] sm:$0xff] }
 0x177   :  { %v1308_v7 = vpop.f32.mrf.mxu1  ;;  %1547 = vmatmul.mubr.f32.gmra.mxu1 %v301_v17  ;;  %2525 = vmatprep.mubr.msk.f32.mxu0 %vm491_vm0, %v198_v53 }
 0x178   :  { %v4109_v22 = vadd.f32 %v1308_v7, %v844_v13  ;;  %v945_v23 = vpop.f32.mrf.mxu0  ;;  %1551 = vmatprep.mubr.f32.mxu1 %v307_v3  ;;  %v218_v7 = vld [vmem:[%s5125_s0 + $0x660] sm:$0xff] }
 0x179   :  { %v1310_v46 = vpop.f32.mrf.mxu1  ;;  %v317_v23 = vld [vmem:[%s5125_s0 + $0x978] sm:$0xff] }
 0x17a   :  { %v4122_v17 = vpop.f32.mrf.mxu0  ;;  %2526 = vmatmul.mubr.msk.f32.gmra.mxu0 %vm491_vm0, %v203_v14 }
 0x17b   :  { %v1313_v53 = vpop.f32.mrf.mxu1  ;;  %1552 = vmatmul.mubr.f32.gmra.mxu1 %v306_v27  ;;  %2528 = vmatprep.mubr.msk.f32.mxu0 %vm491_vm0, %v208_v35  ;;  %v854_v27 = vadd.f32 %v3903_v30, %v3754_v48  ;;  %v316_v48 = vld [vmem:[%s5125_s0 + $0x970] sm:$0xff] }
 0x17c   :  { %v4129_v3 = vadd.f32 %v1313_v53, %v849_v0  ;;  %v950_v13 = vpop.f32.mrf.mxu0  ;;  %1556 = vmatprep.mubr.f32.mxu1 %v312_v62  ;;  %v223_v62 = vld [vmem:[%s5125_s0 + $0x688] sm:$0xff] }
 0x17d   :  { %v1315_v14 = vpop.f32.mrf.mxu1 }
 0x17e   :  { %v4142_v35 = vpop.f32.mrf.mxu0  ;;  %2529 = vmatmul.mubr.msk.f32.gmra.mxu0 %vm491_vm0, %v213_v56  ;;  %v228_v56 = vld [vmem:[%s5125_s0 + $0x6b0] sm:$0xff] }
 0x17f   :  { %v1318_v46 = vpop.f32.mrf.mxu1  ;;  %1557 = vmatmul.mubr.f32.gmra.mxu1 %v311_v36  ;;  %2531 = vmatprep.mubr.msk.f32.mxu0 %vm491_vm0, %v218_v7  ;;  %v322_v36 = vld [vmem:[%s5125_s0 + $0x9a0] sm:$0xff]  ;;  %v859_v7 = vadd.f32 %v3903_v30, %v3771_v58  ;;  %v321_v58 = vld [vmem:[%s5125_s0 + $0x998] sm:$0xff] }
 0x180   :  { %v4149_v0 = vadd.f32 %v1318_v46, %v854_v27  ;;  %v955_v53 = vpop.f32.mrf.mxu0  ;;  %1561 = vmatprep.mubr.f32.mxu1 %v317_v23  ;;  %v233_v27 = vld [vmem:[%s5125_s0 + $0x6d8] sm:$0xff] }
 0x181   :  { %v1320_v13 = vpop.f32.mrf.mxu1 }
 0x182   :  { %v4162_v14 = vpop.f32.mrf.mxu0  ;;  %2532 = vmatmul.mubr.msk.f32.gmra.mxu0 %vm491_vm0, %v223_v62  ;;  %v238_v62 = vld [vmem:[%s5125_s0 + $0x700] sm:$0xff] }
 0x183   :  { %v1323_v23 = vpop.f32.mrf.mxu1  ;;  %1562 = vmatmul.mubr.f32.gmra.mxu1 %v316_v48  ;;  %2534 = vmatprep.mubr.msk.f32.mxu0 %vm491_vm0, %v228_v56  ;;  %v327_v48 = vld [vmem:[%s5125_s0 + $0x9c8] sm:$0xff]  ;;  %v864_v56 = vadd.f32 %v3903_v30, %v3789_v5  ;;  %v326_v5 = vld [vmem:[%s5125_s0 + $0x9c0] sm:$0xff] }
 0x184   :  { %v4169_v46 = vadd.f32 %v1323_v23, %v859_v7  ;;  %v960_v53 = vpop.f32.mrf.mxu0  ;;  %1566 = vmatprep.mubr.f32.mxu1 %v322_v36  ;;  %v243_v23 = vld [vmem:[%s5125_s0 + $0x728] sm:$0xff] }
 0x185   :  { %v1325_v13 = vpop.f32.mrf.mxu1 }
 0x186   :  { %v4182_v7 = vpop.f32.mrf.mxu0  ;;  %2535 = vmatmul.mubr.msk.f32.gmra.mxu0 %vm491_vm0, %v233_v27  ;;  %v248_v27 = vld [vmem:[%s5125_s0 + $0x750] sm:$0xff] }
 0x187   :  { %v1328_v36 = vpop.f32.mrf.mxu1  ;;  %1567 = vmatmul.mubr.f32.gmra.mxu1 %v321_v58  ;;  %2537 = vmatprep.mubr.msk.f32.mxu0 %vm491_vm0, %v238_v62  ;;  %v332_v58 = vld [vmem:[%s5125_s0 + $0x9f0] sm:$0xff]  ;;  %v869_v62 = vadd.f32 %v3903_v30, %v3807_v19  ;;  %v331_v19 = vld [vmem:[%s5125_s0 + $0x9e8] sm:$0xff] }
 0x188   :  { %v4189_v53 = vadd.f32 %v1328_v36, %v864_v56  ;;  %v965_v13 = vpop.f32.mrf.mxu0  ;;  %1571 = vmatprep.mubr.f32.mxu1 %v327_v48  ;;  %v253_v36 = vld [vmem:[%s5125_s0 + $0x778] sm:$0xff] }
 0x189   :  { %v1330_v34 = vpop.f32.mrf.mxu1 }
 0x18a   :  { %v4202_v56 = vpop.f32.mrf.mxu0  ;;  %2538 = vmatmul.mubr.msk.f32.gmra.mxu0 %vm491_vm0, %v243_v23  ;;  %v258_v23 = vld [vmem:[%s5125_s0 + $0x7a0] sm:$0xff] }
 0x18b   :  { %v1333_v48 = vpop.f32.mrf.mxu1  ;;  %1572 = vmatmul.mubr.f32.gmra.mxu1 %v326_v5  ;;  %2540 = vmatprep.mubr.msk.f32.mxu0 %vm491_vm0, %v248_v27  ;;  %v337_v5 = vld [vmem:[%s5125_s0 + $0xa18] sm:$0xff]  ;;  %v874_v27 = vadd.f32 %v3903_v30, %v3825_v32  ;;  %v336_v32 = vld [vmem:[%s5125_s0 + $0xa10] sm:$0xff] }
 0x18c   :  { %v4209_v34 = vadd.f32 %v1333_v48, %v869_v62  ;;  %v970_v13 = vpop.f32.mrf.mxu0  ;;  %1576 = vmatprep.mubr.f32.mxu1 %v332_v58  ;;  %v263_v48 = vld [vmem:[%s5125_s0 + $0x7c8] sm:$0xff] }
 0x18d   :  { %v1335_v12 = vpop.f32.mrf.mxu1 }
 0x18e   :  { %v4222_v62 = vpop.f32.mrf.mxu0  ;;  %2541 = vmatmul.mubr.msk.f32.gmra.mxu0 %vm491_vm0, %v253_v36  ;;  %v268_v36 = vld [vmem:[%s5125_s0 + $0x7f0] sm:$0xff] }
 0x18f   :  { %v1338_v58 = vpop.f32.mrf.mxu1  ;;  %1577 = vmatmul.mubr.f32.gmra.mxu1 %v331_v19  ;;  %2543 = vmatprep.mubr.msk.f32.mxu0 %vm491_vm0, %v258_v23  ;;  %v342_v19 = vld [vmem:[%s5125_s0 + $0xa40] sm:$0xff]  ;;  %v879_v23 = vadd.f32 %v3903_v30, %v3843_v44  ;;  %v341_v44 = vld [vmem:[%s5125_s0 + $0xa38] sm:$0xff] }
 0x190   :  { %v4229_v12 = vadd.f32 %v1338_v58, %v874_v27  ;;  %v975_v13 = vpop.f32.mrf.mxu0  ;;  %1581 = vmatprep.mubr.f32.mxu1 %v337_v5  ;;  %v273_v58 = vld [vmem:[%s5125_s0 + $0x818] sm:$0xff] }
 0x191   :  { %v1340_v45 = vpop.f32.mrf.mxu1 }
 0x192   :  { %v4242_v27 = vpop.f32.mrf.mxu0  ;;  %2544 = vmatmul.mubr.msk.f32.gmra.mxu0 %vm491_vm0, %v263_v48  ;;  %v278_v48 = vld [vmem:[%s5125_s0 + $0x840] sm:$0xff] }
 0x193   :  { %v1343_v5 = vpop.f32.mrf.mxu1  ;;  %1582 = vmatmul.mubr.f32.gmra.mxu1 %v336_v32  ;;  %2546 = vmatprep.mubr.msk.f32.mxu0 %vm491_vm0, %v268_v36  ;;  %v347_v32 = vld [vmem:[%s5125_s0 + $0xa68] sm:$0xff]  ;;  %v884_v36 = vadd.f32 %v3903_v30, %v3861_v60  ;;  %v346_v60 = vld [vmem:[%s5125_s0 + $0xa60] sm:$0xff] }
 0x194   :  { %v4249_v45 = vadd.f32 %v1343_v5, %v879_v23  ;;  %v980_v13 = vpop.f32.mrf.mxu0  ;;  %1586 = vmatprep.mubr.f32.mxu1 %v342_v19  ;;  %v283_v5 = vld [vmem:[%s5125_s0 + $0x868] sm:$0xff] }
 0x195   :  { %v1345_v61 = vpop.f32.mrf.mxu1 }
 0x196   :  { %v4262_v23 = vpop.f32.mrf.mxu0  ;;  %2547 = vmatmul.mubr.msk.f32.gmra.mxu0 %vm491_vm0, %v273_v58  ;;  %v288_v58 = vld [vmem:[%s5125_s0 + $0x890] sm:$0xff] }
 0x197   :  { %v1348_v19 = vpop.f32.mrf.mxu1  ;;  %1587 = vmatmul.mubr.f32.gmra.mxu1 %v341_v44  ;;  %2549 = vmatprep.mubr.msk.f32.mxu0 %vm491_vm0, %v278_v48  ;;  %v352_v44 = vld [vmem:[%s5125_s0 + $0xa90] sm:$0xff]  ;;  %v889_v48 = vadd.f32 %v3903_v30, %v3879_v11  ;;  %v351_v11 = vld [vmem:[%s5125_s0 + $0xa88] sm:$0xff] }
 0x198   :  { %v4269_v61 = vadd.f32 %v1348_v19, %v884_v36  ;;  %v985_v13 = vpop.f32.mrf.mxu0  ;;  %1591 = vmatprep.mubr.f32.mxu1 %v347_v32  ;;  %v293_v19 = vld [vmem:[%s5125_s0 + $0x8b8] sm:$0xff] }
 0x199   :  { %v1350_v20 = vpop.f32.mrf.mxu1 }
 0x19a   :  { %v4282_v36 = vpop.f32.mrf.mxu0  ;;  %2550 = vmatmul.mubr.msk.f32.gmra.mxu0 %vm491_vm0, %v283_v5  ;;  %v298_v5 = vld [vmem:[%s5125_s0 + $0x8e0] sm:$0xff] }
 0x19b   :  { %v1353_v32 = vpop.f32.mrf.mxu1  ;;  %1592 = vmatmul.mubr.f32.gmra.mxu1 %v346_v60  ;;  %2552 = vmatprep.mubr.msk.f32.mxu0 %vm491_vm0, %v288_v58  ;;  %v357_v60 = vld [vmem:[%s5125_s0 + $0xab8] sm:$0xff]  ;;  %v894_v58 = vadd.f32 %v3903_v30, %v3897_v29  ;;  %v356_v29 = vld [vmem:[%s5125_s0 + $0xab0] sm:$0xff] }
 0x19c   :  { %v4289_v20 = vadd.f32 %v1353_v32, %v889_v48  ;;  %v990_v13 = vpop.f32.mrf.mxu0  ;;  %1596 = vmatprep.mubr.f32.mxu1 %v352_v44  ;;  %v303_v32 = vld [vmem:[%s5125_s0 + $0x908] sm:$0xff] }
 0x19d   :  { %v1355_v33 = vpop.f32.mrf.mxu1 }
 0x19e   :  { %v4302_v48 = vpop.f32.mrf.mxu0  ;;  %2553 = vmatmul.mubr.msk.f32.gmra.mxu0 %vm491_vm0, %v293_v19  ;;  %v308_v19 = vld [vmem:[%s5125_s0 + $0x930] sm:$0xff] }
 0x19f   :  { %v1358_v44 = vpop.f32.mrf.mxu1  ;;  %1597 = vmatmul.mubr.f32.gmra.mxu1 %v351_v11  ;;  %2555 = vmatprep.mubr.msk.f32.mxu0 %vm491_vm0, %v298_v5  ;;  %v362_v11 = vld [vmem:[%s5125_s0 + $0xae0] sm:$0xff]  ;;  %v899_v5 = vadd.f32 %v3903_v30, %v3922_v52  ;;  %v361_v52 = vld [vmem:[%s5125_s0 + $0xad8] sm:$0xff] }
 0x1a0   :  { %v4309_v33 = vadd.f32 %v1358_v44, %v894_v58  ;;  %v995_v13 = vpop.f32.mrf.mxu0  ;;  %1601 = vmatprep.mubr.f32.mxu1 %v357_v60  ;;  %v313_v44 = vld [vmem:[%s5125_s0 + $0x958] sm:$0xff] }
 0x1a1   :  { %v1360_v59 = vpop.f32.mrf.mxu1 }
 0x1a2   :  { %v4322_v58 = vpop.f32.mrf.mxu0  ;;  %2556 = vmatmul.mubr.msk.f32.gmra.mxu0 %vm491_vm0, %v303_v32  ;;  %v318_v32 = vld [vmem:[%s5125_s0 + $0x980] sm:$0xff] }
 0x1a3   :  { %v1363_v60 = vpop.f32.mrf.mxu1  ;;  %1602 = vmatmul.mubr.f32.gmra.mxu1 %v356_v29  ;;  %2558 = vmatprep.mubr.msk.f32.mxu0 %vm491_vm0, %v308_v19  ;;  %v367_v29 = vld [vmem:[%s5125_s0 + $0xb08] sm:$0xff]  ;;  %v904_v19 = vadd.f32 %v3903_v30, %v3942_v10  ;;  %v366_v10 = vld [vmem:[%s5125_s0 + $0xb00] sm:$0xff] }
 0x1a4   :  { %v4329_v59 = vadd.f32 %v1363_v60, %v899_v5  ;;  %v1000_v13 = vpop.f32.mrf.mxu0  ;;  %1606 = vmatprep.mubr.f32.mxu1 %v362_v11  ;;  %v323_v60 = vld [vmem:[%s5125_s0 + $0x9a8] sm:$0xff] }
 0x1a5   :  { %v1365_v6 = vpop.f32.mrf.mxu1 }
 0x1a6   :  { %v4342_v5 = vpop.f32.mrf.mxu0  ;;  %2559 = vmatmul.mubr.msk.f32.gmra.mxu0 %vm491_vm0, %v313_v44  ;;  %v328_v44 = vld [vmem:[%s5125_s0 + $0x9d0] sm:$0xff] }
 0x1a7   :  { %v1368_v11 = vpop.f32.mrf.mxu1  ;;  %1607 = vmatmul.mubr.f32.gmra.mxu1 %v361_v52  ;;  %2561 = vmatprep.mubr.msk.f32.mxu0 %vm491_vm0, %v318_v32  ;;  %v372_v52 = vld [vmem:[%s5125_s0 + $0xb30] sm:$0xff]  ;;  %v909_v32 = vadd.f32 %v3903_v30, %v3962_v41  ;;  %v371_v41 = vld [vmem:[%s5125_s0 + $0xb28] sm:$0xff] }
 0x1a8   :  { %v4349_v6 = vadd.f32 %v1368_v11, %v904_v19  ;;  %v1005_v13 = vpop.f32.mrf.mxu0  ;;  %1611 = vmatprep.mubr.f32.mxu1 %v367_v29  ;;  %v333_v11 = vld [vmem:[%s5125_s0 + $0x9f8] sm:$0xff] }
 0x1a9   :  { %v1370_v37 = vpop.f32.mrf.mxu1 }
 0x1aa   :  { %v4362_v19 = vpop.f32.mrf.mxu0  ;;  %2562 = vmatmul.mubr.msk.f32.gmra.mxu0 %vm491_vm0, %v323_v60  ;;  %v338_v60 = vld [vmem:[%s5125_s0 + $0xa20] sm:$0xff] }
 0x1ab   :  { %v1373_v29 = vpop.f32.mrf.mxu1  ;;  %1612 = vmatmul.mubr.f32.gmra.mxu1 %v366_v10  ;;  %2564 = vmatprep.mubr.msk.f32.mxu0 %vm491_vm0, %v328_v44  ;;  %v377_v10 = vld [vmem:[%s5125_s0 + $0xb58] sm:$0xff]  ;;  %v914_v44 = vadd.f32 %v3903_v30, %v3982_v2  ;;  %v376_v2 = vld [vmem:[%s5125_s0 + $0xb50] sm:$0xff] }
 0x1ac   :  { %v4369_v37 = vadd.f32 %v1373_v29, %v909_v32  ;;  %v1010_v13 = vpop.f32.mrf.mxu0  ;;  %1616 = vmatprep.mubr.f32.mxu1 %v372_v52  ;;  %v343_v29 = vld [vmem:[%s5125_s0 + $0xa48] sm:$0xff] }
 0x1ad   :  { %v1375_v49 = vpop.f32.mrf.mxu1 }
 0x1ae   :  { %v4382_v32 = vpop.f32.mrf.mxu0  ;;  %2565 = vmatmul.mubr.msk.f32.gmra.mxu0 %vm491_vm0, %v333_v11  ;;  %v348_v11 = vld [vmem:[%s5125_s0 + $0xa70] sm:$0xff] }
 0x1af   :  { %v1378_v52 = vpop.f32.mrf.mxu1  ;;  %1617 = vmatmul.mubr.f32.gmra.mxu1 %v371_v41  ;;  %2567 = vmatprep.mubr.msk.f32.mxu0 %vm491_vm0, %v338_v60  ;;  %v382_v41 = vld [vmem:[%s5125_s0 + $0xb80] sm:$0xff]  ;;  %v919_v60 = vadd.f32 %v3903_v30, %v4002_v26  ;;  %v381_v26 = vld [vmem:[%s5125_s0 + $0xb78] sm:$0xff] }
 0x1b0   :  { %v4389_v49 = vadd.f32 %v1378_v52, %v914_v44  ;;  %v1015_v13 = vpop.f32.mrf.mxu0  ;;  %1621 = vmatprep.mubr.f32.mxu1 %v377_v10  ;;  %v353_v52 = vld [vmem:[%s5125_s0 + $0xa98] sm:$0xff] }
 0x1b1   :  { %v1380_v18 = vpop.f32.mrf.mxu1 }
 0x1b2   :  { %v4402_v44 = vpop.f32.mrf.mxu0  ;;  %2568 = vmatmul.mubr.msk.f32.gmra.mxu0 %vm491_vm0, %v343_v29  ;;  %v358_v29 = vld [vmem:[%s5125_s0 + $0xac0] sm:$0xff] }
 0x1b3   :  { %v1383_v10 = vpop.f32.mrf.mxu1  ;;  %1622 = vmatmul.mubr.f32.gmra.mxu1 %v376_v2  ;;  %2570 = vmatprep.mubr.msk.f32.mxu0 %vm491_vm0, %v348_v11  ;;  %v387_v2 = vld [vmem:[%s5125_s0 + $0xba8] sm:$0xff]  ;;  %v924_v11 = vadd.f32 %v3903_v30, %v4022_v1  ;;  %v386_v1 = vld [vmem:[%s5125_s0 + $0xba0] sm:$0xff] }
 0x1b4   :  { %v4409_v18 = vadd.f32 %v1383_v10, %v919_v60  ;;  %v1020_v13 = vpop.f32.mrf.mxu0  ;;  %1626 = vmatprep.mubr.f32.mxu1 %v382_v41  ;;  %v363_v10 = vld [vmem:[%s5125_s0 + $0xae8] sm:$0xff] }
 0x1b5   :  { %v1385_v28 = vpop.f32.mrf.mxu1 }
 0x1b6   :  { %v4422_v60 = vpop.f32.mrf.mxu0  ;;  %2571 = vmatmul.mubr.msk.f32.gmra.mxu0 %vm491_vm0, %v353_v52  ;;  %v368_v52 = vld [vmem:[%s5125_s0 + $0xb10] sm:$0xff] }
 0x1b7   :  { %v1388_v41 = vpop.f32.mrf.mxu1  ;;  %1627 = vmatmul.mubr.f32.gmra.mxu1 %v381_v26  ;;  %2573 = vmatprep.mubr.msk.f32.mxu0 %vm491_vm0, %v358_v29  ;;  %v392_v26 = vld [vmem:[%s5125_s0 + $0xbd0] sm:$0xff]  ;;  %v929_v29 = vadd.f32 %v3903_v30, %v4042_v25  ;;  %v391_v25 = vld [vmem:[%s5125_s0 + $0xbc8] sm:$0xff] }
 0x1b8   :  { %v4429_v28 = vadd.f32 %v1388_v41, %v924_v11  ;;  %v1025_v13 = vpop.f32.mrf.mxu0  ;;  %1631 = vmatprep.mubr.f32.mxu1 %v387_v2  ;;  %v373_v41 = vld [vmem:[%s5125_s0 + $0xb38] sm:$0xff] }
 0x1b9   :  { %v1390_v63 = vpop.f32.mrf.mxu1 }
 0x1ba   :  { %v4442_v11 = vpop.f32.mrf.mxu0  ;;  %2574 = vmatmul.mubr.msk.f32.gmra.mxu0 %vm491_vm0, %v363_v10  ;;  %v378_v10 = vld [vmem:[%s5125_s0 + $0xb60] sm:$0xff] }
 0x1bb   :  { %v1393_v2 = vpop.f32.mrf.mxu1  ;;  %1632 = vmatmul.mubr.f32.gmra.mxu1 %v386_v1  ;;  %2576 = vmatprep.mubr.msk.f32.mxu0 %vm491_vm0, %v368_v52  ;;  %v397_v1 = vld [vmem:[%s5125_s0 + $0xbf8] sm:$0xff]  ;;  %v934_v52 = vadd.f32 %v3903_v30, %v4062_v15  ;;  %v396_v15 = vld [vmem:[%s5125_s0 + $0xbf0] sm:$0xff] }
 0x1bc   :  { %v4449_v63 = vadd.f32 %v1393_v2, %v929_v29  ;;  %v1030_v13 = vpop.f32.mrf.mxu0  ;;  %1636 = vmatprep.mubr.f32.mxu1 %v392_v26  ;;  %v383_v2 = vld [vmem:[%s5125_s0 + $0xb88] sm:$0xff] }
 0x1bd   :  { %v1395_v8 = vpop.f32.mrf.mxu1 }
 0x1be   :  { %v4462_v29 = vpop.f32.mrf.mxu0  ;;  %2577 = vmatmul.mubr.msk.f32.gmra.mxu0 %vm491_vm0, %v373_v41  ;;  %v388_v41 = vld [vmem:[%s5125_s0 + $0xbb0] sm:$0xff] }
 0x1bf   :  { %v1398_v26 = vpop.f32.mrf.mxu1  ;;  %1637 = vmatmul.mubr.f32.gmra.mxu1 %v391_v25  ;;  %2579 = vmatprep.mubr.msk.f32.mxu0 %vm491_vm0, %v378_v10  ;;  %v402_v25 = vld [vmem:[%s5125_s0 + $0xc20] sm:$0xff]  ;;  %v939_v10 = vadd.f32 %v3903_v30, %v4082_v40  ;;  %v401_v40 = vld [vmem:[%s5125_s0 + $0xc18] sm:$0xff] }
 0x1c0   :  { %v4469_v8 = vadd.f32 %v1398_v26, %v934_v52  ;;  %v1035_v13 = vpop.f32.mrf.mxu0  ;;  %1641 = vmatprep.mubr.f32.mxu1 %v397_v1  ;;  %v393_v26 = vld [vmem:[%s5125_s0 + $0xbd8] sm:$0xff] }
 0x1c1   :  { %v1400_v47 = vpop.f32.mrf.mxu1 }
 0x1c2   :  { %v4482_v52 = vpop.f32.mrf.mxu0  ;;  %2580 = vmatmul.mubr.msk.f32.gmra.mxu0 %vm491_vm0, %v383_v2  ;;  %v398_v2 = vld [vmem:[%s5125_s0 + $0xc00] sm:$0xff] }
 0x1c3   :  { %v1403_v1 = vpop.f32.mrf.mxu1  ;;  %1642 = vmatmul.mubr.f32.gmra.mxu1 %v396_v15  ;;  %2582 = vmatprep.mubr.msk.f32.mxu0 %vm491_vm0, %v388_v41  ;;  %v407_v15 = vld [vmem:[%s5125_s0 + $0xc48] sm:$0xff]  ;;  %v944_v41 = vadd.f32 %v3903_v30, %v4102_v38  ;;  %v406_v38 = vld [vmem:[%s5125_s0 + $0xc40] sm:$0xff] }
 0x1c4   :  { %v4489_v47 = vadd.f32 %v1403_v1, %v939_v10  ;;  %v1040_v13 = vpop.f32.mrf.mxu0  ;;  %1646 = vmatprep.mubr.f32.mxu1 %v402_v25  ;;  %v403_v1 = vld [vmem:[%s5125_s0 + $0xc28] sm:$0xff] }
 0x1c5   :  { %v1405_v55 = vpop.f32.mrf.mxu1 }
 0x1c6   :  { %v4502_v10 = vpop.f32.mrf.mxu0  ;;  %2583 = vmatmul.mubr.msk.f32.gmra.mxu0 %vm491_vm0, %v393_v26  ;;  %v408_v26 = vld [vmem:[%s5125_s0 + $0xc50] sm:$0xff] }
 0x1c7   :  { %v1408_v25 = vpop.f32.mrf.mxu1  ;;  %1647 = vmatmul.mubr.f32.gmra.mxu1 %v401_v40  ;;  %2585 = vmatprep.mubr.msk.f32.mxu0 %vm491_vm0, %v398_v2  ;;  %v412_v40 = vld [vmem:[%s5125_s0 + $0xc70] sm:$0xff]  ;;  %v949_v2 = vadd.f32 %v3903_v30, %v4122_v17  ;;  %v411_v17 = vld [vmem:[%s5125_s0 + $0xc68] sm:$0xff] }
 0x1c8   :  { %v4509_v55 = vadd.f32 %v1408_v25, %v944_v41  ;;  %v1045_v13 = vpop.f32.mrf.mxu0  ;;  %1651 = vmatprep.mubr.f32.mxu1 %v407_v15  ;;  %v413_v25 = vld [vmem:[%s5125_s0 + $0xc78] sm:$0xff] }
 0x1c9   :  { %v1410_v31 = vpop.f32.mrf.mxu1 }
 0x1ca   :  { %v4522_v41 = vpop.f32.mrf.mxu0  ;;  %2586 = vmatmul.mubr.msk.f32.gmra.mxu0 %vm491_vm0, %v403_v1  ;;  %v954_v1 = vadd.f32 %v3903_v30, %v4142_v35 }
 0x1cb   :  { %5148 = vst [vmem:[#allocation22_spill] sm:$0xff] %v4522_v41  ;;  %v1413_v15 = vpop.f32.mrf.mxu1  ;;  %1652 = vmatmul.mubr.f32.gmra.mxu1 %v406_v38  ;;  %2588 = vmatprep.mubr.msk.f32.mxu0 %vm491_vm0, %v408_v26 }
 0x1cc   :  { %v4529_v31 = vadd.f32 %v1413_v15, %v949_v2  ;;  %v1050_v13 = vpop.f32.mrf.mxu0  ;;  %1656 = vmatprep.mubr.f32.mxu1 %v412_v40  ;;  %v959_v40 = vadd.f32 %v3903_v30, %v4162_v14  ;;  %v969_v14 = vadd.f32 %v3903_v30, %v4202_v56  ;;  %v979_v56 = vadd.f32 %v3903_v30, %v4242_v27 }
 0x1cd   :  { %v1415_v39 = vpop.f32.mrf.mxu1  ;;  %v989_v27 = vadd.f32 %v3903_v30, %v4282_v36  ;;  %v999_v36 = vadd.f32 %v3903_v30, %v4322_v58 }
 0x1ce   :  { %v4536_v16 = vpop.f32.mrf.mxu0  ;;  %2589 = vmatmul.mubr.msk.f32.gmra.mxu0 %vm491_vm0, %v413_v25 }
 0x1cf   :  { %5149 = vst [vmem:[#allocation23_spill] sm:$0xff] %v4536_v16  ;;  %v1418_v38 = vpop.f32.mrf.mxu1  ;;  %1657 = vmatmul.mubr.f32.gmra.mxu1 %v411_v17  ;;  %v964_v16 = vadd.f32 %v3903_v30, %v4182_v7  ;;  %v974_v7 = vadd.f32 %v3903_v30, %v4222_v62  ;;  %v984_v62 = vadd.f32 %v3903_v30, %v4262_v23 }
 0x1d0   :  { %v4539_v26 = vadd.f32 %v1418_v38, %v954_v1  ;;  %v1055_v2 = vpop.f32.mrf.mxu0  ;;  %v994_v23 = vadd.f32 %v3903_v30, %v4302_v48 }
 0x1d1   :  { %v1420_v15 = vpop.f32.mrf.mxu1 }
 0x1d2   :  { %v4543_v13 = vpop.f32.mrf.mxu0 }
 0x1d3   :  { %5150 = vst [vmem:[#allocation24_spill] sm:$0xff] %v4543_v13  ;;  %v1423_v24 = vpop.f32.mrf.mxu1 }
 0x1d4   :  { %v4545_v39 = vadd.f32 %v1423_v24, %v959_v40  ;;  %v1060_v41 = vpop.f32.mrf.mxu0 }
 0x1d5   :  { %v1425_v35 = vpop.f32.mrf.mxu1 }
 0x1d6   :  { %v4549_v25 = vpop.f32.mrf.mxu0 }
 0x1d7   :  { %5151 = vst [vmem:[#allocation25_spill] sm:$0xff] %v4549_v25  ;;  %v1428_v17 = vpop.f32.mrf.mxu1 }
 0x1d8   :  { %v4551_v1 = vadd.f32 %v1428_v17, %v964_v16  ;;  %v1065_v38 = vpop.f32.mrf.mxu0 }
 0x1d9   :  { %v1430_v2 = vpop.f32.mrf.mxu1 }
 0x1da   :  { %v4555_v15 = vpop.f32.mrf.mxu0 }
 0x1db   :  { %5152 = vst [vmem:[#allocation26_spill] sm:$0xff] %v4555_v15  ;;  %v1433_v13 = vpop.f32.mrf.mxu1 }
 0x1dc   :  { %v4557_v24 = vadd.f32 %v1433_v13, %v969_v14  ;;  %v1070_v41 = vpop.f32.mrf.mxu0 }
 0x1dd   :  { %v1435_v40 = vpop.f32.mrf.mxu1 }
 0x1de   :  { %v4561_v35 = vpop.f32.mrf.mxu0 }
 0x1df   :  { %5153 = vst [vmem:[#allocation27_spill] sm:$0xff] %v4561_v35  ;;  %v1438_v25 = vpop.f32.mrf.mxu1 }
 0x1e0   :  { %v4563_v16 = vadd.f32 %v1438_v25, %v974_v7  ;;  %v1075_v17 = vpop.f32.mrf.mxu0 }
 0x1e1   :  { %v1440_v38 = vpop.f32.mrf.mxu1 }
 0x1e2   :  { %v4567_v2 = vpop.f32.mrf.mxu0 }
 0x1e3   :  { %5154 = vst [vmem:[#allocation28_spill] sm:$0xff] %v4567_v2  ;;  %v1443_v15 = vpop.f32.mrf.mxu1 }
 0x1e4   :  { %v4569_v13 = vadd.f32 %v1443_v15, %v979_v56  ;;  %v1080_v14 = vpop.f32.mrf.mxu0 }
 0x1e5   :  { %v1445_v41 = vpop.f32.mrf.mxu1 }
 0x1e6   :  { %v4573_v40 = vpop.f32.mrf.mxu0 }
 0x1e7   :  { %5155 = vst [vmem:[#allocation29_spill] sm:$0xff] %v4573_v40  ;;  %v1448_v35 = vpop.f32.mrf.mxu1 }
 0x1e8   :  { %v4575_v25 = vadd.f32 %v1448_v35, %v984_v62  ;;  %v1085_v7 = vpop.f32.mrf.mxu0 }
 0x1e9   :  { %v1450_v17 = vpop.f32.mrf.mxu1 }
 0x1ea   :  { %v4579_v38 = vpop.f32.mrf.mxu0 }
 0x1eb   :  { %5156 = vst [vmem:[#allocation30_spill] sm:$0xff] %v4579_v38  ;;  %v1453_v2 = vpop.f32.mrf.mxu1 }
 0x1ec   :  { %v4581_v15 = vadd.f32 %v1453_v2, %v989_v27  ;;  %v1090_v56 = vpop.f32.mrf.mxu0 }
 0x1ed   :  { %v1455_v14 = vpop.f32.mrf.mxu1 }
 0x1ee   :  { %v4585_v41 = vpop.f32.mrf.mxu0 }
 0x1ef   :  { %5157 = vst [vmem:[#allocation31_spill] sm:$0xff] %v4585_v41  ;;  %v1458_v40 = vpop.f32.mrf.mxu1 }
 0x1f0   :  { %v4587_v35 = vadd.f32 %v1458_v40, %v994_v23  ;;  %v1095_v62 = vpop.f32.mrf.mxu0  ;;  %v1004_v40 = vadd.f32 %v3903_v30, %v4342_v5 }
 0x1f1   :  { %v1460_v7 = vpop.f32.mrf.mxu1 }
 0x1f2   :  { %v2473_v17 = vpop.f32.mrf.mxu0 }
 0x1f3   :  { %v1463_v38 = vpop.f32.mrf.mxu1  ;;  %v1734_v2 = vadd.f32 %v2473_v17, %v3949_v21 }
 0x1f4   :  { %v4592_v27 = vadd.f32 %v1463_v38, %v999_v36  ;;  %v1728_v56 = vpop.f32.mrf.mxu0  ;;  %v4612_v36 = vld [vmem:[%s5126_s2] ss:$0 sm:$0xff] }
 0x1f5   :  { %v2128_v14 = vmax.f32 %v1734_v2, 0.0  ;;  %v1465_v48 = vpop.f32.mrf.mxu1  ;;  %v1729_v41 = vadd.f32 %v1728_v56, %v3929_v57 }
 0x1f6   :  { %v2476_v23 = vpop.f32.mrf.mxu0 }
 0x1f7   :  { %2209 = vst.msk [vmem:[%s5127_s3 + $0x8] sm:$0xff] %vm2207_vm1, %v2128_v14  ;;  %v2127_v58 = vmax.f32 %v1729_v41, 0.0  ;;  %v1468_v62 = vpop.f32.mrf.mxu1  ;;  %v1744_v21 = vadd.f32 %v2476_v23, %v3989_v9  ;;  %v1009_v9 = vadd.f32 %v4612_v36, %v4362_v19  ;;  %v1014_v23 = vadd.f32 %v4612_v36, %v4382_v32 }
 0x1f8   :  { %v4602_v38 = vadd.f32 %v1468_v62, %v1004_v40  ;;  %v1738_v7 = vpop.f32.mrf.mxu0 }
 0x1f9   :  { %2208 = vst.msk [vmem:[%s5127_s3] sm:$0xff] %vm2207_vm1, %v2127_v58  ;;  %v2130_v57 = vmax.f32 %v1744_v21, 0.0  ;;  %v1470_v30 = vpop.f32.mrf.mxu1  ;;  %v1739_v5 = vadd.f32 %v1738_v7, %v3969_v50 }
 0x1fa   :  { %v2479_v41 = vpop.f32.mrf.mxu0 }
 0x1fb   :  { %2211 = vst.msk [vmem:[%s5127_s3 + $0x18] sm:$0xff] %vm2207_vm1, %v2130_v57  ;;  %v2129_v17 = vmax.f32 %v1739_v5, 0.0  ;;  %v1473_v2 = vpop.f32.mrf.mxu1  ;;  %v1754_v56 = vadd.f32 %v2479_v41, %v4029_v4  ;;  %v1019_v5 = vadd.f32 %v4612_v36, %v4402_v44 }
 0x1fc   :  { %v4621_v14 = vadd.f32 %v1473_v2, %v1009_v9  ;;  %v1748_v50 = vpop.f32.mrf.mxu0 }
 0x1fd   :  { %2210 = vst.msk [vmem:[%s5127_s3 + $0x10] sm:$0xff] %vm2207_vm1, %v2129_v17  ;;  %v2132_v48 = vmax.f32 %v1754_v56, 0.0  ;;  %v1475_v19 = vpop.f32.mrf.mxu1  ;;  %v1749_v40 = vadd.f32 %v1748_v50, %v4009_v42 }
 0x1fe   :  { %v2482_v58 = vpop.f32.mrf.mxu0 }
 0x1ff   :  { %2213 = vst.msk [vmem:[%s5127_s3 + $0x28] sm:$0xff] %vm2207_vm1, %v2132_v48  ;;  %v2131_v4 = vmax.f32 %v1749_v40, 0.0  ;;  %v1478_v62 = vpop.f32.mrf.mxu1  ;;  %v1764_v21 = vadd.f32 %v2482_v58, %v4069_v54  ;;  %v1024_v48 = vadd.f32 %v4612_v36, %v4422_v60 }
 0x200   :  { %v4635_v7 = vadd.f32 %v1478_v62, %v1014_v23  ;;  %v1758_v57 = vpop.f32.mrf.mxu0 }
 0x201   :  { %2212 = vst.msk [vmem:[%s5127_s3 + $0x20] sm:$0xff] %vm2207_vm1, %v2131_v4  ;;  %v2134_v42 = vmax.f32 %v1764_v21, 0.0  ;;  %v1480_v32 = vpop.f32.mrf.mxu1  ;;  %v1759_v30 = vadd.f32 %v1758_v57, %v4049_v43  ;;  %v1029_v21 = vadd.f32 %v4612_v36, %v4442_v11 }
 0x202   :  { %v2485_v9 = vpop.f32.mrf.mxu0 }
 0x203   :  { %2215 = vst.msk [vmem:[%s5127_s3 + $0x38] sm:$0xff] %vm2207_vm1, %v2134_v42  ;;  %v2133_v54 = vmax.f32 %v1759_v30, 0.0  ;;  %v1483_v41 = vpop.f32.mrf.mxu1  ;;  %v1774_v17 = vadd.f32 %v2485_v9, %v4109_v22 }
 0x204   :  { %v4649_v2 = vadd.f32 %v1483_v41, %v1019_v5  ;;  %v1768_v56 = vpop.f32.mrf.mxu0 }
 0x205   :  { %2214 = vst.msk [vmem:[%s5127_s3 + $0x30] sm:$0xff] %vm2207_vm1, %v2133_v54  ;;  %v2136_v43 = vmax.f32 %v1774_v17, 0.0  ;;  %v1485_v44 = vpop.f32.mrf.mxu1  ;;  %v1769_v50 = vadd.f32 %v1768_v56, %v4089_v51 }
 0x206   :  { %v2488_v19 = vpop.f32.mrf.mxu0 }
 0x207   :  { %2217 = vst.msk [vmem:[%s5127_s3 + $0x48] sm:$0xff] %vm2207_vm1, %v2136_v43  ;;  %v2135_v22 = vmax.f32 %v1769_v50, 0.0  ;;  %v1488_v40 = vpop.f32.mrf.mxu1  ;;  %v1784_v23 = vadd.f32 %v2488_v19, %v4149_v0 }
 0x208   :  { %v4663_v58 = vadd.f32 %v1488_v40, %v1024_v48  ;;  %v1778_v4 = vpop.f32.mrf.mxu0 }
 0x209   :  { %2216 = vst.msk [vmem:[%s5127_s3 + $0x40] sm:$0xff] %vm2207_vm1, %v2135_v22  ;;  %v2138_v51 = vmax.f32 %v1784_v23, 0.0  ;;  %v1490_v60 = vpop.f32.mrf.mxu1  ;;  %v1779_v62 = vadd.f32 %v1778_v4, %v4129_v3 }
 0x20a   :  { %v2491_v57 = vpop.f32.mrf.mxu0 }
 0x20b   :  { %2219 = vst.msk [vmem:[%s5127_s3 + $0x58] sm:$0xff] %vm2207_vm1, %v2138_v51  ;;  %v2137_v0 = vmax.f32 %v1779_v62, 0.0  ;;  %v1493_v42 = vpop.f32.mrf.mxu1  ;;  %v1794_v32 = vadd.f32 %v2491_v57, %v4189_v53 }
 0x20c   :  { %v4677_v30 = vadd.f32 %v1493_v42, %v1029_v21  ;;  %v1788_v5 = vpop.f32.mrf.mxu0 }
 0x20d   :  { %2218 = vst.msk [vmem:[%s5127_s3 + $0x50] sm:$0xff] %vm2207_vm1, %v2137_v0  ;;  %v2140_v3 = vmax.f32 %v1794_v32, 0.0  ;;  %v1495_v11 = vpop.f32.mrf.mxu1  ;;  %v1789_v9 = vadd.f32 %v1788_v5, %v4169_v46 }
 0x20e   :  { %v2494_v54 = vpop.f32.mrf.mxu0 }
 0x20f   :  { %2221 = vst.msk [vmem:[%s5127_s3 + $0x68] sm:$0xff] %vm2207_vm1, %v2140_v3  ;;  %v2139_v41 = vmax.f32 %v1789_v9, 0.0  ;;  %v4688_v53 = vpop.f32.mrf.mxu1  ;;  %v1804_v17 = vadd.f32 %v2494_v54, %v4229_v12 }
 0x210   :  { %v1798_v56 = vpop.f32.mrf.mxu0 }
 0x211   :  { %2220 = vst.msk [vmem:[%s5127_s3 + $0x60] sm:$0xff] %vm2207_vm1, %v2139_v41  ;;  %v2142_v43 = vmax.f32 %v1804_v17, 0.0  ;;  %v1500_v44 = vpop.f32.mrf.mxu1  ;;  %v1799_v46 = vadd.f32 %v1798_v56, %v4209_v34 }
 0x212   :  { %v2497_v50 = vpop.f32.mrf.mxu0 }
 0x213   :  { %2223 = vst.msk [vmem:[%s5127_s3 + $0x78] sm:$0xff] %vm2207_vm1, %v2142_v43  ;;  %v2141_v48 = vmax.f32 %v1799_v46, 0.0  ;;  %v4700_v19 = vpop.f32.mrf.mxu1  ;;  %v1814_v12 = vadd.f32 %v2497_v50, %v4269_v61 }
 0x214   :  { %v1808_v22 = vpop.f32.mrf.mxu0 }
 0x215   :  { %2222 = vst.msk [vmem:[%s5127_s3 + $0x70] sm:$0xff] %vm2207_vm1, %v2141_v48  ;;  %v2144_v40 = vmax.f32 %v1814_v12, 0.0  ;;  %v1505_v23 = vpop.f32.mrf.mxu1  ;;  %v1809_v34 = vadd.f32 %v1808_v22, %v4249_v45 }
 0x216   :  { %v2500_v4 = vpop.f32.mrf.mxu0 }
 0x217   :  { %2225 = vst.msk [vmem:[%s5127_s3 + $0x88] sm:$0xff] %vm2207_vm1, %v2144_v40  ;;  %v2143_v51 = vmax.f32 %v1809_v34, 0.0  ;;  %v4712_v60 = vpop.f32.mrf.mxu1  ;;  %v1824_v61 = vadd.f32 %v2500_v4, %v4309_v33 }
 0x218   :  { %v1818_v62 = vpop.f32.mrf.mxu0 }
 0x219   :  { %2224 = vst.msk [vmem:[%s5127_s3 + $0x80] sm:$0xff] %vm2207_vm1, %v2143_v51  ;;  %v2146_v21 = vmax.f32 %v1824_v61, 0.0  ;;  %v1510_v57 = vpop.f32.mrf.mxu1  ;;  %v1819_v45 = vadd.f32 %v1818_v62, %v4289_v20 }
 0x21a   :  { %v2503_v0 = vpop.f32.mrf.mxu0 }
 0x21b   :  { %2227 = vst.msk [vmem:[%s5127_s3 + $0x98] sm:$0xff] %vm2207_vm1, %v2146_v21  ;;  %v2145_v42 = vmax.f32 %v1819_v45, 0.0  ;;  %v4724_v32 = vpop.f32.mrf.mxu1  ;;  %v1834_v33 = vadd.f32 %v2503_v0, %v4349_v6 }
 0x21c   :  { %v1828_v5 = vpop.f32.mrf.mxu0 }
 0x21d   :  { %2226 = vst.msk [vmem:[%s5127_s3 + $0x90] sm:$0xff] %vm2207_vm1, %v2145_v42  ;;  %v2148_v3 = vmax.f32 %v1834_v33, 0.0  ;;  %v1515_v11 = vpop.f32.mrf.mxu1  ;;  %v1829_v20 = vadd.f32 %v1828_v5, %v4329_v59 }
 0x21e   :  { %v2506_v9 = vpop.f32.mrf.mxu0 }
 0x21f   :  { %2229 = vst.msk [vmem:[%s5127_s3 + $0xa8] sm:$0xff] %vm2207_vm1, %v2148_v3  ;;  %v2147_v54 = vmax.f32 %v1829_v20, 0.0  ;;  %v4736_v41 = vpop.f32.mrf.mxu1  ;;  %v1844_v6 = vadd.f32 %v2506_v9, %v4389_v49 }
 0x220   :  { %v1838_v17 = vpop.f32.mrf.mxu0 }
 0x221   :  { %2228 = vst.msk [vmem:[%s5127_s3 + $0xa0] sm:$0xff] %vm2207_vm1, %v2147_v54  ;;  %v2150_v56 = vmax.f32 %v1844_v6, 0.0  ;;  %v1520_v43 = vpop.f32.mrf.mxu1  ;;  %v1839_v59 = vadd.f32 %v1838_v17, %v4369_v37 }
 0x222   :  { %v2509_v44 = vpop.f32.mrf.mxu0 }
 0x223   :  { %2231 = vst.msk [vmem:[%s5127_s3 + $0xb8] sm:$0xff] %vm2207_vm1, %v2150_v56  ;;  %v2149_v46 = vmax.f32 %v1839_v59, 0.0  ;;  %v4748_v50 = vpop.f32.mrf.mxu1  ;;  %v1854_v49 = vadd.f32 %v2509_v44, %v4429_v28 }
 0x224   :  { %v1848_v48 = vpop.f32.mrf.mxu0 }
 0x225   :  { %2230 = vst.msk [vmem:[%s5127_s3 + $0xb0] sm:$0xff] %vm2207_vm1, %v2149_v46  ;;  %v2152_v12 = vmax.f32 %v1854_v49, 0.0  ;;  %v1525_v22 = vpop.f32.mrf.mxu1  ;;  %v1849_v37 = vadd.f32 %v1848_v48, %v4409_v18 }
 0x226   :  { %v2512_v40 = vpop.f32.mrf.mxu0 }
 0x227   :  { %2233 = vst.msk [vmem:[%s5127_s3 + $0xc8] sm:$0xff] %vm2207_vm1, %v2152_v12  ;;  %v2151_v23 = vmax.f32 %v1849_v37, 0.0  ;;  %v4760_v34 = vpop.f32.mrf.mxu1  ;;  %v1864_v28 = vadd.f32 %v2512_v40, %v4469_v8 }
 0x228   :  { %v1858_v4 = vpop.f32.mrf.mxu0 }
 0x229   :  { %2232 = vst.msk [vmem:[%s5127_s3 + $0xc0] sm:$0xff] %vm2207_vm1, %v2151_v23  ;;  %v2154_v51 = vmax.f32 %v1864_v28, 0.0  ;;  %v1530_v61 = vpop.f32.mrf.mxu1  ;;  %v1859_v18 = vadd.f32 %v1858_v4, %v4449_v63 }
 0x22a   :  { %v2515_v62 = vpop.f32.mrf.mxu0 }
 0x22b   :  { %2235 = vst.msk [vmem:[%s5127_s3 + $0xd8] sm:$0xff] %vm2207_vm1, %v2154_v51  ;;  %v2153_v21 = vmax.f32 %v1859_v18, 0.0  ;;  %v4772_v57 = vpop.f32.mrf.mxu1  ;;  %v1874_v8 = vadd.f32 %v2515_v62, %v4509_v55 }
 0x22c   :  { %v1868_v45 = vpop.f32.mrf.mxu0 }
 0x22d   :  { %2234 = vst.msk [vmem:[%s5127_s3 + $0xd0] sm:$0xff] %vm2207_vm1, %v2153_v21  ;;  %v2156_v0 = vmax.f32 %v1874_v8, 0.0  ;;  %v1535_v42 = vpop.f32.mrf.mxu1  ;;  %v1869_v63 = vadd.f32 %v1868_v45, %v4489_v47 }
 0x22e   :  { %v2518_v33 = vpop.f32.mrf.mxu0 }
 0x22f   :  { %2237 = vst.msk [vmem:[%s5127_s3 + $0xe8] sm:$0xff] %vm2207_vm1, %v2156_v0  ;;  %v2155_v5 = vmax.f32 %v1869_v63, 0.0  ;;  %v4784_v3 = vpop.f32.mrf.mxu1  ;;  %v1884_v55 = vadd.f32 %v2518_v33, %v4539_v26 }
 0x230   :  { %v1878_v11 = vpop.f32.mrf.mxu0 }
 0x231   :  { %2236 = vst.msk [vmem:[%s5127_s3 + $0xe0] sm:$0xff] %vm2207_vm1, %v2155_v5  ;;  %v2158_v20 = vmax.f32 %v1884_v55, 0.0  ;;  %v1540_v9 = vpop.f32.mrf.mxu1  ;;  %v1879_v47 = vadd.f32 %v1878_v11, %v4529_v31 }
 0x232   :  { %v2521_v54 = vpop.f32.mrf.mxu0 }
 0x233   :  { %2239 = vst.msk [vmem:[%s5127_s3 + $0xf8] sm:$0xff] %vm2207_vm1, %v2158_v20  ;;  %v2157_v6 = vmax.f32 %v1879_v47, 0.0  ;;  %v4796_v17 = vpop.f32.mrf.mxu1  ;;  %v1894_v26 = vadd.f32 %v2521_v54, %v4551_v1 }
 0x234   :  { %v1888_v56 = vpop.f32.mrf.mxu0 }
 0x235   :  { %2238 = vst.msk [vmem:[%s5127_s3 + $0xf0] sm:$0xff] %vm2207_vm1, %v2157_v6  ;;  %v2160_v43 = vmax.f32 %v1894_v26, 0.0  ;;  %v1545_v59 = vpop.f32.mrf.mxu1  ;;  %v1889_v31 = vadd.f32 %v1888_v56, %v4545_v39  ;;  %v1034_v56 = vadd.f32 %v4612_v36, %v4462_v29 }
 0x236   :  { %v2524_v44 = vpop.f32.mrf.mxu0 }
 0x237   :  { %2241 = vst.msk [vmem:[%s5127_s3 + $0x108] sm:$0xff] %vm2207_vm1, %v2160_v43  ;;  %v2159_v46 = vmax.f32 %v1889_v31, 0.0  ;;  %v4808_v49 = vpop.f32.mrf.mxu1  ;;  %v1904_v1 = vadd.f32 %v2524_v44, %v4563_v16  ;;  %v1499_v44 = vadd.f32 %v4688_v53, %v1034_v56 }
 0x238   :  { %v1898_v48 = vpop.f32.mrf.mxu0 }
 0x239   :  { %2240 = vst.msk [vmem:[%s5127_s3 + $0x100] sm:$0xff] %vm2207_vm1, %v2159_v46  ;;  %v2162_v12 = vmax.f32 %v1904_v1, 0.0  ;;  %v1550_v22 = vpop.f32.mrf.mxu1  ;;  %v1899_v39 = vadd.f32 %v1898_v48, %v4557_v24  ;;  %v1044_v48 = vadd.f32 %v4612_v36, %v4502_v10 }
 0x23a   :  { %v2527_v37 = vpop.f32.mrf.mxu0 }
 0x23b   :  { %2243 = vst.msk [vmem:[%s5127_s3 + $0x118] sm:$0xff] %vm2207_vm1, %v2162_v12  ;;  %v2161_v40 = vmax.f32 %v1899_v39, 0.0  ;;  %v4820_v23 = vpop.f32.mrf.mxu1  ;;  %v1914_v16 = vadd.f32 %v2527_v37, %v4575_v25  ;;  %v1039_v39 = vadd.f32 %v4612_v36, %v4482_v52  ;;  %v1509_v37 = vadd.f32 %v4712_v60, %v1044_v48 }
 0x23c   :  { %v1908_v28 = vpop.f32.mrf.mxu0 }
 0x23d   :  { %2242 = vst.msk [vmem:[%s5127_s3 + $0x110] sm:$0xff] %vm2207_vm1, %v2161_v40  ;;  %v2164_v4 = vmax.f32 %v1914_v16, 0.0  ;;  %v1555_v51 = vpop.f32.mrf.mxu1  ;;  %v1909_v24 = vadd.f32 %v1908_v28, %v4569_v13  ;;  %v5158_v28 = vld [vmem:[#allocation23_spill] sm:$0xff] }
 0x23e   :  { %v2530_v61 = vpop.f32.mrf.mxu0  ;;  %v1504_v51 = vadd.f32 %v4700_v19, %v1039_v39 }
 0x23f   :  { %2245 = vst.msk [vmem:[%s5127_s3 + $0x128] sm:$0xff] %vm2207_vm1, %v2164_v4  ;;  %v2163_v18 = vmax.f32 %v1909_v24, 0.0  ;;  %v4832_v62 = vpop.f32.mrf.mxu1  ;;  %v1924_v25 = vadd.f32 %v2530_v61, %v4587_v35  ;;  %v1054_v4 = vadd.f32 %v4612_v36, %v5158_v28 }
 0x240   :  { %v1918_v21 = vpop.f32.mrf.mxu0 }
 0x241   :  { %2244 = vst.msk [vmem:[%s5127_s3 + $0x120] sm:$0xff] %vm2207_vm1, %v2163_v18  ;;  %v2166_v8 = vmax.f32 %v1924_v25, 0.0  ;;  %v1560_v45 = vpop.f32.mrf.mxu1  ;;  %v1919_v13 = vadd.f32 %v1918_v21, %v4581_v15  ;;  %v5159_v18 = vld [vmem:[#allocation22_spill] sm:$0xff] }
 0x242   :  { %v2533_v0 = vpop.f32.mrf.mxu0  ;;  %v1049_v25 = vadd.f32 %v4612_v36, %v5159_v18 }
 0x243   :  { %2247 = vst.msk [vmem:[%s5127_s3 + $0x138] sm:$0xff] %vm2207_vm1, %v2166_v8  ;;  %v2165_v42 = vmax.f32 %v1919_v13, 0.0  ;;  %v4844_v63 = vpop.f32.mrf.mxu1  ;;  %v1934_v35 = vadd.f32 %v2533_v0, %v4602_v38  ;;  %v5160_v13 = vld [vmem:[#allocation25_spill] sm:$0xff] }
 0x244   :  { %v1928_v33 = vpop.f32.mrf.mxu0  ;;  %v1064_v0 = vadd.f32 %v4612_v36, %v5160_v13  ;;  %v5168_v13 = vld [vmem:[#allocation3_spill] sm:$0xff] }
 0x245   :  { %2246 = vst.msk [vmem:[%s5127_s3 + $0x130] sm:$0xff] %vm2207_vm1, %v2165_v42  ;;  %v2168_v5 = vmax.f32 %v1934_v35, 0.0  ;;  %v1565_v55 = vpop.f32.mrf.mxu1  ;;  %v1929_v15 = vadd.f32 %v1928_v33, %v4592_v27  ;;  %v1514_v42 = vadd.f32 %v4724_v32, %v1049_v25  ;;  %v5167_v25 = vld [vmem:[#allocation30_spill] sm:$0xff] }
 0x246   :  { %v2536_v11 = vpop.f32.mrf.mxu0  ;;  %v5161_v55 = vld [vmem:[#allocation24_spill] sm:$0xff] }
 0x247   :  { %2249 = vst.msk [vmem:[%s5127_s3 + $0x148] sm:$0xff] %vm2207_vm1, %v2168_v5  ;;  %v2167_v20 = vmax.f32 %v1929_v15, 0.0  ;;  %v4856_v9 = vpop.f32.mrf.mxu1  ;;  %v1944_v38 = vadd.f32 %v2536_v11, %v4635_v7  ;;  %v1059_v15 = vadd.f32 %v4612_v36, %v5161_v55  ;;  %v1529_v11 = vadd.f32 %v4760_v34, %v1064_v0  ;;  %v5169_v55 = vld [vmem:[#allocation2_spill] sm:$0xff] }
 0x248   :  { %v1938_v47 = vpop.f32.mrf.mxu0  ;;  %v1104_v0 = vadd.f32 %v4612_v36, %v5168_v13 }
 0x249   :  { %2248 = vst.msk [vmem:[%s5127_s3 + $0x140] sm:$0xff] %vm2207_vm1, %v2167_v20  ;;  %v2170_v54 = vmax.f32 %v1944_v38, 0.0  ;;  %v1570_v6 = vpop.f32.mrf.mxu1  ;;  %v1939_v27 = vadd.f32 %v1938_v47, %v4621_v14 }
 0x24a   :  { %v2539_v26 = vpop.f32.mrf.mxu0 }
 0x24b   :  { %2251 = vst.msk [vmem:[%s5127_s3 + $0x158] sm:$0xff] %vm2207_vm1, %v2170_v54  ;;  %v2169_v7 = vmax.f32 %v1939_v27, 0.0  ;;  %v4870_v43 = vpop.f32.mrf.mxu1  ;;  %v1954_v59 = vadd.f32 %v2539_v26, %v4663_v58  ;;  %v5162_v54 = vld [vmem:[#allocation27_spill] sm:$0xff]  ;;  %v1524_v27 = vadd.f32 %v4748_v50, %v1059_v15  ;;  %v1099_v15 = vadd.f32 %v4612_v36, %v5169_v55 }
 0x24c   :  { %v1948_v31 = vpop.f32.mrf.mxu0  ;;  %v1074_v6 = vadd.f32 %v4612_v36, %v5162_v54 }
 0x24d   :  { %2250 = vst.msk [vmem:[%s5127_s3 + $0x150] sm:$0xff] %vm2207_vm1, %v2169_v7  ;;  %v2172_v14 = vmax.f32 %v1954_v59, 0.0  ;;  %v1575_v29 = vpop.f32.mrf.mxu1  ;;  %v1949_v46 = vadd.f32 %v1948_v31, %v4649_v2  ;;  %v5163_v59 = vld [vmem:[#allocation26_spill] sm:$0xff] }
 0x24e   :  { %v2542_v1 = vpop.f32.mrf.mxu0  ;;  %v1069_v31 = vadd.f32 %v4612_v36, %v5163_v59 }
 0x24f   :  { %2253 = vst.msk [vmem:[%s5127_s3 + $0x168] sm:$0xff] %vm2207_vm1, %v2172_v14  ;;  %v2171_v58 = vmax.f32 %v1949_v46, 0.0  ;;  %v4885_v53 = vpop.f32.mrf.mxu1  ;;  %v1964_v12 = vadd.f32 %v2542_v1, %v1499_v44  ;;  %v1539_v44 = vadd.f32 %v4784_v3, %v1074_v6  ;;  %v5164_v1 = vld [vmem:[#allocation29_spill] sm:$0xff]  ;;  %v1564_v6 = vadd.f32 %v4844_v63, %v1099_v15 }
 0x250   :  { %v1958_v22 = vpop.f32.mrf.mxu0  ;;  %v1084_v48 = vadd.f32 %v4612_v36, %v5164_v1 }
 0x251   :  { %2252 = vst.msk [vmem:[%s5127_s3 + $0x160] sm:$0xff] %vm2207_vm1, %v2171_v58  ;;  %v2174_v10 = vmax.f32 %v1964_v12, 0.0  ;;  %v1580_v2 = vpop.f32.mrf.mxu1  ;;  %v1959_v40 = vadd.f32 %v1958_v22, %v4677_v30  ;;  %v1519_v30 = vadd.f32 %v4736_v41, %v1054_v4  ;;  %v1534_v58 = vadd.f32 %v4772_v57, %v1069_v31  ;;  %v5166_v4 = vld [vmem:[#allocation31_spill] sm:$0xff] }
 0x252   :  { %v2545_v16 = vpop.f32.mrf.mxu0  ;;  %v1549_v2 = vadd.f32 %v4808_v49, %v1084_v48 }
 0x253   :  { %2255 = vst.msk [vmem:[%s5127_s3 + $0x178] sm:$0xff] %vm2207_vm1, %v2174_v10  ;;  %v2173_v52 = vmax.f32 %v1959_v40, 0.0  ;;  %v4902_v60 = vpop.f32.mrf.mxu1  ;;  %v1974_v24 = vadd.f32 %v2545_v16, %v1509_v37  ;;  %v5165_v37 = vld [vmem:[#allocation28_spill] sm:$0xff] }
 0x254   :  { %v1968_v61 = vpop.f32.mrf.mxu0  ;;  %v1079_v10 = vadd.f32 %v4612_v36, %v5165_v37 }
 0x255   :  { %2254 = vst.msk [vmem:[%s5127_s3 + $0x170] sm:$0xff] %vm2207_vm1, %v2173_v52  ;;  %v2176_v19 = vmax.f32 %v1974_v24, 0.0  ;;  %v1585_v21 = vpop.f32.mrf.mxu1  ;;  %v1969_v8 = vadd.f32 %v1968_v61, %v1504_v51  ;;  %v1094_v51 = vadd.f32 %v4612_v36, %v5166_v4 }
 0x256   :  { %v2548_v45 = vpop.f32.mrf.mxu0  ;;  %v1544_v52 = vadd.f32 %v4796_v17, %v1079_v10 }
 0x257   :  { %2257 = vst.msk [vmem:[%s5127_s3 + $0x188] sm:$0xff] %vm2207_vm1, %v2176_v19  ;;  %v2175_v41 = vmax.f32 %v1969_v8, 0.0  ;;  %v4918_v35 = vpop.f32.mrf.mxu1  ;;  %v1984_v33 = vadd.f32 %v2548_v45, %v1519_v30  ;;  %v1089_v30 = vadd.f32 %v4612_v36, %v5167_v25  ;;  %v1559_v19 = vadd.f32 %v4832_v62, %v1094_v51 }
 0x258   :  { %v1978_v5 = vpop.f32.mrf.mxu0 }
 0x259   :  { %2256 = vst.msk [vmem:[%s5127_s3 + $0x180] sm:$0xff] %vm2207_vm1, %v2175_v41  ;;  %v2178_v32 = vmax.f32 %v1984_v33, 0.0  ;;  %v1590_v20 = vpop.f32.mrf.mxu1  ;;  %v1979_v38 = vadd.f32 %v1978_v5, %v1514_v42  ;;  %v1554_v42 = vadd.f32 %v4820_v23, %v1089_v30 }
 0x25a   :  { %v2551_v47 = vpop.f32.mrf.mxu0 }
 0x25b   :  { %2259 = vst.msk [vmem:[%s5127_s3 + $0x198] sm:$0xff] %vm2207_vm1, %v2178_v32  ;;  %v2177_v34 = vmax.f32 %v1979_v38, 0.0  ;;  %v4934_v26 = vpop.f32.mrf.mxu1  ;;  %v1994_v56 = vadd.f32 %v2551_v47, %v1529_v11  ;;  %v1569_v11 = vadd.f32 %v4856_v9, %v1104_v0  ;;  %v5170_v47 = vld [vmem:[#allocation5_spill] sm:$0xff] }
 0x25c   :  { %v1988_v7 = vpop.f32.mrf.mxu0  ;;  %v1114_v54 = vadd.f32 %v4612_v36, %v5170_v47 }
 0x25d   :  { %2258 = vst.msk [vmem:[%s5127_s3 + $0x190] sm:$0xff] %vm2207_vm1, %v2177_v34  ;;  %v2180_v50 = vmax.f32 %v1994_v56, 0.0  ;;  %v1595_v14 = vpop.f32.mrf.mxu1  ;;  %v1989_v29 = vadd.f32 %v1988_v7, %v1524_v27  ;;  %v5171_v7 = vld [vmem:[#allocation4_spill] sm:$0xff] }
 0x25e   :  { %v2554_v46 = vpop.f32.mrf.mxu0  ;;  %v1109_v59 = vadd.f32 %v4612_v36, %v5171_v7  ;;  %v1579_v31 = vadd.f32 %v4885_v53, %v1114_v54  ;;  %v5179_v54 = vld [vmem:[#allocation12_spill] sm:$0xff] }
 0x25f   :  { %2261 = vst.msk [vmem:[%s5127_s3 + $0x1a8] sm:$0xff] %vm2207_vm1, %v2180_v50  ;;  %v2179_v3 = vmax.f32 %v1989_v29, 0.0  ;;  %v4950_v12 = vpop.f32.mrf.mxu1  ;;  %v2004_v22 = vadd.f32 %v2554_v46, %v1539_v44  ;;  %v5172_v29 = vld [vmem:[#allocation7_spill] sm:$0xff] }
 0x260   :  { %v1998_v39 = vpop.f32.mrf.mxu0  ;;  %v1124_v46 = vadd.f32 %v4612_v36, %v5172_v29  ;;  %v1574_v1 = vadd.f32 %v4870_v43, %v1109_v59  ;;  %v5180_v59 = vld [vmem:[#allocation15_spill] sm:$0xff] }
 0x261   :  { %2260 = vst.msk [vmem:[%s5127_s3 + $0x1a0] sm:$0xff] %vm2207_vm1, %v2179_v3  ;;  %v2182_v57 = vmax.f32 %v2004_v22, 0.0  ;;  %v1600_v40 = vpop.f32.mrf.mxu1  ;;  %v1999_v16 = vadd.f32 %v1998_v39, %v1534_v58  ;;  %v5173_v22 = vld [vmem:[#allocation6_spill] sm:$0xff] }
 0x262   :  { %v2557_v28 = vpop.f32.mrf.mxu0  ;;  %v1119_v39 = vadd.f32 %v4612_v36, %v5173_v22  ;;  %v1589_v37 = vadd.f32 %v4918_v35, %v1124_v46  ;;  %v5174_v40 = vld [vmem:[#allocation9_spill] sm:$0xff]  ;;  %v5181_v46 = vld [vmem:[#allocation14_spill] sm:$0xff] }
 0x263   :  { %2263 = vst.msk [vmem:[%s5127_s3 + $0x1b8] sm:$0xff] %vm2207_vm1, %v2182_v57  ;;  %v2181_v49 = vmax.f32 %v1999_v16, 0.0  ;;  %v4966_v24 = vpop.f32.mrf.mxu1  ;;  %v2014_v61 = vadd.f32 %v2557_v28, %v1549_v2  ;;  %v1134_v16 = vadd.f32 %v4612_v36, %v5174_v40  ;;  %v5182_v22 = vld [vmem:[#allocation17_spill] sm:$0xff]  ;;  %v5183_v40 = vld [vmem:[#allocation16_spill] sm:$0xff] }
 0x264   :  { %v2008_v18 = vpop.f32.mrf.mxu0  ;;  %v1584_v28 = vadd.f32 %v4902_v60, %v1119_v39  ;;  %v1174_v39 = vadd.f32 %v4612_v36, %v5182_v22 }
 0x265   :  { %2262 = vst.msk [vmem:[%s5127_s3 + $0x1b0] sm:$0xff] %vm2207_vm1, %v2181_v49  ;;  %v2184_v17 = vmax.f32 %v2014_v61, 0.0  ;;  %v1605_v21 = vpop.f32.mrf.mxu1  ;;  %v2009_v8 = vadd.f32 %v2008_v18, %v1544_v52  ;;  %v5175_v49 = vld [vmem:[#allocation8_spill] sm:$0xff]  ;;  %v1599_v18 = vadd.f32 %v4950_v12, %v1134_v16  ;;  %v1169_v16 = vadd.f32 %v4612_v36, %v5183_v40 }
 0x266   :  { %v2560_v45 = vpop.f32.mrf.mxu0  ;;  %v1129_v61 = vadd.f32 %v4612_v36, %v5175_v49  ;;  %v5184_v49 = vld [vmem:[#allocation19_spill] sm:$0xff] }
 0x267   :  { %2265 = vst.msk [vmem:[%s5127_s3 + $0x1c8] sm:$0xff] %vm2207_vm1, %v2184_v17  ;;  %v2183_v62 = vmax.f32 %v2009_v8, 0.0  ;;  %v1608_v41 = vpop.f32.mrf.mxu1  ;;  %v2024_v33 = vadd.f32 %v2560_v45, %v1559_v19  ;;  %v5176_v17 = vld [vmem:[#allocation11_spill] sm:$0xff] }
 0x268   :  { %v2018_v5 = vpop.f32.mrf.mxu0  ;;  %v1144_v21 = vadd.f32 %v4612_v36, %v5176_v17  ;;  %v1594_v8 = vadd.f32 %v4934_v26, %v1129_v61  ;;  %v1184_v61 = vadd.f32 %v4612_v36, %v5184_v49  ;;  %v5185_v17 = vld [vmem:[#allocation18_spill] sm:$0xff] }
 0x269   :  { %2264 = vst.msk [vmem:[%s5127_s3 + $0x1c0] sm:$0xff] %vm2207_vm1, %v2183_v62  ;;  %v2186_v23 = vmax.f32 %v2024_v33, 0.0  ;;  %v1610_v32 = vpop.f32.mrf.mxu1  ;;  %v2019_v20 = vadd.f32 %v2018_v5, %v1554_v42  ;;  %v5177_v42 = vld [vmem:[#allocation10_spill] sm:$0xff] }
 0x26a   :  { %v2563_v38 = vpop.f32.mrf.mxu0  ;;  %v1139_v62 = vadd.f32 %v4612_v36, %v5177_v42  ;;  %v1609_v33 = vadd.f32 %v1608_v41, %v1144_v21  ;;  %v1179_v21 = vadd.f32 %v4612_v36, %v5185_v17 }
 0x26b   :  { %2267 = vst.msk [vmem:[%s5127_s3 + $0x1d8] sm:$0xff] %vm2207_vm1, %v2186_v23  ;;  %v2185_v9 = vmax.f32 %v2019_v20, 0.0  ;;  %v4996_v27 = vpop.f32.mrf.mxu1  ;;  %v2034_v34 = vadd.f32 %v2563_v38, %v1569_v11  ;;  %v5178_v11 = vld [vmem:[#allocation13_spill] sm:$0xff] }
 0x26c   :  { %v2028_v56 = vpop.f32.mrf.mxu0  ;;  %v1154_v23 = vadd.f32 %v4612_v36, %v5178_v11  ;;  %v1604_v32 = vadd.f32 %v4966_v24, %v1139_v62 }
 0x26d   :  { %2266 = vst.msk [vmem:[%s5127_s3 + $0x1d0] sm:$0xff] %vm2207_vm1, %v2185_v9  ;;  %v2188_v63 = vmax.f32 %v2034_v34, 0.0  ;;  %v1615_v44 = vpop.f32.mrf.mxu1  ;;  %v2029_v50 = vadd.f32 %v2028_v56, %v1564_v6  ;;  %v1149_v6 = vadd.f32 %v4612_v36, %v5179_v54 }
 0x26e   :  { %v2566_v14 = vpop.f32.mrf.mxu0 }
 0x26f   :  { %2269 = vst.msk [vmem:[%s5127_s3 + $0x1e8] sm:$0xff] %vm2207_vm1, %v2188_v63  ;;  %v2187_v53 = vmax.f32 %v2029_v50, 0.0  ;;  %v1618_v48 = vpop.f32.mrf.mxu1  ;;  %v2044_v58 = vadd.f32 %v2566_v14, %v1579_v31  ;;  %v1164_v31 = vadd.f32 %v4612_v36, %v5180_v59  ;;  %v1614_v63 = vadd.f32 %v4996_v27, %v1149_v6 }
 0x270   :  { %v2038_v3 = vpop.f32.mrf.mxu0  ;;  %v1619_v9 = vadd.f32 %v1618_v48, %v1154_v23 }
 0x271   :  { %2268 = vst.msk [vmem:[%s5127_s3 + $0x1e0] sm:$0xff] %vm2207_vm1, %v2187_v53  ;;  %v2190_v43 = vmax.f32 %v2044_v58, 0.0  ;;  %v1620_v10 = vpop.f32.mrf.mxu1  ;;  %v2039_v2 = vadd.f32 %v2038_v3, %v1574_v1  ;;  %v1159_v1 = vadd.f32 %v4612_v36, %v5181_v46 }
 0x272   :  { %v2569_v57 = vpop.f32.mrf.mxu0 }
 0x273   :  { %2271 = vst.msk [vmem:[%s5127_s3 + $0x1f8] sm:$0xff] %vm2207_vm1, %v2190_v43  ;;  %v2189_v35 = vmax.f32 %v2039_v2, 0.0  ;;  %v1623_v4 = vpop.f32.mrf.mxu1  ;;  %v2054_v51 = vadd.f32 %v2569_v57, %v1589_v37 }
 0x274   :  { %v2048_v52 = vpop.f32.mrf.mxu0  ;;  %v1624_v37 = vadd.f32 %v1623_v4, %v1159_v1 }
 0x275   :  { %2270 = vst.msk [vmem:[%s5127_s3 + $0x1f0] sm:$0xff] %vm2207_vm1, %v2189_v35  ;;  %v2192_v60 = vmax.f32 %v2054_v51, 0.0  ;;  %v1625_v25 = vpop.f32.mrf.mxu1  ;;  %v2049_v30 = vadd.f32 %v2048_v52, %v1584_v28 }
 0x276   :  { %v2572_v19 = vpop.f32.mrf.mxu0 }
 0x277   :  { %2273 = vst.msk [vmem:[%s5127_s3 + $0x208] sm:$0xff] %vm2207_vm1, %v2192_v60  ;;  %v2191_v12 = vmax.f32 %v2049_v30, 0.0  ;;  %v1628_v45 = vpop.f32.mrf.mxu1  ;;  %v2064_v13 = vadd.f32 %v2572_v19, %v1599_v18 }
 0x278   :  { %v2058_v0 = vpop.f32.mrf.mxu0  ;;  %v1629_v53 = vadd.f32 %v1628_v45, %v1164_v31 }
 0x279   :  { %2272 = vst.msk [vmem:[%s5127_s3 + $0x200] sm:$0xff] %vm2207_vm1, %v2191_v12  ;;  %v2194_v5 = vmax.f32 %v2064_v13, 0.0  ;;  %v1630_v26 = vpop.f32.mrf.mxu1  ;;  %v2059_v55 = vadd.f32 %v2058_v0, %v1594_v8 }
 0x27a   :  { %v2575_v15 = vpop.f32.mrf.mxu0 }
 0x27b   :  { %2275 = vst.msk [vmem:[%s5127_s3 + $0x218] sm:$0xff] %vm2207_vm1, %v2194_v5  ;;  %v2193_v41 = vmax.f32 %v2059_v55, 0.0  ;;  %v1633_v20 = vpop.f32.mrf.mxu1  ;;  %v2074_v38 = vadd.f32 %v2575_v15, %v1609_v33  ;;  %v5186_v55 = vld [vmem:[#allocation20_spill] sm:$0xff] }
 0x27c   :  { %v2068_v47 = vpop.f32.mrf.mxu0  ;;  %v1634_v18 = vadd.f32 %v1633_v20, %v1169_v16  ;;  %v1189_v15 = vadd.f32 %v4612_v36, %v5186_v55 }
 0x27d   :  { %2274 = vst.msk [vmem:[%s5127_s3 + $0x210] sm:$0xff] %vm2207_vm1, %v2193_v41  ;;  %v2196_v34 = vmax.f32 %v2074_v38, 0.0  ;;  %v1635_v24 = vpop.f32.mrf.mxu1  ;;  %v2069_v56 = vadd.f32 %v2068_v47, %v1604_v32  ;;  %v5187_v41 = vld [vmem:[#allocation21_spill] sm:$0xff] }
 0x27e   :  { %v2578_v7 = vpop.f32.mrf.mxu0  ;;  %v1194_v20 = vadd.f32 %v4612_v36, %v5187_v41 }
 0x27f   :  { %2277 = vst.msk [vmem:[%s5127_s3 + $0x228] sm:$0xff] %vm2207_vm1, %v2196_v34  ;;  %v2195_v44 = vmax.f32 %v2069_v56, 0.0  ;;  %v1638_v50 = vpop.f32.mrf.mxu1  ;;  %v2084_v14 = vadd.f32 %v2578_v7, %v1619_v9 }
 0x280   :  { %v2078_v29 = vpop.f32.mrf.mxu0  ;;  %v1639_v28 = vadd.f32 %v1638_v50, %v1174_v39 }
 0x281   :  { %2276 = vst.msk [vmem:[%s5127_s3 + $0x220] sm:$0xff] %vm2207_vm1, %v2195_v44  ;;  %v2198_v48 = vmax.f32 %v2084_v14, 0.0  ;;  %v1640_v27 = vpop.f32.mrf.mxu1  ;;  %v2079_v58 = vadd.f32 %v2078_v29, %v1614_v63 }
 0x282   :  { %v2581_v3 = vpop.f32.mrf.mxu0 }
 0x283   :  { %2279 = vst.msk [vmem:[%s5127_s3 + $0x238] sm:$0xff] %vm2207_vm1, %v2198_v48  ;;  %v2197_v43 = vmax.f32 %v2079_v58, 0.0  ;;  %v1643_v10 = vpop.f32.mrf.mxu1  ;;  %v2094_v2 = vadd.f32 %v2581_v3, %v1629_v53 }
 0x284   :  { %v2088_v57 = vpop.f32.mrf.mxu0  ;;  %v1644_v42 = vadd.f32 %v1643_v10, %v1179_v21 }
 0x285   :  { %2278 = vst.msk [vmem:[%s5127_s3 + $0x230] sm:$0xff] %vm2207_vm1, %v2197_v43  ;;  %v2200_v35 = vmax.f32 %v2094_v2, 0.0  ;;  %v1645_v4 = vpop.f32.mrf.mxu1  ;;  %v2089_v51 = vadd.f32 %v2088_v57, %v1624_v37 }
 0x286   :  { %v2584_v52 = vpop.f32.mrf.mxu0 }
 0x287   :  { %2281 = vst.msk [vmem:[%s5127_s3 + $0x248] sm:$0xff] %vm2207_vm1, %v2200_v35  ;;  %v2199_v60 = vmax.f32 %v2089_v51, 0.0  ;;  %v1648_v25 = vpop.f32.mrf.mxu1  ;;  %v2104_v30 = vadd.f32 %v2584_v52, %v1639_v28 }
 0x288   :  { %v2098_v19 = vpop.f32.mrf.mxu0  ;;  %v1649_v8 = vadd.f32 %v1648_v25, %v1184_v61 }
 0x289   :  { %2280 = vst.msk [vmem:[%s5127_s3 + $0x240] sm:$0xff] %vm2207_vm1, %v2199_v60  ;;  %v2202_v12 = vmax.f32 %v2104_v30, 0.0  ;;  %v1650_v45 = vpop.f32.mrf.mxu1  ;;  %v2099_v13 = vadd.f32 %v2098_v19, %v1634_v18 }
 0x28a   :  { %v2587_v0 = vpop.f32.mrf.mxu0 }
 0x28b   :  { %2283 = vst.msk [vmem:[%s5127_s3 + $0x258] sm:$0xff] %vm2207_vm1, %v2202_v12  ;;  %v2201_v62 = vmax.f32 %v2099_v13, 0.0  ;;  %v1653_v33 = vpop.f32.mrf.mxu1  ;;  %v2114_v5 = vadd.f32 %v2587_v0, %v1649_v8 }
 0x28c   :  { %v2108_v26 = vpop.f32.mrf.mxu0  ;;  %v1654_v47 = vadd.f32 %v1653_v33, %v1189_v15 }
 0x28d   :  { %2282 = vst.msk [vmem:[%s5127_s3 + $0x250] sm:$0xff] %vm2207_vm1, %v2201_v62  ;;  %v2204_v11 = vmax.f32 %v2114_v5, 0.0  ;;  %v1655_v23 = vpop.f32.mrf.mxu1  ;;  %v2109_v32 = vadd.f32 %v2108_v26, %v1644_v42 }
 0x28e   :  { %v2590_v38 = vpop.f32.mrf.mxu0 }
 0x28f   :  { %2285 = vst.msk [vmem:[%s5127_s3 + $0x268] sm:$0xff] %vm2207_vm1, %v2204_v11  ;;  %v2203_v54 = vmax.f32 %v2109_v32, 0.0  ;;  %v1658_v6 = vpop.f32.mrf.mxu1 }
 0x290   :  { %v1659_v9 = vadd.f32 %v1658_v6, %v1194_v20  ;;  %v2118_v34 = vpop.f32.mrf.mxu0 }
 0x291   :  { %2284 = vst.msk [vmem:[%s5127_s3 + $0x260] sm:$0xff] %vm2207_vm1, %v2203_v54  ;;  %v1660_v24 = vpop.f32.mrf.mxu1  ;;  %v2119_v56 = vadd.f32 %v2118_v34, %v1654_v47 }
 0x292   :  { %v2124_v7 = vadd.f32 %v2590_v38, %v1659_v9 }
 0x293   :  { %v2205_v36 = vmax.f32 %v2119_v56, 0.0 }
 0x294   :  { %v2206_v59 = vmax.f32 %v2124_v7, 0.0 }
 0x295   :  { %2286 = vst.msk [vmem:[%s5127_s3 + $0x270] sm:$0xff] %vm2207_vm1, %v2205_v36 }
 0x296   :  { %2287 = vst.msk [vmem:[%s5127_s3 + $0x278] sm:$0xff] %vm2207_vm1, %v2206_v59 }

// kernel: qnetwork_forward.5
= control target key start
LH: loop header
LB: loop body
LE: loop exit
PB: predicated region body
PF: predicated region fallthrough
CT: control target
= control target key end

     0   :  { %v542_v0 = vmov 0.0   ;;  %vm515_vm0 = vcmask 523264   ;;  %s1164_s1 = inlined_call_operand.vmem [shape: f32[512,64], index: 1, kind: input, shape index: {}]   ;;  %s1165_s0 = inlined_call_operand.vmem [shape: f32[160,512], index: 0, kind: input, shape index: {}]   ;;  %s1166_s2 = inlined_call_operand.vmem [shape: f32[1,64], index: 2, kind: input, shape index: {}]   ;;  %s1167_s3 = inlined_call_operand.vmem [shape: f32[160,64], index: 3, kind: output, shape index: {}]  }
   0x1   :  { %165 = vmatprep.subr.mxu0 %v542_v0  ;;  %330 = vmatprep.subr.mxu1 %v542_v0  ;;  %v109_v1 = vld [vmem:[%s1164_s1 + $0x78] sm:$0xff]  ;;  %v108_v3 = vld [vmem:[%s1164_s1 + $0x70] sm:$0xff]  ;;  %v107_v5 = vld [vmem:[%s1164_s1 + $0x68] sm:$0xff] }
   0x2   :  { %v141_v2 = vld [vmem:[%s1164_s1 + $0x178] sm:$0xff]  ;;  %166 = vmatpush1.msra.mxu0 %v109_v1  ;;  %v140_v4 = vld [vmem:[%s1164_s1 + $0x170] sm:$0xff]  ;;  %v139_v6 = vld [vmem:[%s1164_s1 + $0x168] sm:$0xff] }
   0x3   :  { %331 = vmatpush1.msra.mxu1 %v141_v2  ;;  %167 = vmatprep.subr.mxu0 %v542_v0  ;;  %v106_v7 = vld [vmem:[%s1164_s1 + $0x60] sm:$0xff]  ;;  %v105_v9 = vld [vmem:[%s1164_s1 + $0x58] sm:$0xff]  ;;  %v104_v11 = vld [vmem:[%s1164_s1 + $0x50] sm:$0xff] }
   0x4   :  { %332 = vmatprep.subr.mxu1 %v542_v0  ;;  %168 = vmatpush1.msra.mxu0 %v108_v3  ;;  %v138_v8 = vld [vmem:[%s1164_s1 + $0x160] sm:$0xff]  ;;  %v137_v10 = vld [vmem:[%s1164_s1 + $0x158] sm:$0xff]  ;;  %v136_v12 = vld [vmem:[%s1164_s1 + $0x150] sm:$0xff] }
   0x5   :  { %333 = vmatpush1.msra.mxu1 %v140_v4  ;;  %169 = vmatprep.subr.mxu0 %v542_v0  ;;  %v103_v13 = vld [vmem:[%s1164_s1 + $0x48] sm:$0xff]  ;;  %v102_v15 = vld [vmem:[%s1164_s1 + $0x40] sm:$0xff]  ;;  %v101_v17 = vld [vmem:[%s1164_s1 + $0x38] sm:$0xff] }
   0x6   :  { %334 = vmatprep.subr.mxu1 %v542_v0  ;;  %170 = vmatpush1.msra.mxu0 %v107_v5  ;;  %v135_v14 = vld [vmem:[%s1164_s1 + $0x148] sm:$0xff]  ;;  %v134_v16 = vld [vmem:[%s1164_s1 + $0x140] sm:$0xff]  ;;  %v133_v18 = vld [vmem:[%s1164_s1 + $0x138] sm:$0xff] }
   0x7   :  { %335 = vmatpush1.msra.mxu1 %v139_v6  ;;  %171 = vmatprep.subr.mxu0 %v542_v0  ;;  %v100_v19 = vld [vmem:[%s1164_s1 + $0x30] sm:$0xff]  ;;  %v99_v21 = vld [vmem:[%s1164_s1 + $0x28] sm:$0xff]  ;;  %v98_v23 = vld [vmem:[%s1164_s1 + $0x20] sm:$0xff] }
   0x8   :  { %336 = vmatprep.subr.mxu1 %v542_v0  ;;  %172 = vmatpush1.msra.mxu0 %v106_v7  ;;  %v132_v20 = vld [vmem:[%s1164_s1 + $0x130] sm:$0xff]  ;;  %v131_v22 = vld [vmem:[%s1164_s1 + $0x128] sm:$0xff]  ;;  %v130_v24 = vld [vmem:[%s1164_s1 + $0x120] sm:$0xff] }
   0x9   :  { %337 = vmatpush1.msra.mxu1 %v138_v8  ;;  %173 = vmatprep.subr.mxu0 %v542_v0  ;;  %v97_v25 = vld [vmem:[%s1164_s1 + $0x18] sm:$0xff]  ;;  %v96_v27 = vld [vmem:[%s1164_s1 + $0x10] sm:$0xff]  ;;  %v95_v29 = vld [vmem:[%s1164_s1 + $0x8] sm:$0xff] }
   0xa   :  { %338 = vmatprep.subr.mxu1 %v542_v0  ;;  %174 = vmatpush1.msra.mxu0 %v105_v9  ;;  %v129_v26 = vld [vmem:[%s1164_s1 + $0x118] sm:$0xff]  ;;  %v128_v28 = vld [vmem:[%s1164_s1 + $0x110] sm:$0xff]  ;;  %v127_v30 = vld [vmem:[%s1164_s1 + $0x108] sm:$0xff] }
   0xb   :  { %339 = vmatpush1.msra.mxu1 %v137_v10  ;;  %175 = vmatprep.subr.mxu0 %v542_v0  ;;  %v94_v31 = vld [vmem:[%s1164_s1] sm:$0xff]  ;;  %v125_v33 = vld [vmem:[%s1164_s1 + $0xf8] sm:$0xff]  ;;  %v124_v35 = vld [vmem:[%s1164_s1 + $0xf0] sm:$0xff] }
   0xc   :  { %340 = vmatprep.subr.mxu1 %v542_v0  ;;  %176 = vmatpush1.msra.mxu0 %v104_v11  ;;  %v126_v32 = vld [vmem:[%s1164_s1 + $0x100] sm:$0xff]  ;;  %v157_v34 = vld [vmem:[%s1164_s1 + $0x1f8] sm:$0xff]  ;;  %v156_v36 = vld [vmem:[%s1164_s1 + $0x1f0] sm:$0xff] }
   0xd   :  { %341 = vmatpush1.msra.mxu1 %v136_v12  ;;  %177 = vmatprep.subr.mxu0 %v542_v0  ;;  %v123_v37 = vld [vmem:[%s1164_s1 + $0xe8] sm:$0xff]  ;;  %v122_v39 = vld [vmem:[%s1164_s1 + $0xe0] sm:$0xff]  ;;  %v121_v41 = vld [vmem:[%s1164_s1 + $0xd8] sm:$0xff] }
   0xe   :  { %342 = vmatprep.subr.mxu1 %v542_v0  ;;  %178 = vmatpush1.msra.mxu0 %v103_v13  ;;  %v155_v38 = vld [vmem:[%s1164_s1 + $0x1e8] sm:$0xff]  ;;  %v154_v40 = vld [vmem:[%s1164_s1 + $0x1e0] sm:$0xff]  ;;  %v153_v42 = vld [vmem:[%s1164_s1 + $0x1d8] sm:$0xff] }
   0xf   :  { %343 = vmatpush1.msra.mxu1 %v135_v14  ;;  %179 = vmatprep.subr.mxu0 %v542_v0  ;;  %v120_v43 = vld [vmem:[%s1164_s1 + $0xd0] sm:$0xff]  ;;  %v119_v45 = vld [vmem:[%s1164_s1 + $0xc8] sm:$0xff]  ;;  %v118_v47 = vld [vmem:[%s1164_s1 + $0xc0] sm:$0xff] }
  0x10   :  { %344 = vmatprep.subr.mxu1 %v542_v0  ;;  %180 = vmatpush1.msra.mxu0 %v102_v15  ;;  %v152_v44 = vld [vmem:[%s1164_s1 + $0x1d0] sm:$0xff]  ;;  %v151_v46 = vld [vmem:[%s1164_s1 + $0x1c8] sm:$0xff]  ;;  %v150_v48 = vld [vmem:[%s1164_s1 + $0x1c0] sm:$0xff] }
  0x11   :  { %345 = vmatpush1.msra.mxu1 %v134_v16  ;;  %181 = vmatprep.subr.mxu0 %v542_v0  ;;  %v117_v49 = vld [vmem:[%s1164_s1 + $0xb8] sm:$0xff]  ;;  %v116_v51 = vld [vmem:[%s1164_s1 + $0xb0] sm:$0xff]  ;;  %v115_v53 = vld [vmem:[%s1164_s1 + $0xa8] sm:$0xff] }
  0x12   :  { %346 = vmatprep.subr.mxu1 %v542_v0  ;;  %182 = vmatpush1.msra.mxu0 %v101_v17  ;;  %v149_v50 = vld [vmem:[%s1164_s1 + $0x1b8] sm:$0xff]  ;;  %v148_v52 = vld [vmem:[%s1164_s1 + $0x1b0] sm:$0xff]  ;;  %v147_v54 = vld [vmem:[%s1164_s1 + $0x1a8] sm:$0xff] }
  0x13   :  { %347 = vmatpush1.msra.mxu1 %v133_v18  ;;  %183 = vmatprep.subr.mxu0 %v542_v0  ;;  %v114_v55 = vld [vmem:[%s1164_s1 + $0xa0] sm:$0xff]  ;;  %v113_v57 = vld [vmem:[%s1164_s1 + $0x98] sm:$0xff]  ;;  %v112_v59 = vld [vmem:[%s1164_s1 + $0x90] sm:$0xff] }
  0x14   :  { %348 = vmatprep.subr.mxu1 %v542_v0  ;;  %184 = vmatpush1.msra.mxu0 %v100_v19  ;;  %v146_v56 = vld [vmem:[%s1164_s1 + $0x1a0] sm:$0xff]  ;;  %v145_v58 = vld [vmem:[%s1164_s1 + $0x198] sm:$0xff]  ;;  %v144_v60 = vld [vmem:[%s1164_s1 + $0x190] sm:$0xff] }
  0x15   :  { %349 = vmatpush1.msra.mxu1 %v132_v20  ;;  %185 = vmatprep.subr.mxu0 %v542_v0  ;;  %v111_v61 = vld [vmem:[%s1164_s1 + $0x88] sm:$0xff]  ;;  %v110_v63 = vld [vmem:[%s1164_s1 + $0x80] sm:$0xff]  ;;  %v17_v3 = vld [vmem:[%s1165_s0 + $0x18] sm:$0xff] }
  0x16   :  { %350 = vmatprep.subr.mxu1 %v542_v0  ;;  %186 = vmatpush1.msra.mxu0 %v99_v21  ;;  %v143_v62 = vld [vmem:[%s1164_s1 + $0x188] sm:$0xff]  ;;  %v142_v2 = vld [vmem:[%s1164_s1 + $0x180] sm:$0xff]  ;;  %v16_v5 = vld [vmem:[%s1165_s0 + $0x10] sm:$0xff] }
  0x17   :  { %351 = vmatpush1.msra.mxu1 %v131_v22  ;;  %187 = vmatprep.subr.mxu0 %v542_v0  ;;  %v15_v1 = vld [vmem:[%s1165_s0 + $0x8] sm:$0xff]  ;;  %v14_v4 = vld [vmem:[%s1165_s0] sm:$0xff]  ;;  %v21_v7 = vld [vmem:[%s1165_s0 + $0x38] sm:$0xff] }
  0x18   :  { %352 = vmatprep.subr.mxu1 %v542_v0  ;;  %188 = vmatpush1.msra.mxu0 %v98_v23  ;;  %v19_v6 = vld [vmem:[%s1165_s0 + $0x28] sm:$0xff]  ;;  %v20_v8 = vld [vmem:[%s1165_s0 + $0x30] sm:$0xff]  ;;  %v25_v10 = vld [vmem:[%s1165_s0 + $0x58] sm:$0xff] }
  0x19   :  { %353 = vmatpush1.msra.mxu1 %v130_v24  ;;  %189 = vmatprep.subr.mxu0 %v542_v0  ;;  %v23_v9 = vld [vmem:[%s1165_s0 + $0x48] sm:$0xff]  ;;  %v22_v11 = vld [vmem:[%s1165_s0 + $0x40] sm:$0xff]  ;;  %v24_v12 = vld [vmem:[%s1165_s0 + $0x50] sm:$0xff] }
  0x1a   :  { %354 = vmatprep.subr.mxu1 %v542_v0  ;;  %190 = vmatpush1.msra.mxu0 %v97_v25  ;;  %v27_v13 = vld [vmem:[%s1165_s0 + $0x68] sm:$0xff]  ;;  %v29_v14 = vld [vmem:[%s1165_s0 + $0x78] sm:$0xff]  ;;  %v26_v15 = vld [vmem:[%s1165_s0 + $0x60] sm:$0xff] }
  0x1b   :  { %355 = vmatpush1.msra.mxu1 %v129_v26  ;;  %191 = vmatprep.subr.mxu0 %v542_v0  ;;  %v28_v16 = vld [vmem:[%s1165_s0 + $0x70] sm:$0xff]  ;;  %v31_v17 = vld [vmem:[%s1165_s0 + $0x88] sm:$0xff]  ;;  %v33_v18 = vld [vmem:[%s1165_s0 + $0x98] sm:$0xff] }
  0x1c   :  { %356 = vmatprep.subr.mxu1 %v542_v0  ;;  %192 = vmatpush1.msra.mxu0 %v96_v27  ;;  %v30_v19 = vld [vmem:[%s1165_s0 + $0x80] sm:$0xff]  ;;  %v32_v20 = vld [vmem:[%s1165_s0 + $0x90] sm:$0xff]  ;;  %v35_v21 = vld [vmem:[%s1165_s0 + $0xa8] sm:$0xff] }
  0x1d   :  { %357 = vmatpush1.msra.mxu1 %v128_v28  ;;  %193 = vmatprep.subr.mxu0 %v542_v0  ;;  %v37_v22 = vld [vmem:[%s1165_s0 + $0xb8] sm:$0xff]  ;;  %v34_v23 = vld [vmem:[%s1165_s0 + $0xa0] sm:$0xff]  ;;  %v36_v24 = vld [vmem:[%s1165_s0 + $0xb0] sm:$0xff] }
  0x1e   :  { %358 = vmatprep.subr.mxu1 %v542_v0  ;;  %194 = vmatpush1.msra.mxu0 %v95_v29  ;;  %v39_v25 = vld [vmem:[%s1165_s0 + $0xc8] sm:$0xff]  ;;  %v41_v26 = vld [vmem:[%s1165_s0 + $0xd8] sm:$0xff]  ;;  %v38_v27 = vld [vmem:[%s1165_s0 + $0xc0] sm:$0xff] }
  0x1f   :  { %359 = vmatpush1.msra.mxu1 %v127_v30  ;;  %195 = vmatprep.subr.mxu0 %v542_v0  ;;  %v40_v28 = vld [vmem:[%s1165_s0 + $0xd0] sm:$0xff]  ;;  %v43_v29 = vld [vmem:[%s1165_s0 + $0xe8] sm:$0xff]  ;;  %v45_v30 = vld [vmem:[%s1165_s0 + $0xf8] sm:$0xff] }
  0x20   :  { %360 = vmatprep.subr.mxu1 %v542_v0  ;;  %196 = vmatpush1.msra.mxu0 %v94_v31  ;;  %v42_v31 = vld [vmem:[%s1165_s0 + $0xe0] sm:$0xff] }
  0x21   :  { %361 = vmatpush1.msra.mxu1 %v126_v32  ;;  %197 = vmatprep.subr.mxu0 %v542_v0  ;;  %v44_v32 = vld [vmem:[%s1165_s0 + $0xf0] sm:$0xff] }
  0x22   :  { %362 = vmatprep.subr.mxu1 %v542_v0  ;;  %198 = vmatpush2.msra.mxu0 %v125_v33  ;;  %v47_v33 = vld [vmem:[%s1165_s0 + $0x108] sm:$0xff] }
  0x23   :  { %363 = vmatpush2.msra.mxu1 %v157_v34  ;;  %199 = vmatprep.subr.mxu0 %v542_v0  ;;  %v49_v34 = vld [vmem:[%s1165_s0 + $0x118] sm:$0xff] }
  0x24   :  { %364 = vmatprep.subr.mxu1 %v542_v0  ;;  %200 = vmatpush2.msra.mxu0 %v124_v35  ;;  %v46_v35 = vld [vmem:[%s1165_s0 + $0x100] sm:$0xff] }
  0x25   :  { %365 = vmatpush2.msra.mxu1 %v156_v36  ;;  %201 = vmatprep.subr.mxu0 %v542_v0  ;;  %v48_v36 = vld [vmem:[%s1165_s0 + $0x110] sm:$0xff] }
  0x26   :  { %366 = vmatprep.subr.mxu1 %v542_v0  ;;  %202 = vmatpush2.msra.mxu0 %v123_v37  ;;  %v51_v37 = vld [vmem:[%s1165_s0 + $0x128] sm:$0xff] }
  0x27   :  { %367 = vmatpush2.msra.mxu1 %v155_v38  ;;  %203 = vmatprep.subr.mxu0 %v542_v0  ;;  %v53_v38 = vld [vmem:[%s1165_s0 + $0x138] sm:$0xff] }
  0x28   :  { %368 = vmatprep.subr.mxu1 %v542_v0  ;;  %204 = vmatpush2.msra.mxu0 %v122_v39  ;;  %v50_v39 = vld [vmem:[%s1165_s0 + $0x120] sm:$0xff] }
  0x29   :  { %369 = vmatpush2.msra.mxu1 %v154_v40  ;;  %205 = vmatprep.subr.mxu0 %v542_v0  ;;  %v52_v40 = vld [vmem:[%s1165_s0 + $0x130] sm:$0xff] }
  0x2a   :  { %370 = vmatprep.subr.mxu1 %v542_v0  ;;  %206 = vmatpush2.msra.mxu0 %v121_v41  ;;  %v55_v41 = vld [vmem:[%s1165_s0 + $0x148] sm:$0xff] }
  0x2b   :  { %371 = vmatpush2.msra.mxu1 %v153_v42  ;;  %207 = vmatprep.subr.mxu0 %v542_v0  ;;  %v57_v42 = vld [vmem:[%s1165_s0 + $0x158] sm:$0xff] }
  0x2c   :  { %372 = vmatprep.subr.mxu1 %v542_v0  ;;  %208 = vmatpush2.msra.mxu0 %v120_v43  ;;  %v54_v43 = vld [vmem:[%s1165_s0 + $0x140] sm:$0xff] }
  0x2d   :  { %373 = vmatpush2.msra.mxu1 %v152_v44  ;;  %209 = vmatprep.subr.mxu0 %v542_v0  ;;  %v56_v44 = vld [vmem:[%s1165_s0 + $0x150] sm:$0xff] }
  0x2e   :  { %374 = vmatprep.subr.mxu1 %v542_v0  ;;  %210 = vmatpush2.msra.mxu0 %v119_v45  ;;  %v59_v45 = vld [vmem:[%s1165_s0 + $0x168] sm:$0xff] }
  0x2f   :  { %375 = vmatpush2.msra.mxu1 %v151_v46  ;;  %211 = vmatprep.subr.mxu0 %v542_v0  ;;  %v61_v46 = vld [vmem:[%s1165_s0 + $0x178] sm:$0xff] }
  0x30   :  { %376 = vmatprep.subr.mxu1 %v542_v0  ;;  %212 = vmatpush2.msra.mxu0 %v118_v47  ;;  %v58_v47 = vld [vmem:[%s1165_s0 + $0x160] sm:$0xff] }
  0x31   :  { %377 = vmatpush2.msra.mxu1 %v150_v48  ;;  %213 = vmatprep.subr.mxu0 %v542_v0  ;;  %v60_v48 = vld [vmem:[%s1165_s0 + $0x170] sm:$0xff] }
  0x32   :  { %378 = vmatprep.subr.mxu1 %v542_v0  ;;  %214 = vmatpush2.msra.mxu0 %v117_v49  ;;  %v63_v49 = vld [vmem:[%s1165_s0 + $0x188] sm:$0xff] }
  0x33   :  { %379 = vmatpush2.msra.mxu1 %v149_v50  ;;  %215 = vmatprep.subr.mxu0 %v542_v0  ;;  %v65_v50 = vld [vmem:[%s1165_s0 + $0x198] sm:$0xff] }
  0x34   :  { %380 = vmatprep.subr.mxu1 %v542_v0  ;;  %216 = vmatpush2.msra.mxu0 %v116_v51  ;;  %v62_v51 = vld [vmem:[%s1165_s0 + $0x180] sm:$0xff] }
  0x35   :  { %381 = vmatpush2.msra.mxu1 %v148_v52  ;;  %217 = vmatprep.subr.mxu0 %v542_v0  ;;  %v64_v52 = vld [vmem:[%s1165_s0 + $0x190] sm:$0xff] }
  0x36   :  { %382 = vmatprep.subr.mxu1 %v542_v0  ;;  %218 = vmatpush2.msra.mxu0 %v115_v53  ;;  %v67_v53 = vld [vmem:[%s1165_s0 + $0x1a8] sm:$0xff] }
  0x37   :  { %383 = vmatpush2.msra.mxu1 %v147_v54  ;;  %219 = vmatprep.subr.mxu0 %v542_v0  ;;  %v69_v54 = vld [vmem:[%s1165_s0 + $0x1b8] sm:$0xff] }
  0x38   :  { %384 = vmatprep.subr.mxu1 %v542_v0  ;;  %220 = vmatpush2.msra.mxu0 %v114_v55  ;;  %v66_v55 = vld [vmem:[%s1165_s0 + $0x1a0] sm:$0xff] }
  0x39   :  { %385 = vmatpush2.msra.mxu1 %v146_v56  ;;  %221 = vmatprep.subr.mxu0 %v542_v0  ;;  %v68_v56 = vld [vmem:[%s1165_s0 + $0x1b0] sm:$0xff] }
  0x3a   :  { %386 = vmatprep.subr.mxu1 %v542_v0  ;;  %222 = vmatpush2.msra.mxu0 %v113_v57  ;;  %v71_v57 = vld [vmem:[%s1165_s0 + $0x1c8] sm:$0xff] }
  0x3b   :  { %387 = vmatpush2.msra.mxu1 %v145_v58  ;;  %223 = vmatprep.subr.mxu0 %v542_v0  ;;  %v73_v58 = vld [vmem:[%s1165_s0 + $0x1d8] sm:$0xff] }
  0x3c   :  { %388 = vmatprep.subr.mxu1 %v542_v0  ;;  %224 = vmatpush2.msra.mxu0 %v112_v59  ;;  %v70_v59 = vld [vmem:[%s1165_s0 + $0x1c0] sm:$0xff] }
  0x3d   :  { %389 = vmatpush2.msra.mxu1 %v144_v60  ;;  %225 = vmatprep.subr.mxu0 %v542_v0  ;;  %v72_v60 = vld [vmem:[%s1165_s0 + $0x1d0] sm:$0xff] }
  0x3e   :  { %390 = vmatprep.subr.mxu1 %v542_v0  ;;  %226 = vmatpush2.msra.mxu0 %v111_v61  ;;  %v75_v61 = vld [vmem:[%s1165_s0 + $0x1e8] sm:$0xff] }
  0x3f   :  { %391 = vmatpush2.msra.mxu1 %v143_v62  ;;  %227 = vmatprep.subr.mxu0 %v542_v0  ;;  %v77_v62 = vld [vmem:[%s1165_s0 + $0x1f8] sm:$0xff] }
  0x40   :  { %392 = vmatprep.subr.mxu1 %v542_v0  ;;  %228 = vmatpush2.msra.mxu0 %v110_v63  ;;  %v18_v0 = vld [vmem:[%s1165_s0 + $0x20] sm:$0xff] }
  0x41   :  { %229 = vmatprep.mubr.f32.mxu0 %v15_v1  ;;  %393 = vmatpush2.msra.mxu1 %v142_v2  ;;  %v74_v63 = vld [vmem:[%s1165_s0 + $0x1e0] sm:$0xff]  ;;  %v76_v1 = vld [vmem:[%s1165_s0 + $0x1f0] sm:$0xff]  ;;  %v79_v2 = vld [vmem:[%s1165_s0 + $0x208] sm:$0xff] }
  0x42   :  { %394 = vmatprep.mubr.f32.mxu1 %v17_v3  ;;  %230 = vmatmul.mubr.f32.vlgmr.msra.gmra.mxu0 %v14_v4  ;;  %v81_v3 = vld [vmem:[%s1165_s0 + $0x218] sm:$0xff]  ;;  %v78_v4 = vld [vmem:[%s1165_s0 + $0x200] sm:$0xff] }
  0x43   :  { %395 = vmatmul.mubr.f32.vlgmr.msra.gmra.mxu1 %v16_v5  ;;  %234 = vmatprep.mubr.f32.mxu0 %v19_v6  ;;  %v80_v5 = vld [vmem:[%s1165_s0 + $0x210] sm:$0xff]  ;;  %v83_v6 = vld [vmem:[%s1165_s0 + $0x228] sm:$0xff] }
  0x44   :  { %399 = vmatprep.mubr.f32.mxu1 %v21_v7  ;;  %v85_v7 = vld [vmem:[%s1165_s0 + $0x238] sm:$0xff] }
  0x46   :  { %235 = vmatmul.mubr.f32.gmra.mxu0 %v18_v0  ;;  %v82_v0 = vld [vmem:[%s1165_s0 + $0x220] sm:$0xff] }
  0x47   :  { %400 = vmatmul.mubr.f32.gmra.mxu1 %v20_v8  ;;  %239 = vmatprep.mubr.f32.mxu0 %v23_v9  ;;  %v84_v8 = vld [vmem:[%s1165_s0 + $0x230] sm:$0xff]  ;;  %v87_v9 = vld [vmem:[%s1165_s0 + $0x248] sm:$0xff] }
  0x48   :  { %404 = vmatprep.mubr.f32.mxu1 %v25_v10  ;;  %v89_v10 = vld [vmem:[%s1165_s0 + $0x258] sm:$0xff] }
  0x4a   :  { %240 = vmatmul.mubr.f32.gmra.mxu0 %v22_v11  ;;  %v86_v11 = vld [vmem:[%s1165_s0 + $0x240] sm:$0xff] }
  0x4b   :  { %405 = vmatmul.mubr.f32.gmra.mxu1 %v24_v12  ;;  %244 = vmatprep.mubr.f32.mxu0 %v27_v13  ;;  %v88_v12 = vld [vmem:[%s1165_s0 + $0x250] sm:$0xff]  ;;  %v91_v13 = vld [vmem:[%s1165_s0 + $0x268] sm:$0xff] }
  0x4c   :  { %409 = vmatprep.mubr.f32.mxu1 %v29_v14  ;;  %v93_v14 = vld [vmem:[%s1165_s0 + $0x278] sm:$0xff] }
  0x4e   :  { %245 = vmatmul.mubr.f32.gmra.mxu0 %v26_v15  ;;  %v90_v15 = vld [vmem:[%s1165_s0 + $0x260] sm:$0xff] }
  0x4f   :  { %410 = vmatmul.mubr.f32.gmra.mxu1 %v28_v16  ;;  %249 = vmatprep.mubr.f32.mxu0 %v31_v17  ;;  %v92_v16 = vld [vmem:[%s1165_s0 + $0x270] sm:$0xff]  ;;  %v1062_v17 = vld [vmem:[%s1166_s2] ss:$0 sm:$0xff] }
  0x50   :  { %414 = vmatprep.mubr.f32.mxu1 %v33_v18 }
  0x52   :  { %250 = vmatmul.mubr.f32.gmra.mxu0 %v30_v19 }
  0x53   :  { %415 = vmatmul.mubr.f32.gmra.mxu1 %v32_v20  ;;  %254 = vmatprep.mubr.f32.mxu0 %v35_v21 }
  0x54   :  { %419 = vmatprep.mubr.f32.mxu1 %v37_v22 }
  0x56   :  { %255 = vmatmul.mubr.f32.gmra.mxu0 %v34_v23 }
  0x57   :  { %420 = vmatmul.mubr.f32.gmra.mxu1 %v36_v24  ;;  %259 = vmatprep.mubr.f32.mxu0 %v39_v25 }
  0x58   :  { %424 = vmatprep.mubr.f32.mxu1 %v41_v26 }
  0x5a   :  { %260 = vmatmul.mubr.f32.gmra.mxu0 %v38_v27 }
  0x5b   :  { %425 = vmatmul.mubr.f32.gmra.mxu1 %v40_v28  ;;  %264 = vmatprep.mubr.f32.mxu0 %v43_v29 }
  0x5c   :  { %429 = vmatprep.mubr.f32.mxu1 %v45_v30 }
  0x5e   :  { %265 = vmatmul.mubr.f32.gmra.mxu0 %v42_v31 }
  0x5f   :  { %430 = vmatmul.mubr.f32.gmra.mxu1 %v44_v32  ;;  %269 = vmatprep.mubr.f32.mxu0 %v47_v33 }
  0x60   :  { %434 = vmatprep.mubr.f32.mxu1 %v49_v34 }
  0x62   :  { %270 = vmatmul.mubr.f32.gmra.mxu0 %v46_v35 }
  0x63   :  { %435 = vmatmul.mubr.f32.gmra.mxu1 %v48_v36  ;;  %274 = vmatprep.mubr.f32.mxu0 %v51_v37 }
  0x64   :  { %439 = vmatprep.mubr.f32.mxu1 %v53_v38 }
  0x66   :  { %275 = vmatmul.mubr.f32.gmra.mxu0 %v50_v39 }
  0x67   :  { %440 = vmatmul.mubr.f32.gmra.mxu1 %v52_v40  ;;  %279 = vmatprep.mubr.f32.mxu0 %v55_v41 }
  0x68   :  { %444 = vmatprep.mubr.f32.mxu1 %v57_v42 }
  0x6a   :  { %280 = vmatmul.mubr.f32.gmra.mxu0 %v54_v43 }
  0x6b   :  { %445 = vmatmul.mubr.f32.gmra.mxu1 %v56_v44  ;;  %284 = vmatprep.mubr.f32.mxu0 %v59_v45 }
  0x6c   :  { %449 = vmatprep.mubr.f32.mxu1 %v61_v46 }
  0x6e   :  { %285 = vmatmul.mubr.f32.gmra.mxu0 %v58_v47 }
  0x6f   :  { %450 = vmatmul.mubr.f32.gmra.mxu1 %v60_v48  ;;  %289 = vmatprep.mubr.f32.mxu0 %v63_v49 }
  0x70   :  { %454 = vmatprep.mubr.f32.mxu1 %v65_v50 }
  0x72   :  { %290 = vmatmul.mubr.f32.gmra.mxu0 %v62_v51 }
  0x73   :  { %455 = vmatmul.mubr.f32.gmra.mxu1 %v64_v52  ;;  %294 = vmatprep.mubr.f32.mxu0 %v67_v53 }
  0x74   :  { %459 = vmatprep.mubr.f32.mxu1 %v69_v54 }
  0x76   :  { %295 = vmatmul.mubr.f32.gmra.mxu0 %v66_v55 }
  0x77   :  { %460 = vmatmul.mubr.f32.gmra.mxu1 %v68_v56  ;;  %299 = vmatprep.mubr.f32.mxu0 %v71_v57 }
  0x78   :  { %464 = vmatprep.mubr.f32.mxu1 %v73_v58 }
  0x7a   :  { %300 = vmatmul.mubr.f32.gmra.mxu0 %v70_v59 }
  0x7b   :  { %465 = vmatmul.mubr.f32.gmra.mxu1 %v72_v60  ;;  %304 = vmatprep.mubr.f32.mxu0 %v75_v61 }
  0x7c   :  { %469 = vmatprep.mubr.f32.mxu1 %v77_v62 }
  0x7e   :  { %305 = vmatmul.mubr.f32.gmra.mxu0 %v74_v63 }
  0x7f   :  { %470 = vmatmul.mubr.f32.gmra.mxu1 %v76_v1  ;;  %309 = vmatprep.mubr.f32.mxu0 %v79_v2 }
  0x80   :  { %474 = vmatprep.mubr.f32.mxu1 %v81_v3 }
  0x82   :  { %310 = vmatmul.mubr.f32.gmra.mxu0 %v78_v4 }
  0x83   :  { %475 = vmatmul.mubr.f32.gmra.mxu1 %v80_v5  ;;  %314 = vmatprep.mubr.f32.mxu0 %v83_v6 }
  0x84   :  { %479 = vmatprep.mubr.f32.mxu1 %v85_v7 }
  0x86   :  { %315 = vmatmul.mubr.f32.gmra.mxu0 %v82_v0 }
  0x87   :  { %480 = vmatmul.mubr.f32.gmra.mxu1 %v84_v8  ;;  %319 = vmatprep.mubr.f32.mxu0 %v87_v9 }
  0x88   :  { %484 = vmatprep.mubr.f32.mxu1 %v89_v10 }
  0x8a   :  { %320 = vmatmul.mubr.f32.gmra.mxu0 %v86_v11 }
  0x8b   :  { %485 = vmatmul.mubr.f32.gmra.mxu1 %v88_v12  ;;  %324 = vmatprep.mubr.f32.mxu0 %v91_v13 }
  0x8c   :  { %489 = vmatprep.mubr.f32.mxu1 %v93_v14 }
  0x8e   :  { %325 = vmatmul.mubr.f32.gmra.mxu0 %v90_v15 }
  0x8f   :  { %490 = vmatmul.mubr.f32.gmra.mxu1 %v92_v16 }
 0x102   :  { %v231_v18 = vpop.f32.mrf.mxu0 }
 0x103   :  { %v396_v19 = vpop.f32.mrf.mxu1  ;;  %v232_v20 = vadd.f32 %v1062_v17, %v231_v18 }
 0x104   :  { %v233_v21 = vpop.f32.mrf.mxu0 }
 0x105   :  { %v398_v22 = vpop.f32.mrf.mxu1  ;;  %v397_v23 = vadd.f32 %v396_v19, %v232_v20 }
 0x106   :  { %v236_v24 = vpop.f32.mrf.mxu0 }
 0x107   :  { %v401_v25 = vpop.f32.mrf.mxu1  ;;  %v495_v26 = vmax.f32 %v397_v23, 0.0  ;;  %v237_v27 = vadd.f32 %v1062_v17, %v236_v24 }
 0x108   :  { %v238_v28 = vpop.f32.mrf.mxu0 }
 0x109   :  { %v403_v29 = vpop.f32.mrf.mxu1  ;;  %516 = vst.msk [vmem:[%s1167_s3] sm:$0xff] %vm515_vm0, %v495_v26  ;;  %v402_v30 = vadd.f32 %v401_v25, %v237_v27 }
 0x10a   :  { %v241_v31 = vpop.f32.mrf.mxu0 }
 0x10b   :  { %v406_v32 = vpop.f32.mrf.mxu1  ;;  %v496_v33 = vmax.f32 %v402_v30, 0.0  ;;  %v242_v34 = vadd.f32 %v1062_v17, %v241_v31 }
 0x10c   :  { %v243_v35 = vpop.f32.mrf.mxu0 }
 0x10d   :  { %v408_v36 = vpop.f32.mrf.mxu1  ;;  %517 = vst.msk [vmem:[%s1167_s3 + $0x8] sm:$0xff] %vm515_vm0, %v496_v33  ;;  %v407_v37 = vadd.f32 %v406_v32, %v242_v34 }
 0x10e   :  { %v246_v38 = vpop.f32.mrf.mxu0 }
 0x10f   :  { %v411_v39 = vpop.f32.mrf.mxu1  ;;  %v497_v40 = vmax.f32 %v407_v37, 0.0  ;;  %v247_v41 = vadd.f32 %v1062_v17, %v246_v38 }
 0x110   :  { %v248_v42 = vpop.f32.mrf.mxu0 }
 0x111   :  { %v413_v43 = vpop.f32.mrf.mxu1  ;;  %518 = vst.msk [vmem:[%s1167_s3 + $0x10] sm:$0xff] %vm515_vm0, %v497_v40  ;;  %v412_v44 = vadd.f32 %v411_v39, %v247_v41 }
 0x112   :  { %v251_v45 = vpop.f32.mrf.mxu0 }
 0x113   :  { %v416_v46 = vpop.f32.mrf.mxu1  ;;  %v498_v47 = vmax.f32 %v412_v44, 0.0  ;;  %v252_v48 = vadd.f32 %v1062_v17, %v251_v45 }
 0x114   :  { %v253_v49 = vpop.f32.mrf.mxu0 }
 0x115   :  { %v418_v50 = vpop.f32.mrf.mxu1  ;;  %519 = vst.msk [vmem:[%s1167_s3 + $0x18] sm:$0xff] %vm515_vm0, %v498_v47  ;;  %v417_v51 = vadd.f32 %v416_v46, %v252_v48 }
 0x116   :  { %v256_v52 = vpop.f32.mrf.mxu0 }
 0x117   :  { %v421_v53 = vpop.f32.mrf.mxu1  ;;  %v499_v54 = vmax.f32 %v417_v51, 0.0  ;;  %v257_v55 = vadd.f32 %v1062_v17, %v256_v52 }
 0x118   :  { %v258_v56 = vpop.f32.mrf.mxu0 }
 0x119   :  { %v423_v57 = vpop.f32.mrf.mxu1  ;;  %520 = vst.msk [vmem:[%s1167_s3 + $0x20] sm:$0xff] %vm515_vm0, %v499_v54  ;;  %v422_v58 = vadd.f32 %v421_v53, %v257_v55 }
 0x11a   :  { %v261_v59 = vpop.f32.mrf.mxu0 }
 0x11b   :  { %v426_v60 = vpop.f32.mrf.mxu1  ;;  %v500_v61 = vmax.f32 %v422_v58, 0.0  ;;  %v262_v62 = vadd.f32 %v1062_v17, %v261_v59 }
 0x11c   :  { %v263_v63 = vpop.f32.mrf.mxu0 }
 0x11d   :  { %v428_v1 = vpop.f32.mrf.mxu1  ;;  %521 = vst.msk [vmem:[%s1167_s3 + $0x28] sm:$0xff] %vm515_vm0, %v500_v61  ;;  %v427_v2 = vadd.f32 %v426_v60, %v262_v62 }
 0x11e   :  { %v266_v3 = vpop.f32.mrf.mxu0 }
 0x11f   :  { %v431_v4 = vpop.f32.mrf.mxu1  ;;  %v501_v5 = vmax.f32 %v427_v2, 0.0  ;;  %v267_v6 = vadd.f32 %v1062_v17, %v266_v3 }
 0x120   :  { %v268_v7 = vpop.f32.mrf.mxu0 }
 0x121   :  { %v433_v0 = vpop.f32.mrf.mxu1  ;;  %522 = vst.msk [vmem:[%s1167_s3 + $0x30] sm:$0xff] %vm515_vm0, %v501_v5  ;;  %v432_v8 = vadd.f32 %v431_v4, %v267_v6 }
 0x122   :  { %v271_v9 = vpop.f32.mrf.mxu0 }
 0x123   :  { %v436_v10 = vpop.f32.mrf.mxu1  ;;  %v502_v11 = vmax.f32 %v432_v8, 0.0  ;;  %v272_v12 = vadd.f32 %v1062_v17, %v271_v9 }
 0x124   :  { %v273_v13 = vpop.f32.mrf.mxu0 }
 0x125   :  { %v438_v14 = vpop.f32.mrf.mxu1  ;;  %523 = vst.msk [vmem:[%s1167_s3 + $0x38] sm:$0xff] %vm515_vm0, %v502_v11  ;;  %v437_v15 = vadd.f32 %v436_v10, %v272_v12 }
 0x126   :  { %v276_v16 = vpop.f32.mrf.mxu0 }
 0x127   :  { %v441_v18 = vpop.f32.mrf.mxu1  ;;  %v503_v19 = vmax.f32 %v437_v15, 0.0  ;;  %v277_v20 = vadd.f32 %v1062_v17, %v276_v16 }
 0x128   :  { %v278_v21 = vpop.f32.mrf.mxu0 }
 0x129   :  { %v443_v22 = vpop.f32.mrf.mxu1  ;;  %524 = vst.msk [vmem:[%s1167_s3 + $0x40] sm:$0xff] %vm515_vm0, %v503_v19  ;;  %v442_v23 = vadd.f32 %v441_v18, %v277_v20 }
 0x12a   :  { %v281_v24 = vpop.f32.mrf.mxu0 }
 0x12b   :  { %v446_v25 = vpop.f32.mrf.mxu1  ;;  %v504_v26 = vmax.f32 %v442_v23, 0.0  ;;  %v282_v27 = vadd.f32 %v1062_v17, %v281_v24 }
 0x12c   :  { %v283_v28 = vpop.f32.mrf.mxu0 }
 0x12d   :  { %v448_v29 = vpop.f32.mrf.mxu1  ;;  %525 = vst.msk [vmem:[%s1167_s3 + $0x48] sm:$0xff] %vm515_vm0, %v504_v26  ;;  %v447_v30 = vadd.f32 %v446_v25, %v282_v27 }
 0x12e   :  { %v286_v31 = vpop.f32.mrf.mxu0 }
 0x12f   :  { %v451_v32 = vpop.f32.mrf.mxu1  ;;  %v505_v33 = vmax.f32 %v447_v30, 0.0  ;;  %v287_v34 = vadd.f32 %v1062_v17, %v286_v31 }
 0x130   :  { %v288_v35 = vpop.f32.mrf.mxu0 }
 0x131   :  { %v453_v36 = vpop.f32.mrf.mxu1  ;;  %526 = vst.msk [vmem:[%s1167_s3 + $0x50] sm:$0xff] %vm515_vm0, %v505_v33  ;;  %v452_v37 = vadd.f32 %v451_v32, %v287_v34 }
 0x132   :  { %v291_v38 = vpop.f32.mrf.mxu0 }
 0x133   :  { %v456_v39 = vpop.f32.mrf.mxu1  ;;  %v506_v40 = vmax.f32 %v452_v37, 0.0  ;;  %v292_v41 = vadd.f32 %v1062_v17, %v291_v38 }
 0x134   :  { %v293_v42 = vpop.f32.mrf.mxu0 }
 0x135   :  { %v458_v43 = vpop.f32.mrf.mxu1  ;;  %527 = vst.msk [vmem:[%s1167_s3 + $0x58] sm:$0xff] %vm515_vm0, %v506_v40  ;;  %v457_v44 = vadd.f32 %v456_v39, %v292_v41 }
 0x136   :  { %v296_v45 = vpop.f32.mrf.mxu0 }
 0x137   :  { %v461_v46 = vpop.f32.mrf.mxu1  ;;  %v507_v47 = vmax.f32 %v457_v44, 0.0  ;;  %v297_v48 = vadd.f32 %v1062_v17, %v296_v45 }
 0x138   :  { %v298_v49 = vpop.f32.mrf.mxu0 }
 0x139   :  { %v463_v50 = vpop.f32.mrf.mxu1  ;;  %528 = vst.msk [vmem:[%s1167_s3 + $0x60] sm:$0xff] %vm515_vm0, %v507_v47  ;;  %v462_v51 = vadd.f32 %v461_v46, %v297_v48 }
 0x13a   :  { %v301_v52 = vpop.f32.mrf.mxu0 }
 0x13b   :  { %v466_v53 = vpop.f32.mrf.mxu1  ;;  %v508_v54 = vmax.f32 %v462_v51, 0.0  ;;  %v302_v55 = vadd.f32 %v1062_v17, %v301_v52 }
 0x13c   :  { %v303_v56 = vpop.f32.mrf.mxu0 }
 0x13d   :  { %v468_v57 = vpop.f32.mrf.mxu1  ;;  %529 = vst.msk [vmem:[%s1167_s3 + $0x68] sm:$0xff] %vm515_vm0, %v508_v54  ;;  %v467_v58 = vadd.f32 %v466_v53, %v302_v55 }
 0x13e   :  { %v306_v59 = vpop.f32.mrf.mxu0 }
 0x13f   :  { %v471_v60 = vpop.f32.mrf.mxu1  ;;  %v509_v61 = vmax.f32 %v467_v58, 0.0  ;;  %v307_v62 = vadd.f32 %v1062_v17, %v306_v59 }
 0x140   :  { %v308_v63 = vpop.f32.mrf.mxu0 }
 0x141   :  { %v473_v1 = vpop.f32.mrf.mxu1  ;;  %530 = vst.msk [vmem:[%s1167_s3 + $0x70] sm:$0xff] %vm515_vm0, %v509_v61  ;;  %v472_v2 = vadd.f32 %v471_v60, %v307_v62 }
 0x142   :  { %v311_v3 = vpop.f32.mrf.mxu0 }
 0x143   :  { %v476_v4 = vpop.f32.mrf.mxu1  ;;  %v510_v5 = vmax.f32 %v472_v2, 0.0  ;;  %v312_v6 = vadd.f32 %v1062_v17, %v311_v3 }
 0x144   :  { %v313_v7 = vpop.f32.mrf.mxu0 }
 0x145   :  { %v478_v0 = vpop.f32.mrf.mxu1  ;;  %531 = vst.msk [vmem:[%s1167_s3 + $0x78] sm:$0xff] %vm515_vm0, %v510_v5  ;;  %v477_v8 = vadd.f32 %v476_v4, %v312_v6 }
 0x146   :  { %v316_v9 = vpop.f32.mrf.mxu0 }
 0x147   :  { %v481_v10 = vpop.f32.mrf.mxu1  ;;  %v511_v11 = vmax.f32 %v477_v8, 0.0  ;;  %v317_v12 = vadd.f32 %v1062_v17, %v316_v9 }
 0x148   :  { %v318_v13 = vpop.f32.mrf.mxu0 }
 0x149   :  { %v483_v14 = vpop.f32.mrf.mxu1  ;;  %532 = vst.msk [vmem:[%s1167_s3 + $0x80] sm:$0xff] %vm515_vm0, %v511_v11  ;;  %v482_v15 = vadd.f32 %v481_v10, %v317_v12 }
 0x14a   :  { %v321_v16 = vpop.f32.mrf.mxu0 }
 0x14b   :  { %v486_v18 = vpop.f32.mrf.mxu1  ;;  %v512_v19 = vmax.f32 %v482_v15, 0.0  ;;  %v322_v20 = vadd.f32 %v1062_v17, %v321_v16 }
 0x14c   :  { %v323_v21 = vpop.f32.mrf.mxu0 }
 0x14d   :  { %v488_v22 = vpop.f32.mrf.mxu1  ;;  %533 = vst.msk [vmem:[%s1167_s3 + $0x88] sm:$0xff] %vm515_vm0, %v512_v19  ;;  %v487_v23 = vadd.f32 %v486_v18, %v322_v20 }
 0x14e   :  { %v326_v24 = vpop.f32.mrf.mxu0 }
 0x14f   :  { %v491_v25 = vpop.f32.mrf.mxu1  ;;  %v513_v26 = vmax.f32 %v487_v23, 0.0  ;;  %v327_v27 = vadd.f32 %v1062_v17, %v326_v24 }
 0x150   :  { %v328_v28 = vpop.f32.mrf.mxu0 }
 0x151   :  { %v493_v29 = vpop.f32.mrf.mxu1  ;;  %534 = vst.msk [vmem:[%s1167_s3 + $0x90] sm:$0xff] %vm515_vm0, %v513_v26  ;;  %v492_v30 = vadd.f32 %v491_v25, %v327_v27 }
 0x153   :  { %v514_v31 = vmax.f32 %v492_v30, 0.0 }
 0x155   :  { %535 = vst.msk [vmem:[%s1167_s3 + $0x98] sm:$0xff] %vm515_vm0, %v514_v31 }

// kernel: qnetwork_forward.6
= control target key start
LH: loop header
LB: loop body
LE: loop exit
PB: predicated region body
PF: predicated region fallthrough
CT: control target
= control target key end

     0   :  { %v905_v0 = vmov 0.0   ;;  %vm193_vm0 = vcmask 523264   ;;  %s1688_s1 = inlined_call_operand.vmem [shape: f32[576,64], index: 1, kind: input, shape index: {}]   ;;  %s1689_s0 = inlined_call_operand.vmem [shape: f32[160,576], index: 0, kind: input, shape index: {}]   ;;  %s1690_s2 = inlined_call_operand.vmem [shape: f32[1,64], index: 2, kind: input, shape index: {}]   ;;  %s1691_s3 = inlined_call_operand.vmem [shape: f32[160,64], index: 3, kind: output, shape index: {}]  }
   0x1   :  { %254 = vmatprep.subr.mxu0 %v905_v0  ;;  %419 = vmatprep.subr.mxu1 %v905_v0  ;;  %v129_v1 = vld [vmem:[%s1688_s1 + $0x78] sm:$0xff]  ;;  %v128_v3 = vld [vmem:[%s1688_s1 + $0x70] sm:$0xff]  ;;  %v127_v5 = vld [vmem:[%s1688_s1 + $0x68] sm:$0xff] }
   0x2   :  { %v161_v2 = vld [vmem:[%s1688_s1 + $0x178] sm:$0xff]  ;;  %255 = vmatpush1.msra.mxu0 %v129_v1  ;;  %v160_v4 = vld [vmem:[%s1688_s1 + $0x170] sm:$0xff]  ;;  %v159_v6 = vld [vmem:[%s1688_s1 + $0x168] sm:$0xff] }
   0x3   :  { %420 = vmatpush1.msra.mxu1 %v161_v2  ;;  %256 = vmatprep.subr.mxu0 %v905_v0  ;;  %v126_v7 = vld [vmem:[%s1688_s1 + $0x60] sm:$0xff]  ;;  %v125_v9 = vld [vmem:[%s1688_s1 + $0x58] sm:$0xff]  ;;  %v124_v11 = vld [vmem:[%s1688_s1 + $0x50] sm:$0xff] }
   0x4   :  { %421 = vmatprep.subr.mxu1 %v905_v0  ;;  %257 = vmatpush1.msra.mxu0 %v128_v3  ;;  %v158_v8 = vld [vmem:[%s1688_s1 + $0x160] sm:$0xff]  ;;  %v157_v10 = vld [vmem:[%s1688_s1 + $0x158] sm:$0xff]  ;;  %v156_v12 = vld [vmem:[%s1688_s1 + $0x150] sm:$0xff] }
   0x5   :  { %422 = vmatpush1.msra.mxu1 %v160_v4  ;;  %258 = vmatprep.subr.mxu0 %v905_v0  ;;  %v123_v13 = vld [vmem:[%s1688_s1 + $0x48] sm:$0xff]  ;;  %v122_v15 = vld [vmem:[%s1688_s1 + $0x40] sm:$0xff]  ;;  %v121_v17 = vld [vmem:[%s1688_s1 + $0x38] sm:$0xff] }
   0x6   :  { %423 = vmatprep.subr.mxu1 %v905_v0  ;;  %259 = vmatpush1.msra.mxu0 %v127_v5  ;;  %v155_v14 = vld [vmem:[%s1688_s1 + $0x148] sm:$0xff]  ;;  %v154_v16 = vld [vmem:[%s1688_s1 + $0x140] sm:$0xff]  ;;  %v153_v18 = vld [vmem:[%s1688_s1 + $0x138] sm:$0xff] }
   0x7   :  { %424 = vmatpush1.msra.mxu1 %v159_v6  ;;  %260 = vmatprep.subr.mxu0 %v905_v0  ;;  %v120_v19 = vld [vmem:[%s1688_s1 + $0x30] sm:$0xff]  ;;  %v119_v21 = vld [vmem:[%s1688_s1 + $0x28] sm:$0xff]  ;;  %v118_v23 = vld [vmem:[%s1688_s1 + $0x20] sm:$0xff] }
   0x8   :  { %425 = vmatprep.subr.mxu1 %v905_v0  ;;  %261 = vmatpush1.msra.mxu0 %v126_v7  ;;  %v152_v20 = vld [vmem:[%s1688_s1 + $0x130] sm:$0xff]  ;;  %v151_v22 = vld [vmem:[%s1688_s1 + $0x128] sm:$0xff]  ;;  %v150_v24 = vld [vmem:[%s1688_s1 + $0x120] sm:$0xff] }
   0x9   :  { %426 = vmatpush1.msra.mxu1 %v158_v8  ;;  %262 = vmatprep.subr.mxu0 %v905_v0  ;;  %v117_v25 = vld [vmem:[%s1688_s1 + $0x18] sm:$0xff]  ;;  %v116_v27 = vld [vmem:[%s1688_s1 + $0x10] sm:$0xff]  ;;  %v115_v29 = vld [vmem:[%s1688_s1 + $0x8] sm:$0xff] }
   0xa   :  { %427 = vmatprep.subr.mxu1 %v905_v0  ;;  %263 = vmatpush1.msra.mxu0 %v125_v9  ;;  %v149_v26 = vld [vmem:[%s1688_s1 + $0x118] sm:$0xff]  ;;  %v148_v28 = vld [vmem:[%s1688_s1 + $0x110] sm:$0xff]  ;;  %v147_v30 = vld [vmem:[%s1688_s1 + $0x108] sm:$0xff] }
   0xb   :  { %428 = vmatpush1.msra.mxu1 %v157_v10  ;;  %264 = vmatprep.subr.mxu0 %v905_v0  ;;  %v114_v31 = vld [vmem:[%s1688_s1] sm:$0xff]  ;;  %v145_v33 = vld [vmem:[%s1688_s1 + $0xf8] sm:$0xff]  ;;  %v144_v35 = vld [vmem:[%s1688_s1 + $0xf0] sm:$0xff] }
   0xc   :  { %429 = vmatprep.subr.mxu1 %v905_v0  ;;  %265 = vmatpush1.msra.mxu0 %v124_v11  ;;  %v146_v32 = vld [vmem:[%s1688_s1 + $0x100] sm:$0xff]  ;;  %v177_v34 = vld [vmem:[%s1688_s1 + $0x1f8] sm:$0xff]  ;;  %v176_v36 = vld [vmem:[%s1688_s1 + $0x1f0] sm:$0xff] }
   0xd   :  { %430 = vmatpush1.msra.mxu1 %v156_v12  ;;  %266 = vmatprep.subr.mxu0 %v905_v0  ;;  %v143_v37 = vld [vmem:[%s1688_s1 + $0xe8] sm:$0xff]  ;;  %v142_v39 = vld [vmem:[%s1688_s1 + $0xe0] sm:$0xff]  ;;  %v141_v41 = vld [vmem:[%s1688_s1 + $0xd8] sm:$0xff] }
   0xe   :  { %431 = vmatprep.subr.mxu1 %v905_v0  ;;  %267 = vmatpush1.msra.mxu0 %v123_v13  ;;  %v175_v38 = vld [vmem:[%s1688_s1 + $0x1e8] sm:$0xff]  ;;  %v174_v40 = vld [vmem:[%s1688_s1 + $0x1e0] sm:$0xff]  ;;  %v173_v42 = vld [vmem:[%s1688_s1 + $0x1d8] sm:$0xff] }
   0xf   :  { %432 = vmatpush1.msra.mxu1 %v155_v14  ;;  %268 = vmatprep.subr.mxu0 %v905_v0  ;;  %v140_v43 = vld [vmem:[%s1688_s1 + $0xd0] sm:$0xff]  ;;  %v139_v45 = vld [vmem:[%s1688_s1 + $0xc8] sm:$0xff]  ;;  %v138_v47 = vld [vmem:[%s1688_s1 + $0xc0] sm:$0xff] }
  0x10   :  { %433 = vmatprep.subr.mxu1 %v905_v0  ;;  %269 = vmatpush1.msra.mxu0 %v122_v15  ;;  %v172_v44 = vld [vmem:[%s1688_s1 + $0x1d0] sm:$0xff]  ;;  %v171_v46 = vld [vmem:[%s1688_s1 + $0x1c8] sm:$0xff]  ;;  %v170_v48 = vld [vmem:[%s1688_s1 + $0x1c0] sm:$0xff] }
  0x11   :  { %434 = vmatpush1.msra.mxu1 %v154_v16  ;;  %270 = vmatprep.subr.mxu0 %v905_v0  ;;  %v137_v49 = vld [vmem:[%s1688_s1 + $0xb8] sm:$0xff]  ;;  %v136_v51 = vld [vmem:[%s1688_s1 + $0xb0] sm:$0xff]  ;;  %v135_v53 = vld [vmem:[%s1688_s1 + $0xa8] sm:$0xff] }
  0x12   :  { %435 = vmatprep.subr.mxu1 %v905_v0  ;;  %271 = vmatpush1.msra.mxu0 %v121_v17  ;;  %v169_v50 = vld [vmem:[%s1688_s1 + $0x1b8] sm:$0xff]  ;;  %v168_v52 = vld [vmem:[%s1688_s1 + $0x1b0] sm:$0xff]  ;;  %v167_v54 = vld [vmem:[%s1688_s1 + $0x1a8] sm:$0xff] }
  0x13   :  { %436 = vmatpush1.msra.mxu1 %v153_v18  ;;  %272 = vmatprep.subr.mxu0 %v905_v0  ;;  %v134_v55 = vld [vmem:[%s1688_s1 + $0xa0] sm:$0xff]  ;;  %v133_v57 = vld [vmem:[%s1688_s1 + $0x98] sm:$0xff]  ;;  %v132_v59 = vld [vmem:[%s1688_s1 + $0x90] sm:$0xff] }
  0x14   :  { %437 = vmatprep.subr.mxu1 %v905_v0  ;;  %273 = vmatpush1.msra.mxu0 %v120_v19  ;;  %v166_v56 = vld [vmem:[%s1688_s1 + $0x1a0] sm:$0xff]  ;;  %v165_v58 = vld [vmem:[%s1688_s1 + $0x198] sm:$0xff]  ;;  %v164_v60 = vld [vmem:[%s1688_s1 + $0x190] sm:$0xff] }
  0x15   :  { %438 = vmatpush1.msra.mxu1 %v152_v20  ;;  %274 = vmatprep.subr.mxu0 %v905_v0  ;;  %v131_v61 = vld [vmem:[%s1688_s1 + $0x88] sm:$0xff]  ;;  %v130_v63 = vld [vmem:[%s1688_s1 + $0x80] sm:$0xff]  ;;  %v17_v3 = vld [vmem:[%s1689_s0 + $0x18] sm:$0xff] }
  0x16   :  { %439 = vmatprep.subr.mxu1 %v905_v0  ;;  %275 = vmatpush1.msra.mxu0 %v119_v21  ;;  %v163_v62 = vld [vmem:[%s1688_s1 + $0x188] sm:$0xff]  ;;  %v162_v2 = vld [vmem:[%s1688_s1 + $0x180] sm:$0xff]  ;;  %v16_v5 = vld [vmem:[%s1689_s0 + $0x10] sm:$0xff] }
  0x17   :  { %440 = vmatpush1.msra.mxu1 %v151_v22  ;;  %276 = vmatprep.subr.mxu0 %v905_v0  ;;  %v15_v1 = vld [vmem:[%s1689_s0 + $0x8] sm:$0xff]  ;;  %v14_v4 = vld [vmem:[%s1689_s0] sm:$0xff]  ;;  %v185_v6 = vld [vmem:[%s1688_s1 + $0x238] sm:$0xff] }
  0x18   :  { %441 = vmatprep.subr.mxu1 %v905_v0  ;;  %277 = vmatpush1.msra.mxu0 %v118_v23  ;;  %v22_v7 = vld [vmem:[%s1689_s0 + $0x40] sm:$0xff]  ;;  %v19_v8 = vld [vmem:[%s1689_s0 + $0x28] sm:$0xff]  ;;  %v21_v9 = vld [vmem:[%s1689_s0 + $0x38] sm:$0xff] }
  0x19   :  { %442 = vmatpush1.msra.mxu1 %v150_v24  ;;  %278 = vmatprep.subr.mxu0 %v905_v0  ;;  %v25_v10 = vld [vmem:[%s1689_s0 + $0x58] sm:$0xff]  ;;  %v27_v11 = vld [vmem:[%s1689_s0 + $0x68] sm:$0xff]  ;;  %v184_v12 = vld [vmem:[%s1688_s1 + $0x230] sm:$0xff] }
  0x1a   :  { %443 = vmatprep.subr.mxu1 %v905_v0  ;;  %279 = vmatpush1.msra.mxu0 %v117_v25  ;;  %v24_v13 = vld [vmem:[%s1689_s0 + $0x50] sm:$0xff]  ;;  %v26_v14 = vld [vmem:[%s1689_s0 + $0x60] sm:$0xff]  ;;  %v183_v17 = vld [vmem:[%s1688_s1 + $0x228] sm:$0xff] }
  0x1b   :  { %444 = vmatpush1.msra.mxu1 %v149_v26  ;;  %280 = vmatprep.subr.mxu0 %v905_v0  ;;  %v30_v15 = vld [vmem:[%s1689_s0 + $0x80] sm:$0xff]  ;;  %v32_v16 = vld [vmem:[%s1689_s0 + $0x90] sm:$0xff]  ;;  %v29_v18 = vld [vmem:[%s1689_s0 + $0x78] sm:$0xff] }
  0x1c   :  { %445 = vmatprep.subr.mxu1 %v905_v0  ;;  %281 = vmatpush1.msra.mxu0 %v116_v27  ;;  %v31_v19 = vld [vmem:[%s1689_s0 + $0x88] sm:$0xff]  ;;  %v37_v21 = vld [vmem:[%s1689_s0 + $0xb8] sm:$0xff]  ;;  %v182_v22 = vld [vmem:[%s1688_s1 + $0x220] sm:$0xff] }
  0x1d   :  { %446 = vmatpush1.msra.mxu1 %v148_v28  ;;  %282 = vmatprep.subr.mxu0 %v905_v0  ;;  %v35_v20 = vld [vmem:[%s1689_s0 + $0xa8] sm:$0xff]  ;;  %v34_v23 = vld [vmem:[%s1689_s0 + $0xa0] sm:$0xff]  ;;  %v36_v24 = vld [vmem:[%s1689_s0 + $0xb0] sm:$0xff] }
  0x1e   :  { %447 = vmatprep.subr.mxu1 %v905_v0  ;;  %283 = vmatpush1.msra.mxu0 %v115_v29  ;;  %v40_v25 = vld [vmem:[%s1689_s0 + $0xd0] sm:$0xff]  ;;  %v42_v26 = vld [vmem:[%s1689_s0 + $0xe0] sm:$0xff]  ;;  %v181_v27 = vld [vmem:[%s1688_s1 + $0x218] sm:$0xff] }
  0x1f   :  { %448 = vmatpush1.msra.mxu1 %v147_v30  ;;  %284 = vmatprep.subr.mxu0 %v905_v0  ;;  %v39_v28 = vld [vmem:[%s1689_s0 + $0xc8] sm:$0xff]  ;;  %v41_v29 = vld [vmem:[%s1689_s0 + $0xd8] sm:$0xff] }
  0x20   :  { %449 = vmatprep.subr.mxu1 %v905_v0  ;;  %285 = vmatpush1.msra.mxu0 %v114_v31  ;;  %v45_v30 = vld [vmem:[%s1689_s0 + $0xf8] sm:$0xff]  ;;  %v47_v31 = vld [vmem:[%s1689_s0 + $0x108] sm:$0xff] }
  0x21   :  { %450 = vmatpush1.msra.mxu1 %v146_v32  ;;  %286 = vmatprep.subr.mxu0 %v905_v0  ;;  %v180_v32 = vld [vmem:[%s1688_s1 + $0x210] sm:$0xff] }
  0x22   :  { %451 = vmatprep.subr.mxu1 %v905_v0  ;;  %287 = vmatpush2.msra.mxu0 %v145_v33  ;;  %v44_v33 = vld [vmem:[%s1689_s0 + $0xf0] sm:$0xff] }
  0x23   :  { %452 = vmatpush2.msra.mxu1 %v177_v34  ;;  %288 = vmatprep.subr.mxu0 %v905_v0  ;;  %v46_v34 = vld [vmem:[%s1689_s0 + $0x100] sm:$0xff] }
  0x24   :  { %453 = vmatprep.subr.mxu1 %v905_v0  ;;  %289 = vmatpush2.msra.mxu0 %v144_v35  ;;  %v50_v35 = vld [vmem:[%s1689_s0 + $0x120] sm:$0xff] }
  0x25   :  { %454 = vmatpush2.msra.mxu1 %v176_v36  ;;  %290 = vmatprep.subr.mxu0 %v905_v0  ;;  %v52_v36 = vld [vmem:[%s1689_s0 + $0x130] sm:$0xff] }
  0x26   :  { %455 = vmatprep.subr.mxu1 %v905_v0  ;;  %291 = vmatpush2.msra.mxu0 %v143_v37  ;;  %v179_v37 = vld [vmem:[%s1688_s1 + $0x208] sm:$0xff] }
  0x27   :  { %456 = vmatpush2.msra.mxu1 %v175_v38  ;;  %292 = vmatprep.subr.mxu0 %v905_v0  ;;  %v49_v38 = vld [vmem:[%s1689_s0 + $0x118] sm:$0xff] }
  0x28   :  { %457 = vmatprep.subr.mxu1 %v905_v0  ;;  %293 = vmatpush2.msra.mxu0 %v142_v39  ;;  %v51_v39 = vld [vmem:[%s1689_s0 + $0x128] sm:$0xff] }
  0x29   :  { %458 = vmatpush2.msra.mxu1 %v174_v40  ;;  %294 = vmatprep.subr.mxu0 %v905_v0  ;;  %v55_v40 = vld [vmem:[%s1689_s0 + $0x148] sm:$0xff] }
  0x2a   :  { %459 = vmatprep.subr.mxu1 %v905_v0  ;;  %295 = vmatpush2.msra.mxu0 %v141_v41  ;;  %v57_v41 = vld [vmem:[%s1689_s0 + $0x158] sm:$0xff] }
  0x2b   :  { %460 = vmatpush2.msra.mxu1 %v173_v42  ;;  %296 = vmatprep.subr.mxu0 %v905_v0  ;;  %v178_v42 = vld [vmem:[%s1688_s1 + $0x200] sm:$0xff] }
  0x2c   :  { %461 = vmatprep.subr.mxu1 %v905_v0  ;;  %297 = vmatpush2.msra.mxu0 %v140_v43  ;;  %v54_v43 = vld [vmem:[%s1689_s0 + $0x140] sm:$0xff] }
  0x2d   :  { %462 = vmatpush2.msra.mxu1 %v172_v44  ;;  %298 = vmatprep.subr.mxu0 %v905_v0  ;;  %v56_v44 = vld [vmem:[%s1689_s0 + $0x150] sm:$0xff] }
  0x2e   :  { %463 = vmatprep.subr.mxu1 %v905_v0  ;;  %299 = vmatpush2.msra.mxu0 %v139_v45  ;;  %v60_v45 = vld [vmem:[%s1689_s0 + $0x170] sm:$0xff] }
  0x2f   :  { %464 = vmatpush2.msra.mxu1 %v171_v46  ;;  %300 = vmatprep.subr.mxu0 %v905_v0  ;;  %v62_v46 = vld [vmem:[%s1689_s0 + $0x180] sm:$0xff] }
  0x30   :  { %465 = vmatprep.subr.mxu1 %v905_v0  ;;  %301 = vmatpush2.msra.mxu0 %v138_v47  ;;  %v59_v47 = vld [vmem:[%s1689_s0 + $0x168] sm:$0xff] }
  0x31   :  { %466 = vmatpush2.msra.mxu1 %v170_v48  ;;  %302 = vmatprep.subr.mxu0 %v905_v0  ;;  %v61_v48 = vld [vmem:[%s1689_s0 + $0x178] sm:$0xff] }
  0x32   :  { %467 = vmatprep.subr.mxu1 %v905_v0  ;;  %303 = vmatpush2.msra.mxu0 %v137_v49  ;;  %v65_v49 = vld [vmem:[%s1689_s0 + $0x198] sm:$0xff] }
  0x33   :  { %468 = vmatpush2.msra.mxu1 %v169_v50  ;;  %304 = vmatprep.subr.mxu0 %v905_v0  ;;  %v67_v50 = vld [vmem:[%s1689_s0 + $0x1a8] sm:$0xff] }
  0x34   :  { %469 = vmatprep.subr.mxu1 %v905_v0  ;;  %305 = vmatpush2.msra.mxu0 %v136_v51  ;;  %v64_v51 = vld [vmem:[%s1689_s0 + $0x190] sm:$0xff] }
  0x35   :  { %470 = vmatpush2.msra.mxu1 %v168_v52  ;;  %306 = vmatprep.subr.mxu0 %v905_v0  ;;  %v66_v52 = vld [vmem:[%s1689_s0 + $0x1a0] sm:$0xff] }
  0x36   :  { %471 = vmatprep.subr.mxu1 %v905_v0  ;;  %307 = vmatpush2.msra.mxu0 %v135_v53  ;;  %v70_v53 = vld [vmem:[%s1689_s0 + $0x1c0] sm:$0xff] }
  0x37   :  { %472 = vmatpush2.msra.mxu1 %v167_v54  ;;  %308 = vmatprep.subr.mxu0 %v905_v0  ;;  %v72_v54 = vld [vmem:[%s1689_s0 + $0x1d0] sm:$0xff] }
  0x38   :  { %473 = vmatprep.subr.mxu1 %v905_v0  ;;  %309 = vmatpush2.msra.mxu0 %v134_v55  ;;  %v69_v55 = vld [vmem:[%s1689_s0 + $0x1b8] sm:$0xff] }
  0x39   :  { %474 = vmatpush2.msra.mxu1 %v166_v56  ;;  %310 = vmatprep.subr.mxu0 %v905_v0  ;;  %v71_v56 = vld [vmem:[%s1689_s0 + $0x1c8] sm:$0xff] }
  0x3a   :  { %475 = vmatprep.subr.mxu1 %v905_v0  ;;  %311 = vmatpush2.msra.mxu0 %v133_v57  ;;  %v75_v57 = vld [vmem:[%s1689_s0 + $0x1e8] sm:$0xff] }
  0x3b   :  { %476 = vmatpush2.msra.mxu1 %v165_v58  ;;  %312 = vmatprep.subr.mxu0 %v905_v0  ;;  %v77_v58 = vld [vmem:[%s1689_s0 + $0x1f8] sm:$0xff] }
  0x3c   :  { %477 = vmatprep.subr.mxu1 %v905_v0  ;;  %313 = vmatpush2.msra.mxu0 %v132_v59  ;;  %v74_v59 = vld [vmem:[%s1689_s0 + $0x1e0] sm:$0xff] }
  0x3d   :  { %478 = vmatpush2.msra.mxu1 %v164_v60  ;;  %314 = vmatprep.subr.mxu0 %v905_v0  ;;  %v76_v60 = vld [vmem:[%s1689_s0 + $0x1f0] sm:$0xff] }
  0x3e   :  { %479 = vmatprep.subr.mxu1 %v905_v0  ;;  %315 = vmatpush2.msra.mxu0 %v131_v61  ;;  %v80_v61 = vld [vmem:[%s1689_s0 + $0x210] sm:$0xff] }
  0x3f   :  { %480 = vmatpush2.msra.mxu1 %v163_v62  ;;  %316 = vmatprep.subr.mxu0 %v905_v0  ;;  %v82_v62 = vld [vmem:[%s1689_s0 + $0x220] sm:$0xff] }
  0x40   :  { %481 = vmatprep.subr.mxu1 %v905_v0  ;;  %317 = vmatpush2.msra.mxu0 %v130_v63  ;;  %v20_v0 = vld [vmem:[%s1689_s0 + $0x30] sm:$0xff]  ;;  %v79_v63 = vld [vmem:[%s1689_s0 + $0x208] sm:$0xff] }
  0x41   :  { %318 = vmatprep.mubr.f32.mxu0 %v15_v1  ;;  %482 = vmatpush2.msra.mxu1 %v162_v2  ;;  %v81_v1 = vld [vmem:[%s1689_s0 + $0x218] sm:$0xff] }
  0x42   :  { %483 = vmatprep.mubr.f32.mxu1 %v17_v3  ;;  %319 = vmatmul.mubr.f32.vlgmr.msra.gmra.mxu0 %v14_v4  ;;  %v85_v2 = vld [vmem:[%s1689_s0 + $0x238] sm:$0xff]  ;;  %v87_v3 = vld [vmem:[%s1689_s0 + $0x248] sm:$0xff]  ;;  %v84_v4 = vld [vmem:[%s1689_s0 + $0x230] sm:$0xff] }
  0x43   :  { %484 = vmatmul.mubr.f32.vlgmr.msra.gmra.mxu1 %v16_v5  ;;  %842 = vmatprep.subr.mxu0 %v185_v6  ;;  %v86_v5 = vld [vmem:[%s1689_s0 + $0x240] sm:$0xff] }
  0x44   :  { %888 = vmatprep.subr.mxu1 %v185_v6  ;;  %843 = vmatpush3.msra.mxu0 %v185_v6 }
  0x45   :  { %896 = vmatpush3.msra.mxu1 %v185_v6  ;;  %323 = vmatprep.mubr.f32.mxu0 %v20_v0  ;;  %v90_v6 = vld [vmem:[%s1689_s0 + $0x260] sm:$0xff]  ;;  %v92_v0 = vld [vmem:[%s1689_s0 + $0x270] sm:$0xff] }
  0x46   :  { %488 = vmatprep.mubr.f32.mxu1 %v22_v7  ;;  %324 = vmatmul.mubr.f32.gmra.mxu0 %v19_v8  ;;  %v89_v7 = vld [vmem:[%s1689_s0 + $0x258] sm:$0xff]  ;;  %v91_v8 = vld [vmem:[%s1689_s0 + $0x268] sm:$0xff] }
  0x47   :  { %489 = vmatmul.mubr.f32.gmra.mxu1 %v21_v9  ;;  %328 = vmatprep.mubr.f32.mxu0 %v25_v10  ;;  %v95_v9 = vld [vmem:[%s1689_s0 + $0x288] sm:$0xff]  ;;  %v97_v10 = vld [vmem:[%s1689_s0 + $0x298] sm:$0xff] }
  0x48   :  { %493 = vmatprep.mubr.f32.mxu1 %v27_v11  ;;  %844 = vmatprep.subr.mxu0 %v184_v12  ;;  %v94_v11 = vld [vmem:[%s1689_s0 + $0x280] sm:$0xff] }
  0x49   :  { %889 = vmatprep.subr.mxu1 %v184_v12  ;;  %845 = vmatpush3.msra.mxu0 %v184_v12 }
  0x4a   :  { %897 = vmatpush3.msra.mxu1 %v184_v12  ;;  %329 = vmatmul.mubr.f32.gmra.mxu0 %v24_v13  ;;  %v96_v12 = vld [vmem:[%s1689_s0 + $0x290] sm:$0xff] }
  0x4b   :  { %494 = vmatmul.mubr.f32.gmra.mxu1 %v26_v14  ;;  %333 = vmatprep.mubr.f32.mxu0 %v30_v15  ;;  %v100_v13 = vld [vmem:[%s1689_s0 + $0x2b0] sm:$0xff]  ;;  %v102_v14 = vld [vmem:[%s1689_s0 + $0x2c0] sm:$0xff]  ;;  %v99_v15 = vld [vmem:[%s1689_s0 + $0x2a8] sm:$0xff] }
  0x4c   :  { %498 = vmatprep.mubr.f32.mxu1 %v32_v16  ;;  %846 = vmatprep.subr.mxu0 %v183_v17  ;;  %v101_v16 = vld [vmem:[%s1689_s0 + $0x2b8] sm:$0xff] }
  0x4d   :  { %890 = vmatprep.subr.mxu1 %v183_v17  ;;  %847 = vmatpush3.msra.mxu0 %v183_v17 }
  0x4e   :  { %898 = vmatpush3.msra.mxu1 %v183_v17  ;;  %334 = vmatmul.mubr.f32.gmra.mxu0 %v29_v18  ;;  %v105_v17 = vld [vmem:[%s1689_s0 + $0x2d8] sm:$0xff]  ;;  %v107_v18 = vld [vmem:[%s1689_s0 + $0x2e8] sm:$0xff] }
  0x4f   :  { %499 = vmatmul.mubr.f32.gmra.mxu1 %v31_v19  ;;  %338 = vmatprep.mubr.f32.mxu0 %v35_v20  ;;  %v104_v19 = vld [vmem:[%s1689_s0 + $0x2d0] sm:$0xff]  ;;  %v106_v20 = vld [vmem:[%s1689_s0 + $0x2e0] sm:$0xff] }
  0x50   :  { %503 = vmatprep.mubr.f32.mxu1 %v37_v21  ;;  %848 = vmatprep.subr.mxu0 %v182_v22  ;;  %v110_v21 = vld [vmem:[%s1689_s0 + $0x300] sm:$0xff] }
  0x51   :  { %891 = vmatprep.subr.mxu1 %v182_v22  ;;  %849 = vmatpush3.msra.mxu0 %v182_v22 }
  0x52   :  { %899 = vmatpush3.msra.mxu1 %v182_v22  ;;  %339 = vmatmul.mubr.f32.gmra.mxu0 %v34_v23  ;;  %v112_v22 = vld [vmem:[%s1689_s0 + $0x310] sm:$0xff]  ;;  %v109_v23 = vld [vmem:[%s1689_s0 + $0x2f8] sm:$0xff] }
  0x53   :  { %504 = vmatmul.mubr.f32.gmra.mxu1 %v36_v24  ;;  %343 = vmatprep.mubr.f32.mxu0 %v40_v25  ;;  %v111_v24 = vld [vmem:[%s1689_s0 + $0x308] sm:$0xff]  ;;  %v18_v25 = vld [vmem:[%s1689_s0 + $0x20] sm:$0xff] }
  0x54   :  { %508 = vmatprep.mubr.f32.mxu1 %v42_v26  ;;  %850 = vmatprep.subr.mxu0 %v181_v27  ;;  %v68_v26 = vld [vmem:[%s1689_s0 + $0x1b0] sm:$0xff] }
  0x55   :  { %892 = vmatprep.subr.mxu1 %v181_v27  ;;  %851 = vmatpush3.msra.mxu0 %v181_v27 }
  0x56   :  { %900 = vmatpush3.msra.mxu1 %v181_v27  ;;  %344 = vmatmul.mubr.f32.gmra.mxu0 %v39_v28  ;;  %v23_v27 = vld [vmem:[%s1689_s0 + $0x48] sm:$0xff]  ;;  %v73_v28 = vld [vmem:[%s1689_s0 + $0x1d8] sm:$0xff] }
  0x57   :  { %509 = vmatmul.mubr.f32.gmra.mxu1 %v41_v29  ;;  %348 = vmatprep.mubr.f32.mxu0 %v45_v30  ;;  %v28_v29 = vld [vmem:[%s1689_s0 + $0x70] sm:$0xff]  ;;  %v78_v30 = vld [vmem:[%s1689_s0 + $0x200] sm:$0xff] }
  0x58   :  { %513 = vmatprep.mubr.f32.mxu1 %v47_v31  ;;  %852 = vmatprep.subr.mxu0 %v180_v32  ;;  %v33_v31 = vld [vmem:[%s1689_s0 + $0x98] sm:$0xff] }
  0x59   :  { %893 = vmatprep.subr.mxu1 %v180_v32  ;;  %853 = vmatpush3.msra.mxu0 %v180_v32 }
  0x5a   :  { %901 = vmatpush3.msra.mxu1 %v180_v32  ;;  %349 = vmatmul.mubr.f32.gmra.mxu0 %v44_v33  ;;  %v83_v32 = vld [vmem:[%s1689_s0 + $0x228] sm:$0xff]  ;;  %v38_v33 = vld [vmem:[%s1689_s0 + $0xc0] sm:$0xff] }
  0x5b   :  { %514 = vmatmul.mubr.f32.gmra.mxu1 %v46_v34  ;;  %353 = vmatprep.mubr.f32.mxu0 %v50_v35  ;;  %v88_v34 = vld [vmem:[%s1689_s0 + $0x250] sm:$0xff]  ;;  %v43_v35 = vld [vmem:[%s1689_s0 + $0xe8] sm:$0xff] }
  0x5c   :  { %518 = vmatprep.mubr.f32.mxu1 %v52_v36  ;;  %854 = vmatprep.subr.mxu0 %v179_v37  ;;  %v93_v36 = vld [vmem:[%s1689_s0 + $0x278] sm:$0xff] }
  0x5d   :  { %894 = vmatprep.subr.mxu1 %v179_v37  ;;  %855 = vmatpush3.msra.mxu0 %v179_v37 }
  0x5e   :  { %902 = vmatpush3.msra.mxu1 %v179_v37  ;;  %354 = vmatmul.mubr.f32.gmra.mxu0 %v49_v38  ;;  %v48_v37 = vld [vmem:[%s1689_s0 + $0x110] sm:$0xff]  ;;  %v98_v38 = vld [vmem:[%s1689_s0 + $0x2a0] sm:$0xff] }
  0x5f   :  { %519 = vmatmul.mubr.f32.gmra.mxu1 %v51_v39  ;;  %358 = vmatprep.mubr.f32.mxu0 %v55_v40  ;;  %v53_v39 = vld [vmem:[%s1689_s0 + $0x138] sm:$0xff]  ;;  %v103_v40 = vld [vmem:[%s1689_s0 + $0x2c8] sm:$0xff] }
  0x60   :  { %523 = vmatprep.mubr.f32.mxu1 %v57_v41  ;;  %856 = vmatprep.subr.mxu0 %v178_v42  ;;  %v58_v41 = vld [vmem:[%s1689_s0 + $0x160] sm:$0xff] }
  0x61   :  { %895 = vmatprep.subr.mxu1 %v178_v42  ;;  %857 = vmatpush3.msra.mxu0 %v178_v42 }
  0x62   :  { %903 = vmatpush3.msra.mxu1 %v178_v42  ;;  %359 = vmatmul.mubr.f32.gmra.mxu0 %v54_v43  ;;  %v108_v42 = vld [vmem:[%s1689_s0 + $0x2f0] sm:$0xff]  ;;  %v63_v43 = vld [vmem:[%s1689_s0 + $0x188] sm:$0xff] }
  0x63   :  { %524 = vmatmul.mubr.f32.gmra.mxu1 %v56_v44  ;;  %363 = vmatprep.mubr.f32.mxu0 %v60_v45  ;;  %v113_v44 = vld [vmem:[%s1689_s0 + $0x318] sm:$0xff]  ;;  %v1529_v45 = vld [vmem:[%s1690_s2] ss:$0 sm:$0xff] }
  0x64   :  { %528 = vmatprep.mubr.f32.mxu1 %v62_v46 }
  0x66   :  { %364 = vmatmul.mubr.f32.gmra.mxu0 %v59_v47 }
  0x67   :  { %529 = vmatmul.mubr.f32.gmra.mxu1 %v61_v48  ;;  %368 = vmatprep.mubr.f32.mxu0 %v65_v49 }
  0x68   :  { %533 = vmatprep.mubr.f32.mxu1 %v67_v50 }
  0x6a   :  { %369 = vmatmul.mubr.f32.gmra.mxu0 %v64_v51 }
  0x6b   :  { %534 = vmatmul.mubr.f32.gmra.mxu1 %v66_v52  ;;  %373 = vmatprep.mubr.f32.mxu0 %v70_v53 }
  0x6c   :  { %538 = vmatprep.mubr.f32.mxu1 %v72_v54 }
  0x6e   :  { %374 = vmatmul.mubr.f32.gmra.mxu0 %v69_v55 }
  0x6f   :  { %539 = vmatmul.mubr.f32.gmra.mxu1 %v71_v56  ;;  %378 = vmatprep.mubr.f32.mxu0 %v75_v57 }
  0x70   :  { %543 = vmatprep.mubr.f32.mxu1 %v77_v58 }
  0x72   :  { %379 = vmatmul.mubr.f32.gmra.mxu0 %v74_v59 }
  0x73   :  { %544 = vmatmul.mubr.f32.gmra.mxu1 %v76_v60  ;;  %383 = vmatprep.mubr.f32.mxu0 %v80_v61 }
  0x74   :  { %548 = vmatprep.mubr.f32.mxu1 %v82_v62 }
  0x76   :  { %384 = vmatmul.mubr.f32.gmra.mxu0 %v79_v63 }
  0x77   :  { %549 = vmatmul.mubr.f32.gmra.mxu1 %v81_v1  ;;  %388 = vmatprep.mubr.f32.mxu0 %v85_v2 }
  0x78   :  { %553 = vmatprep.mubr.f32.mxu1 %v87_v3 }
  0x7a   :  { %389 = vmatmul.mubr.f32.gmra.mxu0 %v84_v4 }
  0x7b   :  { %554 = vmatmul.mubr.f32.gmra.mxu1 %v86_v5  ;;  %393 = vmatprep.mubr.f32.mxu0 %v90_v6 }
  0x7c   :  { %558 = vmatprep.mubr.f32.mxu1 %v92_v0 }
  0x7e   :  { %394 = vmatmul.mubr.f32.gmra.mxu0 %v89_v7 }
  0x7f   :  { %559 = vmatmul.mubr.f32.gmra.mxu1 %v91_v8  ;;  %398 = vmatprep.mubr.f32.mxu0 %v95_v9 }
  0x80   :  { %563 = vmatprep.mubr.f32.mxu1 %v97_v10 }
  0x82   :  { %399 = vmatmul.mubr.f32.gmra.mxu0 %v94_v11 }
  0x83   :  { %564 = vmatmul.mubr.f32.gmra.mxu1 %v96_v12  ;;  %403 = vmatprep.mubr.f32.mxu0 %v100_v13 }
  0x84   :  { %568 = vmatprep.mubr.f32.mxu1 %v102_v14 }
  0x86   :  { %404 = vmatmul.mubr.f32.gmra.mxu0 %v99_v15 }
  0x87   :  { %569 = vmatmul.mubr.f32.gmra.mxu1 %v101_v16  ;;  %408 = vmatprep.mubr.f32.mxu0 %v105_v17 }
  0x88   :  { %573 = vmatprep.mubr.f32.mxu1 %v107_v18 }
  0x8a   :  { %409 = vmatmul.mubr.f32.gmra.mxu0 %v104_v19 }
  0x8b   :  { %574 = vmatmul.mubr.f32.gmra.mxu1 %v106_v20  ;;  %413 = vmatprep.mubr.f32.mxu0 %v110_v21 }
  0x8c   :  { %578 = vmatprep.mubr.f32.mxu1 %v112_v22 }
  0x8e   :  { %414 = vmatmul.mubr.f32.gmra.mxu0 %v109_v23 }
  0x8f   :  { %579 = vmatmul.mubr.f32.gmra.mxu1 %v111_v24  ;;  %858 = vmatprep.mubr.msk.f32.mxu0 %vm193_vm0, %v18_v25 }
  0x90   :  { %873 = vmatprep.mubr.msk.f32.mxu1 %vm193_vm0, %v68_v26 }
  0x92   :  { %859 = vmatmul.mubr.msk.f32.vlgmr.msra.gmra.mxu0 %vm193_vm0, %v23_v27 }
  0x93   :  { %874 = vmatmul.mubr.msk.f32.vlgmr.msra.gmra.mxu1 %vm193_vm0, %v73_v28  ;;  %861 = vmatprep.mubr.msk.f32.mxu0 %vm193_vm0, %v28_v29 }
  0x94   :  { %876 = vmatprep.mubr.msk.f32.mxu1 %vm193_vm0, %v78_v30 }
  0x96   :  { %862 = vmatmul.mubr.msk.f32.gmra.mxu0 %vm193_vm0, %v33_v31 }
  0x97   :  { %877 = vmatmul.mubr.msk.f32.gmra.mxu1 %vm193_vm0, %v83_v32  ;;  %864 = vmatprep.mubr.msk.f32.mxu0 %vm193_vm0, %v38_v33 }
  0x98   :  { %879 = vmatprep.mubr.msk.f32.mxu1 %vm193_vm0, %v88_v34 }
  0x9a   :  { %865 = vmatmul.mubr.msk.f32.gmra.mxu0 %vm193_vm0, %v43_v35 }
  0x9b   :  { %880 = vmatmul.mubr.msk.f32.gmra.mxu1 %vm193_vm0, %v93_v36  ;;  %867 = vmatprep.mubr.msk.f32.mxu0 %vm193_vm0, %v48_v37 }
  0x9c   :  { %882 = vmatprep.mubr.msk.f32.mxu1 %vm193_vm0, %v98_v38 }
  0x9e   :  { %868 = vmatmul.mubr.msk.f32.gmra.mxu0 %vm193_vm0, %v53_v39 }
  0x9f   :  { %883 = vmatmul.mubr.msk.f32.gmra.mxu1 %vm193_vm0, %v103_v40  ;;  %870 = vmatprep.mubr.msk.f32.mxu0 %vm193_vm0, %v58_v41 }
  0xa0   :  { %885 = vmatprep.mubr.msk.f32.mxu1 %vm193_vm0, %v108_v42 }
  0xa2   :  { %871 = vmatmul.mubr.msk.f32.gmra.mxu0 %vm193_vm0, %v63_v43 }
  0xa3   :  { %886 = vmatmul.mubr.msk.f32.gmra.mxu1 %vm193_vm0, %v113_v44 }
 0x102   :  { %v320_v46 = vpop.f32.mrf.mxu0 }
 0x103   :  { %v485_v47 = vpop.f32.mrf.mxu1  ;;  %v321_v48 = vadd.f32 %v1529_v45, %v320_v46 }
 0x104   :  { %v322_v49 = vpop.f32.mrf.mxu0 }
 0x105   :  { %v487_v50 = vpop.f32.mrf.mxu1  ;;  %v1532_v51 = vadd.f32 %v485_v47, %v321_v48 }
 0x106   :  { %v325_v52 = vpop.f32.mrf.mxu0 }
 0x107   :  { %v490_v53 = vpop.f32.mrf.mxu1  ;;  %v326_v54 = vadd.f32 %v1529_v45, %v325_v52 }
 0x108   :  { %v327_v55 = vpop.f32.mrf.mxu0 }
 0x109   :  { %v492_v56 = vpop.f32.mrf.mxu1  ;;  %v1535_v57 = vadd.f32 %v490_v53, %v326_v54 }
 0x10a   :  { %v330_v58 = vpop.f32.mrf.mxu0 }
 0x10b   :  { %v495_v59 = vpop.f32.mrf.mxu1  ;;  %v331_v60 = vadd.f32 %v1529_v45, %v330_v58 }
 0x10c   :  { %v332_v61 = vpop.f32.mrf.mxu0 }
 0x10d   :  { %v497_v62 = vpop.f32.mrf.mxu1  ;;  %v1538_v63 = vadd.f32 %v495_v59, %v331_v60 }
 0x10e   :  { %v335_v1 = vpop.f32.mrf.mxu0 }
 0x10f   :  { %v500_v2 = vpop.f32.mrf.mxu1  ;;  %v336_v3 = vadd.f32 %v1529_v45, %v335_v1 }
 0x110   :  { %v337_v4 = vpop.f32.mrf.mxu0 }
 0x111   :  { %v502_v5 = vpop.f32.mrf.mxu1  ;;  %v1541_v6 = vadd.f32 %v500_v2, %v336_v3 }
 0x112   :  { %v340_v0 = vpop.f32.mrf.mxu0 }
 0x113   :  { %v505_v7 = vpop.f32.mrf.mxu1  ;;  %v341_v8 = vadd.f32 %v1529_v45, %v340_v0 }
 0x114   :  { %v342_v9 = vpop.f32.mrf.mxu0 }
 0x115   :  { %v507_v10 = vpop.f32.mrf.mxu1  ;;  %v1544_v11 = vadd.f32 %v505_v7, %v341_v8 }
 0x116   :  { %v345_v12 = vpop.f32.mrf.mxu0 }
 0x117   :  { %v510_v13 = vpop.f32.mrf.mxu1  ;;  %v346_v14 = vadd.f32 %v1529_v45, %v345_v12 }
 0x118   :  { %v347_v15 = vpop.f32.mrf.mxu0 }
 0x119   :  { %v512_v16 = vpop.f32.mrf.mxu1  ;;  %v1547_v17 = vadd.f32 %v510_v13, %v346_v14 }
 0x11a   :  { %v350_v18 = vpop.f32.mrf.mxu0 }
 0x11b   :  { %v515_v19 = vpop.f32.mrf.mxu1  ;;  %v351_v20 = vadd.f32 %v1529_v45, %v350_v18 }
 0x11c   :  { %v352_v21 = vpop.f32.mrf.mxu0 }
 0x11d   :  { %v517_v22 = vpop.f32.mrf.mxu1  ;;  %v1550_v23 = vadd.f32 %v515_v19, %v351_v20 }
 0x11e   :  { %v1552_v24 = vpop.f32.mrf.mxu0 }
 0x11f   :  { %v1554_v25 = vpop.f32.mrf.mxu1 }
 0x120   :  { %v357_v26 = vpop.f32.mrf.mxu0 }
 0x121   :  { %v522_v27 = vpop.f32.mrf.mxu1 }
 0x122   :  { %v1556_v28 = vpop.f32.mrf.mxu0 }
 0x123   :  { %v1558_v29 = vpop.f32.mrf.mxu1 }
 0x124   :  { %v362_v30 = vpop.f32.mrf.mxu0 }
 0x125   :  { %v527_v31 = vpop.f32.mrf.mxu1 }
 0x126   :  { %v1560_v32 = vpop.f32.mrf.mxu0 }
 0x127   :  { %v1562_v33 = vpop.f32.mrf.mxu1 }
 0x128   :  { %v367_v34 = vpop.f32.mrf.mxu0 }
 0x129   :  { %v532_v35 = vpop.f32.mrf.mxu1 }
 0x12a   :  { %v370_v36 = vpop.f32.mrf.mxu0 }
 0x12b   :  { %v535_v37 = vpop.f32.mrf.mxu1  ;;  %v371_v18 = vadd.f32 %v1529_v45, %v370_v36 }
 0x12c   :  { %v372_v38 = vpop.f32.mrf.mxu0 }
 0x12d   :  { %v537_v39 = vpop.f32.mrf.mxu1  ;;  %v536_v31 = vadd.f32 %v535_v37, %v371_v18 }
 0x12e   :  { %v375_v40 = vpop.f32.mrf.mxu0 }
 0x12f   :  { %v540_v41 = vpop.f32.mrf.mxu1  ;;  %v376_v14 = vadd.f32 %v1529_v45, %v375_v40 }
 0x130   :  { %v377_v42 = vpop.f32.mrf.mxu0 }
 0x131   :  { %v542_v43 = vpop.f32.mrf.mxu1  ;;  %v541_v22 = vadd.f32 %v540_v41, %v376_v14 }
 0x132   :  { %v380_v44 = vpop.f32.mrf.mxu0 }
 0x133   :  { %v545_v46 = vpop.f32.mrf.mxu1  ;;  %v381_v26 = vadd.f32 %v1529_v45, %v380_v44 }
 0x134   :  { %v382_v47 = vpop.f32.mrf.mxu0 }
 0x135   :  { %v547_v48 = vpop.f32.mrf.mxu1 }
 0x136   :  { %v385_v49 = vpop.f32.mrf.mxu0 }
 0x137   :  { %v550_v50 = vpop.f32.mrf.mxu1  ;;  %v386_v19 = vadd.f32 %v1529_v45, %v385_v49  ;;  %v546_v49 = vadd.f32 %v545_v46, %v381_v26  ;;  %v356_v46 = vadd.f32 %v1529_v45, %v1552_v24 }
 0x138   :  { %v387_v52 = vpop.f32.mrf.mxu0 }
 0x139   :  { %v552_v53 = vpop.f32.mrf.mxu1  ;;  %v551_v38 = vadd.f32 %v550_v50, %v386_v19 }
 0x13a   :  { %v390_v54 = vpop.f32.mrf.mxu0 }
 0x13b   :  { %v1564_v55 = vpop.f32.mrf.mxu1  ;;  %v391_v41 = vadd.f32 %v1529_v45, %v390_v54 }
 0x13c   :  { %v392_v56 = vpop.f32.mrf.mxu0 }
 0x13d   :  { %v557_v58 = vpop.f32.mrf.mxu1 }
 0x13e   :  { %v395_v59 = vpop.f32.mrf.mxu0 }
 0x13f   :  { %v560_v60 = vpop.f32.mrf.mxu1  ;;  %v396_v39 = vadd.f32 %v1529_v45, %v395_v59 }
 0x140   :  { %v397_v61 = vpop.f32.mrf.mxu0 }
 0x141   :  { %v562_v62 = vpop.f32.mrf.mxu1  ;;  %v561_v53 = vadd.f32 %v560_v60, %v396_v39  ;;  %v556_v60 = vadd.f32 %v1564_v55, %v391_v41  ;;  %v521_v55 = vadd.f32 %v1554_v25, %v356_v46 }
 0x142   :  { %v400_v1 = vpop.f32.mrf.mxu0 }
 0x143   :  { %v1566_v2 = vpop.f32.mrf.mxu1  ;;  %v401_v62 = vadd.f32 %v1529_v45, %v400_v1  ;;  %v366_v1 = vadd.f32 %v1529_v45, %v1560_v32 }
 0x144   :  { %v402_v3 = vpop.f32.mrf.mxu0 }
 0x145   :  { %v567_v4 = vpop.f32.mrf.mxu1 }
 0x146   :  { %v405_v5 = vpop.f32.mrf.mxu0 }
 0x147   :  { %v1568_v0 = vpop.f32.mrf.mxu1  ;;  %v406_v54 = vadd.f32 %v1529_v45, %v405_v5 }
 0x148   :  { %v407_v7 = vpop.f32.mrf.mxu0 }
 0x149   :  { %v572_v8 = vpop.f32.mrf.mxu1 }
 0x14a   :  { %v1570_v9 = vpop.f32.mrf.mxu0 }
 0x14b   :  { %v1572_v10 = vpop.f32.mrf.mxu1 }
 0x14c   :  { %v412_v12 = vpop.f32.mrf.mxu0 }
 0x14d   :  { %v577_v13 = vpop.f32.mrf.mxu1  ;;  %v571_v12 = vadd.f32 %v1568_v0, %v406_v54  ;;  %v361_v0 = vadd.f32 %v1529_v45, %v1556_v28 }
 0x14e   :  { %v415_v15 = vpop.f32.mrf.mxu0 }
 0x14f   :  { %v1575_v16 = vpop.f32.mrf.mxu1  ;;  %v416_v13 = vadd.f32 %v1529_v45, %v415_v15  ;;  %v566_v15 = vadd.f32 %v1566_v2, %v401_v62  ;;  %v531_v2 = vadd.f32 %v1562_v33, %v366_v1  ;;  %v526_v33 = vadd.f32 %v1558_v29, %v361_v0 }
 0x150   :  { %v417_v20 = vpop.f32.mrf.mxu0 }
 0x151   :  { %v582_v21 = vpop.f32.mrf.mxu1  ;;  %v411_v20 = vadd.f32 %v1529_v45, %v1570_v9  ;;  %v581_v45 = vadd.f32 %v1575_v16, %v416_v13 }
 0x152   :  { %v860_v27 = vpop.f32.mrf.mxu0 }
 0x153   :  { %v875_v30 = vpop.f32.mrf.mxu1  ;;  %v656_v34 = vadd.f32 %v860_v27, %v1535_v57  ;;  %v576_v16 = vadd.f32 %v1572_v10, %v411_v20 }
 0x154   :  { %v706_v35 = vadd.f32 %v875_v30, %v541_v22  ;;  %v650_v40 = vpop.f32.mrf.mxu0 }
 0x155   :  { %v700_v42 = vpop.f32.mrf.mxu1  ;;  %v750_v43 = vmax.f32 %v656_v34, 0.0  ;;  %v651_v47 = vadd.f32 %v650_v40, %v1532_v51 }
 0x156   :  { %v760_v36 = vmax.f32 %v706_v35, 0.0  ;;  %v701_v48 = vadd.f32 %v700_v42, %v536_v31  ;;  %v863_v44 = vpop.f32.mrf.mxu0 }
 0x157   :  { %v878_v52 = vpop.f32.mrf.mxu1  ;;  %770 = vst.msk [vmem:[%s1691_s3 + $0x8] sm:$0xff] %vm193_vm0, %v750_v43  ;;  %v749_v57 = vmax.f32 %v651_v47, 0.0  ;;  %v666_v51 = vadd.f32 %v863_v44, %v1541_v6 }
 0x158   :  { %780 = vst.msk [vmem:[%s1691_s3 + $0x58] sm:$0xff] %vm193_vm0, %v760_v36  ;;  %v759_v37 = vmax.f32 %v701_v48, 0.0  ;;  %v716_v50 = vadd.f32 %v878_v52, %v551_v38  ;;  %v660_v56 = vpop.f32.mrf.mxu0 }
 0x159   :  { %v710_v58 = vpop.f32.mrf.mxu1  ;;  %769 = vst.msk [vmem:[%s1691_s3] sm:$0xff] %vm193_vm0, %v749_v57  ;;  %v752_v6 = vmax.f32 %v666_v51, 0.0  ;;  %v661_v61 = vadd.f32 %v660_v56, %v1538_v63 }
 0x15a   :  { %779 = vst.msk [vmem:[%s1691_s3 + $0x50] sm:$0xff] %vm193_vm0, %v759_v37  ;;  %v762_v59 = vmax.f32 %v716_v50, 0.0  ;;  %v711_v24 = vadd.f32 %v710_v58, %v546_v49  ;;  %v866_v3 = vpop.f32.mrf.mxu0 }
 0x15b   :  { %v881_v4 = vpop.f32.mrf.mxu1  ;;  %772 = vst.msk [vmem:[%s1691_s3 + $0x18] sm:$0xff] %vm193_vm0, %v752_v6  ;;  %v751_v5 = vmax.f32 %v661_v61, 0.0  ;;  %v676_v63 = vadd.f32 %v866_v3, %v1547_v17 }
 0x15c   :  { %782 = vst.msk [vmem:[%s1691_s3 + $0x68] sm:$0xff] %vm193_vm0, %v762_v59  ;;  %v761_v7 = vmax.f32 %v711_v24, 0.0  ;;  %v726_v8 = vadd.f32 %v881_v4, %v561_v53  ;;  %v670_v14 = vpop.f32.mrf.mxu0 }
 0x15d   :  { %v720_v18 = vpop.f32.mrf.mxu1  ;;  %771 = vst.msk [vmem:[%s1691_s3 + $0x10] sm:$0xff] %vm193_vm0, %v751_v5  ;;  %v754_v17 = vmax.f32 %v676_v63, 0.0  ;;  %v671_v32 = vadd.f32 %v670_v14, %v1544_v11 }
 0x15e   :  { %781 = vst.msk [vmem:[%s1691_s3 + $0x60] sm:$0xff] %vm193_vm0, %v761_v7  ;;  %v764_v25 = vmax.f32 %v726_v8, 0.0  ;;  %v721_v19 = vadd.f32 %v720_v18, %v556_v60  ;;  %v869_v21 = vpop.f32.mrf.mxu0 }
 0x15f   :  { %v884_v22 = vpop.f32.mrf.mxu1  ;;  %774 = vst.msk [vmem:[%s1691_s3 + $0x28] sm:$0xff] %vm193_vm0, %v754_v17  ;;  %v753_v11 = vmax.f32 %v671_v32, 0.0  ;;  %v686_v28 = vadd.f32 %v869_v21, %v521_v55 }
 0x160   :  { %784 = vst.msk [vmem:[%s1691_s3 + $0x78] sm:$0xff] %vm193_vm0, %v764_v25  ;;  %v763_v26 = vmax.f32 %v721_v19, 0.0  ;;  %v736_v27 = vadd.f32 %v884_v22, %v571_v12  ;;  %v680_v9 = vpop.f32.mrf.mxu0 }
 0x161   :  { %v730_v30 = vpop.f32.mrf.mxu1  ;;  %773 = vst.msk [vmem:[%s1691_s3 + $0x20] sm:$0xff] %vm193_vm0, %v753_v11  ;;  %v756_v31 = vmax.f32 %v686_v28, 0.0  ;;  %v681_v35 = vadd.f32 %v680_v9, %v1550_v23 }
 0x162   :  { %783 = vst.msk [vmem:[%s1691_s3 + $0x70] sm:$0xff] %vm193_vm0, %v763_v26  ;;  %v766_v34 = vmax.f32 %v736_v27, 0.0  ;;  %v731_v38 = vadd.f32 %v730_v30, %v566_v15  ;;  %v872_v39 = vpop.f32.mrf.mxu0 }
 0x163   :  { %v887_v40 = vpop.f32.mrf.mxu1  ;;  %776 = vst.msk [vmem:[%s1691_s3 + $0x38] sm:$0xff] %vm193_vm0, %v756_v31  ;;  %v755_v42 = vmax.f32 %v681_v35, 0.0  ;;  %v696_v23 = vadd.f32 %v872_v39, %v531_v2 }
 0x164   :  { %786 = vst.msk [vmem:[%s1691_s3 + $0x88] sm:$0xff] %vm193_vm0, %v766_v34  ;;  %v765_v43 = vmax.f32 %v731_v38, 0.0  ;;  %v746_v36 = vadd.f32 %v887_v40, %v581_v45  ;;  %v690_v47 = vpop.f32.mrf.mxu0 }
 0x165   :  { %v740_v29 = vpop.f32.mrf.mxu1  ;;  %775 = vst.msk [vmem:[%s1691_s3 + $0x30] sm:$0xff] %vm193_vm0, %v755_v42  ;;  %v758_v10 = vmax.f32 %v696_v23, 0.0  ;;  %v691_v49 = vadd.f32 %v690_v47, %v526_v33 }
 0x166   :  { %785 = vst.msk [vmem:[%s1691_s3 + $0x80] sm:$0xff] %vm193_vm0, %v765_v43  ;;  %v768_v48 = vmax.f32 %v746_v36, 0.0  ;;  %v741_v41 = vadd.f32 %v740_v29, %v576_v16 }
 0x167   :  { %778 = vst.msk [vmem:[%s1691_s3 + $0x48] sm:$0xff] %vm193_vm0, %v758_v10  ;;  %v757_v44 = vmax.f32 %v691_v49, 0.0 }
 0x168   :  { %788 = vst.msk [vmem:[%s1691_s3 + $0x98] sm:$0xff] %vm193_vm0, %v768_v48  ;;  %v767_v52 = vmax.f32 %v741_v41, 0.0 }
 0x169   :  { %777 = vst.msk [vmem:[%s1691_s3 + $0x40] sm:$0xff] %vm193_vm0, %v757_v44 }
 0x16a   :  { %787 = vst.msk [vmem:[%s1691_s3 + $0x90] sm:$0xff] %vm193_vm0, %v767_v52 }

// kernel: qnetwork_forward.7
= control target key start
LH: loop header
LB: loop body
LE: loop exit
PB: predicated region body
PF: predicated region fallthrough
CT: control target
= control target key end

     0   :  { %s10907_s0 = inlined_call_operand.vmem [shape: bf16[8,5120], index: 0, kind: input, shape index: {}]   ;;  %s10908_s1 = inlined_call_operand.vmem [shape: bf16[5120,1024], index: 1, kind: input, shape index: {}]   ;;  %s10909_s2 = inlined_call_operand.vmem [shape: f32[2,1,512], index: 2, kind: input, shape index: {}]   ;;  %s10910_s3 = inlined_call_operand.vmem [shape: f32[2,512,8], index: 3, kind: input, shape index: {}]   ;;  %s10911_s4 = inlined_call_operand.vmem [shape: f32[2,1,8], index: 4, kind: input, shape index: {}]   ;;  %s10912_s5 = inlined_call_operand.vmem [shape: f32[2,8,8], index: 5, kind: output, shape index: {}]  }
   0x1   :  { %10913 = sst [smem:[#allocation4_spill]] %s10907_s0 }
   0x2   :  { %10914 = sst [smem:[#allocation5_spill]] %s10908_s1 }
   0x3   :  { %s8618_s18 = smov 0   ;;  %s8620_s19 = smov 0  }
   0x4   :  { %s8622_s20 = smov 0   ;;  %s8624_s21 = smov 0  }
   0x5   :  { %s8626_s22 = smov 0   ;;  %s8628_s23 = smov 0  }
   0x6   :  { %s8630_s24 = smov 0  }
   0x7 LB: > { %s24_s25 = sadd.s32 1, %s8577_s22  ;;  %s27_s26 = sadd.s32 1, %s8581_s23  ;;  %s8585_s24 = sphi %s8630_s24, %s15_s24   ;;  %s8581_s23 = sphi %s8628_s23, %s10922_s23   ;;  %s8577_s22 = sphi %s8626_s22, %s10921_s22   ;;  %s8573_s21 = sphi %s8624_s21, %s10920_s21   ;;  %s8569_s20 = sphi %s8622_s20, %s10919_s20   ;;  %s8565_s19 = sphi %s8620_s19, %s10918_s19   ;;  %s8561_s18 = sphi %s8618_s18, %s10917_s18  }
   0x8   : > { %p25_p0 = scmp.ge.s32.totalorder %s24_s25, 2  ;;  %p69_p1 = scmp.ne.s32.totalorder %s8565_s19, %s8561_s18 }
   0x9   : > { %p70_p2 = scmp.eq.s32.totalorder %s8585_s24, 0  ;;  %s62_s30 = sadd.s32 1, %s8565_s19 }
   0xa   : > { %s10924_s25 = smov (%p25_p0, %s24_s25), 0  ;;  %s10926_s26 = smov (!%p25_p0, %s27_s26), %s8581_s23 }
   0xb   : > { %p71_p3 = por %p70_p2, %p69_p1  ;;  %p29_p4 = scmp.ge.s32.totalorder %s10926_s26, 2 }
   0xc   : > { %s57_s27 = ssub.s32 %s8577_s22, %s10924_s25  ;;  %p6745_p6 = scmp.ge.s32.totalorder %s8585_s24, 4 }
   0xd   : > { %s10928_s26 = smov (%p29_p4, %s10926_s26), 0 }
   0xe   : > { %s58_s28 = ssub.s32 %s8581_s23, %s10928_s26  ;;  %199 = sbr.rel (%p6745_p6) target bundleno = 349 (0x15d), region = 16 }
   0xf   : > { %s59_s29 = sor.u32 %s58_s28, %s57_s27 }
  0x10   : > { %p60_p5 = scmp.eq.s32.totalorder %s59_s29, 0 }
  0x12   : > { %s8669_s6 = scalar_select %p60_p5, %s8565_s19, %s62_s30  }
  0x13   : > { %211 = sbr.rel (!%p71_p3) target bundleno = 349 (0x15d), region = 24  ;;  %s213_s7 = sand.u32 (%p71_p3), 1, %s8565_s19  }
  0x14   : > { %s7492_s8 = smul.u32 (%p71_p3), 5120, %s213_s7  ;;  %s6746_s9 = sshll.u32 (%p71_p3), %s8581_s23, 2 }
  0x15   : > { %s7420_s10 = smul.u32 (%p71_p3), 2560, %s8577_s22  ;;  %s10915_s1 = sld [smem:[#allocation5_spill]] (%p71_p3) }
  0x16   : > { %s8683_s16 = scalar_lea.vmem (%p71_p3), [#allocation3], %s7492_s8 }
  0x17   : > { %s219_s11 = sadd.s32 (%p71_p3), %s7420_s10, %s6746_s9 }
  0x18   : > { %s6748_s12 = sshll.u32 %s219_s11, 2 }
  0x1b   : > { %s8678_s15 = scalar_lea.vmem %s10915_s1, %s6748_s12 }
  0x1c   : > { %v234_v0 = vld [vmem:[%s8678_s15] sm:$0xff]  ;;  %v236_v1 = vld [vmem:[%s8678_s15 + $0x8] sm:$0xff] }
  0x1d   : > { %v238_v2 = vld [vmem:[%s8678_s15 + $0x20] sm:$0xff]  ;;  %235 = vst [vmem:[%s8683_s16] sm:$0xff] %v234_v0  ;;  %237 = vst [vmem:[%s8683_s16 + $0x8] sm:$0xff] %v236_v1  ;;  %v240_v3 = vld [vmem:[%s8678_s15 + $0x28] sm:$0xff] }
  0x1e   : > { %239 = vst [vmem:[%s8683_s16 + $0x10] sm:$0xff] %v238_v2  ;;  %v242_v4 = vld [vmem:[%s8678_s15 + $0x40] sm:$0xff]  ;;  %v244_v5 = vld [vmem:[%s8678_s15 + $0x48] sm:$0xff]  ;;  %241 = vst [vmem:[%s8683_s16 + $0x18] sm:$0xff] %v240_v3 }
  0x1f   : > { %243 = vst [vmem:[%s8683_s16 + $0x20] sm:$0xff] %v242_v4  ;;  %245 = vst [vmem:[%s8683_s16 + $0x28] sm:$0xff] %v244_v5  ;;  %v246_v6 = vld [vmem:[%s8678_s15 + $0x60] sm:$0xff]  ;;  %v248_v7 = vld [vmem:[%s8678_s15 + $0x68] sm:$0xff] }
  0x20   : > { %v250_v8 = vld [vmem:[%s8678_s15 + $0x80] sm:$0xff]  ;;  %247 = vst [vmem:[%s8683_s16 + $0x30] sm:$0xff] %v246_v6  ;;  %249 = vst [vmem:[%s8683_s16 + $0x38] sm:$0xff] %v248_v7  ;;  %v252_v9 = vld [vmem:[%s8678_s15 + $0x88] sm:$0xff] }
  0x21   : > { %251 = vst [vmem:[%s8683_s16 + $0x40] sm:$0xff] %v250_v8  ;;  %v254_v10 = vld [vmem:[%s8678_s15 + $0xa0] sm:$0xff]  ;;  %v256_v11 = vld [vmem:[%s8678_s15 + $0xa8] sm:$0xff]  ;;  %253 = vst [vmem:[%s8683_s16 + $0x48] sm:$0xff] %v252_v9 }
  0x22   : > { %255 = vst [vmem:[%s8683_s16 + $0x50] sm:$0xff] %v254_v10  ;;  %257 = vst [vmem:[%s8683_s16 + $0x58] sm:$0xff] %v256_v11  ;;  %v258_v12 = vld [vmem:[%s8678_s15 + $0xc0] sm:$0xff]  ;;  %v260_v13 = vld [vmem:[%s8678_s15 + $0xc8] sm:$0xff] }
  0x23   : > { %v262_v14 = vld [vmem:[%s8678_s15 + $0xe0] sm:$0xff]  ;;  %259 = vst [vmem:[%s8683_s16 + $0x60] sm:$0xff] %v258_v12  ;;  %261 = vst [vmem:[%s8683_s16 + $0x68] sm:$0xff] %v260_v13  ;;  %v264_v15 = vld [vmem:[%s8678_s15 + $0xe8] sm:$0xff] }
  0x24   : > { %263 = vst [vmem:[%s8683_s16 + $0x70] sm:$0xff] %v262_v14  ;;  %v266_v16 = vld [vmem:[%s8678_s15 + $0x100] sm:$0xff]  ;;  %v268_v17 = vld [vmem:[%s8678_s15 + $0x108] sm:$0xff]  ;;  %265 = vst [vmem:[%s8683_s16 + $0x78] sm:$0xff] %v264_v15 }
  0x25   : > { %267 = vst [vmem:[%s8683_s16 + $0x80] sm:$0xff] %v266_v16  ;;  %269 = vst [vmem:[%s8683_s16 + $0x88] sm:$0xff] %v268_v17  ;;  %v270_v18 = vld [vmem:[%s8678_s15 + $0x120] sm:$0xff]  ;;  %v272_v19 = vld [vmem:[%s8678_s15 + $0x128] sm:$0xff] }
  0x26   : > { %v274_v20 = vld [vmem:[%s8678_s15 + $0x140] sm:$0xff]  ;;  %271 = vst [vmem:[%s8683_s16 + $0x90] sm:$0xff] %v270_v18  ;;  %273 = vst [vmem:[%s8683_s16 + $0x98] sm:$0xff] %v272_v19  ;;  %v276_v21 = vld [vmem:[%s8678_s15 + $0x148] sm:$0xff] }
  0x27   : > { %275 = vst [vmem:[%s8683_s16 + $0xa0] sm:$0xff] %v274_v20  ;;  %v278_v22 = vld [vmem:[%s8678_s15 + $0x160] sm:$0xff]  ;;  %v280_v23 = vld [vmem:[%s8678_s15 + $0x168] sm:$0xff]  ;;  %277 = vst [vmem:[%s8683_s16 + $0xa8] sm:$0xff] %v276_v21 }
  0x28   : > { %279 = vst [vmem:[%s8683_s16 + $0xb0] sm:$0xff] %v278_v22  ;;  %281 = vst [vmem:[%s8683_s16 + $0xb8] sm:$0xff] %v280_v23  ;;  %v282_v24 = vld [vmem:[%s8678_s15 + $0x180] sm:$0xff]  ;;  %v284_v25 = vld [vmem:[%s8678_s15 + $0x188] sm:$0xff] }
  0x29   : > { %v286_v26 = vld [vmem:[%s8678_s15 + $0x1a0] sm:$0xff]  ;;  %283 = vst [vmem:[%s8683_s16 + $0xc0] sm:$0xff] %v282_v24  ;;  %285 = vst [vmem:[%s8683_s16 + $0xc8] sm:$0xff] %v284_v25  ;;  %v288_v27 = vld [vmem:[%s8678_s15 + $0x1a8] sm:$0xff] }
  0x2a   : > { %287 = vst [vmem:[%s8683_s16 + $0xd0] sm:$0xff] %v286_v26  ;;  %v290_v28 = vld [vmem:[%s8678_s15 + $0x1c0] sm:$0xff]  ;;  %v292_v29 = vld [vmem:[%s8678_s15 + $0x1c8] sm:$0xff]  ;;  %289 = vst [vmem:[%s8683_s16 + $0xd8] sm:$0xff] %v288_v27 }
  0x2b   : > { %291 = vst [vmem:[%s8683_s16 + $0xe0] sm:$0xff] %v290_v28  ;;  %293 = vst [vmem:[%s8683_s16 + $0xe8] sm:$0xff] %v292_v29  ;;  %v294_v30 = vld [vmem:[%s8678_s15 + $0x1e0] sm:$0xff]  ;;  %v296_v31 = vld [vmem:[%s8678_s15 + $0x1e8] sm:$0xff] }
  0x2c   : > { %v298_v32 = vld [vmem:[%s8678_s15 + $0x200] sm:$0xff]  ;;  %295 = vst [vmem:[%s8683_s16 + $0xf0] sm:$0xff] %v294_v30  ;;  %297 = vst [vmem:[%s8683_s16 + $0xf8] sm:$0xff] %v296_v31  ;;  %v300_v33 = vld [vmem:[%s8678_s15 + $0x208] sm:$0xff] }
  0x2d   : > { %299 = vst [vmem:[%s8683_s16 + $0x100] sm:$0xff] %v298_v32  ;;  %v302_v34 = vld [vmem:[%s8678_s15 + $0x220] sm:$0xff]  ;;  %v304_v35 = vld [vmem:[%s8678_s15 + $0x228] sm:$0xff]  ;;  %301 = vst [vmem:[%s8683_s16 + $0x108] sm:$0xff] %v300_v33 }
  0x2e   : > { %303 = vst [vmem:[%s8683_s16 + $0x110] sm:$0xff] %v302_v34  ;;  %305 = vst [vmem:[%s8683_s16 + $0x118] sm:$0xff] %v304_v35  ;;  %v306_v36 = vld [vmem:[%s8678_s15 + $0x240] sm:$0xff]  ;;  %v308_v37 = vld [vmem:[%s8678_s15 + $0x248] sm:$0xff] }
  0x2f   : > { %v310_v38 = vld [vmem:[%s8678_s15 + $0x260] sm:$0xff]  ;;  %307 = vst [vmem:[%s8683_s16 + $0x120] sm:$0xff] %v306_v36  ;;  %309 = vst [vmem:[%s8683_s16 + $0x128] sm:$0xff] %v308_v37  ;;  %v312_v39 = vld [vmem:[%s8678_s15 + $0x268] sm:$0xff] }
  0x30   : > { %311 = vst [vmem:[%s8683_s16 + $0x130] sm:$0xff] %v310_v38  ;;  %v314_v40 = vld [vmem:[%s8678_s15 + $0x280] sm:$0xff]  ;;  %v316_v41 = vld [vmem:[%s8678_s15 + $0x288] sm:$0xff]  ;;  %313 = vst [vmem:[%s8683_s16 + $0x138] sm:$0xff] %v312_v39 }
  0x31   : > { %315 = vst [vmem:[%s8683_s16 + $0x140] sm:$0xff] %v314_v40  ;;  %317 = vst [vmem:[%s8683_s16 + $0x148] sm:$0xff] %v316_v41  ;;  %v318_v42 = vld [vmem:[%s8678_s15 + $0x2a0] sm:$0xff]  ;;  %v320_v43 = vld [vmem:[%s8678_s15 + $0x2a8] sm:$0xff] }
  0x32   : > { %v322_v44 = vld [vmem:[%s8678_s15 + $0x2c0] sm:$0xff]  ;;  %319 = vst [vmem:[%s8683_s16 + $0x150] sm:$0xff] %v318_v42  ;;  %321 = vst [vmem:[%s8683_s16 + $0x158] sm:$0xff] %v320_v43  ;;  %v324_v45 = vld [vmem:[%s8678_s15 + $0x2c8] sm:$0xff] }
  0x33   : > { %323 = vst [vmem:[%s8683_s16 + $0x160] sm:$0xff] %v322_v44  ;;  %v326_v46 = vld [vmem:[%s8678_s15 + $0x2e0] sm:$0xff]  ;;  %v328_v47 = vld [vmem:[%s8678_s15 + $0x2e8] sm:$0xff]  ;;  %325 = vst [vmem:[%s8683_s16 + $0x168] sm:$0xff] %v324_v45 }
  0x34   : > { %327 = vst [vmem:[%s8683_s16 + $0x170] sm:$0xff] %v326_v46  ;;  %329 = vst [vmem:[%s8683_s16 + $0x178] sm:$0xff] %v328_v47  ;;  %v330_v48 = vld [vmem:[%s8678_s15 + $0x300] sm:$0xff]  ;;  %v332_v49 = vld [vmem:[%s8678_s15 + $0x308] sm:$0xff] }
  0x35   : > { %v334_v50 = vld [vmem:[%s8678_s15 + $0x320] sm:$0xff]  ;;  %331 = vst [vmem:[%s8683_s16 + $0x180] sm:$0xff] %v330_v48  ;;  %333 = vst [vmem:[%s8683_s16 + $0x188] sm:$0xff] %v332_v49  ;;  %v336_v51 = vld [vmem:[%s8678_s15 + $0x328] sm:$0xff] }
  0x36   : > { %335 = vst [vmem:[%s8683_s16 + $0x190] sm:$0xff] %v334_v50  ;;  %v338_v52 = vld [vmem:[%s8678_s15 + $0x340] sm:$0xff]  ;;  %v340_v53 = vld [vmem:[%s8678_s15 + $0x348] sm:$0xff]  ;;  %337 = vst [vmem:[%s8683_s16 + $0x198] sm:$0xff] %v336_v51 }
  0x37   : > { %339 = vst [vmem:[%s8683_s16 + $0x1a0] sm:$0xff] %v338_v52  ;;  %341 = vst [vmem:[%s8683_s16 + $0x1a8] sm:$0xff] %v340_v53  ;;  %v342_v54 = vld [vmem:[%s8678_s15 + $0x360] sm:$0xff]  ;;  %v344_v55 = vld [vmem:[%s8678_s15 + $0x368] sm:$0xff] }
  0x38   : > { %v346_v56 = vld [vmem:[%s8678_s15 + $0x380] sm:$0xff]  ;;  %343 = vst [vmem:[%s8683_s16 + $0x1b0] sm:$0xff] %v342_v54  ;;  %345 = vst [vmem:[%s8683_s16 + $0x1b8] sm:$0xff] %v344_v55  ;;  %v348_v57 = vld [vmem:[%s8678_s15 + $0x388] sm:$0xff] }
  0x39   : > { %347 = vst [vmem:[%s8683_s16 + $0x1c0] sm:$0xff] %v346_v56  ;;  %v350_v58 = vld [vmem:[%s8678_s15 + $0x3a0] sm:$0xff]  ;;  %v352_v59 = vld [vmem:[%s8678_s15 + $0x3a8] sm:$0xff]  ;;  %349 = vst [vmem:[%s8683_s16 + $0x1c8] sm:$0xff] %v348_v57 }
  0x3a   : > { %351 = vst [vmem:[%s8683_s16 + $0x1d0] sm:$0xff] %v350_v58  ;;  %353 = vst [vmem:[%s8683_s16 + $0x1d8] sm:$0xff] %v352_v59  ;;  %v354_v60 = vld [vmem:[%s8678_s15 + $0x3c0] sm:$0xff]  ;;  %v356_v61 = vld [vmem:[%s8678_s15 + $0x3c8] sm:$0xff] }
  0x3b   : > { %v358_v62 = vld [vmem:[%s8678_s15 + $0x3e0] sm:$0xff]  ;;  %355 = vst [vmem:[%s8683_s16 + $0x1e0] sm:$0xff] %v354_v60  ;;  %357 = vst [vmem:[%s8683_s16 + $0x1e8] sm:$0xff] %v356_v61  ;;  %v360_v63 = vld [vmem:[%s8678_s15 + $0x3e8] sm:$0xff] }
  0x3c   : > { %359 = vst [vmem:[%s8683_s16 + $0x1f0] sm:$0xff] %v358_v62  ;;  %v362_v0 = vld [vmem:[%s8678_s15 + $0x400] sm:$0xff]  ;;  %v364_v1 = vld [vmem:[%s8678_s15 + $0x408] sm:$0xff]  ;;  %361 = vst [vmem:[%s8683_s16 + $0x1f8] sm:$0xff] %v360_v63 }
  0x3d   : > { %363 = vst [vmem:[%s8683_s16 + $0x200] sm:$0xff] %v362_v0  ;;  %365 = vst [vmem:[%s8683_s16 + $0x208] sm:$0xff] %v364_v1  ;;  %v366_v2 = vld [vmem:[%s8678_s15 + $0x420] sm:$0xff]  ;;  %v368_v3 = vld [vmem:[%s8678_s15 + $0x428] sm:$0xff] }
  0x3e   : > { %v370_v4 = vld [vmem:[%s8678_s15 + $0x440] sm:$0xff]  ;;  %367 = vst [vmem:[%s8683_s16 + $0x210] sm:$0xff] %v366_v2  ;;  %369 = vst [vmem:[%s8683_s16 + $0x218] sm:$0xff] %v368_v3  ;;  %v372_v5 = vld [vmem:[%s8678_s15 + $0x448] sm:$0xff] }
  0x3f   : > { %371 = vst [vmem:[%s8683_s16 + $0x220] sm:$0xff] %v370_v4  ;;  %v374_v6 = vld [vmem:[%s8678_s15 + $0x460] sm:$0xff]  ;;  %v376_v7 = vld [vmem:[%s8678_s15 + $0x468] sm:$0xff]  ;;  %373 = vst [vmem:[%s8683_s16 + $0x228] sm:$0xff] %v372_v5 }
  0x40   : > { %375 = vst [vmem:[%s8683_s16 + $0x230] sm:$0xff] %v374_v6  ;;  %377 = vst [vmem:[%s8683_s16 + $0x238] sm:$0xff] %v376_v7  ;;  %v378_v8 = vld [vmem:[%s8678_s15 + $0x480] sm:$0xff]  ;;  %v380_v9 = vld [vmem:[%s8678_s15 + $0x488] sm:$0xff] }
  0x41   : > { %v382_v10 = vld [vmem:[%s8678_s15 + $0x4a0] sm:$0xff]  ;;  %379 = vst [vmem:[%s8683_s16 + $0x240] sm:$0xff] %v378_v8  ;;  %381 = vst [vmem:[%s8683_s16 + $0x248] sm:$0xff] %v380_v9  ;;  %v384_v11 = vld [vmem:[%s8678_s15 + $0x4a8] sm:$0xff] }
  0x42   : > { %383 = vst [vmem:[%s8683_s16 + $0x250] sm:$0xff] %v382_v10  ;;  %v386_v12 = vld [vmem:[%s8678_s15 + $0x4c0] sm:$0xff]  ;;  %v388_v13 = vld [vmem:[%s8678_s15 + $0x4c8] sm:$0xff]  ;;  %385 = vst [vmem:[%s8683_s16 + $0x258] sm:$0xff] %v384_v11 }
  0x43   : > { %387 = vst [vmem:[%s8683_s16 + $0x260] sm:$0xff] %v386_v12  ;;  %389 = vst [vmem:[%s8683_s16 + $0x268] sm:$0xff] %v388_v13  ;;  %v390_v14 = vld [vmem:[%s8678_s15 + $0x4e0] sm:$0xff]  ;;  %v392_v15 = vld [vmem:[%s8678_s15 + $0x4e8] sm:$0xff] }
  0x44   : > { %v394_v16 = vld [vmem:[%s8678_s15 + $0x500] sm:$0xff]  ;;  %391 = vst [vmem:[%s8683_s16 + $0x270] sm:$0xff] %v390_v14  ;;  %393 = vst [vmem:[%s8683_s16 + $0x278] sm:$0xff] %v392_v15  ;;  %v396_v17 = vld [vmem:[%s8678_s15 + $0x508] sm:$0xff] }
  0x45   : > { %395 = vst [vmem:[%s8683_s16 + $0x280] sm:$0xff] %v394_v16  ;;  %v398_v18 = vld [vmem:[%s8678_s15 + $0x520] sm:$0xff]  ;;  %v400_v19 = vld [vmem:[%s8678_s15 + $0x528] sm:$0xff]  ;;  %397 = vst [vmem:[%s8683_s16 + $0x288] sm:$0xff] %v396_v17 }
  0x46   : > { %399 = vst [vmem:[%s8683_s16 + $0x290] sm:$0xff] %v398_v18  ;;  %401 = vst [vmem:[%s8683_s16 + $0x298] sm:$0xff] %v400_v19  ;;  %v402_v20 = vld [vmem:[%s8678_s15 + $0x540] sm:$0xff]  ;;  %v404_v21 = vld [vmem:[%s8678_s15 + $0x548] sm:$0xff] }
  0x47   : > { %v406_v22 = vld [vmem:[%s8678_s15 + $0x560] sm:$0xff]  ;;  %403 = vst [vmem:[%s8683_s16 + $0x2a0] sm:$0xff] %v402_v20  ;;  %405 = vst [vmem:[%s8683_s16 + $0x2a8] sm:$0xff] %v404_v21  ;;  %v408_v23 = vld [vmem:[%s8678_s15 + $0x568] sm:$0xff] }
  0x48   : > { %407 = vst [vmem:[%s8683_s16 + $0x2b0] sm:$0xff] %v406_v22  ;;  %v410_v24 = vld [vmem:[%s8678_s15 + $0x580] sm:$0xff]  ;;  %v412_v25 = vld [vmem:[%s8678_s15 + $0x588] sm:$0xff]  ;;  %409 = vst [vmem:[%s8683_s16 + $0x2b8] sm:$0xff] %v408_v23 }
  0x49   : > { %411 = vst [vmem:[%s8683_s16 + $0x2c0] sm:$0xff] %v410_v24  ;;  %413 = vst [vmem:[%s8683_s16 + $0x2c8] sm:$0xff] %v412_v25  ;;  %v414_v26 = vld [vmem:[%s8678_s15 + $0x5a0] sm:$0xff]  ;;  %v416_v27 = vld [vmem:[%s8678_s15 + $0x5a8] sm:$0xff] }
  0x4a   : > { %v418_v28 = vld [vmem:[%s8678_s15 + $0x5c0] sm:$0xff]  ;;  %415 = vst [vmem:[%s8683_s16 + $0x2d0] sm:$0xff] %v414_v26  ;;  %417 = vst [vmem:[%s8683_s16 + $0x2d8] sm:$0xff] %v416_v27  ;;  %v420_v29 = vld [vmem:[%s8678_s15 + $0x5c8] sm:$0xff] }
  0x4b   : > { %419 = vst [vmem:[%s8683_s16 + $0x2e0] sm:$0xff] %v418_v28  ;;  %v422_v30 = vld [vmem:[%s8678_s15 + $0x5e0] sm:$0xff]  ;;  %v424_v31 = vld [vmem:[%s8678_s15 + $0x5e8] sm:$0xff]  ;;  %421 = vst [vmem:[%s8683_s16 + $0x2e8] sm:$0xff] %v420_v29 }
  0x4c   : > { %423 = vst [vmem:[%s8683_s16 + $0x2f0] sm:$0xff] %v422_v30  ;;  %425 = vst [vmem:[%s8683_s16 + $0x2f8] sm:$0xff] %v424_v31  ;;  %v426_v32 = vld [vmem:[%s8678_s15 + $0x600] sm:$0xff]  ;;  %v428_v33 = vld [vmem:[%s8678_s15 + $0x608] sm:$0xff] }
  0x4d   : > { %v430_v34 = vld [vmem:[%s8678_s15 + $0x620] sm:$0xff]  ;;  %427 = vst [vmem:[%s8683_s16 + $0x300] sm:$0xff] %v426_v32  ;;  %429 = vst [vmem:[%s8683_s16 + $0x308] sm:$0xff] %v428_v33  ;;  %v432_v35 = vld [vmem:[%s8678_s15 + $0x628] sm:$0xff] }
  0x4e   : > { %431 = vst [vmem:[%s8683_s16 + $0x310] sm:$0xff] %v430_v34  ;;  %v434_v36 = vld [vmem:[%s8678_s15 + $0x640] sm:$0xff]  ;;  %v436_v37 = vld [vmem:[%s8678_s15 + $0x648] sm:$0xff]  ;;  %433 = vst [vmem:[%s8683_s16 + $0x318] sm:$0xff] %v432_v35 }
  0x4f   : > { %435 = vst [vmem:[%s8683_s16 + $0x320] sm:$0xff] %v434_v36  ;;  %437 = vst [vmem:[%s8683_s16 + $0x328] sm:$0xff] %v436_v37  ;;  %v438_v38 = vld [vmem:[%s8678_s15 + $0x660] sm:$0xff]  ;;  %v440_v39 = vld [vmem:[%s8678_s15 + $0x668] sm:$0xff] }
  0x50   : > { %v442_v40 = vld [vmem:[%s8678_s15 + $0x680] sm:$0xff]  ;;  %439 = vst [vmem:[%s8683_s16 + $0x330] sm:$0xff] %v438_v38  ;;  %441 = vst [vmem:[%s8683_s16 + $0x338] sm:$0xff] %v440_v39  ;;  %v444_v41 = vld [vmem:[%s8678_s15 + $0x688] sm:$0xff] }
  0x51   : > { %443 = vst [vmem:[%s8683_s16 + $0x340] sm:$0xff] %v442_v40  ;;  %v446_v42 = vld [vmem:[%s8678_s15 + $0x6a0] sm:$0xff]  ;;  %v448_v43 = vld [vmem:[%s8678_s15 + $0x6a8] sm:$0xff]  ;;  %445 = vst [vmem:[%s8683_s16 + $0x348] sm:$0xff] %v444_v41 }
  0x52   : > { %447 = vst [vmem:[%s8683_s16 + $0x350] sm:$0xff] %v446_v42  ;;  %449 = vst [vmem:[%s8683_s16 + $0x358] sm:$0xff] %v448_v43  ;;  %v450_v44 = vld [vmem:[%s8678_s15 + $0x6c0] sm:$0xff]  ;;  %v452_v45 = vld [vmem:[%s8678_s15 + $0x6c8] sm:$0xff] }
  0x53   : > { %v454_v46 = vld [vmem:[%s8678_s15 + $0x6e0] sm:$0xff]  ;;  %451 = vst [vmem:[%s8683_s16 + $0x360] sm:$0xff] %v450_v44  ;;  %453 = vst [vmem:[%s8683_s16 + $0x368] sm:$0xff] %v452_v45  ;;  %v456_v47 = vld [vmem:[%s8678_s15 + $0x6e8] sm:$0xff] }
  0x54   : > { %455 = vst [vmem:[%s8683_s16 + $0x370] sm:$0xff] %v454_v46  ;;  %v458_v48 = vld [vmem:[%s8678_s15 + $0x700] sm:$0xff]  ;;  %v460_v49 = vld [vmem:[%s8678_s15 + $0x708] sm:$0xff]  ;;  %457 = vst [vmem:[%s8683_s16 + $0x378] sm:$0xff] %v456_v47 }
  0x55   : > { %459 = vst [vmem:[%s8683_s16 + $0x380] sm:$0xff] %v458_v48  ;;  %461 = vst [vmem:[%s8683_s16 + $0x388] sm:$0xff] %v460_v49  ;;  %v462_v50 = vld [vmem:[%s8678_s15 + $0x720] sm:$0xff]  ;;  %v464_v51 = vld [vmem:[%s8678_s15 + $0x728] sm:$0xff] }
  0x56   : > { %v466_v52 = vld [vmem:[%s8678_s15 + $0x740] sm:$0xff]  ;;  %463 = vst [vmem:[%s8683_s16 + $0x390] sm:$0xff] %v462_v50  ;;  %465 = vst [vmem:[%s8683_s16 + $0x398] sm:$0xff] %v464_v51  ;;  %v468_v53 = vld [vmem:[%s8678_s15 + $0x748] sm:$0xff] }
  0x57   : > { %467 = vst [vmem:[%s8683_s16 + $0x3a0] sm:$0xff] %v466_v52  ;;  %v470_v54 = vld [vmem:[%s8678_s15 + $0x760] sm:$0xff]  ;;  %v472_v55 = vld [vmem:[%s8678_s15 + $0x768] sm:$0xff]  ;;  %469 = vst [vmem:[%s8683_s16 + $0x3a8] sm:$0xff] %v468_v53 }
  0x58   : > { %471 = vst [vmem:[%s8683_s16 + $0x3b0] sm:$0xff] %v470_v54  ;;  %473 = vst [vmem:[%s8683_s16 + $0x3b8] sm:$0xff] %v472_v55  ;;  %v474_v56 = vld [vmem:[%s8678_s15 + $0x780] sm:$0xff]  ;;  %v476_v57 = vld [vmem:[%s8678_s15 + $0x788] sm:$0xff] }
  0x59   : > { %v478_v58 = vld [vmem:[%s8678_s15 + $0x7a0] sm:$0xff]  ;;  %475 = vst [vmem:[%s8683_s16 + $0x3c0] sm:$0xff] %v474_v56  ;;  %477 = vst [vmem:[%s8683_s16 + $0x3c8] sm:$0xff] %v476_v57  ;;  %v480_v59 = vld [vmem:[%s8678_s15 + $0x7a8] sm:$0xff] }
  0x5a   : > { %479 = vst [vmem:[%s8683_s16 + $0x3d0] sm:$0xff] %v478_v58  ;;  %v482_v60 = vld [vmem:[%s8678_s15 + $0x7c0] sm:$0xff]  ;;  %v484_v61 = vld [vmem:[%s8678_s15 + $0x7c8] sm:$0xff]  ;;  %481 = vst [vmem:[%s8683_s16 + $0x3d8] sm:$0xff] %v480_v59 }
  0x5b   : > { %483 = vst [vmem:[%s8683_s16 + $0x3e0] sm:$0xff] %v482_v60  ;;  %485 = vst [vmem:[%s8683_s16 + $0x3e8] sm:$0xff] %v484_v61  ;;  %v486_v62 = vld [vmem:[%s8678_s15 + $0x7e0] sm:$0xff]  ;;  %v488_v63 = vld [vmem:[%s8678_s15 + $0x7e8] sm:$0xff] }
  0x5c   : > { %v490_v0 = vld [vmem:[%s8678_s15 + $0x800] sm:$0xff]  ;;  %487 = vst [vmem:[%s8683_s16 + $0x3f0] sm:$0xff] %v486_v62  ;;  %489 = vst [vmem:[%s8683_s16 + $0x3f8] sm:$0xff] %v488_v63  ;;  %v492_v1 = vld [vmem:[%s8678_s15 + $0x808] sm:$0xff] }
  0x5d   : > { %491 = vst [vmem:[%s8683_s16 + $0x400] sm:$0xff] %v490_v0  ;;  %v494_v2 = vld [vmem:[%s8678_s15 + $0x820] sm:$0xff]  ;;  %v496_v3 = vld [vmem:[%s8678_s15 + $0x828] sm:$0xff]  ;;  %493 = vst [vmem:[%s8683_s16 + $0x408] sm:$0xff] %v492_v1 }
  0x5e   : > { %495 = vst [vmem:[%s8683_s16 + $0x410] sm:$0xff] %v494_v2  ;;  %497 = vst [vmem:[%s8683_s16 + $0x418] sm:$0xff] %v496_v3  ;;  %v498_v4 = vld [vmem:[%s8678_s15 + $0x840] sm:$0xff]  ;;  %v500_v5 = vld [vmem:[%s8678_s15 + $0x848] sm:$0xff] }
  0x5f   : > { %v502_v6 = vld [vmem:[%s8678_s15 + $0x860] sm:$0xff]  ;;  %499 = vst [vmem:[%s8683_s16 + $0x420] sm:$0xff] %v498_v4  ;;  %501 = vst [vmem:[%s8683_s16 + $0x428] sm:$0xff] %v500_v5  ;;  %v504_v7 = vld [vmem:[%s8678_s15 + $0x868] sm:$0xff] }
  0x60   : > { %503 = vst [vmem:[%s8683_s16 + $0x430] sm:$0xff] %v502_v6  ;;  %v506_v8 = vld [vmem:[%s8678_s15 + $0x880] sm:$0xff]  ;;  %v508_v9 = vld [vmem:[%s8678_s15 + $0x888] sm:$0xff]  ;;  %505 = vst [vmem:[%s8683_s16 + $0x438] sm:$0xff] %v504_v7 }
  0x61   : > { %507 = vst [vmem:[%s8683_s16 + $0x440] sm:$0xff] %v506_v8  ;;  %509 = vst [vmem:[%s8683_s16 + $0x448] sm:$0xff] %v508_v9  ;;  %v510_v10 = vld [vmem:[%s8678_s15 + $0x8a0] sm:$0xff]  ;;  %v512_v11 = vld [vmem:[%s8678_s15 + $0x8a8] sm:$0xff] }
  0x62   : > { %v514_v12 = vld [vmem:[%s8678_s15 + $0x8c0] sm:$0xff]  ;;  %511 = vst [vmem:[%s8683_s16 + $0x450] sm:$0xff] %v510_v10  ;;  %513 = vst [vmem:[%s8683_s16 + $0x458] sm:$0xff] %v512_v11  ;;  %v516_v13 = vld [vmem:[%s8678_s15 + $0x8c8] sm:$0xff] }
  0x63   : > { %515 = vst [vmem:[%s8683_s16 + $0x460] sm:$0xff] %v514_v12  ;;  %v518_v14 = vld [vmem:[%s8678_s15 + $0x8e0] sm:$0xff]  ;;  %v520_v15 = vld [vmem:[%s8678_s15 + $0x8e8] sm:$0xff]  ;;  %517 = vst [vmem:[%s8683_s16 + $0x468] sm:$0xff] %v516_v13 }
  0x64   : > { %519 = vst [vmem:[%s8683_s16 + $0x470] sm:$0xff] %v518_v14  ;;  %521 = vst [vmem:[%s8683_s16 + $0x478] sm:$0xff] %v520_v15  ;;  %v522_v16 = vld [vmem:[%s8678_s15 + $0x900] sm:$0xff]  ;;  %v524_v17 = vld [vmem:[%s8678_s15 + $0x908] sm:$0xff] }
  0x65   : > { %v526_v18 = vld [vmem:[%s8678_s15 + $0x920] sm:$0xff]  ;;  %523 = vst [vmem:[%s8683_s16 + $0x480] sm:$0xff] %v522_v16  ;;  %525 = vst [vmem:[%s8683_s16 + $0x488] sm:$0xff] %v524_v17  ;;  %v528_v19 = vld [vmem:[%s8678_s15 + $0x928] sm:$0xff] }
  0x66   : > { %527 = vst [vmem:[%s8683_s16 + $0x490] sm:$0xff] %v526_v18  ;;  %v530_v20 = vld [vmem:[%s8678_s15 + $0x940] sm:$0xff]  ;;  %v532_v21 = vld [vmem:[%s8678_s15 + $0x948] sm:$0xff]  ;;  %529 = vst [vmem:[%s8683_s16 + $0x498] sm:$0xff] %v528_v19 }
  0x67   : > { %531 = vst [vmem:[%s8683_s16 + $0x4a0] sm:$0xff] %v530_v20  ;;  %533 = vst [vmem:[%s8683_s16 + $0x4a8] sm:$0xff] %v532_v21  ;;  %v534_v22 = vld [vmem:[%s8678_s15 + $0x960] sm:$0xff]  ;;  %v536_v23 = vld [vmem:[%s8678_s15 + $0x968] sm:$0xff] }
  0x68   : > { %v538_v24 = vld [vmem:[%s8678_s15 + $0x980] sm:$0xff]  ;;  %535 = vst [vmem:[%s8683_s16 + $0x4b0] sm:$0xff] %v534_v22  ;;  %537 = vst [vmem:[%s8683_s16 + $0x4b8] sm:$0xff] %v536_v23  ;;  %v540_v25 = vld [vmem:[%s8678_s15 + $0x988] sm:$0xff] }
  0x69   : > { %539 = vst [vmem:[%s8683_s16 + $0x4c0] sm:$0xff] %v538_v24  ;;  %v542_v26 = vld [vmem:[%s8678_s15 + $0x9a0] sm:$0xff]  ;;  %v544_v27 = vld [vmem:[%s8678_s15 + $0x9a8] sm:$0xff]  ;;  %541 = vst [vmem:[%s8683_s16 + $0x4c8] sm:$0xff] %v540_v25 }
  0x6a   : > { %543 = vst [vmem:[%s8683_s16 + $0x4d0] sm:$0xff] %v542_v26  ;;  %545 = vst [vmem:[%s8683_s16 + $0x4d8] sm:$0xff] %v544_v27  ;;  %v546_v28 = vld [vmem:[%s8678_s15 + $0x9c0] sm:$0xff]  ;;  %v548_v29 = vld [vmem:[%s8678_s15 + $0x9c8] sm:$0xff] }
  0x6b   : > { %v550_v30 = vld [vmem:[%s8678_s15 + $0x9e0] sm:$0xff]  ;;  %547 = vst [vmem:[%s8683_s16 + $0x4e0] sm:$0xff] %v546_v28  ;;  %549 = vst [vmem:[%s8683_s16 + $0x4e8] sm:$0xff] %v548_v29  ;;  %v552_v31 = vld [vmem:[%s8678_s15 + $0x9e8] sm:$0xff] }
  0x6c   : > { %551 = vst [vmem:[%s8683_s16 + $0x4f0] sm:$0xff] %v550_v30  ;;  %v554_v32 = vld [vmem:[%s8678_s15 + $0xa00] sm:$0xff]  ;;  %v556_v33 = vld [vmem:[%s8678_s15 + $0xa08] sm:$0xff]  ;;  %553 = vst [vmem:[%s8683_s16 + $0x4f8] sm:$0xff] %v552_v31 }
  0x6d   : > { %555 = vst [vmem:[%s8683_s16 + $0x500] sm:$0xff] %v554_v32  ;;  %557 = vst [vmem:[%s8683_s16 + $0x508] sm:$0xff] %v556_v33  ;;  %v558_v34 = vld [vmem:[%s8678_s15 + $0xa20] sm:$0xff]  ;;  %v560_v35 = vld [vmem:[%s8678_s15 + $0xa28] sm:$0xff] }
  0x6e   : > { %v562_v36 = vld [vmem:[%s8678_s15 + $0xa40] sm:$0xff]  ;;  %559 = vst [vmem:[%s8683_s16 + $0x510] sm:$0xff] %v558_v34  ;;  %561 = vst [vmem:[%s8683_s16 + $0x518] sm:$0xff] %v560_v35  ;;  %v564_v37 = vld [vmem:[%s8678_s15 + $0xa48] sm:$0xff] }
  0x6f   : > { %563 = vst [vmem:[%s8683_s16 + $0x520] sm:$0xff] %v562_v36  ;;  %v566_v38 = vld [vmem:[%s8678_s15 + $0xa60] sm:$0xff]  ;;  %v568_v39 = vld [vmem:[%s8678_s15 + $0xa68] sm:$0xff]  ;;  %565 = vst [vmem:[%s8683_s16 + $0x528] sm:$0xff] %v564_v37 }
  0x70   : > { %567 = vst [vmem:[%s8683_s16 + $0x530] sm:$0xff] %v566_v38  ;;  %569 = vst [vmem:[%s8683_s16 + $0x538] sm:$0xff] %v568_v39  ;;  %v570_v40 = vld [vmem:[%s8678_s15 + $0xa80] sm:$0xff]  ;;  %v572_v41 = vld [vmem:[%s8678_s15 + $0xa88] sm:$0xff] }
  0x71   : > { %v574_v42 = vld [vmem:[%s8678_s15 + $0xaa0] sm:$0xff]  ;;  %571 = vst [vmem:[%s8683_s16 + $0x540] sm:$0xff] %v570_v40  ;;  %573 = vst [vmem:[%s8683_s16 + $0x548] sm:$0xff] %v572_v41  ;;  %v576_v43 = vld [vmem:[%s8678_s15 + $0xaa8] sm:$0xff] }
  0x72   : > { %575 = vst [vmem:[%s8683_s16 + $0x550] sm:$0xff] %v574_v42  ;;  %v578_v44 = vld [vmem:[%s8678_s15 + $0xac0] sm:$0xff]  ;;  %v580_v45 = vld [vmem:[%s8678_s15 + $0xac8] sm:$0xff]  ;;  %577 = vst [vmem:[%s8683_s16 + $0x558] sm:$0xff] %v576_v43 }
  0x73   : > { %579 = vst [vmem:[%s8683_s16 + $0x560] sm:$0xff] %v578_v44  ;;  %581 = vst [vmem:[%s8683_s16 + $0x568] sm:$0xff] %v580_v45  ;;  %v582_v46 = vld [vmem:[%s8678_s15 + $0xae0] sm:$0xff]  ;;  %v584_v47 = vld [vmem:[%s8678_s15 + $0xae8] sm:$0xff] }
  0x74   : > { %v586_v48 = vld [vmem:[%s8678_s15 + $0xb00] sm:$0xff]  ;;  %583 = vst [vmem:[%s8683_s16 + $0x570] sm:$0xff] %v582_v46  ;;  %585 = vst [vmem:[%s8683_s16 + $0x578] sm:$0xff] %v584_v47  ;;  %v588_v49 = vld [vmem:[%s8678_s15 + $0xb08] sm:$0xff] }
  0x75   : > { %587 = vst [vmem:[%s8683_s16 + $0x580] sm:$0xff] %v586_v48  ;;  %v590_v50 = vld [vmem:[%s8678_s15 + $0xb20] sm:$0xff]  ;;  %v592_v51 = vld [vmem:[%s8678_s15 + $0xb28] sm:$0xff]  ;;  %589 = vst [vmem:[%s8683_s16 + $0x588] sm:$0xff] %v588_v49 }
  0x76   : > { %591 = vst [vmem:[%s8683_s16 + $0x590] sm:$0xff] %v590_v50  ;;  %593 = vst [vmem:[%s8683_s16 + $0x598] sm:$0xff] %v592_v51  ;;  %v594_v52 = vld [vmem:[%s8678_s15 + $0xb40] sm:$0xff]  ;;  %v596_v53 = vld [vmem:[%s8678_s15 + $0xb48] sm:$0xff] }
  0x77   : > { %v598_v54 = vld [vmem:[%s8678_s15 + $0xb60] sm:$0xff]  ;;  %595 = vst [vmem:[%s8683_s16 + $0x5a0] sm:$0xff] %v594_v52  ;;  %597 = vst [vmem:[%s8683_s16 + $0x5a8] sm:$0xff] %v596_v53  ;;  %v600_v55 = vld [vmem:[%s8678_s15 + $0xb68] sm:$0xff] }
  0x78   : > { %599 = vst [vmem:[%s8683_s16 + $0x5b0] sm:$0xff] %v598_v54  ;;  %v602_v56 = vld [vmem:[%s8678_s15 + $0xb80] sm:$0xff]  ;;  %v604_v57 = vld [vmem:[%s8678_s15 + $0xb88] sm:$0xff]  ;;  %601 = vst [vmem:[%s8683_s16 + $0x5b8] sm:$0xff] %v600_v55 }
  0x79   : > { %603 = vst [vmem:[%s8683_s16 + $0x5c0] sm:$0xff] %v602_v56  ;;  %605 = vst [vmem:[%s8683_s16 + $0x5c8] sm:$0xff] %v604_v57  ;;  %v606_v58 = vld [vmem:[%s8678_s15 + $0xba0] sm:$0xff]  ;;  %v608_v59 = vld [vmem:[%s8678_s15 + $0xba8] sm:$0xff] }
  0x7a   : > { %v610_v60 = vld [vmem:[%s8678_s15 + $0xbc0] sm:$0xff]  ;;  %607 = vst [vmem:[%s8683_s16 + $0x5d0] sm:$0xff] %v606_v58  ;;  %609 = vst [vmem:[%s8683_s16 + $0x5d8] sm:$0xff] %v608_v59  ;;  %v612_v61 = vld [vmem:[%s8678_s15 + $0xbc8] sm:$0xff] }
  0x7b   : > { %611 = vst [vmem:[%s8683_s16 + $0x5e0] sm:$0xff] %v610_v60  ;;  %v614_v62 = vld [vmem:[%s8678_s15 + $0xbe0] sm:$0xff]  ;;  %v616_v63 = vld [vmem:[%s8678_s15 + $0xbe8] sm:$0xff]  ;;  %613 = vst [vmem:[%s8683_s16 + $0x5e8] sm:$0xff] %v612_v61 }
  0x7c   : > { %615 = vst [vmem:[%s8683_s16 + $0x5f0] sm:$0xff] %v614_v62  ;;  %617 = vst [vmem:[%s8683_s16 + $0x5f8] sm:$0xff] %v616_v63  ;;  %v618_v0 = vld [vmem:[%s8678_s15 + $0xc00] sm:$0xff]  ;;  %v620_v1 = vld [vmem:[%s8678_s15 + $0xc08] sm:$0xff] }
  0x7d   : > { %v622_v2 = vld [vmem:[%s8678_s15 + $0xc20] sm:$0xff]  ;;  %619 = vst [vmem:[%s8683_s16 + $0x600] sm:$0xff] %v618_v0  ;;  %621 = vst [vmem:[%s8683_s16 + $0x608] sm:$0xff] %v620_v1  ;;  %v624_v3 = vld [vmem:[%s8678_s15 + $0xc28] sm:$0xff] }
  0x7e   : > { %623 = vst [vmem:[%s8683_s16 + $0x610] sm:$0xff] %v622_v2  ;;  %v626_v4 = vld [vmem:[%s8678_s15 + $0xc40] sm:$0xff]  ;;  %v628_v5 = vld [vmem:[%s8678_s15 + $0xc48] sm:$0xff]  ;;  %625 = vst [vmem:[%s8683_s16 + $0x618] sm:$0xff] %v624_v3 }
  0x7f   : > { %627 = vst [vmem:[%s8683_s16 + $0x620] sm:$0xff] %v626_v4  ;;  %629 = vst [vmem:[%s8683_s16 + $0x628] sm:$0xff] %v628_v5  ;;  %v630_v6 = vld [vmem:[%s8678_s15 + $0xc60] sm:$0xff]  ;;  %v632_v7 = vld [vmem:[%s8678_s15 + $0xc68] sm:$0xff] }
  0x80   : > { %v634_v8 = vld [vmem:[%s8678_s15 + $0xc80] sm:$0xff]  ;;  %631 = vst [vmem:[%s8683_s16 + $0x630] sm:$0xff] %v630_v6  ;;  %633 = vst [vmem:[%s8683_s16 + $0x638] sm:$0xff] %v632_v7  ;;  %v636_v9 = vld [vmem:[%s8678_s15 + $0xc88] sm:$0xff] }
  0x81   : > { %635 = vst [vmem:[%s8683_s16 + $0x640] sm:$0xff] %v634_v8  ;;  %v638_v10 = vld [vmem:[%s8678_s15 + $0xca0] sm:$0xff]  ;;  %v640_v11 = vld [vmem:[%s8678_s15 + $0xca8] sm:$0xff]  ;;  %637 = vst [vmem:[%s8683_s16 + $0x648] sm:$0xff] %v636_v9 }
  0x82   : > { %639 = vst [vmem:[%s8683_s16 + $0x650] sm:$0xff] %v638_v10  ;;  %641 = vst [vmem:[%s8683_s16 + $0x658] sm:$0xff] %v640_v11  ;;  %v642_v12 = vld [vmem:[%s8678_s15 + $0xcc0] sm:$0xff]  ;;  %v644_v13 = vld [vmem:[%s8678_s15 + $0xcc8] sm:$0xff] }
  0x83   : > { %v646_v14 = vld [vmem:[%s8678_s15 + $0xce0] sm:$0xff]  ;;  %643 = vst [vmem:[%s8683_s16 + $0x660] sm:$0xff] %v642_v12  ;;  %645 = vst [vmem:[%s8683_s16 + $0x668] sm:$0xff] %v644_v13  ;;  %v648_v15 = vld [vmem:[%s8678_s15 + $0xce8] sm:$0xff] }
  0x84   : > { %647 = vst [vmem:[%s8683_s16 + $0x670] sm:$0xff] %v646_v14  ;;  %v650_v16 = vld [vmem:[%s8678_s15 + $0xd00] sm:$0xff]  ;;  %v652_v17 = vld [vmem:[%s8678_s15 + $0xd08] sm:$0xff]  ;;  %649 = vst [vmem:[%s8683_s16 + $0x678] sm:$0xff] %v648_v15 }
  0x85   : > { %651 = vst [vmem:[%s8683_s16 + $0x680] sm:$0xff] %v650_v16  ;;  %653 = vst [vmem:[%s8683_s16 + $0x688] sm:$0xff] %v652_v17  ;;  %v654_v18 = vld [vmem:[%s8678_s15 + $0xd20] sm:$0xff]  ;;  %v656_v19 = vld [vmem:[%s8678_s15 + $0xd28] sm:$0xff] }
  0x86   : > { %v658_v20 = vld [vmem:[%s8678_s15 + $0xd40] sm:$0xff]  ;;  %655 = vst [vmem:[%s8683_s16 + $0x690] sm:$0xff] %v654_v18  ;;  %657 = vst [vmem:[%s8683_s16 + $0x698] sm:$0xff] %v656_v19  ;;  %v660_v21 = vld [vmem:[%s8678_s15 + $0xd48] sm:$0xff] }
  0x87   : > { %659 = vst [vmem:[%s8683_s16 + $0x6a0] sm:$0xff] %v658_v20  ;;  %v662_v22 = vld [vmem:[%s8678_s15 + $0xd60] sm:$0xff]  ;;  %v664_v23 = vld [vmem:[%s8678_s15 + $0xd68] sm:$0xff]  ;;  %661 = vst [vmem:[%s8683_s16 + $0x6a8] sm:$0xff] %v660_v21 }
  0x88   : > { %663 = vst [vmem:[%s8683_s16 + $0x6b0] sm:$0xff] %v662_v22  ;;  %665 = vst [vmem:[%s8683_s16 + $0x6b8] sm:$0xff] %v664_v23  ;;  %v666_v24 = vld [vmem:[%s8678_s15 + $0xd80] sm:$0xff]  ;;  %v668_v25 = vld [vmem:[%s8678_s15 + $0xd88] sm:$0xff] }
  0x89   : > { %v670_v26 = vld [vmem:[%s8678_s15 + $0xda0] sm:$0xff]  ;;  %667 = vst [vmem:[%s8683_s16 + $0x6c0] sm:$0xff] %v666_v24  ;;  %669 = vst [vmem:[%s8683_s16 + $0x6c8] sm:$0xff] %v668_v25  ;;  %v672_v27 = vld [vmem:[%s8678_s15 + $0xda8] sm:$0xff] }
  0x8a   : > { %671 = vst [vmem:[%s8683_s16 + $0x6d0] sm:$0xff] %v670_v26  ;;  %v674_v28 = vld [vmem:[%s8678_s15 + $0xdc0] sm:$0xff]  ;;  %v676_v29 = vld [vmem:[%s8678_s15 + $0xdc8] sm:$0xff]  ;;  %673 = vst [vmem:[%s8683_s16 + $0x6d8] sm:$0xff] %v672_v27 }
  0x8b   : > { %675 = vst [vmem:[%s8683_s16 + $0x6e0] sm:$0xff] %v674_v28  ;;  %677 = vst [vmem:[%s8683_s16 + $0x6e8] sm:$0xff] %v676_v29  ;;  %v678_v30 = vld [vmem:[%s8678_s15 + $0xde0] sm:$0xff]  ;;  %v680_v31 = vld [vmem:[%s8678_s15 + $0xde8] sm:$0xff] }
  0x8c   : > { %v682_v32 = vld [vmem:[%s8678_s15 + $0xe00] sm:$0xff]  ;;  %679 = vst [vmem:[%s8683_s16 + $0x6f0] sm:$0xff] %v678_v30  ;;  %681 = vst [vmem:[%s8683_s16 + $0x6f8] sm:$0xff] %v680_v31  ;;  %v684_v33 = vld [vmem:[%s8678_s15 + $0xe08] sm:$0xff] }
  0x8d   : > { %683 = vst [vmem:[%s8683_s16 + $0x700] sm:$0xff] %v682_v32  ;;  %v686_v34 = vld [vmem:[%s8678_s15 + $0xe20] sm:$0xff]  ;;  %v688_v35 = vld [vmem:[%s8678_s15 + $0xe28] sm:$0xff]  ;;  %685 = vst [vmem:[%s8683_s16 + $0x708] sm:$0xff] %v684_v33 }
  0x8e   : > { %687 = vst [vmem:[%s8683_s16 + $0x710] sm:$0xff] %v686_v34  ;;  %689 = vst [vmem:[%s8683_s16 + $0x718] sm:$0xff] %v688_v35  ;;  %v690_v36 = vld [vmem:[%s8678_s15 + $0xe40] sm:$0xff]  ;;  %v692_v37 = vld [vmem:[%s8678_s15 + $0xe48] sm:$0xff] }
  0x8f   : > { %v694_v38 = vld [vmem:[%s8678_s15 + $0xe60] sm:$0xff]  ;;  %691 = vst [vmem:[%s8683_s16 + $0x720] sm:$0xff] %v690_v36  ;;  %693 = vst [vmem:[%s8683_s16 + $0x728] sm:$0xff] %v692_v37  ;;  %v696_v39 = vld [vmem:[%s8678_s15 + $0xe68] sm:$0xff] }
  0x90   : > { %695 = vst [vmem:[%s8683_s16 + $0x730] sm:$0xff] %v694_v38  ;;  %v698_v40 = vld [vmem:[%s8678_s15 + $0xe80] sm:$0xff]  ;;  %v700_v41 = vld [vmem:[%s8678_s15 + $0xe88] sm:$0xff]  ;;  %697 = vst [vmem:[%s8683_s16 + $0x738] sm:$0xff] %v696_v39 }
  0x91   : > { %699 = vst [vmem:[%s8683_s16 + $0x740] sm:$0xff] %v698_v40  ;;  %701 = vst [vmem:[%s8683_s16 + $0x748] sm:$0xff] %v700_v41  ;;  %v702_v42 = vld [vmem:[%s8678_s15 + $0xea0] sm:$0xff]  ;;  %v704_v43 = vld [vmem:[%s8678_s15 + $0xea8] sm:$0xff] }
  0x92   : > { %v706_v44 = vld [vmem:[%s8678_s15 + $0xec0] sm:$0xff]  ;;  %703 = vst [vmem:[%s8683_s16 + $0x750] sm:$0xff] %v702_v42  ;;  %705 = vst [vmem:[%s8683_s16 + $0x758] sm:$0xff] %v704_v43  ;;  %v708_v45 = vld [vmem:[%s8678_s15 + $0xec8] sm:$0xff] }
  0x93   : > { %707 = vst [vmem:[%s8683_s16 + $0x760] sm:$0xff] %v706_v44  ;;  %v710_v46 = vld [vmem:[%s8678_s15 + $0xee0] sm:$0xff]  ;;  %v712_v47 = vld [vmem:[%s8678_s15 + $0xee8] sm:$0xff]  ;;  %709 = vst [vmem:[%s8683_s16 + $0x768] sm:$0xff] %v708_v45 }
  0x94   : > { %711 = vst [vmem:[%s8683_s16 + $0x770] sm:$0xff] %v710_v46  ;;  %713 = vst [vmem:[%s8683_s16 + $0x778] sm:$0xff] %v712_v47  ;;  %v714_v48 = vld [vmem:[%s8678_s15 + $0xf00] sm:$0xff]  ;;  %v716_v49 = vld [vmem:[%s8678_s15 + $0xf08] sm:$0xff] }
  0x95   : > { %v718_v50 = vld [vmem:[%s8678_s15 + $0xf20] sm:$0xff]  ;;  %715 = vst [vmem:[%s8683_s16 + $0x780] sm:$0xff] %v714_v48  ;;  %717 = vst [vmem:[%s8683_s16 + $0x788] sm:$0xff] %v716_v49  ;;  %v720_v51 = vld [vmem:[%s8678_s15 + $0xf28] sm:$0xff] }
  0x96   : > { %719 = vst [vmem:[%s8683_s16 + $0x790] sm:$0xff] %v718_v50  ;;  %v722_v52 = vld [vmem:[%s8678_s15 + $0xf40] sm:$0xff]  ;;  %v724_v53 = vld [vmem:[%s8678_s15 + $0xf48] sm:$0xff]  ;;  %721 = vst [vmem:[%s8683_s16 + $0x798] sm:$0xff] %v720_v51 }
  0x97   : > { %723 = vst [vmem:[%s8683_s16 + $0x7a0] sm:$0xff] %v722_v52  ;;  %725 = vst [vmem:[%s8683_s16 + $0x7a8] sm:$0xff] %v724_v53  ;;  %v726_v54 = vld [vmem:[%s8678_s15 + $0xf60] sm:$0xff]  ;;  %v728_v55 = vld [vmem:[%s8678_s15 + $0xf68] sm:$0xff] }
  0x98   : > { %v730_v56 = vld [vmem:[%s8678_s15 + $0xf80] sm:$0xff]  ;;  %727 = vst [vmem:[%s8683_s16 + $0x7b0] sm:$0xff] %v726_v54  ;;  %729 = vst [vmem:[%s8683_s16 + $0x7b8] sm:$0xff] %v728_v55  ;;  %v732_v57 = vld [vmem:[%s8678_s15 + $0xf88] sm:$0xff] }
  0x99   : > { %731 = vst [vmem:[%s8683_s16 + $0x7c0] sm:$0xff] %v730_v56  ;;  %v734_v58 = vld [vmem:[%s8678_s15 + $0xfa0] sm:$0xff]  ;;  %v736_v59 = vld [vmem:[%s8678_s15 + $0xfa8] sm:$0xff]  ;;  %733 = vst [vmem:[%s8683_s16 + $0x7c8] sm:$0xff] %v732_v57 }
  0x9a   : > { %735 = vst [vmem:[%s8683_s16 + $0x7d0] sm:$0xff] %v734_v58  ;;  %737 = vst [vmem:[%s8683_s16 + $0x7d8] sm:$0xff] %v736_v59  ;;  %v738_v60 = vld [vmem:[%s8678_s15 + $0xfc0] sm:$0xff]  ;;  %v740_v61 = vld [vmem:[%s8678_s15 + $0xfc8] sm:$0xff] }
  0x9b   : > { %v742_v62 = vld [vmem:[%s8678_s15 + $0xfe0] sm:$0xff]  ;;  %739 = vst [vmem:[%s8683_s16 + $0x7e0] sm:$0xff] %v738_v60  ;;  %741 = vst [vmem:[%s8683_s16 + $0x7e8] sm:$0xff] %v740_v61  ;;  %v744_v63 = vld [vmem:[%s8678_s15 + $0xfe8] sm:$0xff] }
  0x9c   : > { %743 = vst [vmem:[%s8683_s16 + $0x7f0] sm:$0xff] %v742_v62  ;;  %v746_v0 = vld [vmem:[%s8678_s15 + $0x1000] sm:$0xff]  ;;  %v748_v1 = vld [vmem:[%s8678_s15 + $0x1008] sm:$0xff]  ;;  %745 = vst [vmem:[%s8683_s16 + $0x7f8] sm:$0xff] %v744_v63 }
  0x9d   : > { %747 = vst [vmem:[%s8683_s16 + $0x800] sm:$0xff] %v746_v0  ;;  %749 = vst [vmem:[%s8683_s16 + $0x808] sm:$0xff] %v748_v1  ;;  %v750_v2 = vld [vmem:[%s8678_s15 + $0x1020] sm:$0xff]  ;;  %v752_v3 = vld [vmem:[%s8678_s15 + $0x1028] sm:$0xff] }
  0x9e   : > { %v754_v4 = vld [vmem:[%s8678_s15 + $0x1040] sm:$0xff]  ;;  %751 = vst [vmem:[%s8683_s16 + $0x810] sm:$0xff] %v750_v2  ;;  %753 = vst [vmem:[%s8683_s16 + $0x818] sm:$0xff] %v752_v3  ;;  %v756_v5 = vld [vmem:[%s8678_s15 + $0x1048] sm:$0xff] }
  0x9f   : > { %755 = vst [vmem:[%s8683_s16 + $0x820] sm:$0xff] %v754_v4  ;;  %v758_v6 = vld [vmem:[%s8678_s15 + $0x1060] sm:$0xff]  ;;  %v760_v7 = vld [vmem:[%s8678_s15 + $0x1068] sm:$0xff]  ;;  %757 = vst [vmem:[%s8683_s16 + $0x828] sm:$0xff] %v756_v5 }
  0xa0   : > { %759 = vst [vmem:[%s8683_s16 + $0x830] sm:$0xff] %v758_v6  ;;  %761 = vst [vmem:[%s8683_s16 + $0x838] sm:$0xff] %v760_v7  ;;  %v762_v8 = vld [vmem:[%s8678_s15 + $0x1080] sm:$0xff]  ;;  %v764_v9 = vld [vmem:[%s8678_s15 + $0x1088] sm:$0xff] }
  0xa1   : > { %v766_v10 = vld [vmem:[%s8678_s15 + $0x10a0] sm:$0xff]  ;;  %763 = vst [vmem:[%s8683_s16 + $0x840] sm:$0xff] %v762_v8  ;;  %765 = vst [vmem:[%s8683_s16 + $0x848] sm:$0xff] %v764_v9  ;;  %v768_v11 = vld [vmem:[%s8678_s15 + $0x10a8] sm:$0xff] }
  0xa2   : > { %767 = vst [vmem:[%s8683_s16 + $0x850] sm:$0xff] %v766_v10  ;;  %v770_v12 = vld [vmem:[%s8678_s15 + $0x10c0] sm:$0xff]  ;;  %v772_v13 = vld [vmem:[%s8678_s15 + $0x10c8] sm:$0xff]  ;;  %769 = vst [vmem:[%s8683_s16 + $0x858] sm:$0xff] %v768_v11 }
  0xa3   : > { %771 = vst [vmem:[%s8683_s16 + $0x860] sm:$0xff] %v770_v12  ;;  %773 = vst [vmem:[%s8683_s16 + $0x868] sm:$0xff] %v772_v13  ;;  %v774_v14 = vld [vmem:[%s8678_s15 + $0x10e0] sm:$0xff]  ;;  %v776_v15 = vld [vmem:[%s8678_s15 + $0x10e8] sm:$0xff] }
  0xa4   : > { %v778_v16 = vld [vmem:[%s8678_s15 + $0x1100] sm:$0xff]  ;;  %775 = vst [vmem:[%s8683_s16 + $0x870] sm:$0xff] %v774_v14  ;;  %777 = vst [vmem:[%s8683_s16 + $0x878] sm:$0xff] %v776_v15  ;;  %v780_v17 = vld [vmem:[%s8678_s15 + $0x1108] sm:$0xff] }
  0xa5   : > { %779 = vst [vmem:[%s8683_s16 + $0x880] sm:$0xff] %v778_v16  ;;  %v782_v18 = vld [vmem:[%s8678_s15 + $0x1120] sm:$0xff]  ;;  %v784_v19 = vld [vmem:[%s8678_s15 + $0x1128] sm:$0xff]  ;;  %781 = vst [vmem:[%s8683_s16 + $0x888] sm:$0xff] %v780_v17 }
  0xa6   : > { %783 = vst [vmem:[%s8683_s16 + $0x890] sm:$0xff] %v782_v18  ;;  %785 = vst [vmem:[%s8683_s16 + $0x898] sm:$0xff] %v784_v19  ;;  %v786_v20 = vld [vmem:[%s8678_s15 + $0x1140] sm:$0xff]  ;;  %v788_v21 = vld [vmem:[%s8678_s15 + $0x1148] sm:$0xff] }
  0xa7   : > { %v790_v22 = vld [vmem:[%s8678_s15 + $0x1160] sm:$0xff]  ;;  %787 = vst [vmem:[%s8683_s16 + $0x8a0] sm:$0xff] %v786_v20  ;;  %789 = vst [vmem:[%s8683_s16 + $0x8a8] sm:$0xff] %v788_v21  ;;  %v792_v23 = vld [vmem:[%s8678_s15 + $0x1168] sm:$0xff] }
  0xa8   : > { %791 = vst [vmem:[%s8683_s16 + $0x8b0] sm:$0xff] %v790_v22  ;;  %v794_v24 = vld [vmem:[%s8678_s15 + $0x1180] sm:$0xff]  ;;  %v796_v25 = vld [vmem:[%s8678_s15 + $0x1188] sm:$0xff]  ;;  %793 = vst [vmem:[%s8683_s16 + $0x8b8] sm:$0xff] %v792_v23 }
  0xa9   : > { %795 = vst [vmem:[%s8683_s16 + $0x8c0] sm:$0xff] %v794_v24  ;;  %797 = vst [vmem:[%s8683_s16 + $0x8c8] sm:$0xff] %v796_v25  ;;  %v798_v26 = vld [vmem:[%s8678_s15 + $0x11a0] sm:$0xff]  ;;  %v800_v27 = vld [vmem:[%s8678_s15 + $0x11a8] sm:$0xff] }
  0xaa   : > { %v802_v28 = vld [vmem:[%s8678_s15 + $0x11c0] sm:$0xff]  ;;  %799 = vst [vmem:[%s8683_s16 + $0x8d0] sm:$0xff] %v798_v26  ;;  %801 = vst [vmem:[%s8683_s16 + $0x8d8] sm:$0xff] %v800_v27  ;;  %v804_v29 = vld [vmem:[%s8678_s15 + $0x11c8] sm:$0xff] }
  0xab   : > { %803 = vst [vmem:[%s8683_s16 + $0x8e0] sm:$0xff] %v802_v28  ;;  %v806_v30 = vld [vmem:[%s8678_s15 + $0x11e0] sm:$0xff]  ;;  %v808_v31 = vld [vmem:[%s8678_s15 + $0x11e8] sm:$0xff]  ;;  %805 = vst [vmem:[%s8683_s16 + $0x8e8] sm:$0xff] %v804_v29 }
  0xac   : > { %807 = vst [vmem:[%s8683_s16 + $0x8f0] sm:$0xff] %v806_v30  ;;  %809 = vst [vmem:[%s8683_s16 + $0x8f8] sm:$0xff] %v808_v31  ;;  %v810_v32 = vld [vmem:[%s8678_s15 + $0x1200] sm:$0xff]  ;;  %v812_v33 = vld [vmem:[%s8678_s15 + $0x1208] sm:$0xff] }
  0xad   : > { %v814_v34 = vld [vmem:[%s8678_s15 + $0x1220] sm:$0xff]  ;;  %811 = vst [vmem:[%s8683_s16 + $0x900] sm:$0xff] %v810_v32  ;;  %813 = vst [vmem:[%s8683_s16 + $0x908] sm:$0xff] %v812_v33  ;;  %v816_v35 = vld [vmem:[%s8678_s15 + $0x1228] sm:$0xff] }
  0xae   : > { %815 = vst [vmem:[%s8683_s16 + $0x910] sm:$0xff] %v814_v34  ;;  %v818_v36 = vld [vmem:[%s8678_s15 + $0x1240] sm:$0xff]  ;;  %v820_v37 = vld [vmem:[%s8678_s15 + $0x1248] sm:$0xff]  ;;  %817 = vst [vmem:[%s8683_s16 + $0x918] sm:$0xff] %v816_v35 }
  0xaf   : > { %819 = vst [vmem:[%s8683_s16 + $0x920] sm:$0xff] %v818_v36  ;;  %821 = vst [vmem:[%s8683_s16 + $0x928] sm:$0xff] %v820_v37  ;;  %v822_v38 = vld [vmem:[%s8678_s15 + $0x1260] sm:$0xff]  ;;  %v824_v39 = vld [vmem:[%s8678_s15 + $0x1268] sm:$0xff] }
  0xb0   : > { %v826_v40 = vld [vmem:[%s8678_s15 + $0x1280] sm:$0xff]  ;;  %823 = vst [vmem:[%s8683_s16 + $0x930] sm:$0xff] %v822_v38  ;;  %825 = vst [vmem:[%s8683_s16 + $0x938] sm:$0xff] %v824_v39  ;;  %v828_v41 = vld [vmem:[%s8678_s15 + $0x1288] sm:$0xff] }
  0xb1   : > { %827 = vst [vmem:[%s8683_s16 + $0x940] sm:$0xff] %v826_v40  ;;  %v830_v42 = vld [vmem:[%s8678_s15 + $0x12a0] sm:$0xff]  ;;  %v832_v43 = vld [vmem:[%s8678_s15 + $0x12a8] sm:$0xff]  ;;  %829 = vst [vmem:[%s8683_s16 + $0x948] sm:$0xff] %v828_v41 }
  0xb2   : > { %831 = vst [vmem:[%s8683_s16 + $0x950] sm:$0xff] %v830_v42  ;;  %833 = vst [vmem:[%s8683_s16 + $0x958] sm:$0xff] %v832_v43  ;;  %v834_v44 = vld [vmem:[%s8678_s15 + $0x12c0] sm:$0xff]  ;;  %v836_v45 = vld [vmem:[%s8678_s15 + $0x12c8] sm:$0xff] }
  0xb3   : > { %v838_v46 = vld [vmem:[%s8678_s15 + $0x12e0] sm:$0xff]  ;;  %835 = vst [vmem:[%s8683_s16 + $0x960] sm:$0xff] %v834_v44  ;;  %837 = vst [vmem:[%s8683_s16 + $0x968] sm:$0xff] %v836_v45  ;;  %v840_v47 = vld [vmem:[%s8678_s15 + $0x12e8] sm:$0xff] }
  0xb4   : > { %839 = vst [vmem:[%s8683_s16 + $0x970] sm:$0xff] %v838_v46  ;;  %v842_v48 = vld [vmem:[%s8678_s15 + $0x1300] sm:$0xff]  ;;  %v844_v49 = vld [vmem:[%s8678_s15 + $0x1308] sm:$0xff]  ;;  %841 = vst [vmem:[%s8683_s16 + $0x978] sm:$0xff] %v840_v47 }
  0xb5   : > { %843 = vst [vmem:[%s8683_s16 + $0x980] sm:$0xff] %v842_v48  ;;  %845 = vst [vmem:[%s8683_s16 + $0x988] sm:$0xff] %v844_v49  ;;  %v846_v50 = vld [vmem:[%s8678_s15 + $0x1320] sm:$0xff]  ;;  %v848_v51 = vld [vmem:[%s8678_s15 + $0x1328] sm:$0xff] }
  0xb6   : > { %v850_v52 = vld [vmem:[%s8678_s15 + $0x1340] sm:$0xff]  ;;  %847 = vst [vmem:[%s8683_s16 + $0x990] sm:$0xff] %v846_v50  ;;  %849 = vst [vmem:[%s8683_s16 + $0x998] sm:$0xff] %v848_v51  ;;  %v852_v53 = vld [vmem:[%s8678_s15 + $0x1348] sm:$0xff] }
  0xb7   : > { %851 = vst [vmem:[%s8683_s16 + $0x9a0] sm:$0xff] %v850_v52  ;;  %v854_v54 = vld [vmem:[%s8678_s15 + $0x1360] sm:$0xff]  ;;  %v856_v55 = vld [vmem:[%s8678_s15 + $0x1368] sm:$0xff]  ;;  %853 = vst [vmem:[%s8683_s16 + $0x9a8] sm:$0xff] %v852_v53 }
  0xb8   : > { %855 = vst [vmem:[%s8683_s16 + $0x9b0] sm:$0xff] %v854_v54  ;;  %857 = vst [vmem:[%s8683_s16 + $0x9b8] sm:$0xff] %v856_v55  ;;  %v858_v56 = vld [vmem:[%s8678_s15 + $0x1380] sm:$0xff]  ;;  %v860_v57 = vld [vmem:[%s8678_s15 + $0x1388] sm:$0xff] }
  0xb9   : > { %v862_v58 = vld [vmem:[%s8678_s15 + $0x13a0] sm:$0xff]  ;;  %859 = vst [vmem:[%s8683_s16 + $0x9c0] sm:$0xff] %v858_v56  ;;  %861 = vst [vmem:[%s8683_s16 + $0x9c8] sm:$0xff] %v860_v57  ;;  %v864_v59 = vld [vmem:[%s8678_s15 + $0x13a8] sm:$0xff] }
  0xba   : > { %863 = vst [vmem:[%s8683_s16 + $0x9d0] sm:$0xff] %v862_v58  ;;  %v866_v60 = vld [vmem:[%s8678_s15 + $0x13c0] sm:$0xff]  ;;  %v868_v61 = vld [vmem:[%s8678_s15 + $0x13c8] sm:$0xff]  ;;  %865 = vst [vmem:[%s8683_s16 + $0x9d8] sm:$0xff] %v864_v59 }
  0xbb   : > { %867 = vst [vmem:[%s8683_s16 + $0x9e0] sm:$0xff] %v866_v60  ;;  %869 = vst [vmem:[%s8683_s16 + $0x9e8] sm:$0xff] %v868_v61  ;;  %v870_v62 = vld [vmem:[%s8678_s15 + $0x13e0] sm:$0xff]  ;;  %v872_v63 = vld [vmem:[%s8678_s15 + $0x13e8] sm:$0xff] }
  0xbc   : > { %v874_v0 = vld [vmem:[%s8678_s15 + $0x1400] sm:$0xff]  ;;  %871 = vst [vmem:[%s8683_s16 + $0x9f0] sm:$0xff] %v870_v62  ;;  %873 = vst [vmem:[%s8683_s16 + $0x9f8] sm:$0xff] %v872_v63  ;;  %v876_v1 = vld [vmem:[%s8678_s15 + $0x1408] sm:$0xff] }
  0xbd   : > { %875 = vst [vmem:[%s8683_s16 + $0xa00] sm:$0xff] %v874_v0  ;;  %v878_v2 = vld [vmem:[%s8678_s15 + $0x1420] sm:$0xff]  ;;  %v880_v3 = vld [vmem:[%s8678_s15 + $0x1428] sm:$0xff]  ;;  %877 = vst [vmem:[%s8683_s16 + $0xa08] sm:$0xff] %v876_v1 }
  0xbe   : > { %879 = vst [vmem:[%s8683_s16 + $0xa10] sm:$0xff] %v878_v2  ;;  %881 = vst [vmem:[%s8683_s16 + $0xa18] sm:$0xff] %v880_v3  ;;  %v882_v4 = vld [vmem:[%s8678_s15 + $0x1440] sm:$0xff]  ;;  %v884_v5 = vld [vmem:[%s8678_s15 + $0x1448] sm:$0xff] }
  0xbf   : > { %v886_v6 = vld [vmem:[%s8678_s15 + $0x1460] sm:$0xff]  ;;  %883 = vst [vmem:[%s8683_s16 + $0xa20] sm:$0xff] %v882_v4  ;;  %885 = vst [vmem:[%s8683_s16 + $0xa28] sm:$0xff] %v884_v5  ;;  %v888_v7 = vld [vmem:[%s8678_s15 + $0x1468] sm:$0xff] }
  0xc0   : > { %887 = vst [vmem:[%s8683_s16 + $0xa30] sm:$0xff] %v886_v6  ;;  %v890_v8 = vld [vmem:[%s8678_s15 + $0x1480] sm:$0xff]  ;;  %v892_v9 = vld [vmem:[%s8678_s15 + $0x1488] sm:$0xff]  ;;  %889 = vst [vmem:[%s8683_s16 + $0xa38] sm:$0xff] %v888_v7 }
  0xc1   : > { %891 = vst [vmem:[%s8683_s16 + $0xa40] sm:$0xff] %v890_v8  ;;  %893 = vst [vmem:[%s8683_s16 + $0xa48] sm:$0xff] %v892_v9  ;;  %v894_v10 = vld [vmem:[%s8678_s15 + $0x14a0] sm:$0xff]  ;;  %v896_v11 = vld [vmem:[%s8678_s15 + $0x14a8] sm:$0xff] }
  0xc2   : > { %v898_v12 = vld [vmem:[%s8678_s15 + $0x14c0] sm:$0xff]  ;;  %895 = vst [vmem:[%s8683_s16 + $0xa50] sm:$0xff] %v894_v10  ;;  %897 = vst [vmem:[%s8683_s16 + $0xa58] sm:$0xff] %v896_v11  ;;  %v900_v13 = vld [vmem:[%s8678_s15 + $0x14c8] sm:$0xff] }
  0xc3   : > { %899 = vst [vmem:[%s8683_s16 + $0xa60] sm:$0xff] %v898_v12  ;;  %v902_v14 = vld [vmem:[%s8678_s15 + $0x14e0] sm:$0xff]  ;;  %v904_v15 = vld [vmem:[%s8678_s15 + $0x14e8] sm:$0xff]  ;;  %901 = vst [vmem:[%s8683_s16 + $0xa68] sm:$0xff] %v900_v13 }
  0xc4   : > { %903 = vst [vmem:[%s8683_s16 + $0xa70] sm:$0xff] %v902_v14  ;;  %905 = vst [vmem:[%s8683_s16 + $0xa78] sm:$0xff] %v904_v15  ;;  %v906_v16 = vld [vmem:[%s8678_s15 + $0x1500] sm:$0xff]  ;;  %v908_v17 = vld [vmem:[%s8678_s15 + $0x1508] sm:$0xff] }
  0xc5   : > { %v910_v18 = vld [vmem:[%s8678_s15 + $0x1520] sm:$0xff]  ;;  %907 = vst [vmem:[%s8683_s16 + $0xa80] sm:$0xff] %v906_v16  ;;  %909 = vst [vmem:[%s8683_s16 + $0xa88] sm:$0xff] %v908_v17  ;;  %v912_v19 = vld [vmem:[%s8678_s15 + $0x1528] sm:$0xff] }
  0xc6   : > { %911 = vst [vmem:[%s8683_s16 + $0xa90] sm:$0xff] %v910_v18  ;;  %v914_v20 = vld [vmem:[%s8678_s15 + $0x1540] sm:$0xff]  ;;  %v916_v21 = vld [vmem:[%s8678_s15 + $0x1548] sm:$0xff]  ;;  %913 = vst [vmem:[%s8683_s16 + $0xa98] sm:$0xff] %v912_v19 }
  0xc7   : > { %915 = vst [vmem:[%s8683_s16 + $0xaa0] sm:$0xff] %v914_v20  ;;  %917 = vst [vmem:[%s8683_s16 + $0xaa8] sm:$0xff] %v916_v21  ;;  %v918_v22 = vld [vmem:[%s8678_s15 + $0x1560] sm:$0xff]  ;;  %v920_v23 = vld [vmem:[%s8678_s15 + $0x1568] sm:$0xff] }
  0xc8   : > { %v922_v24 = vld [vmem:[%s8678_s15 + $0x1580] sm:$0xff]  ;;  %919 = vst [vmem:[%s8683_s16 + $0xab0] sm:$0xff] %v918_v22  ;;  %921 = vst [vmem:[%s8683_s16 + $0xab8] sm:$0xff] %v920_v23  ;;  %v924_v25 = vld [vmem:[%s8678_s15 + $0x1588] sm:$0xff] }
  0xc9   : > { %923 = vst [vmem:[%s8683_s16 + $0xac0] sm:$0xff] %v922_v24  ;;  %v926_v26 = vld [vmem:[%s8678_s15 + $0x15a0] sm:$0xff]  ;;  %v928_v27 = vld [vmem:[%s8678_s15 + $0x15a8] sm:$0xff]  ;;  %925 = vst [vmem:[%s8683_s16 + $0xac8] sm:$0xff] %v924_v25 }
  0xca   : > { %927 = vst [vmem:[%s8683_s16 + $0xad0] sm:$0xff] %v926_v26  ;;  %929 = vst [vmem:[%s8683_s16 + $0xad8] sm:$0xff] %v928_v27  ;;  %v930_v28 = vld [vmem:[%s8678_s15 + $0x15c0] sm:$0xff]  ;;  %v932_v29 = vld [vmem:[%s8678_s15 + $0x15c8] sm:$0xff] }
  0xcb   : > { %v934_v30 = vld [vmem:[%s8678_s15 + $0x15e0] sm:$0xff]  ;;  %931 = vst [vmem:[%s8683_s16 + $0xae0] sm:$0xff] %v930_v28  ;;  %933 = vst [vmem:[%s8683_s16 + $0xae8] sm:$0xff] %v932_v29  ;;  %v936_v31 = vld [vmem:[%s8678_s15 + $0x15e8] sm:$0xff] }
  0xcc   : > { %935 = vst [vmem:[%s8683_s16 + $0xaf0] sm:$0xff] %v934_v30  ;;  %v938_v32 = vld [vmem:[%s8678_s15 + $0x1600] sm:$0xff]  ;;  %v940_v33 = vld [vmem:[%s8678_s15 + $0x1608] sm:$0xff]  ;;  %937 = vst [vmem:[%s8683_s16 + $0xaf8] sm:$0xff] %v936_v31 }
  0xcd   : > { %939 = vst [vmem:[%s8683_s16 + $0xb00] sm:$0xff] %v938_v32  ;;  %941 = vst [vmem:[%s8683_s16 + $0xb08] sm:$0xff] %v940_v33  ;;  %v942_v34 = vld [vmem:[%s8678_s15 + $0x1620] sm:$0xff]  ;;  %v944_v35 = vld [vmem:[%s8678_s15 + $0x1628] sm:$0xff] }
  0xce   : > { %v946_v36 = vld [vmem:[%s8678_s15 + $0x1640] sm:$0xff]  ;;  %943 = vst [vmem:[%s8683_s16 + $0xb10] sm:$0xff] %v942_v34  ;;  %945 = vst [vmem:[%s8683_s16 + $0xb18] sm:$0xff] %v944_v35  ;;  %v948_v37 = vld [vmem:[%s8678_s15 + $0x1648] sm:$0xff] }
  0xcf   : > { %947 = vst [vmem:[%s8683_s16 + $0xb20] sm:$0xff] %v946_v36  ;;  %v950_v38 = vld [vmem:[%s8678_s15 + $0x1660] sm:$0xff]  ;;  %v952_v39 = vld [vmem:[%s8678_s15 + $0x1668] sm:$0xff]  ;;  %949 = vst [vmem:[%s8683_s16 + $0xb28] sm:$0xff] %v948_v37 }
  0xd0   : > { %951 = vst [vmem:[%s8683_s16 + $0xb30] sm:$0xff] %v950_v38  ;;  %953 = vst [vmem:[%s8683_s16 + $0xb38] sm:$0xff] %v952_v39  ;;  %v954_v40 = vld [vmem:[%s8678_s15 + $0x1680] sm:$0xff]  ;;  %v956_v41 = vld [vmem:[%s8678_s15 + $0x1688] sm:$0xff] }
  0xd1   : > { %v958_v42 = vld [vmem:[%s8678_s15 + $0x16a0] sm:$0xff]  ;;  %955 = vst [vmem:[%s8683_s16 + $0xb40] sm:$0xff] %v954_v40  ;;  %957 = vst [vmem:[%s8683_s16 + $0xb48] sm:$0xff] %v956_v41  ;;  %v960_v43 = vld [vmem:[%s8678_s15 + $0x16a8] sm:$0xff] }
  0xd2   : > { %959 = vst [vmem:[%s8683_s16 + $0xb50] sm:$0xff] %v958_v42  ;;  %v962_v44 = vld [vmem:[%s8678_s15 + $0x16c0] sm:$0xff]  ;;  %v964_v45 = vld [vmem:[%s8678_s15 + $0x16c8] sm:$0xff]  ;;  %961 = vst [vmem:[%s8683_s16 + $0xb58] sm:$0xff] %v960_v43 }
  0xd3   : > { %963 = vst [vmem:[%s8683_s16 + $0xb60] sm:$0xff] %v962_v44  ;;  %965 = vst [vmem:[%s8683_s16 + $0xb68] sm:$0xff] %v964_v45  ;;  %v966_v46 = vld [vmem:[%s8678_s15 + $0x16e0] sm:$0xff]  ;;  %v968_v47 = vld [vmem:[%s8678_s15 + $0x16e8] sm:$0xff] }
  0xd4   : > { %v970_v48 = vld [vmem:[%s8678_s15 + $0x1700] sm:$0xff]  ;;  %967 = vst [vmem:[%s8683_s16 + $0xb70] sm:$0xff] %v966_v46  ;;  %969 = vst [vmem:[%s8683_s16 + $0xb78] sm:$0xff] %v968_v47  ;;  %v972_v49 = vld [vmem:[%s8678_s15 + $0x1708] sm:$0xff] }
  0xd5   : > { %971 = vst [vmem:[%s8683_s16 + $0xb80] sm:$0xff] %v970_v48  ;;  %v974_v50 = vld [vmem:[%s8678_s15 + $0x1720] sm:$0xff]  ;;  %v976_v51 = vld [vmem:[%s8678_s15 + $0x1728] sm:$0xff]  ;;  %973 = vst [vmem:[%s8683_s16 + $0xb88] sm:$0xff] %v972_v49 }
  0xd6   : > { %975 = vst [vmem:[%s8683_s16 + $0xb90] sm:$0xff] %v974_v50  ;;  %977 = vst [vmem:[%s8683_s16 + $0xb98] sm:$0xff] %v976_v51  ;;  %v978_v52 = vld [vmem:[%s8678_s15 + $0x1740] sm:$0xff]  ;;  %v980_v53 = vld [vmem:[%s8678_s15 + $0x1748] sm:$0xff] }
  0xd7   : > { %v982_v54 = vld [vmem:[%s8678_s15 + $0x1760] sm:$0xff]  ;;  %979 = vst [vmem:[%s8683_s16 + $0xba0] sm:$0xff] %v978_v52  ;;  %981 = vst [vmem:[%s8683_s16 + $0xba8] sm:$0xff] %v980_v53  ;;  %v984_v55 = vld [vmem:[%s8678_s15 + $0x1768] sm:$0xff] }
  0xd8   : > { %983 = vst [vmem:[%s8683_s16 + $0xbb0] sm:$0xff] %v982_v54  ;;  %v986_v56 = vld [vmem:[%s8678_s15 + $0x1780] sm:$0xff]  ;;  %v988_v57 = vld [vmem:[%s8678_s15 + $0x1788] sm:$0xff]  ;;  %985 = vst [vmem:[%s8683_s16 + $0xbb8] sm:$0xff] %v984_v55 }
  0xd9   : > { %987 = vst [vmem:[%s8683_s16 + $0xbc0] sm:$0xff] %v986_v56  ;;  %989 = vst [vmem:[%s8683_s16 + $0xbc8] sm:$0xff] %v988_v57  ;;  %v990_v58 = vld [vmem:[%s8678_s15 + $0x17a0] sm:$0xff]  ;;  %v992_v59 = vld [vmem:[%s8678_s15 + $0x17a8] sm:$0xff] }
  0xda   : > { %v994_v60 = vld [vmem:[%s8678_s15 + $0x17c0] sm:$0xff]  ;;  %991 = vst [vmem:[%s8683_s16 + $0xbd0] sm:$0xff] %v990_v58  ;;  %993 = vst [vmem:[%s8683_s16 + $0xbd8] sm:$0xff] %v992_v59  ;;  %v996_v61 = vld [vmem:[%s8678_s15 + $0x17c8] sm:$0xff] }
  0xdb   : > { %995 = vst [vmem:[%s8683_s16 + $0xbe0] sm:$0xff] %v994_v60  ;;  %v998_v62 = vld [vmem:[%s8678_s15 + $0x17e0] sm:$0xff]  ;;  %v1000_v63 = vld [vmem:[%s8678_s15 + $0x17e8] sm:$0xff]  ;;  %997 = vst [vmem:[%s8683_s16 + $0xbe8] sm:$0xff] %v996_v61 }
  0xdc   : > { %999 = vst [vmem:[%s8683_s16 + $0xbf0] sm:$0xff] %v998_v62  ;;  %1001 = vst [vmem:[%s8683_s16 + $0xbf8] sm:$0xff] %v1000_v63  ;;  %v1002_v0 = vld [vmem:[%s8678_s15 + $0x1800] sm:$0xff]  ;;  %v1004_v1 = vld [vmem:[%s8678_s15 + $0x1808] sm:$0xff] }
  0xdd   : > { %v1006_v2 = vld [vmem:[%s8678_s15 + $0x1820] sm:$0xff]  ;;  %1003 = vst [vmem:[%s8683_s16 + $0xc00] sm:$0xff] %v1002_v0  ;;  %1005 = vst [vmem:[%s8683_s16 + $0xc08] sm:$0xff] %v1004_v1  ;;  %v1008_v3 = vld [vmem:[%s8678_s15 + $0x1828] sm:$0xff] }
  0xde   : > { %1007 = vst [vmem:[%s8683_s16 + $0xc10] sm:$0xff] %v1006_v2  ;;  %v1010_v4 = vld [vmem:[%s8678_s15 + $0x1840] sm:$0xff]  ;;  %v1012_v5 = vld [vmem:[%s8678_s15 + $0x1848] sm:$0xff]  ;;  %1009 = vst [vmem:[%s8683_s16 + $0xc18] sm:$0xff] %v1008_v3 }
  0xdf   : > { %1011 = vst [vmem:[%s8683_s16 + $0xc20] sm:$0xff] %v1010_v4  ;;  %1013 = vst [vmem:[%s8683_s16 + $0xc28] sm:$0xff] %v1012_v5  ;;  %v1014_v6 = vld [vmem:[%s8678_s15 + $0x1860] sm:$0xff]  ;;  %v1016_v7 = vld [vmem:[%s8678_s15 + $0x1868] sm:$0xff] }
  0xe0   : > { %v1018_v8 = vld [vmem:[%s8678_s15 + $0x1880] sm:$0xff]  ;;  %1015 = vst [vmem:[%s8683_s16 + $0xc30] sm:$0xff] %v1014_v6  ;;  %1017 = vst [vmem:[%s8683_s16 + $0xc38] sm:$0xff] %v1016_v7  ;;  %v1020_v9 = vld [vmem:[%s8678_s15 + $0x1888] sm:$0xff] }
  0xe1   : > { %1019 = vst [vmem:[%s8683_s16 + $0xc40] sm:$0xff] %v1018_v8  ;;  %v1022_v10 = vld [vmem:[%s8678_s15 + $0x18a0] sm:$0xff]  ;;  %v1024_v11 = vld [vmem:[%s8678_s15 + $0x18a8] sm:$0xff]  ;;  %1021 = vst [vmem:[%s8683_s16 + $0xc48] sm:$0xff] %v1020_v9 }
  0xe2   : > { %1023 = vst [vmem:[%s8683_s16 + $0xc50] sm:$0xff] %v1022_v10  ;;  %1025 = vst [vmem:[%s8683_s16 + $0xc58] sm:$0xff] %v1024_v11  ;;  %v1026_v12 = vld [vmem:[%s8678_s15 + $0x18c0] sm:$0xff]  ;;  %v1028_v13 = vld [vmem:[%s8678_s15 + $0x18c8] sm:$0xff] }
  0xe3   : > { %v1030_v14 = vld [vmem:[%s8678_s15 + $0x18e0] sm:$0xff]  ;;  %1027 = vst [vmem:[%s8683_s16 + $0xc60] sm:$0xff] %v1026_v12  ;;  %1029 = vst [vmem:[%s8683_s16 + $0xc68] sm:$0xff] %v1028_v13  ;;  %v1032_v15 = vld [vmem:[%s8678_s15 + $0x18e8] sm:$0xff] }
  0xe4   : > { %1031 = vst [vmem:[%s8683_s16 + $0xc70] sm:$0xff] %v1030_v14  ;;  %v1034_v16 = vld [vmem:[%s8678_s15 + $0x1900] sm:$0xff]  ;;  %v1036_v17 = vld [vmem:[%s8678_s15 + $0x1908] sm:$0xff]  ;;  %1033 = vst [vmem:[%s8683_s16 + $0xc78] sm:$0xff] %v1032_v15 }
  0xe5   : > { %1035 = vst [vmem:[%s8683_s16 + $0xc80] sm:$0xff] %v1034_v16  ;;  %1037 = vst [vmem:[%s8683_s16 + $0xc88] sm:$0xff] %v1036_v17  ;;  %v1038_v18 = vld [vmem:[%s8678_s15 + $0x1920] sm:$0xff]  ;;  %v1040_v19 = vld [vmem:[%s8678_s15 + $0x1928] sm:$0xff] }
  0xe6   : > { %v1042_v20 = vld [vmem:[%s8678_s15 + $0x1940] sm:$0xff]  ;;  %1039 = vst [vmem:[%s8683_s16 + $0xc90] sm:$0xff] %v1038_v18  ;;  %1041 = vst [vmem:[%s8683_s16 + $0xc98] sm:$0xff] %v1040_v19  ;;  %v1044_v21 = vld [vmem:[%s8678_s15 + $0x1948] sm:$0xff] }
  0xe7   : > { %1043 = vst [vmem:[%s8683_s16 + $0xca0] sm:$0xff] %v1042_v20  ;;  %v1046_v22 = vld [vmem:[%s8678_s15 + $0x1960] sm:$0xff]  ;;  %v1048_v23 = vld [vmem:[%s8678_s15 + $0x1968] sm:$0xff]  ;;  %1045 = vst [vmem:[%s8683_s16 + $0xca8] sm:$0xff] %v1044_v21 }
  0xe8   : > { %1047 = vst [vmem:[%s8683_s16 + $0xcb0] sm:$0xff] %v1046_v22  ;;  %1049 = vst [vmem:[%s8683_s16 + $0xcb8] sm:$0xff] %v1048_v23  ;;  %v1050_v24 = vld [vmem:[%s8678_s15 + $0x1980] sm:$0xff]  ;;  %v1052_v25 = vld [vmem:[%s8678_s15 + $0x1988] sm:$0xff] }
  0xe9   : > { %v1054_v26 = vld [vmem:[%s8678_s15 + $0x19a0] sm:$0xff]  ;;  %1051 = vst [vmem:[%s8683_s16 + $0xcc0] sm:$0xff] %v1050_v24  ;;  %1053 = vst [vmem:[%s8683_s16 + $0xcc8] sm:$0xff] %v1052_v25  ;;  %v1056_v27 = vld [vmem:[%s8678_s15 + $0x19a8] sm:$0xff] }
  0xea   : > { %1055 = vst [vmem:[%s8683_s16 + $0xcd0] sm:$0xff] %v1054_v26  ;;  %v1058_v28 = vld [vmem:[%s8678_s15 + $0x19c0] sm:$0xff]  ;;  %v1060_v29 = vld [vmem:[%s8678_s15 + $0x19c8] sm:$0xff]  ;;  %1057 = vst [vmem:[%s8683_s16 + $0xcd8] sm:$0xff] %v1056_v27 }
  0xeb   : > { %1059 = vst [vmem:[%s8683_s16 + $0xce0] sm:$0xff] %v1058_v28  ;;  %1061 = vst [vmem:[%s8683_s16 + $0xce8] sm:$0xff] %v1060_v29  ;;  %v1062_v30 = vld [vmem:[%s8678_s15 + $0x19e0] sm:$0xff]  ;;  %v1064_v31 = vld [vmem:[%s8678_s15 + $0x19e8] sm:$0xff] }
  0xec   : > { %v1066_v32 = vld [vmem:[%s8678_s15 + $0x1a00] sm:$0xff]  ;;  %1063 = vst [vmem:[%s8683_s16 + $0xcf0] sm:$0xff] %v1062_v30  ;;  %1065 = vst [vmem:[%s8683_s16 + $0xcf8] sm:$0xff] %v1064_v31  ;;  %v1068_v33 = vld [vmem:[%s8678_s15 + $0x1a08] sm:$0xff] }
  0xed   : > { %1067 = vst [vmem:[%s8683_s16 + $0xd00] sm:$0xff] %v1066_v32  ;;  %v1070_v34 = vld [vmem:[%s8678_s15 + $0x1a20] sm:$0xff]  ;;  %v1072_v35 = vld [vmem:[%s8678_s15 + $0x1a28] sm:$0xff]  ;;  %1069 = vst [vmem:[%s8683_s16 + $0xd08] sm:$0xff] %v1068_v33 }
  0xee   : > { %1071 = vst [vmem:[%s8683_s16 + $0xd10] sm:$0xff] %v1070_v34  ;;  %1073 = vst [vmem:[%s8683_s16 + $0xd18] sm:$0xff] %v1072_v35  ;;  %v1074_v36 = vld [vmem:[%s8678_s15 + $0x1a40] sm:$0xff]  ;;  %v1076_v37 = vld [vmem:[%s8678_s15 + $0x1a48] sm:$0xff] }
  0xef   : > { %v1078_v38 = vld [vmem:[%s8678_s15 + $0x1a60] sm:$0xff]  ;;  %1075 = vst [vmem:[%s8683_s16 + $0xd20] sm:$0xff] %v1074_v36  ;;  %1077 = vst [vmem:[%s8683_s16 + $0xd28] sm:$0xff] %v1076_v37  ;;  %v1080_v39 = vld [vmem:[%s8678_s15 + $0x1a68] sm:$0xff] }
  0xf0   : > { %1079 = vst [vmem:[%s8683_s16 + $0xd30] sm:$0xff] %v1078_v38  ;;  %v1082_v40 = vld [vmem:[%s8678_s15 + $0x1a80] sm:$0xff]  ;;  %v1084_v41 = vld [vmem:[%s8678_s15 + $0x1a88] sm:$0xff]  ;;  %1081 = vst [vmem:[%s8683_s16 + $0xd38] sm:$0xff] %v1080_v39 }
  0xf1   : > { %1083 = vst [vmem:[%s8683_s16 + $0xd40] sm:$0xff] %v1082_v40  ;;  %1085 = vst [vmem:[%s8683_s16 + $0xd48] sm:$0xff] %v1084_v41  ;;  %v1086_v42 = vld [vmem:[%s8678_s15 + $0x1aa0] sm:$0xff]  ;;  %v1088_v43 = vld [vmem:[%s8678_s15 + $0x1aa8] sm:$0xff] }
  0xf2   : > { %v1090_v44 = vld [vmem:[%s8678_s15 + $0x1ac0] sm:$0xff]  ;;  %1087 = vst [vmem:[%s8683_s16 + $0xd50] sm:$0xff] %v1086_v42  ;;  %1089 = vst [vmem:[%s8683_s16 + $0xd58] sm:$0xff] %v1088_v43  ;;  %v1092_v45 = vld [vmem:[%s8678_s15 + $0x1ac8] sm:$0xff] }
  0xf3   : > { %1091 = vst [vmem:[%s8683_s16 + $0xd60] sm:$0xff] %v1090_v44  ;;  %v1094_v46 = vld [vmem:[%s8678_s15 + $0x1ae0] sm:$0xff]  ;;  %v1096_v47 = vld [vmem:[%s8678_s15 + $0x1ae8] sm:$0xff]  ;;  %1093 = vst [vmem:[%s8683_s16 + $0xd68] sm:$0xff] %v1092_v45 }
  0xf4   : > { %1095 = vst [vmem:[%s8683_s16 + $0xd70] sm:$0xff] %v1094_v46  ;;  %1097 = vst [vmem:[%s8683_s16 + $0xd78] sm:$0xff] %v1096_v47  ;;  %v1098_v48 = vld [vmem:[%s8678_s15 + $0x1b00] sm:$0xff]  ;;  %v1100_v49 = vld [vmem:[%s8678_s15 + $0x1b08] sm:$0xff] }
  0xf5   : > { %v1102_v50 = vld [vmem:[%s8678_s15 + $0x1b20] sm:$0xff]  ;;  %1099 = vst [vmem:[%s8683_s16 + $0xd80] sm:$0xff] %v1098_v48  ;;  %1101 = vst [vmem:[%s8683_s16 + $0xd88] sm:$0xff] %v1100_v49  ;;  %v1104_v51 = vld [vmem:[%s8678_s15 + $0x1b28] sm:$0xff] }
  0xf6   : > { %1103 = vst [vmem:[%s8683_s16 + $0xd90] sm:$0xff] %v1102_v50  ;;  %v1106_v52 = vld [vmem:[%s8678_s15 + $0x1b40] sm:$0xff]  ;;  %v1108_v53 = vld [vmem:[%s8678_s15 + $0x1b48] sm:$0xff]  ;;  %1105 = vst [vmem:[%s8683_s16 + $0xd98] sm:$0xff] %v1104_v51 }
  0xf7   : > { %1107 = vst [vmem:[%s8683_s16 + $0xda0] sm:$0xff] %v1106_v52  ;;  %1109 = vst [vmem:[%s8683_s16 + $0xda8] sm:$0xff] %v1108_v53  ;;  %v1110_v54 = vld [vmem:[%s8678_s15 + $0x1b60] sm:$0xff]  ;;  %v1112_v55 = vld [vmem:[%s8678_s15 + $0x1b68] sm:$0xff] }
  0xf8   : > { %v1114_v56 = vld [vmem:[%s8678_s15 + $0x1b80] sm:$0xff]  ;;  %1111 = vst [vmem:[%s8683_s16 + $0xdb0] sm:$0xff] %v1110_v54  ;;  %1113 = vst [vmem:[%s8683_s16 + $0xdb8] sm:$0xff] %v1112_v55  ;;  %v1116_v57 = vld [vmem:[%s8678_s15 + $0x1b88] sm:$0xff] }
  0xf9   : > { %1115 = vst [vmem:[%s8683_s16 + $0xdc0] sm:$0xff] %v1114_v56  ;;  %v1118_v58 = vld [vmem:[%s8678_s15 + $0x1ba0] sm:$0xff]  ;;  %v1120_v59 = vld [vmem:[%s8678_s15 + $0x1ba8] sm:$0xff]  ;;  %1117 = vst [vmem:[%s8683_s16 + $0xdc8] sm:$0xff] %v1116_v57 }
  0xfa   : > { %1119 = vst [vmem:[%s8683_s16 + $0xdd0] sm:$0xff] %v1118_v58  ;;  %1121 = vst [vmem:[%s8683_s16 + $0xdd8] sm:$0xff] %v1120_v59  ;;  %v1122_v60 = vld [vmem:[%s8678_s15 + $0x1bc0] sm:$0xff]  ;;  %v1124_v61 = vld [vmem:[%s8678_s15 + $0x1bc8] sm:$0xff] }
  0xfb   : > { %v1126_v62 = vld [vmem:[%s8678_s15 + $0x1be0] sm:$0xff]  ;;  %1123 = vst [vmem:[%s8683_s16 + $0xde0] sm:$0xff] %v1122_v60  ;;  %1125 = vst [vmem:[%s8683_s16 + $0xde8] sm:$0xff] %v1124_v61  ;;  %v1128_v63 = vld [vmem:[%s8678_s15 + $0x1be8] sm:$0xff] }
  0xfc   : > { %1127 = vst [vmem:[%s8683_s16 + $0xdf0] sm:$0xff] %v1126_v62  ;;  %v1130_v0 = vld [vmem:[%s8678_s15 + $0x1c00] sm:$0xff]  ;;  %v1132_v1 = vld [vmem:[%s8678_s15 + $0x1c08] sm:$0xff]  ;;  %1129 = vst [vmem:[%s8683_s16 + $0xdf8] sm:$0xff] %v1128_v63 }
  0xfd   : > { %1131 = vst [vmem:[%s8683_s16 + $0xe00] sm:$0xff] %v1130_v0  ;;  %1133 = vst [vmem:[%s8683_s16 + $0xe08] sm:$0xff] %v1132_v1  ;;  %v1134_v2 = vld [vmem:[%s8678_s15 + $0x1c20] sm:$0xff]  ;;  %v1136_v3 = vld [vmem:[%s8678_s15 + $0x1c28] sm:$0xff] }
  0xfe   : > { %v1138_v4 = vld [vmem:[%s8678_s15 + $0x1c40] sm:$0xff]  ;;  %1135 = vst [vmem:[%s8683_s16 + $0xe10] sm:$0xff] %v1134_v2  ;;  %1137 = vst [vmem:[%s8683_s16 + $0xe18] sm:$0xff] %v1136_v3  ;;  %v1140_v5 = vld [vmem:[%s8678_s15 + $0x1c48] sm:$0xff] }
  0xff   : > { %1139 = vst [vmem:[%s8683_s16 + $0xe20] sm:$0xff] %v1138_v4  ;;  %v1142_v6 = vld [vmem:[%s8678_s15 + $0x1c60] sm:$0xff]  ;;  %v1144_v7 = vld [vmem:[%s8678_s15 + $0x1c68] sm:$0xff]  ;;  %1141 = vst [vmem:[%s8683_s16 + $0xe28] sm:$0xff] %v1140_v5 }
 0x100   : > { %1143 = vst [vmem:[%s8683_s16 + $0xe30] sm:$0xff] %v1142_v6  ;;  %1145 = vst [vmem:[%s8683_s16 + $0xe38] sm:$0xff] %v1144_v7  ;;  %v1146_v8 = vld [vmem:[%s8678_s15 + $0x1c80] sm:$0xff]  ;;  %v1148_v9 = vld [vmem:[%s8678_s15 + $0x1c88] sm:$0xff] }
 0x101   : > { %v1150_v10 = vld [vmem:[%s8678_s15 + $0x1ca0] sm:$0xff]  ;;  %1147 = vst [vmem:[%s8683_s16 + $0xe40] sm:$0xff] %v1146_v8  ;;  %1149 = vst [vmem:[%s8683_s16 + $0xe48] sm:$0xff] %v1148_v9  ;;  %v1152_v11 = vld [vmem:[%s8678_s15 + $0x1ca8] sm:$0xff] }
 0x102   : > { %1151 = vst [vmem:[%s8683_s16 + $0xe50] sm:$0xff] %v1150_v10  ;;  %v1154_v12 = vld [vmem:[%s8678_s15 + $0x1cc0] sm:$0xff]  ;;  %v1156_v13 = vld [vmem:[%s8678_s15 + $0x1cc8] sm:$0xff]  ;;  %1153 = vst [vmem:[%s8683_s16 + $0xe58] sm:$0xff] %v1152_v11 }
 0x103   : > { %1155 = vst [vmem:[%s8683_s16 + $0xe60] sm:$0xff] %v1154_v12  ;;  %1157 = vst [vmem:[%s8683_s16 + $0xe68] sm:$0xff] %v1156_v13  ;;  %v1158_v14 = vld [vmem:[%s8678_s15 + $0x1ce0] sm:$0xff]  ;;  %v1160_v15 = vld [vmem:[%s8678_s15 + $0x1ce8] sm:$0xff] }
 0x104   : > { %v1162_v16 = vld [vmem:[%s8678_s15 + $0x1d00] sm:$0xff]  ;;  %1159 = vst [vmem:[%s8683_s16 + $0xe70] sm:$0xff] %v1158_v14  ;;  %1161 = vst [vmem:[%s8683_s16 + $0xe78] sm:$0xff] %v1160_v15  ;;  %v1164_v17 = vld [vmem:[%s8678_s15 + $0x1d08] sm:$0xff] }
 0x105   : > { %1163 = vst [vmem:[%s8683_s16 + $0xe80] sm:$0xff] %v1162_v16  ;;  %v1166_v18 = vld [vmem:[%s8678_s15 + $0x1d20] sm:$0xff]  ;;  %v1168_v19 = vld [vmem:[%s8678_s15 + $0x1d28] sm:$0xff]  ;;  %1165 = vst [vmem:[%s8683_s16 + $0xe88] sm:$0xff] %v1164_v17 }
 0x106   : > { %1167 = vst [vmem:[%s8683_s16 + $0xe90] sm:$0xff] %v1166_v18  ;;  %1169 = vst [vmem:[%s8683_s16 + $0xe98] sm:$0xff] %v1168_v19  ;;  %v1170_v20 = vld [vmem:[%s8678_s15 + $0x1d40] sm:$0xff]  ;;  %v1172_v21 = vld [vmem:[%s8678_s15 + $0x1d48] sm:$0xff] }
 0x107   : > { %v1174_v22 = vld [vmem:[%s8678_s15 + $0x1d60] sm:$0xff]  ;;  %1171 = vst [vmem:[%s8683_s16 + $0xea0] sm:$0xff] %v1170_v20  ;;  %1173 = vst [vmem:[%s8683_s16 + $0xea8] sm:$0xff] %v1172_v21  ;;  %v1176_v23 = vld [vmem:[%s8678_s15 + $0x1d68] sm:$0xff] }
 0x108   : > { %1175 = vst [vmem:[%s8683_s16 + $0xeb0] sm:$0xff] %v1174_v22  ;;  %v1178_v24 = vld [vmem:[%s8678_s15 + $0x1d80] sm:$0xff]  ;;  %v1180_v25 = vld [vmem:[%s8678_s15 + $0x1d88] sm:$0xff]  ;;  %1177 = vst [vmem:[%s8683_s16 + $0xeb8] sm:$0xff] %v1176_v23 }
 0x109   : > { %1179 = vst [vmem:[%s8683_s16 + $0xec0] sm:$0xff] %v1178_v24  ;;  %1181 = vst [vmem:[%s8683_s16 + $0xec8] sm:$0xff] %v1180_v25  ;;  %v1182_v26 = vld [vmem:[%s8678_s15 + $0x1da0] sm:$0xff]  ;;  %v1184_v27 = vld [vmem:[%s8678_s15 + $0x1da8] sm:$0xff] }
 0x10a   : > { %v1186_v28 = vld [vmem:[%s8678_s15 + $0x1dc0] sm:$0xff]  ;;  %1183 = vst [vmem:[%s8683_s16 + $0xed0] sm:$0xff] %v1182_v26  ;;  %1185 = vst [vmem:[%s8683_s16 + $0xed8] sm:$0xff] %v1184_v27  ;;  %v1188_v29 = vld [vmem:[%s8678_s15 + $0x1dc8] sm:$0xff] }
 0x10b   : > { %1187 = vst [vmem:[%s8683_s16 + $0xee0] sm:$0xff] %v1186_v28  ;;  %v1190_v30 = vld [vmem:[%s8678_s15 + $0x1de0] sm:$0xff]  ;;  %v1192_v31 = vld [vmem:[%s8678_s15 + $0x1de8] sm:$0xff]  ;;  %1189 = vst [vmem:[%s8683_s16 + $0xee8] sm:$0xff] %v1188_v29 }
 0x10c   : > { %1191 = vst [vmem:[%s8683_s16 + $0xef0] sm:$0xff] %v1190_v30  ;;  %1193 = vst [vmem:[%s8683_s16 + $0xef8] sm:$0xff] %v1192_v31  ;;  %v1194_v32 = vld [vmem:[%s8678_s15 + $0x1e00] sm:$0xff]  ;;  %v1196_v33 = vld [vmem:[%s8678_s15 + $0x1e08] sm:$0xff] }
 0x10d   : > { %v1198_v34 = vld [vmem:[%s8678_s15 + $0x1e20] sm:$0xff]  ;;  %1195 = vst [vmem:[%s8683_s16 + $0xf00] sm:$0xff] %v1194_v32  ;;  %1197 = vst [vmem:[%s8683_s16 + $0xf08] sm:$0xff] %v1196_v33  ;;  %v1200_v35 = vld [vmem:[%s8678_s15 + $0x1e28] sm:$0xff] }
 0x10e   : > { %1199 = vst [vmem:[%s8683_s16 + $0xf10] sm:$0xff] %v1198_v34  ;;  %v1202_v36 = vld [vmem:[%s8678_s15 + $0x1e40] sm:$0xff]  ;;  %v1204_v37 = vld [vmem:[%s8678_s15 + $0x1e48] sm:$0xff]  ;;  %1201 = vst [vmem:[%s8683_s16 + $0xf18] sm:$0xff] %v1200_v35 }
 0x10f   : > { %1203 = vst [vmem:[%s8683_s16 + $0xf20] sm:$0xff] %v1202_v36  ;;  %1205 = vst [vmem:[%s8683_s16 + $0xf28] sm:$0xff] %v1204_v37  ;;  %v1206_v38 = vld [vmem:[%s8678_s15 + $0x1e60] sm:$0xff]  ;;  %v1208_v39 = vld [vmem:[%s8678_s15 + $0x1e68] sm:$0xff] }
 0x110   : > { %v1210_v40 = vld [vmem:[%s8678_s15 + $0x1e80] sm:$0xff]  ;;  %1207 = vst [vmem:[%s8683_s16 + $0xf30] sm:$0xff] %v1206_v38  ;;  %1209 = vst [vmem:[%s8683_s16 + $0xf38] sm:$0xff] %v1208_v39  ;;  %v1212_v41 = vld [vmem:[%s8678_s15 + $0x1e88] sm:$0xff] }
 0x111   : > { %1211 = vst [vmem:[%s8683_s16 + $0xf40] sm:$0xff] %v1210_v40  ;;  %v1214_v42 = vld [vmem:[%s8678_s15 + $0x1ea0] sm:$0xff]  ;;  %v1216_v43 = vld [vmem:[%s8678_s15 + $0x1ea8] sm:$0xff]  ;;  %1213 = vst [vmem:[%s8683_s16 + $0xf48] sm:$0xff] %v1212_v41 }
 0x112   : > { %1215 = vst [vmem:[%s8683_s16 + $0xf50] sm:$0xff] %v1214_v42  ;;  %1217 = vst [vmem:[%s8683_s16 + $0xf58] sm:$0xff] %v1216_v43  ;;  %v1218_v44 = vld [vmem:[%s8678_s15 + $0x1ec0] sm:$0xff]  ;;  %v1220_v45 = vld [vmem:[%s8678_s15 + $0x1ec8] sm:$0xff] }
 0x113   : > { %v1222_v46 = vld [vmem:[%s8678_s15 + $0x1ee0] sm:$0xff]  ;;  %1219 = vst [vmem:[%s8683_s16 + $0xf60] sm:$0xff] %v1218_v44  ;;  %1221 = vst [vmem:[%s8683_s16 + $0xf68] sm:$0xff] %v1220_v45  ;;  %v1224_v47 = vld [vmem:[%s8678_s15 + $0x1ee8] sm:$0xff] }
 0x114   : > { %1223 = vst [vmem:[%s8683_s16 + $0xf70] sm:$0xff] %v1222_v46  ;;  %v1226_v48 = vld [vmem:[%s8678_s15 + $0x1f00] sm:$0xff]  ;;  %v1228_v49 = vld [vmem:[%s8678_s15 + $0x1f08] sm:$0xff]  ;;  %1225 = vst [vmem:[%s8683_s16 + $0xf78] sm:$0xff] %v1224_v47 }
 0x115   : > { %1227 = vst [vmem:[%s8683_s16 + $0xf80] sm:$0xff] %v1226_v48  ;;  %1229 = vst [vmem:[%s8683_s16 + $0xf88] sm:$0xff] %v1228_v49  ;;  %v1230_v50 = vld [vmem:[%s8678_s15 + $0x1f20] sm:$0xff]  ;;  %v1232_v51 = vld [vmem:[%s8678_s15 + $0x1f28] sm:$0xff] }
 0x116   : > { %v1234_v52 = vld [vmem:[%s8678_s15 + $0x1f40] sm:$0xff]  ;;  %1231 = vst [vmem:[%s8683_s16 + $0xf90] sm:$0xff] %v1230_v50  ;;  %1233 = vst [vmem:[%s8683_s16 + $0xf98] sm:$0xff] %v1232_v51  ;;  %v1236_v53 = vld [vmem:[%s8678_s15 + $0x1f48] sm:$0xff] }
 0x117   : > { %1235 = vst [vmem:[%s8683_s16 + $0xfa0] sm:$0xff] %v1234_v52  ;;  %v1238_v54 = vld [vmem:[%s8678_s15 + $0x1f60] sm:$0xff]  ;;  %v1240_v55 = vld [vmem:[%s8678_s15 + $0x1f68] sm:$0xff]  ;;  %1237 = vst [vmem:[%s8683_s16 + $0xfa8] sm:$0xff] %v1236_v53 }
 0x118   : > { %1239 = vst [vmem:[%s8683_s16 + $0xfb0] sm:$0xff] %v1238_v54  ;;  %1241 = vst [vmem:[%s8683_s16 + $0xfb8] sm:$0xff] %v1240_v55  ;;  %v1242_v56 = vld [vmem:[%s8678_s15 + $0x1f80] sm:$0xff]  ;;  %v1244_v57 = vld [vmem:[%s8678_s15 + $0x1f88] sm:$0xff] }
 0x119   : > { %v1246_v58 = vld [vmem:[%s8678_s15 + $0x1fa0] sm:$0xff]  ;;  %1243 = vst [vmem:[%s8683_s16 + $0xfc0] sm:$0xff] %v1242_v56  ;;  %1245 = vst [vmem:[%s8683_s16 + $0xfc8] sm:$0xff] %v1244_v57  ;;  %v1248_v59 = vld [vmem:[%s8678_s15 + $0x1fa8] sm:$0xff] }
 0x11a   : > { %1247 = vst [vmem:[%s8683_s16 + $0xfd0] sm:$0xff] %v1246_v58  ;;  %v1250_v60 = vld [vmem:[%s8678_s15 + $0x1fc0] sm:$0xff]  ;;  %v1252_v61 = vld [vmem:[%s8678_s15 + $0x1fc8] sm:$0xff]  ;;  %1249 = vst [vmem:[%s8683_s16 + $0xfd8] sm:$0xff] %v1248_v59 }
 0x11b   : > { %1251 = vst [vmem:[%s8683_s16 + $0xfe0] sm:$0xff] %v1250_v60  ;;  %1253 = vst [vmem:[%s8683_s16 + $0xfe8] sm:$0xff] %v1252_v61  ;;  %v1254_v62 = vld [vmem:[%s8678_s15 + $0x1fe0] sm:$0xff]  ;;  %v1256_v63 = vld [vmem:[%s8678_s15 + $0x1fe8] sm:$0xff] }
 0x11c   : > { %v1258_v0 = vld [vmem:[%s8678_s15 + $0x2000] sm:$0xff]  ;;  %1255 = vst [vmem:[%s8683_s16 + $0xff0] sm:$0xff] %v1254_v62  ;;  %1257 = vst [vmem:[%s8683_s16 + $0xff8] sm:$0xff] %v1256_v63  ;;  %v1260_v1 = vld [vmem:[%s8678_s15 + $0x2008] sm:$0xff] }
 0x11d   : > { %1259 = vst [vmem:[%s8683_s16 + $0x1000] sm:$0xff] %v1258_v0  ;;  %v1262_v2 = vld [vmem:[%s8678_s15 + $0x2020] sm:$0xff]  ;;  %v1264_v3 = vld [vmem:[%s8678_s15 + $0x2028] sm:$0xff]  ;;  %1261 = vst [vmem:[%s8683_s16 + $0x1008] sm:$0xff] %v1260_v1 }
 0x11e   : > { %1263 = vst [vmem:[%s8683_s16 + $0x1010] sm:$0xff] %v1262_v2  ;;  %1265 = vst [vmem:[%s8683_s16 + $0x1018] sm:$0xff] %v1264_v3  ;;  %v1266_v4 = vld [vmem:[%s8678_s15 + $0x2040] sm:$0xff]  ;;  %v1268_v5 = vld [vmem:[%s8678_s15 + $0x2048] sm:$0xff] }
 0x11f   : > { %v1270_v6 = vld [vmem:[%s8678_s15 + $0x2060] sm:$0xff]  ;;  %1267 = vst [vmem:[%s8683_s16 + $0x1020] sm:$0xff] %v1266_v4  ;;  %1269 = vst [vmem:[%s8683_s16 + $0x1028] sm:$0xff] %v1268_v5  ;;  %v1272_v7 = vld [vmem:[%s8678_s15 + $0x2068] sm:$0xff] }
 0x120   : > { %1271 = vst [vmem:[%s8683_s16 + $0x1030] sm:$0xff] %v1270_v6  ;;  %v1274_v8 = vld [vmem:[%s8678_s15 + $0x2080] sm:$0xff]  ;;  %v1276_v9 = vld [vmem:[%s8678_s15 + $0x2088] sm:$0xff]  ;;  %1273 = vst [vmem:[%s8683_s16 + $0x1038] sm:$0xff] %v1272_v7 }
 0x121   : > { %1275 = vst [vmem:[%s8683_s16 + $0x1040] sm:$0xff] %v1274_v8  ;;  %1277 = vst [vmem:[%s8683_s16 + $0x1048] sm:$0xff] %v1276_v9  ;;  %v1278_v10 = vld [vmem:[%s8678_s15 + $0x20a0] sm:$0xff]  ;;  %v1280_v11 = vld [vmem:[%s8678_s15 + $0x20a8] sm:$0xff] }
 0x122   : > { %v1282_v12 = vld [vmem:[%s8678_s15 + $0x20c0] sm:$0xff]  ;;  %1279 = vst [vmem:[%s8683_s16 + $0x1050] sm:$0xff] %v1278_v10  ;;  %1281 = vst [vmem:[%s8683_s16 + $0x1058] sm:$0xff] %v1280_v11  ;;  %v1284_v13 = vld [vmem:[%s8678_s15 + $0x20c8] sm:$0xff] }
 0x123   : > { %1283 = vst [vmem:[%s8683_s16 + $0x1060] sm:$0xff] %v1282_v12  ;;  %v1286_v14 = vld [vmem:[%s8678_s15 + $0x20e0] sm:$0xff]  ;;  %v1288_v15 = vld [vmem:[%s8678_s15 + $0x20e8] sm:$0xff]  ;;  %1285 = vst [vmem:[%s8683_s16 + $0x1068] sm:$0xff] %v1284_v13 }
 0x124   : > { %1287 = vst [vmem:[%s8683_s16 + $0x1070] sm:$0xff] %v1286_v14  ;;  %1289 = vst [vmem:[%s8683_s16 + $0x1078] sm:$0xff] %v1288_v15  ;;  %v1290_v16 = vld [vmem:[%s8678_s15 + $0x2100] sm:$0xff]  ;;  %v1292_v17 = vld [vmem:[%s8678_s15 + $0x2108] sm:$0xff] }
 0x125   : > { %v1294_v18 = vld [vmem:[%s8678_s15 + $0x2120] sm:$0xff]  ;;  %1291 = vst [vmem:[%s8683_s16 + $0x1080] sm:$0xff] %v1290_v16  ;;  %1293 = vst [vmem:[%s8683_s16 + $0x1088] sm:$0xff] %v1292_v17  ;;  %v1296_v19 = vld [vmem:[%s8678_s15 + $0x2128] sm:$0xff] }
 0x126   : > { %1295 = vst [vmem:[%s8683_s16 + $0x1090] sm:$0xff] %v1294_v18  ;;  %v1298_v20 = vld [vmem:[%s8678_s15 + $0x2140] sm:$0xff]  ;;  %v1300_v21 = vld [vmem:[%s8678_s15 + $0x2148] sm:$0xff]  ;;  %1297 = vst [vmem:[%s8683_s16 + $0x1098] sm:$0xff] %v1296_v19 }
 0x127   : > { %1299 = vst [vmem:[%s8683_s16 + $0x10a0] sm:$0xff] %v1298_v20  ;;  %1301 = vst [vmem:[%s8683_s16 + $0x10a8] sm:$0xff] %v1300_v21  ;;  %v1302_v22 = vld [vmem:[%s8678_s15 + $0x2160] sm:$0xff]  ;;  %v1304_v23 = vld [vmem:[%s8678_s15 + $0x2168] sm:$0xff] }
 0x128   : > { %v1306_v24 = vld [vmem:[%s8678_s15 + $0x2180] sm:$0xff]  ;;  %1303 = vst [vmem:[%s8683_s16 + $0x10b0] sm:$0xff] %v1302_v22  ;;  %1305 = vst [vmem:[%s8683_s16 + $0x10b8] sm:$0xff] %v1304_v23  ;;  %v1308_v25 = vld [vmem:[%s8678_s15 + $0x2188] sm:$0xff] }
 0x129   : > { %1307 = vst [vmem:[%s8683_s16 + $0x10c0] sm:$0xff] %v1306_v24  ;;  %v1310_v26 = vld [vmem:[%s8678_s15 + $0x21a0] sm:$0xff]  ;;  %v1312_v27 = vld [vmem:[%s8678_s15 + $0x21a8] sm:$0xff]  ;;  %1309 = vst [vmem:[%s8683_s16 + $0x10c8] sm:$0xff] %v1308_v25 }
 0x12a   : > { %1311 = vst [vmem:[%s8683_s16 + $0x10d0] sm:$0xff] %v1310_v26  ;;  %1313 = vst [vmem:[%s8683_s16 + $0x10d8] sm:$0xff] %v1312_v27  ;;  %v1314_v28 = vld [vmem:[%s8678_s15 + $0x21c0] sm:$0xff]  ;;  %v1316_v29 = vld [vmem:[%s8678_s15 + $0x21c8] sm:$0xff] }
 0x12b   : > { %v1318_v30 = vld [vmem:[%s8678_s15 + $0x21e0] sm:$0xff]  ;;  %1315 = vst [vmem:[%s8683_s16 + $0x10e0] sm:$0xff] %v1314_v28  ;;  %1317 = vst [vmem:[%s8683_s16 + $0x10e8] sm:$0xff] %v1316_v29  ;;  %v1320_v31 = vld [vmem:[%s8678_s15 + $0x21e8] sm:$0xff] }
 0x12c   : > { %1319 = vst [vmem:[%s8683_s16 + $0x10f0] sm:$0xff] %v1318_v30  ;;  %v1322_v32 = vld [vmem:[%s8678_s15 + $0x2200] sm:$0xff]  ;;  %v1324_v33 = vld [vmem:[%s8678_s15 + $0x2208] sm:$0xff]  ;;  %1321 = vst [vmem:[%s8683_s16 + $0x10f8] sm:$0xff] %v1320_v31 }
 0x12d   : > { %1323 = vst [vmem:[%s8683_s16 + $0x1100] sm:$0xff] %v1322_v32  ;;  %1325 = vst [vmem:[%s8683_s16 + $0x1108] sm:$0xff] %v1324_v33  ;;  %v1326_v34 = vld [vmem:[%s8678_s15 + $0x2220] sm:$0xff]  ;;  %v1328_v35 = vld [vmem:[%s8678_s15 + $0x2228] sm:$0xff] }
 0x12e   : > { %v1330_v36 = vld [vmem:[%s8678_s15 + $0x2240] sm:$0xff]  ;;  %1327 = vst [vmem:[%s8683_s16 + $0x1110] sm:$0xff] %v1326_v34  ;;  %1329 = vst [vmem:[%s8683_s16 + $0x1118] sm:$0xff] %v1328_v35  ;;  %v1332_v37 = vld [vmem:[%s8678_s15 + $0x2248] sm:$0xff] }
 0x12f   : > { %1331 = vst [vmem:[%s8683_s16 + $0x1120] sm:$0xff] %v1330_v36  ;;  %v1334_v38 = vld [vmem:[%s8678_s15 + $0x2260] sm:$0xff]  ;;  %v1336_v39 = vld [vmem:[%s8678_s15 + $0x2268] sm:$0xff]  ;;  %1333 = vst [vmem:[%s8683_s16 + $0x1128] sm:$0xff] %v1332_v37 }
 0x130   : > { %1335 = vst [vmem:[%s8683_s16 + $0x1130] sm:$0xff] %v1334_v38  ;;  %1337 = vst [vmem:[%s8683_s16 + $0x1138] sm:$0xff] %v1336_v39  ;;  %v1338_v40 = vld [vmem:[%s8678_s15 + $0x2280] sm:$0xff]  ;;  %v1340_v41 = vld [vmem:[%s8678_s15 + $0x2288] sm:$0xff] }
 0x131   : > { %v1342_v42 = vld [vmem:[%s8678_s15 + $0x22a0] sm:$0xff]  ;;  %1339 = vst [vmem:[%s8683_s16 + $0x1140] sm:$0xff] %v1338_v40  ;;  %1341 = vst [vmem:[%s8683_s16 + $0x1148] sm:$0xff] %v1340_v41  ;;  %v1344_v43 = vld [vmem:[%s8678_s15 + $0x22a8] sm:$0xff] }
 0x132   : > { %1343 = vst [vmem:[%s8683_s16 + $0x1150] sm:$0xff] %v1342_v42  ;;  %v1346_v44 = vld [vmem:[%s8678_s15 + $0x22c0] sm:$0xff]  ;;  %v1348_v45 = vld [vmem:[%s8678_s15 + $0x22c8] sm:$0xff]  ;;  %1345 = vst [vmem:[%s8683_s16 + $0x1158] sm:$0xff] %v1344_v43 }
 0x133   : > { %1347 = vst [vmem:[%s8683_s16 + $0x1160] sm:$0xff] %v1346_v44  ;;  %1349 = vst [vmem:[%s8683_s16 + $0x1168] sm:$0xff] %v1348_v45  ;;  %v1350_v46 = vld [vmem:[%s8678_s15 + $0x22e0] sm:$0xff]  ;;  %v1352_v47 = vld [vmem:[%s8678_s15 + $0x22e8] sm:$0xff] }
 0x134   : > { %v1354_v48 = vld [vmem:[%s8678_s15 + $0x2300] sm:$0xff]  ;;  %1351 = vst [vmem:[%s8683_s16 + $0x1170] sm:$0xff] %v1350_v46  ;;  %1353 = vst [vmem:[%s8683_s16 + $0x1178] sm:$0xff] %v1352_v47  ;;  %v1356_v49 = vld [vmem:[%s8678_s15 + $0x2308] sm:$0xff] }
 0x135   : > { %1355 = vst [vmem:[%s8683_s16 + $0x1180] sm:$0xff] %v1354_v48  ;;  %v1358_v50 = vld [vmem:[%s8678_s15 + $0x2320] sm:$0xff]  ;;  %v1360_v51 = vld [vmem:[%s8678_s15 + $0x2328] sm:$0xff]  ;;  %1357 = vst [vmem:[%s8683_s16 + $0x1188] sm:$0xff] %v1356_v49 }
 0x136   : > { %1359 = vst [vmem:[%s8683_s16 + $0x1190] sm:$0xff] %v1358_v50  ;;  %1361 = vst [vmem:[%s8683_s16 + $0x1198] sm:$0xff] %v1360_v51  ;;  %v1362_v52 = vld [vmem:[%s8678_s15 + $0x2340] sm:$0xff]  ;;  %v1364_v53 = vld [vmem:[%s8678_s15 + $0x2348] sm:$0xff] }
 0x137   : > { %v1366_v54 = vld [vmem:[%s8678_s15 + $0x2360] sm:$0xff]  ;;  %1363 = vst [vmem:[%s8683_s16 + $0x11a0] sm:$0xff] %v1362_v52  ;;  %1365 = vst [vmem:[%s8683_s16 + $0x11a8] sm:$0xff] %v1364_v53  ;;  %v1368_v55 = vld [vmem:[%s8678_s15 + $0x2368] sm:$0xff] }
 0x138   : > { %1367 = vst [vmem:[%s8683_s16 + $0x11b0] sm:$0xff] %v1366_v54  ;;  %v1370_v56 = vld [vmem:[%s8678_s15 + $0x2380] sm:$0xff]  ;;  %v1372_v57 = vld [vmem:[%s8678_s15 + $0x2388] sm:$0xff]  ;;  %1369 = vst [vmem:[%s8683_s16 + $0x11b8] sm:$0xff] %v1368_v55 }
 0x139   : > { %1371 = vst [vmem:[%s8683_s16 + $0x11c0] sm:$0xff] %v1370_v56  ;;  %1373 = vst [vmem:[%s8683_s16 + $0x11c8] sm:$0xff] %v1372_v57  ;;  %v1374_v58 = vld [vmem:[%s8678_s15 + $0x23a0] sm:$0xff]  ;;  %v1376_v59 = vld [vmem:[%s8678_s15 + $0x23a8] sm:$0xff] }
 0x13a   : > { %v1378_v60 = vld [vmem:[%s8678_s15 + $0x23c0] sm:$0xff]  ;;  %1375 = vst [vmem:[%s8683_s16 + $0x11d0] sm:$0xff] %v1374_v58  ;;  %1377 = vst [vmem:[%s8683_s16 + $0x11d8] sm:$0xff] %v1376_v59  ;;  %v1380_v61 = vld [vmem:[%s8678_s15 + $0x23c8] sm:$0xff] }
 0x13b   : > { %1379 = vst [vmem:[%s8683_s16 + $0x11e0] sm:$0xff] %v1378_v60  ;;  %v1382_v62 = vld [vmem:[%s8678_s15 + $0x23e0] sm:$0xff]  ;;  %v1384_v63 = vld [vmem:[%s8678_s15 + $0x23e8] sm:$0xff]  ;;  %1381 = vst [vmem:[%s8683_s16 + $0x11e8] sm:$0xff] %v1380_v61 }
 0x13c   : > { %1383 = vst [vmem:[%s8683_s16 + $0x11f0] sm:$0xff] %v1382_v62  ;;  %1385 = vst [vmem:[%s8683_s16 + $0x11f8] sm:$0xff] %v1384_v63  ;;  %v1386_v0 = vld [vmem:[%s8678_s15 + $0x2400] sm:$0xff]  ;;  %v1388_v1 = vld [vmem:[%s8678_s15 + $0x2408] sm:$0xff] }
 0x13d   : > { %v1390_v2 = vld [vmem:[%s8678_s15 + $0x2420] sm:$0xff]  ;;  %1387 = vst [vmem:[%s8683_s16 + $0x1200] sm:$0xff] %v1386_v0  ;;  %1389 = vst [vmem:[%s8683_s16 + $0x1208] sm:$0xff] %v1388_v1  ;;  %v1392_v3 = vld [vmem:[%s8678_s15 + $0x2428] sm:$0xff] }
 0x13e   : > { %1391 = vst [vmem:[%s8683_s16 + $0x1210] sm:$0xff] %v1390_v2  ;;  %v1394_v4 = vld [vmem:[%s8678_s15 + $0x2440] sm:$0xff]  ;;  %v1396_v5 = vld [vmem:[%s8678_s15 + $0x2448] sm:$0xff]  ;;  %1393 = vst [vmem:[%s8683_s16 + $0x1218] sm:$0xff] %v1392_v3 }
 0x13f   : > { %1395 = vst [vmem:[%s8683_s16 + $0x1220] sm:$0xff] %v1394_v4  ;;  %1397 = vst [vmem:[%s8683_s16 + $0x1228] sm:$0xff] %v1396_v5  ;;  %v1398_v6 = vld [vmem:[%s8678_s15 + $0x2460] sm:$0xff]  ;;  %v1400_v7 = vld [vmem:[%s8678_s15 + $0x2468] sm:$0xff] }
 0x140   : > { %v1402_v8 = vld [vmem:[%s8678_s15 + $0x2480] sm:$0xff]  ;;  %1399 = vst [vmem:[%s8683_s16 + $0x1230] sm:$0xff] %v1398_v6  ;;  %1401 = vst [vmem:[%s8683_s16 + $0x1238] sm:$0xff] %v1400_v7  ;;  %v1404_v9 = vld [vmem:[%s8678_s15 + $0x2488] sm:$0xff] }
 0x141   : > { %1403 = vst [vmem:[%s8683_s16 + $0x1240] sm:$0xff] %v1402_v8  ;;  %v1406_v10 = vld [vmem:[%s8678_s15 + $0x24a0] sm:$0xff]  ;;  %v1408_v11 = vld [vmem:[%s8678_s15 + $0x24a8] sm:$0xff]  ;;  %1405 = vst [vmem:[%s8683_s16 + $0x1248] sm:$0xff] %v1404_v9 }
 0x142   : > { %1407 = vst [vmem:[%s8683_s16 + $0x1250] sm:$0xff] %v1406_v10  ;;  %1409 = vst [vmem:[%s8683_s16 + $0x1258] sm:$0xff] %v1408_v11  ;;  %v1410_v12 = vld [vmem:[%s8678_s15 + $0x24c0] sm:$0xff]  ;;  %v1412_v13 = vld [vmem:[%s8678_s15 + $0x24c8] sm:$0xff] }
 0x143   : > { %v1414_v14 = vld [vmem:[%s8678_s15 + $0x24e0] sm:$0xff]  ;;  %1411 = vst [vmem:[%s8683_s16 + $0x1260] sm:$0xff] %v1410_v12  ;;  %1413 = vst [vmem:[%s8683_s16 + $0x1268] sm:$0xff] %v1412_v13  ;;  %v1416_v15 = vld [vmem:[%s8678_s15 + $0x24e8] sm:$0xff] }
 0x144   : > { %1415 = vst [vmem:[%s8683_s16 + $0x1270] sm:$0xff] %v1414_v14  ;;  %v1418_v16 = vld [vmem:[%s8678_s15 + $0x2500] sm:$0xff]  ;;  %v1420_v17 = vld [vmem:[%s8678_s15 + $0x2508] sm:$0xff]  ;;  %1417 = vst [vmem:[%s8683_s16 + $0x1278] sm:$0xff] %v1416_v15 }
 0x145   : > { %1419 = vst [vmem:[%s8683_s16 + $0x1280] sm:$0xff] %v1418_v16  ;;  %1421 = vst [vmem:[%s8683_s16 + $0x1288] sm:$0xff] %v1420_v17  ;;  %v1422_v18 = vld [vmem:[%s8678_s15 + $0x2520] sm:$0xff]  ;;  %v1424_v19 = vld [vmem:[%s8678_s15 + $0x2528] sm:$0xff] }
 0x146   : > { %v1426_v20 = vld [vmem:[%s8678_s15 + $0x2540] sm:$0xff]  ;;  %1423 = vst [vmem:[%s8683_s16 + $0x1290] sm:$0xff] %v1422_v18  ;;  %1425 = vst [vmem:[%s8683_s16 + $0x1298] sm:$0xff] %v1424_v19  ;;  %v1428_v21 = vld [vmem:[%s8678_s15 + $0x2548] sm:$0xff] }
 0x147   : > { %1427 = vst [vmem:[%s8683_s16 + $0x12a0] sm:$0xff] %v1426_v20  ;;  %v1430_v22 = vld [vmem:[%s8678_s15 + $0x2560] sm:$0xff]  ;;  %v1432_v23 = vld [vmem:[%s8678_s15 + $0x2568] sm:$0xff]  ;;  %1429 = vst [vmem:[%s8683_s16 + $0x12a8] sm:$0xff] %v1428_v21 }
 0x148   : > { %1431 = vst [vmem:[%s8683_s16 + $0x12b0] sm:$0xff] %v1430_v22  ;;  %1433 = vst [vmem:[%s8683_s16 + $0x12b8] sm:$0xff] %v1432_v23  ;;  %v1434_v24 = vld [vmem:[%s8678_s15 + $0x2580] sm:$0xff]  ;;  %v1436_v25 = vld [vmem:[%s8678_s15 + $0x2588] sm:$0xff] }
 0x149   : > { %v1438_v26 = vld [vmem:[%s8678_s15 + $0x25a0] sm:$0xff]  ;;  %1435 = vst [vmem:[%s8683_s16 + $0x12c0] sm:$0xff] %v1434_v24  ;;  %1437 = vst [vmem:[%s8683_s16 + $0x12c8] sm:$0xff] %v1436_v25  ;;  %v1440_v27 = vld [vmem:[%s8678_s15 + $0x25a8] sm:$0xff] }
 0x14a   : > { %1439 = vst [vmem:[%s8683_s16 + $0x12d0] sm:$0xff] %v1438_v26  ;;  %v1442_v28 = vld [vmem:[%s8678_s15 + $0x25c0] sm:$0xff]  ;;  %v1444_v29 = vld [vmem:[%s8678_s15 + $0x25c8] sm:$0xff]  ;;  %1441 = vst [vmem:[%s8683_s16 + $0x12d8] sm:$0xff] %v1440_v27 }
 0x14b   : > { %1443 = vst [vmem:[%s8683_s16 + $0x12e0] sm:$0xff] %v1442_v28  ;;  %1445 = vst [vmem:[%s8683_s16 + $0x12e8] sm:$0xff] %v1444_v29  ;;  %v1446_v30 = vld [vmem:[%s8678_s15 + $0x25e0] sm:$0xff]  ;;  %v1448_v31 = vld [vmem:[%s8678_s15 + $0x25e8] sm:$0xff] }
 0x14c   : > { %v1450_v32 = vld [vmem:[%s8678_s15 + $0x2600] sm:$0xff]  ;;  %1447 = vst [vmem:[%s8683_s16 + $0x12f0] sm:$0xff] %v1446_v30  ;;  %1449 = vst [vmem:[%s8683_s16 + $0x12f8] sm:$0xff] %v1448_v31  ;;  %v1452_v33 = vld [vmem:[%s8678_s15 + $0x2608] sm:$0xff] }
 0x14d   : > { %1451 = vst [vmem:[%s8683_s16 + $0x1300] sm:$0xff] %v1450_v32  ;;  %v1454_v34 = vld [vmem:[%s8678_s15 + $0x2620] sm:$0xff]  ;;  %v1456_v35 = vld [vmem:[%s8678_s15 + $0x2628] sm:$0xff]  ;;  %1453 = vst [vmem:[%s8683_s16 + $0x1308] sm:$0xff] %v1452_v33 }
 0x14e   : > { %1455 = vst [vmem:[%s8683_s16 + $0x1310] sm:$0xff] %v1454_v34  ;;  %1457 = vst [vmem:[%s8683_s16 + $0x1318] sm:$0xff] %v1456_v35  ;;  %v1458_v36 = vld [vmem:[%s8678_s15 + $0x2640] sm:$0xff]  ;;  %v1460_v37 = vld [vmem:[%s8678_s15 + $0x2648] sm:$0xff] }
 0x14f   : > { %v1462_v38 = vld [vmem:[%s8678_s15 + $0x2660] sm:$0xff]  ;;  %1459 = vst [vmem:[%s8683_s16 + $0x1320] sm:$0xff] %v1458_v36  ;;  %1461 = vst [vmem:[%s8683_s16 + $0x1328] sm:$0xff] %v1460_v37  ;;  %v1464_v39 = vld [vmem:[%s8678_s15 + $0x2668] sm:$0xff] }
 0x150   : > { %1463 = vst [vmem:[%s8683_s16 + $0x1330] sm:$0xff] %v1462_v38  ;;  %v1466_v40 = vld [vmem:[%s8678_s15 + $0x2680] sm:$0xff]  ;;  %v1468_v41 = vld [vmem:[%s8678_s15 + $0x2688] sm:$0xff]  ;;  %1465 = vst [vmem:[%s8683_s16 + $0x1338] sm:$0xff] %v1464_v39 }
 0x151   : > { %1467 = vst [vmem:[%s8683_s16 + $0x1340] sm:$0xff] %v1466_v40  ;;  %1469 = vst [vmem:[%s8683_s16 + $0x1348] sm:$0xff] %v1468_v41  ;;  %v1470_v42 = vld [vmem:[%s8678_s15 + $0x26a0] sm:$0xff]  ;;  %v1472_v43 = vld [vmem:[%s8678_s15 + $0x26a8] sm:$0xff] }
 0x152   : > { %v1474_v44 = vld [vmem:[%s8678_s15 + $0x26c0] sm:$0xff]  ;;  %1471 = vst [vmem:[%s8683_s16 + $0x1350] sm:$0xff] %v1470_v42  ;;  %1473 = vst [vmem:[%s8683_s16 + $0x1358] sm:$0xff] %v1472_v43  ;;  %v1476_v45 = vld [vmem:[%s8678_s15 + $0x26c8] sm:$0xff] }
 0x153   : > { %1475 = vst [vmem:[%s8683_s16 + $0x1360] sm:$0xff] %v1474_v44  ;;  %v1478_v46 = vld [vmem:[%s8678_s15 + $0x26e0] sm:$0xff]  ;;  %v1480_v47 = vld [vmem:[%s8678_s15 + $0x26e8] sm:$0xff]  ;;  %1477 = vst [vmem:[%s8683_s16 + $0x1368] sm:$0xff] %v1476_v45 }
 0x154   : > { %1479 = vst [vmem:[%s8683_s16 + $0x1370] sm:$0xff] %v1478_v46  ;;  %1481 = vst [vmem:[%s8683_s16 + $0x1378] sm:$0xff] %v1480_v47  ;;  %v1482_v48 = vld [vmem:[%s8678_s15 + $0x2700] sm:$0xff]  ;;  %v1484_v49 = vld [vmem:[%s8678_s15 + $0x2708] sm:$0xff] }
 0x155   : > { %v1486_v50 = vld [vmem:[%s8678_s15 + $0x2720] sm:$0xff]  ;;  %1483 = vst [vmem:[%s8683_s16 + $0x1380] sm:$0xff] %v1482_v48  ;;  %1485 = vst [vmem:[%s8683_s16 + $0x1388] sm:$0xff] %v1484_v49  ;;  %v1488_v51 = vld [vmem:[%s8678_s15 + $0x2728] sm:$0xff] }
 0x156   : > { %1487 = vst [vmem:[%s8683_s16 + $0x1390] sm:$0xff] %v1486_v50  ;;  %v1490_v52 = vld [vmem:[%s8678_s15 + $0x2740] sm:$0xff]  ;;  %v1492_v53 = vld [vmem:[%s8678_s15 + $0x2748] sm:$0xff]  ;;  %1489 = vst [vmem:[%s8683_s16 + $0x1398] sm:$0xff] %v1488_v51 }
 0x157   : > { %1491 = vst [vmem:[%s8683_s16 + $0x13a0] sm:$0xff] %v1490_v52  ;;  %1493 = vst [vmem:[%s8683_s16 + $0x13a8] sm:$0xff] %v1492_v53  ;;  %v1494_v54 = vld [vmem:[%s8678_s15 + $0x2760] sm:$0xff]  ;;  %v1496_v55 = vld [vmem:[%s8678_s15 + $0x2768] sm:$0xff] }
 0x158   : > { %v1498_v56 = vld [vmem:[%s8678_s15 + $0x2780] sm:$0xff]  ;;  %1495 = vst [vmem:[%s8683_s16 + $0x13b0] sm:$0xff] %v1494_v54  ;;  %1497 = vst [vmem:[%s8683_s16 + $0x13b8] sm:$0xff] %v1496_v55  ;;  %v1500_v57 = vld [vmem:[%s8678_s15 + $0x2788] sm:$0xff] }
 0x159   : > { %1499 = vst [vmem:[%s8683_s16 + $0x13c0] sm:$0xff] %v1498_v56  ;;  %v1502_v58 = vld [vmem:[%s8678_s15 + $0x27a0] sm:$0xff]  ;;  %v1504_v59 = vld [vmem:[%s8678_s15 + $0x27a8] sm:$0xff]  ;;  %1501 = vst [vmem:[%s8683_s16 + $0x13c8] sm:$0xff] %v1500_v57 }
 0x15a   : > { %1503 = vst [vmem:[%s8683_s16 + $0x13d0] sm:$0xff] %v1502_v58  ;;  %1505 = vst [vmem:[%s8683_s16 + $0x13d8] sm:$0xff] %v1504_v59  ;;  %v1506_v60 = vld [vmem:[%s8678_s15 + $0x27c0] sm:$0xff]  ;;  %v1508_v61 = vld [vmem:[%s8678_s15 + $0x27c8] sm:$0xff] }
 0x15b   : > { %v1510_v62 = vld [vmem:[%s8678_s15 + $0x27e0] sm:$0xff]  ;;  %1507 = vst [vmem:[%s8683_s16 + $0x13e0] sm:$0xff] %v1506_v60  ;;  %1509 = vst [vmem:[%s8683_s16 + $0x13e8] sm:$0xff] %v1508_v61  ;;  %v1512_v63 = vld [vmem:[%s8678_s15 + $0x27e8] sm:$0xff] }
 0x15c   : > { %1511 = vst [vmem:[%s8683_s16 + $0x13f0] sm:$0xff] %v1510_v62  ;;  %1513 = vst [vmem:[%s8683_s16 + $0x13f8] sm:$0xff] %v1512_v63 }
 0x15d PF: > { %p6749_p7 = scmp.ge.s32.totalorder %s8585_s24, 1  ;;  %p1539_p8 = scmp.lt.s32.totalorder %s8585_s24, 5 }
 0x15f   : > { %p1540_p9 = pnand %p6749_p7, %p1539_p8 }
 0x160   : > { %s1546_s17 = sand.u32 (!%p1540_p9), 1, %s8561_s18   ;;  %s1589_s27 = smul.u32 (!%p1540_p9), 20, %s8569_s20 }
 0x161   : > { %1543 = sbr.rel (%p1540_p9) target bundleno = 1452 (0x5ac), region = 59  ;;  %p1597_p10 = scmp.lt.s32.totalorder (!%p1540_p9), %s8573_s21, 1 }
 0x162   : > { %s7493_s28 = smul.u32 (!%p1540_p9), 5120, %s1546_s17  ;;  %p1590_p11 = scmp.lt.s32.totalorder (!%p1540_p9), %s1589_s27, 39 }
 0x163   : > { %s10916_s0 = sld [smem:[#allocation4_spill]] (!%p1540_p9)  ;;  %p6755_p12 = scmp.ne.s32.totalorder (!%p1540_p9), %s8569_s20, 0 }
 0x166   : > { %s10930_s27 = smov (!%p1590_p11, %s1589_s27), 39  ;;  %s10932_s21 = smov (!%p1597_p10, %s8573_s21), 1 }
 0x167   : > { %s6750_s29 = sshll.u32 %s10930_s27, 2  ;;  %s6751_s9 = sshll.u32 %s10932_s21, 2 }
 0x168   : > { %s9979_s11 = scalar_lea.vmem %s10909_s2, %s6751_s9  ;;  %s7421_s12 = sshll.u32 %s10932_s21, 9 }
 0x169   : > { %s9973_s8 = scalar_lea.vmem %s10916_s0, %s6750_s29  ;;  %s9985_s15 = scalar_lea.vmem %s10910_s3, %s7421_s12 }
 0x16a   : > { %s1608_s27 = scalar_lea.vmem %s10911_s4, %s10932_s21  ;;  %s6754_s1 = sshll.u32 %s10932_s21, 3 }
 0x16b   : > { %s9995_s7 = scalar_lea.vmem %s10912_s5, %s6754_s1  ;;  %s9997_s0 = scalar_lea.vmem [#allocation3], %s7493_s28 }
 0x16c   : > { %1616 = sbr.rel (%p6755_p12) target bundleno = 372 (0x174), region = 67 }
 0x171   : > { %v8587_v0 = vmov 0.0  }
 0x172   : > { %1617 = vst [vmem:[#allocation2 + $0x10] sm:$0xff] %v8587_v0  ;;  %1618 = vst [vmem:[#allocation2] sm:$0xff] %v8587_v0 }
 0x173   : > { %1619 = vst [vmem:[#allocation2 + $0x18] sm:$0xff] %v8587_v0  ;;  %1620 = vst [vmem:[#allocation2 + $0x8] sm:$0xff] %v8587_v0 }
 0x174 PF: > { %v7551_v1 = vld [vmem:[%s9997_s0 + $0xe4] ss:$16 sps:$4 sm:$0xff]   ;;  %v7555_v3 = vld [vmem:[%s9997_s0 + $0xe0] ss:$16 sps:$4 sm:$0xff]   ;;  %v1626_v49 = vld [vmem:[%s9973_s8 + $0x8] sm:$0xff]  ;;  %p7416_p13 = scmp.ne.s32.totalorder %s8569_s20, 1 }
 0x175   : > { %v7553_v2 = vld [vmem:[%s9997_s0 + $0x2e4] ss:$16 sps:$4 sm:$0xff]   ;;  %5545 = vmatprep.subr.bf16.mxu0 %v7551_v1  ;;  %v7556_v4 = vld [vmem:[%s9997_s0 + $0x2e0] ss:$16 sps:$4 sm:$0xff]   ;;  %v10052_v52 = vcombine.high %v1626_v49, %v1626_v49 }
 0x176   : > { %5586 = vmatprep.subr.bf16.mxu1 %v7553_v2  ;;  %v7557_v5 = vld [vmem:[%s9997_s0 + $0xc4] ss:$16 sps:$4 sm:$0xff]   ;;  %5546 = vmatpush1.bf16.msra.mxu0 %v7555_v3  ;;  %v7561_v7 = vld [vmem:[%s9997_s0 + $0xc0] ss:$16 sps:$4 sm:$0xff]  }
 0x177   : > { %5587 = vmatpush1.bf16.msra.mxu1 %v7556_v4  ;;  %v7559_v6 = vld [vmem:[%s9997_s0 + $0x2c4] ss:$16 sps:$4 sm:$0xff]   ;;  %5547 = vmatprep.subr.bf16.mxu0 %v7557_v5  ;;  %v7562_v8 = vld [vmem:[%s9997_s0 + $0x2c0] ss:$16 sps:$4 sm:$0xff]  }
 0x178   : > { %5588 = vmatprep.subr.bf16.mxu1 %v7559_v6  ;;  %v7563_v9 = vld [vmem:[%s9997_s0 + $0xa4] ss:$16 sps:$4 sm:$0xff]   ;;  %v7567_v11 = vld [vmem:[%s9997_s0 + $0xa0] ss:$16 sps:$4 sm:$0xff]   ;;  %5618 = vmatprep.mubr.bf16.mxu1 %v10052_v52 }
 0x179   : > { %v7565_v10 = vld [vmem:[%s9997_s0 + $0x2a4] ss:$16 sps:$4 sm:$0xff]   ;;  %v7568_v12 = vld [vmem:[%s9997_s0 + $0x2a0] ss:$16 sps:$4 sm:$0xff]  }
 0x17a   : > { %5548 = vmatpush1.bf16.msra.mxu0 %v7561_v7  ;;  %v7569_v13 = vld [vmem:[%s9997_s0 + $0x84] ss:$16 sps:$4 sm:$0xff]   ;;  %v7573_v15 = vld [vmem:[%s9997_s0 + $0x80] ss:$16 sps:$4 sm:$0xff]  }
 0x17b   : > { %5589 = vmatpush1.bf16.msra.mxu1 %v7562_v8  ;;  %5549 = vmatprep.subr.bf16.mxu0 %v7563_v9  ;;  %v7571_v14 = vld [vmem:[%s9997_s0 + $0x284] ss:$16 sps:$4 sm:$0xff]   ;;  %v7574_v16 = vld [vmem:[%s9997_s0 + $0x280] ss:$16 sps:$4 sm:$0xff]   ;;  %v10076_v8 = vcombine.low %v1626_v49, %v1626_v49 }
 0x17c   : > { %5590 = vmatprep.subr.bf16.mxu1 %v7565_v10  ;;  %v7575_v17 = vld [vmem:[%s9997_s0 + $0x64] ss:$16 sps:$4 sm:$0xff]   ;;  %v7579_v19 = vld [vmem:[%s9997_s0 + $0x60] ss:$16 sps:$4 sm:$0xff]  }
 0x17d   : > { %v7577_v18 = vld [vmem:[%s9997_s0 + $0x264] ss:$16 sps:$4 sm:$0xff]   ;;  %v7580_v20 = vld [vmem:[%s9997_s0 + $0x260] ss:$16 sps:$4 sm:$0xff]  }
 0x17e   : > { %5550 = vmatpush1.bf16.msra.mxu0 %v7567_v11  ;;  %v7581_v21 = vld [vmem:[%s9997_s0 + $0x44] ss:$16 sps:$4 sm:$0xff]   ;;  %v7585_v23 = vld [vmem:[%s9997_s0 + $0x40] ss:$16 sps:$4 sm:$0xff]  }
 0x17f   : > { %5591 = vmatpush1.bf16.msra.mxu1 %v7568_v12  ;;  %5551 = vmatprep.subr.bf16.mxu0 %v7569_v13  ;;  %v7583_v22 = vld [vmem:[%s9997_s0 + $0x244] ss:$16 sps:$4 sm:$0xff]   ;;  %v7586_v24 = vld [vmem:[%s9997_s0 + $0x240] ss:$16 sps:$4 sm:$0xff]  }
 0x180   : > { %5592 = vmatprep.subr.bf16.mxu1 %v7571_v14  ;;  %v7587_v25 = vld [vmem:[%s9997_s0 + $0x24] ss:$16 sps:$4 sm:$0xff]   ;;  %v7591_v27 = vld [vmem:[%s9997_s0 + $0x20] ss:$16 sps:$4 sm:$0xff]  }
 0x181   : > { %v7589_v26 = vld [vmem:[%s9997_s0 + $0x224] ss:$16 sps:$4 sm:$0xff]   ;;  %v7592_v28 = vld [vmem:[%s9997_s0 + $0x220] ss:$16 sps:$4 sm:$0xff]  }
 0x182   : > { %5552 = vmatpush1.bf16.msra.mxu0 %v7573_v15  ;;  %v7593_v29 = vld [vmem:[%s9997_s0 + $0x4] ss:$16 sps:$4 sm:$0xff]   ;;  %v7597_v31 = vld [vmem:[%s9997_s0] ss:$16 sps:$4 sm:$0xff]  }
 0x183   : > { %5593 = vmatpush1.bf16.msra.mxu1 %v7574_v16  ;;  %5553 = vmatprep.subr.bf16.mxu0 %v7575_v17  ;;  %v7595_v30 = vld [vmem:[%s9997_s0 + $0x204] ss:$16 sps:$4 sm:$0xff]   ;;  %v7598_v32 = vld [vmem:[%s9997_s0 + $0x200] ss:$16 sps:$4 sm:$0xff]  }
 0x184   : > { %5594 = vmatprep.subr.bf16.mxu1 %v7577_v18  ;;  %v7599_v33 = vld [vmem:[%s9997_s0 + $0x1e4] ss:$16 sps:$4 sm:$0xff]   ;;  %v7603_v35 = vld [vmem:[%s9997_s0 + $0x1e0] ss:$16 sps:$4 sm:$0xff]  }
 0x185   : > { %v7601_v34 = vld [vmem:[%s9997_s0 + $0x3e4] ss:$16 sps:$4 sm:$0xff]   ;;  %v7604_v36 = vld [vmem:[%s9997_s0 + $0x3e0] ss:$16 sps:$4 sm:$0xff]  }
 0x186   : > { %5554 = vmatpush1.bf16.msra.mxu0 %v7579_v19  ;;  %v7605_v37 = vld [vmem:[%s9997_s0 + $0x1c4] ss:$16 sps:$4 sm:$0xff]   ;;  %v7609_v39 = vld [vmem:[%s9997_s0 + $0x1c0] ss:$16 sps:$4 sm:$0xff]  }
 0x187   : > { %5595 = vmatpush1.bf16.msra.mxu1 %v7580_v20  ;;  %5555 = vmatprep.subr.bf16.mxu0 %v7581_v21  ;;  %v7607_v38 = vld [vmem:[%s9997_s0 + $0x3c4] ss:$16 sps:$4 sm:$0xff]   ;;  %v7610_v40 = vld [vmem:[%s9997_s0 + $0x3c0] ss:$16 sps:$4 sm:$0xff]  }
 0x188   : > { %5596 = vmatprep.subr.bf16.mxu1 %v7583_v22  ;;  %v7611_v41 = vld [vmem:[%s9997_s0 + $0x1a4] ss:$16 sps:$4 sm:$0xff]   ;;  %v7615_v43 = vld [vmem:[%s9997_s0 + $0x1a0] ss:$16 sps:$4 sm:$0xff]  }
 0x189   : > { %v7613_v42 = vld [vmem:[%s9997_s0 + $0x3a4] ss:$16 sps:$4 sm:$0xff]   ;;  %v7616_v44 = vld [vmem:[%s9997_s0 + $0x3a0] ss:$16 sps:$4 sm:$0xff]  }
 0x18a   : > { %5556 = vmatpush1.bf16.msra.mxu0 %v7585_v23  ;;  %v7617_v45 = vld [vmem:[%s9997_s0 + $0x184] ss:$16 sps:$4 sm:$0xff]   ;;  %v7621_v50 = vld [vmem:[%s9997_s0 + $0x180] ss:$16 sps:$4 sm:$0xff]  }
 0x18b   : > { %5597 = vmatpush1.bf16.msra.mxu1 %v7586_v24  ;;  %5557 = vmatprep.subr.bf16.mxu0 %v7587_v25  ;;  %v7619_v46 = vld [vmem:[%s9997_s0 + $0x384] ss:$16 sps:$4 sm:$0xff]   ;;  %v7622_v51 = vld [vmem:[%s9997_s0 + $0x380] ss:$16 sps:$4 sm:$0xff]  }
 0x18c   : > { %5598 = vmatprep.subr.bf16.mxu1 %v7589_v26  ;;  %v1625_v47 = vld [vmem:[%s9973_s8] sm:$0xff] }
 0x18d   : > { %v10047_v48 = vcombine.high %v1625_v47, %v1625_v47  ;;  %v7623_v53 = vld [vmem:[%s9997_s0 + $0x164] ss:$16 sps:$4 sm:$0xff]   ;;  %v7627_v55 = vld [vmem:[%s9997_s0 + $0x160] ss:$16 sps:$4 sm:$0xff]   ;;  %v10074_v7 = vcombine.low %v1625_v47, %v1625_v47 }
 0x18e   : > { %5558 = vmatpush1.bf16.msra.mxu0 %v7591_v27  ;;  %v7625_v54 = vld [vmem:[%s9997_s0 + $0x364] ss:$16 sps:$4 sm:$0xff]   ;;  %v7628_v56 = vld [vmem:[%s9997_s0 + $0x360] ss:$16 sps:$4 sm:$0xff]  }
 0x18f   : > { %5599 = vmatpush1.bf16.msra.mxu1 %v7592_v28  ;;  %5559 = vmatprep.subr.bf16.mxu0 %v7593_v29  ;;  %v7629_v57 = vld [vmem:[%s9997_s0 + $0x144] ss:$16 sps:$4 sm:$0xff]   ;;  %v7633_v59 = vld [vmem:[%s9997_s0 + $0x140] ss:$16 sps:$4 sm:$0xff]  }
 0x190   : > { %5600 = vmatprep.subr.bf16.mxu1 %v7595_v30  ;;  %5577 = vmatprep.mubr.bf16.mxu0 %v10047_v48  ;;  %v7631_v58 = vld [vmem:[%s9997_s0 + $0x344] ss:$16 sps:$4 sm:$0xff]   ;;  %v7634_v60 = vld [vmem:[%s9997_s0 + $0x340] ss:$16 sps:$4 sm:$0xff]  }
 0x191   : > { %v7635_v61 = vld [vmem:[%s9997_s0 + $0x124] ss:$16 sps:$4 sm:$0xff]   ;;  %v7639_v63 = vld [vmem:[%s9997_s0 + $0x120] ss:$16 sps:$4 sm:$0xff]  }
 0x192   : > { %5560 = vmatpush1.bf16.msra.mxu0 %v7597_v31  ;;  %v7637_v62 = vld [vmem:[%s9997_s0 + $0x324] ss:$16 sps:$4 sm:$0xff]   ;;  %v7640_v0 = vld [vmem:[%s9997_s0 + $0x320] ss:$16 sps:$4 sm:$0xff]  }
 0x193   : > { %5601 = vmatpush1.bf16.msra.mxu1 %v7598_v32  ;;  %5561 = vmatprep.subr.bf16.mxu0 %v7599_v33  ;;  %v7641_v1 = vld [vmem:[%s9997_s0 + $0x104] ss:$16 sps:$4 sm:$0xff]   ;;  %v7645_v3 = vld [vmem:[%s9997_s0 + $0x100] ss:$16 sps:$4 sm:$0xff]  }
 0x194   : > { %5602 = vmatprep.subr.bf16.mxu1 %v7601_v34  ;;  %v7643_v2 = vld [vmem:[%s9997_s0 + $0x304] ss:$16 sps:$4 sm:$0xff]   ;;  %v7646_v4 = vld [vmem:[%s9997_s0 + $0x300] ss:$16 sps:$4 sm:$0xff]   ;;  %v10108_v34 = vld [vmem:[%s9973_s8 + $0x18] sm:$0xff] }
 0x195   : > { %v7653_v5 = vld [vmem:[%s9997_s0 + $0x4e4] ss:$16 sps:$4 sm:$0xff]   ;;  %v7651_v9 = vld [vmem:[%s9997_s0 + $0x4e0] ss:$16 sps:$4 sm:$0xff]  }
 0x196   : > { %5562 = vmatpush2.bf16.msra.mxu0 %v7603_v35  ;;  %v7656_v6 = vld [vmem:[%s9997_s0 + $0x6e4] ss:$16 sps:$4 sm:$0xff]   ;;  %v7654_v10 = vld [vmem:[%s9997_s0 + $0x6e0] ss:$16 sps:$4 sm:$0xff]  }
 0x197   : > { %5603 = vmatpush2.bf16.msra.mxu1 %v7604_v36  ;;  %5563 = vmatprep.subr.bf16.mxu0 %v7605_v37  ;;  %v7659_v11 = vld [vmem:[%s9997_s0 + $0x4c4] ss:$16 sps:$4 sm:$0xff]   ;;  %v7657_v13 = vld [vmem:[%s9997_s0 + $0x4c0] ss:$16 sps:$4 sm:$0xff]  }
 0x198   : > { %5604 = vmatprep.subr.bf16.mxu1 %v7607_v38  ;;  %v7662_v12 = vld [vmem:[%s9997_s0 + $0x6c4] ss:$16 sps:$4 sm:$0xff]   ;;  %v7660_v14 = vld [vmem:[%s9997_s0 + $0x6c0] ss:$16 sps:$4 sm:$0xff]   ;;  %v10118_v38 = vcombine.high %v10108_v34, %v10108_v34 }
 0x199   : > { %v7665_v15 = vld [vmem:[%s9997_s0 + $0x4a4] ss:$16 sps:$4 sm:$0xff]   ;;  %v7663_v17 = vld [vmem:[%s9997_s0 + $0x4a0] ss:$16 sps:$4 sm:$0xff]  }
 0x19a   : > { %5564 = vmatpush2.bf16.msra.mxu0 %v7609_v39  ;;  %v7668_v16 = vld [vmem:[%s9997_s0 + $0x6a4] ss:$16 sps:$4 sm:$0xff]   ;;  %v7666_v18 = vld [vmem:[%s9997_s0 + $0x6a0] ss:$16 sps:$4 sm:$0xff]  }
 0x19b   : > { %5605 = vmatpush2.bf16.msra.mxu1 %v7610_v40  ;;  %5565 = vmatprep.subr.bf16.mxu0 %v7611_v41  ;;  %v7671_v19 = vld [vmem:[%s9997_s0 + $0x484] ss:$16 sps:$4 sm:$0xff]   ;;  %v7669_v21 = vld [vmem:[%s9997_s0 + $0x480] ss:$16 sps:$4 sm:$0xff]  }
 0x19c   : > { %5606 = vmatprep.subr.bf16.mxu1 %v7613_v42  ;;  %v7674_v20 = vld [vmem:[%s9997_s0 + $0x684] ss:$16 sps:$4 sm:$0xff]   ;;  %v7672_v22 = vld [vmem:[%s9997_s0 + $0x680] ss:$16 sps:$4 sm:$0xff]  }
 0x19d   : > { %v7677_v23 = vld [vmem:[%s9997_s0 + $0x464] ss:$16 sps:$4 sm:$0xff]   ;;  %v7675_v25 = vld [vmem:[%s9997_s0 + $0x460] ss:$16 sps:$4 sm:$0xff]  }
 0x19e   : > { %5566 = vmatpush2.bf16.msra.mxu0 %v7615_v43  ;;  %v7680_v24 = vld [vmem:[%s9997_s0 + $0x664] ss:$16 sps:$4 sm:$0xff]   ;;  %v7678_v26 = vld [vmem:[%s9997_s0 + $0x660] ss:$16 sps:$4 sm:$0xff]  }
 0x19f   : > { %5607 = vmatpush2.bf16.msra.mxu1 %v7616_v44  ;;  %5567 = vmatprep.subr.bf16.mxu0 %v7617_v45  ;;  %v7683_v27 = vld [vmem:[%s9997_s0 + $0x444] ss:$16 sps:$4 sm:$0xff]   ;;  %v7681_v29 = vld [vmem:[%s9997_s0 + $0x440] ss:$16 sps:$4 sm:$0xff]  }
 0x1a0   : > { %5608 = vmatprep.subr.bf16.mxu1 %v7619_v46  ;;  %v7686_v28 = vld [vmem:[%s9997_s0 + $0x644] ss:$16 sps:$4 sm:$0xff]   ;;  %v7684_v30 = vld [vmem:[%s9997_s0 + $0x640] ss:$16 sps:$4 sm:$0xff]  }
 0x1a1   : > { %v7689_v31 = vld [vmem:[%s9997_s0 + $0x424] ss:$16 sps:$4 sm:$0xff]   ;;  %v7687_v35 = vld [vmem:[%s9997_s0 + $0x420] ss:$16 sps:$4 sm:$0xff]  }
 0x1a2   : > { %5568 = vmatpush2.bf16.msra.mxu0 %v7621_v50  ;;  %v7692_v32 = vld [vmem:[%s9997_s0 + $0x624] ss:$16 sps:$4 sm:$0xff]   ;;  %v7690_v36 = vld [vmem:[%s9997_s0 + $0x620] ss:$16 sps:$4 sm:$0xff]  }
 0x1a3   : > { %5609 = vmatpush2.bf16.msra.mxu1 %v7622_v51  ;;  %5569 = vmatprep.subr.bf16.mxu0 %v7623_v53  ;;  %v10105_v33 = vld [vmem:[%s9973_s8 + $0x10] sm:$0xff] }
 0x1a4   : > { %5610 = vmatprep.subr.bf16.mxu1 %v7625_v54  ;;  %v10114_v37 = vcombine.high %v10105_v33, %v10105_v33  ;;  %v7695_v39 = vld [vmem:[%s9997_s0 + $0x404] ss:$16 sps:$4 sm:$0xff]   ;;  %v7693_v41 = vld [vmem:[%s9997_s0 + $0x400] ss:$16 sps:$4 sm:$0xff]  }
 0x1a5   : > { %v7698_v40 = vld [vmem:[%s9997_s0 + $0x604] ss:$16 sps:$4 sm:$0xff]   ;;  %v7696_v42 = vld [vmem:[%s9997_s0 + $0x600] ss:$16 sps:$4 sm:$0xff]  }
 0x1a6   : > { %5570 = vmatpush2.bf16.msra.mxu0 %v7627_v55  ;;  %v7701_v43 = vld [vmem:[%s9997_s0 + $0x5e4] ss:$16 sps:$4 sm:$0xff]   ;;  %v7699_v45 = vld [vmem:[%s9997_s0 + $0x5e0] ss:$16 sps:$4 sm:$0xff]  }
 0x1a7   : > { %5611 = vmatpush2.bf16.msra.mxu1 %v7628_v56  ;;  %5571 = vmatprep.subr.bf16.mxu0 %v7629_v57  ;;  %v7704_v44 = vld [vmem:[%s9997_s0 + $0x7e4] ss:$16 sps:$4 sm:$0xff]   ;;  %v7702_v46 = vld [vmem:[%s9997_s0 + $0x7e0] ss:$16 sps:$4 sm:$0xff]  }
 0x1a8   : > { %5612 = vmatprep.subr.bf16.mxu1 %v7631_v58  ;;  %v7707_v47 = vld [vmem:[%s9997_s0 + $0x5c4] ss:$16 sps:$4 sm:$0xff]   ;;  %v7705_v50 = vld [vmem:[%s9997_s0 + $0x5c0] ss:$16 sps:$4 sm:$0xff]  }
 0x1a9   : > { %v7710_v49 = vld [vmem:[%s9997_s0 + $0x7c4] ss:$16 sps:$4 sm:$0xff]   ;;  %v7708_v51 = vld [vmem:[%s9997_s0 + $0x7c0] ss:$16 sps:$4 sm:$0xff]  }
 0x1aa   : > { %5572 = vmatpush2.bf16.msra.mxu0 %v7633_v59  ;;  %v7713_v53 = vld [vmem:[%s9997_s0 + $0x5a4] ss:$16 sps:$4 sm:$0xff]   ;;  %v7711_v55 = vld [vmem:[%s9997_s0 + $0x5a0] ss:$16 sps:$4 sm:$0xff]  }
 0x1ab   : > { %5613 = vmatpush2.bf16.msra.mxu1 %v7634_v60  ;;  %5573 = vmatprep.subr.bf16.mxu0 %v7635_v61  ;;  %v7716_v54 = vld [vmem:[%s9997_s0 + $0x7a4] ss:$16 sps:$4 sm:$0xff]   ;;  %v7714_v56 = vld [vmem:[%s9997_s0 + $0x7a0] ss:$16 sps:$4 sm:$0xff]  }
 0x1ac   : > { %5614 = vmatprep.subr.bf16.mxu1 %v7637_v62  ;;  %v7719_v57 = vld [vmem:[%s9997_s0 + $0x584] ss:$16 sps:$4 sm:$0xff]   ;;  %v7717_v59 = vld [vmem:[%s9997_s0 + $0x580] ss:$16 sps:$4 sm:$0xff]  }
 0x1ad   : > { %v7722_v58 = vld [vmem:[%s9997_s0 + $0x784] ss:$16 sps:$4 sm:$0xff]   ;;  %v7720_v60 = vld [vmem:[%s9997_s0 + $0x780] ss:$16 sps:$4 sm:$0xff]  }
 0x1ae   : > { %5574 = vmatpush2.bf16.msra.mxu0 %v7639_v63  ;;  %v7725_v61 = vld [vmem:[%s9997_s0 + $0x564] ss:$16 sps:$4 sm:$0xff]   ;;  %v7723_v63 = vld [vmem:[%s9997_s0 + $0x560] ss:$16 sps:$4 sm:$0xff]  }
 0x1af   : > { %5615 = vmatpush2.bf16.msra.mxu1 %v7640_v0  ;;  %5575 = vmatprep.subr.bf16.mxu0 %v7641_v1  ;;  %v7728_v62 = vld [vmem:[%s9997_s0 + $0x764] ss:$16 sps:$4 sm:$0xff]   ;;  %v7726_v0 = vld [vmem:[%s9997_s0 + $0x760] ss:$16 sps:$4 sm:$0xff]  }
 0x1b0   : > { %5616 = vmatprep.subr.bf16.mxu1 %v7643_v2  ;;  %v7731_v1 = vld [vmem:[%s9997_s0 + $0x544] ss:$16 sps:$4 sm:$0xff]  }
 0x1b1   : > { %v7734_v2 = vld [vmem:[%s9997_s0 + $0x744] ss:$16 sps:$4 sm:$0xff]  }
 0x1b2   : > { %5576 = vmatpush2.bf16.msra.mxu0 %v7645_v3  ;;  %v7729_v3 = vld [vmem:[%s9997_s0 + $0x540] ss:$16 sps:$4 sm:$0xff]  }
 0x1b3   : > { %5617 = vmatpush2.bf16.msra.mxu1 %v7646_v4  ;;  %5627 = vmatprep.subr.bf16.mxu0 %v7653_v5  ;;  %v7732_v4 = vld [vmem:[%s9997_s0 + $0x740] ss:$16 sps:$4 sm:$0xff]   ;;  %v7737_v5 = vld [vmem:[%s9997_s0 + $0x524] ss:$16 sps:$4 sm:$0xff]  }
 0x1b4   : > { %5668 = vmatprep.subr.bf16.mxu1 %v7656_v6  ;;  %v7740_v6 = vld [vmem:[%s9997_s0 + $0x724] ss:$16 sps:$4 sm:$0xff]  }
 0x1b5   : > { %5578 = vmatmul.mubr.bf16.vlgmr.msra.gmra.mxu0 %v10074_v7 }
 0x1b6   : > { %5619 = vmatmul.mubr.bf16.vlgmr.msra.gmra.mxu1 %v10076_v8  ;;  %5628 = vmatpush1.bf16.msra.mxu0 %v7651_v9  ;;  %v7735_v9 = vld [vmem:[%s9997_s0 + $0x520] ss:$16 sps:$4 sm:$0xff]  }
 0x1b7   : > { %5669 = vmatpush1.bf16.msra.mxu1 %v7654_v10  ;;  %5629 = vmatprep.subr.bf16.mxu0 %v7659_v11  ;;  %v7738_v10 = vld [vmem:[%s9997_s0 + $0x720] ss:$16 sps:$4 sm:$0xff]   ;;  %v7743_v11 = vld [vmem:[%s9997_s0 + $0x504] ss:$16 sps:$4 sm:$0xff]  }
 0x1b8   : > { %5670 = vmatprep.subr.bf16.mxu1 %v7662_v12  ;;  %5659 = vmatprep.mubr.bf16.mxu0 %v10114_v37  ;;  %v7746_v12 = vld [vmem:[%s9997_s0 + $0x704] ss:$16 sps:$4 sm:$0xff]  }
 0x1b9   : > { %5700 = vmatprep.mubr.bf16.mxu1 %v10118_v38 }
 0x1ba   : > { %5630 = vmatpush1.bf16.msra.mxu0 %v7657_v13  ;;  %v7741_v13 = vld [vmem:[%s9997_s0 + $0x500] ss:$16 sps:$4 sm:$0xff]  }
 0x1bb   : > { %5671 = vmatpush1.bf16.msra.mxu1 %v7660_v14  ;;  %5631 = vmatprep.subr.bf16.mxu0 %v7665_v15  ;;  %v7744_v14 = vld [vmem:[%s9997_s0 + $0x700] ss:$16 sps:$4 sm:$0xff]   ;;  %v7753_v15 = vld [vmem:[%s9997_s0 + $0x8e4] ss:$16 sps:$4 sm:$0xff]  }
 0x1bc   : > { %5672 = vmatprep.subr.bf16.mxu1 %v7668_v16  ;;  %v7756_v16 = vld [vmem:[%s9997_s0 + $0xae4] ss:$16 sps:$4 sm:$0xff]  }
 0x1be   : > { %5632 = vmatpush1.bf16.msra.mxu0 %v7663_v17  ;;  %v10162_v17 = vcombine.low %v10105_v33, %v10105_v33  ;;  %v7771_v33 = vld [vmem:[%s9997_s0 + $0x884] ss:$16 sps:$4 sm:$0xff]  }
 0x1bf   : > { %5673 = vmatpush1.bf16.msra.mxu1 %v7666_v18  ;;  %5633 = vmatprep.subr.bf16.mxu0 %v7671_v19  ;;  %v10166_v18 = vcombine.low %v10108_v34, %v10108_v34  ;;  %v7751_v19 = vld [vmem:[%s9997_s0 + $0x8e0] ss:$16 sps:$4 sm:$0xff]   ;;  %v7774_v34 = vld [vmem:[%s9997_s0 + $0xa84] ss:$16 sps:$4 sm:$0xff]  }
 0x1c0   : > { %5674 = vmatprep.subr.bf16.mxu1 %v7674_v20  ;;  %v7754_v20 = vld [vmem:[%s9997_s0 + $0xae0] ss:$16 sps:$4 sm:$0xff]  }
 0x1c2   : > { %5634 = vmatpush1.bf16.msra.mxu0 %v7669_v21  ;;  %v7759_v21 = vld [vmem:[%s9997_s0 + $0x8c4] ss:$16 sps:$4 sm:$0xff]  }
 0x1c3   : > { %5675 = vmatpush1.bf16.msra.mxu1 %v7672_v22  ;;  %5635 = vmatprep.subr.bf16.mxu0 %v7677_v23  ;;  %v7762_v22 = vld [vmem:[%s9997_s0 + $0xac4] ss:$16 sps:$4 sm:$0xff]  }
 0x1c4   : > { %5676 = vmatprep.subr.bf16.mxu1 %v7680_v24  ;;  %v10173_v23 = vld [vmem:[%s9973_s8 + $0x20] sm:$0xff]  ;;  %v10176_v24 = vld [vmem:[%s9973_s8 + $0x28] sm:$0xff] }
 0x1c6   : > { %5636 = vmatpush1.bf16.msra.mxu0 %v7675_v25  ;;  %v10180_v25 = vcombine.high %v10173_v23, %v10173_v23 }
 0x1c7   : > { %5677 = vmatpush1.bf16.msra.mxu1 %v7678_v26  ;;  %5637 = vmatprep.subr.bf16.mxu0 %v7683_v27  ;;  %v10184_v26 = vcombine.high %v10176_v24, %v10176_v24  ;;  %v7757_v27 = vld [vmem:[%s9997_s0 + $0x8c0] ss:$16 sps:$4 sm:$0xff]  }
 0x1c8   : > { %5678 = vmatprep.subr.bf16.mxu1 %v7686_v28  ;;  %v7760_v28 = vld [vmem:[%s9997_s0 + $0xac0] ss:$16 sps:$4 sm:$0xff]  }
 0x1ca   : > { %5638 = vmatpush1.bf16.msra.mxu0 %v7681_v29  ;;  %v7765_v29 = vld [vmem:[%s9997_s0 + $0x8a4] ss:$16 sps:$4 sm:$0xff]  }
 0x1cb   : > { %5679 = vmatpush1.bf16.msra.mxu1 %v7684_v30  ;;  %5639 = vmatprep.subr.bf16.mxu0 %v7689_v31  ;;  %v7768_v30 = vld [vmem:[%s9997_s0 + $0xaa4] ss:$16 sps:$4 sm:$0xff]   ;;  %v7763_v31 = vld [vmem:[%s9997_s0 + $0x8a0] ss:$16 sps:$4 sm:$0xff]  }
 0x1cc   : > { %5680 = vmatprep.subr.bf16.mxu1 %v7692_v32  ;;  %v7766_v32 = vld [vmem:[%s9997_s0 + $0xaa0] ss:$16 sps:$4 sm:$0xff]  }
 0x1ce   : > { %5640 = vmatpush1.bf16.msra.mxu0 %v7687_v35  ;;  %v7769_v35 = vld [vmem:[%s9997_s0 + $0x880] ss:$16 sps:$4 sm:$0xff]  }
 0x1cf   : > { %5681 = vmatpush1.bf16.msra.mxu1 %v7690_v36  ;;  %5641 = vmatprep.subr.bf16.mxu0 %v7695_v39  ;;  %v7772_v36 = vld [vmem:[%s9997_s0 + $0xa80] ss:$16 sps:$4 sm:$0xff]   ;;  %v7777_v39 = vld [vmem:[%s9997_s0 + $0x864] ss:$16 sps:$4 sm:$0xff]  }
 0x1d0   : > { %5682 = vmatprep.subr.bf16.mxu1 %v7698_v40  ;;  %v7780_v40 = vld [vmem:[%s9997_s0 + $0xa64] ss:$16 sps:$4 sm:$0xff]  }
 0x1d2   : > { %5642 = vmatpush1.bf16.msra.mxu0 %v7693_v41  ;;  %v7775_v41 = vld [vmem:[%s9997_s0 + $0x860] ss:$16 sps:$4 sm:$0xff]  }
 0x1d3   : > { %5683 = vmatpush1.bf16.msra.mxu1 %v7696_v42  ;;  %5643 = vmatprep.subr.bf16.mxu0 %v7701_v43  ;;  %v7778_v42 = vld [vmem:[%s9997_s0 + $0xa60] ss:$16 sps:$4 sm:$0xff]   ;;  %v7783_v43 = vld [vmem:[%s9997_s0 + $0x844] ss:$16 sps:$4 sm:$0xff]  }
 0x1d4   : > { %5684 = vmatprep.subr.bf16.mxu1 %v7704_v44  ;;  %v7786_v44 = vld [vmem:[%s9997_s0 + $0xa44] ss:$16 sps:$4 sm:$0xff]  }
 0x1d6   : > { %5644 = vmatpush2.bf16.msra.mxu0 %v7699_v45  ;;  %v7781_v45 = vld [vmem:[%s9997_s0 + $0x840] ss:$16 sps:$4 sm:$0xff]  }
 0x1d7   : > { %5685 = vmatpush2.bf16.msra.mxu1 %v7702_v46  ;;  %5645 = vmatprep.subr.bf16.mxu0 %v7707_v47  ;;  %v7784_v46 = vld [vmem:[%s9997_s0 + $0xa40] ss:$16 sps:$4 sm:$0xff]   ;;  %v7789_v47 = vld [vmem:[%s9997_s0 + $0x824] ss:$16 sps:$4 sm:$0xff]  }
 0x1d8   : > { %5686 = vmatprep.subr.bf16.mxu1 %v7710_v49  ;;  %v7792_v49 = vld [vmem:[%s9997_s0 + $0xa24] ss:$16 sps:$4 sm:$0xff]  }
 0x1da   : > { %5646 = vmatpush2.bf16.msra.mxu0 %v7705_v50  ;;  %v7787_v50 = vld [vmem:[%s9997_s0 + $0x820] ss:$16 sps:$4 sm:$0xff]  }
 0x1db   : > { %5687 = vmatpush2.bf16.msra.mxu1 %v7708_v51  ;;  %5647 = vmatprep.subr.bf16.mxu0 %v7713_v53  ;;  %v7790_v51 = vld [vmem:[%s9997_s0 + $0xa20] ss:$16 sps:$4 sm:$0xff]   ;;  %v7795_v53 = vld [vmem:[%s9997_s0 + $0x804] ss:$16 sps:$4 sm:$0xff]  }
 0x1dc   : > { %5688 = vmatprep.subr.bf16.mxu1 %v7716_v54  ;;  %v7798_v54 = vld [vmem:[%s9997_s0 + $0xa04] ss:$16 sps:$4 sm:$0xff]  }
 0x1de   : > { %5648 = vmatpush2.bf16.msra.mxu0 %v7711_v55  ;;  %v7793_v55 = vld [vmem:[%s9997_s0 + $0x800] ss:$16 sps:$4 sm:$0xff]  }
 0x1df   : > { %5689 = vmatpush2.bf16.msra.mxu1 %v7714_v56  ;;  %5649 = vmatprep.subr.bf16.mxu0 %v7719_v57  ;;  %v7796_v56 = vld [vmem:[%s9997_s0 + $0xa00] ss:$16 sps:$4 sm:$0xff]   ;;  %v7801_v57 = vld [vmem:[%s9997_s0 + $0x9e4] ss:$16 sps:$4 sm:$0xff]  }
 0x1e0   : > { %5690 = vmatprep.subr.bf16.mxu1 %v7722_v58  ;;  %v7804_v58 = vld [vmem:[%s9997_s0 + $0xbe4] ss:$16 sps:$4 sm:$0xff]  }
 0x1e2   : > { %5650 = vmatpush2.bf16.msra.mxu0 %v7717_v59  ;;  %v7799_v59 = vld [vmem:[%s9997_s0 + $0x9e0] ss:$16 sps:$4 sm:$0xff]  }
 0x1e3   : > { %5691 = vmatpush2.bf16.msra.mxu1 %v7720_v60  ;;  %5651 = vmatprep.subr.bf16.mxu0 %v7725_v61  ;;  %v7802_v60 = vld [vmem:[%s9997_s0 + $0xbe0] ss:$16 sps:$4 sm:$0xff]   ;;  %v7807_v61 = vld [vmem:[%s9997_s0 + $0x9c4] ss:$16 sps:$4 sm:$0xff]  }
 0x1e4   : > { %5692 = vmatprep.subr.bf16.mxu1 %v7728_v62  ;;  %v7810_v62 = vld [vmem:[%s9997_s0 + $0xbc4] ss:$16 sps:$4 sm:$0xff]  }
 0x1e6   : > { %5652 = vmatpush2.bf16.msra.mxu0 %v7723_v63  ;;  %v7805_v63 = vld [vmem:[%s9997_s0 + $0x9c0] ss:$16 sps:$4 sm:$0xff]  }
 0x1e7   : > { %5693 = vmatpush2.bf16.msra.mxu1 %v7726_v0  ;;  %5653 = vmatprep.subr.bf16.mxu0 %v7731_v1  ;;  %v7808_v0 = vld [vmem:[%s9997_s0 + $0xbc0] ss:$16 sps:$4 sm:$0xff]   ;;  %v7813_v1 = vld [vmem:[%s9997_s0 + $0x9a4] ss:$16 sps:$4 sm:$0xff]  }
 0x1e8   : > { %5694 = vmatprep.subr.bf16.mxu1 %v7734_v2  ;;  %v7816_v2 = vld [vmem:[%s9997_s0 + $0xba4] ss:$16 sps:$4 sm:$0xff]  }
 0x1ea   : > { %5654 = vmatpush2.bf16.msra.mxu0 %v7729_v3  ;;  %v7811_v3 = vld [vmem:[%s9997_s0 + $0x9a0] ss:$16 sps:$4 sm:$0xff]  }
 0x1eb   : > { %5695 = vmatpush2.bf16.msra.mxu1 %v7732_v4  ;;  %5655 = vmatprep.subr.bf16.mxu0 %v7737_v5  ;;  %v7814_v4 = vld [vmem:[%s9997_s0 + $0xba0] ss:$16 sps:$4 sm:$0xff]   ;;  %v7819_v5 = vld [vmem:[%s9997_s0 + $0x984] ss:$16 sps:$4 sm:$0xff]  }
 0x1ec   : > { %5696 = vmatprep.subr.bf16.mxu1 %v7740_v6  ;;  %v7822_v6 = vld [vmem:[%s9997_s0 + $0xb84] ss:$16 sps:$4 sm:$0xff]  }
 0x1ee   : > { %5656 = vmatpush2.bf16.msra.mxu0 %v7735_v9  ;;  %v7817_v9 = vld [vmem:[%s9997_s0 + $0x980] ss:$16 sps:$4 sm:$0xff]  }
 0x1ef   : > { %5697 = vmatpush2.bf16.msra.mxu1 %v7738_v10  ;;  %5657 = vmatprep.subr.bf16.mxu0 %v7743_v11  ;;  %v7820_v10 = vld [vmem:[%s9997_s0 + $0xb80] ss:$16 sps:$4 sm:$0xff]   ;;  %v7825_v11 = vld [vmem:[%s9997_s0 + $0x964] ss:$16 sps:$4 sm:$0xff]  }
 0x1f0   : > { %5698 = vmatprep.subr.bf16.mxu1 %v7746_v12  ;;  %v7828_v12 = vld [vmem:[%s9997_s0 + $0xb64] ss:$16 sps:$4 sm:$0xff]  }
 0x1f2   : > { %5658 = vmatpush2.bf16.msra.mxu0 %v7741_v13  ;;  %v7823_v13 = vld [vmem:[%s9997_s0 + $0x960] ss:$16 sps:$4 sm:$0xff]  }
 0x1f3   : > { %5699 = vmatpush2.bf16.msra.mxu1 %v7744_v14  ;;  %5709 = vmatprep.subr.bf16.mxu0 %v7753_v15  ;;  %v7826_v14 = vld [vmem:[%s9997_s0 + $0xb60] ss:$16 sps:$4 sm:$0xff]   ;;  %v7831_v15 = vld [vmem:[%s9997_s0 + $0x944] ss:$16 sps:$4 sm:$0xff]  }
 0x1f4   : > { %5750 = vmatprep.subr.bf16.mxu1 %v7756_v16  ;;  %v7834_v16 = vld [vmem:[%s9997_s0 + $0xb44] ss:$16 sps:$4 sm:$0xff]  }
 0x1f5   : > { %5660 = vmatmul.mubr.bf16.vlgmr.msra.gmra.mxu0 %v10162_v17 }
 0x1f6   : > { %5701 = vmatmul.mubr.bf16.vlgmr.msra.gmra.mxu1 %v10166_v18  ;;  %5710 = vmatpush1.bf16.msra.mxu0 %v7751_v19  ;;  %v7829_v19 = vld [vmem:[%s9997_s0 + $0x940] ss:$16 sps:$4 sm:$0xff]  }
 0x1f7   : > { %5751 = vmatpush1.bf16.msra.mxu1 %v7754_v20  ;;  %5711 = vmatprep.subr.bf16.mxu0 %v7759_v21  ;;  %v7832_v20 = vld [vmem:[%s9997_s0 + $0xb40] ss:$16 sps:$4 sm:$0xff]   ;;  %v7837_v21 = vld [vmem:[%s9997_s0 + $0x924] ss:$16 sps:$4 sm:$0xff]  }
 0x1f8   : > { %5752 = vmatprep.subr.bf16.mxu1 %v7762_v22  ;;  %5741 = vmatprep.mubr.bf16.mxu0 %v10180_v25  ;;  %v7840_v22 = vld [vmem:[%s9997_s0 + $0xb24] ss:$16 sps:$4 sm:$0xff]  }
 0x1f9   : > { %5782 = vmatprep.mubr.bf16.mxu1 %v10184_v26 }
 0x1fa   : > { %5712 = vmatpush1.bf16.msra.mxu0 %v7757_v27  ;;  %v7835_v27 = vld [vmem:[%s9997_s0 + $0x920] ss:$16 sps:$4 sm:$0xff]  }
 0x1fb   : > { %5753 = vmatpush1.bf16.msra.mxu1 %v7760_v28  ;;  %5713 = vmatprep.subr.bf16.mxu0 %v7765_v29  ;;  %v7838_v28 = vld [vmem:[%s9997_s0 + $0xb20] ss:$16 sps:$4 sm:$0xff]   ;;  %v7843_v29 = vld [vmem:[%s9997_s0 + $0x904] ss:$16 sps:$4 sm:$0xff]  }
 0x1fc   : > { %5754 = vmatprep.subr.bf16.mxu1 %v7768_v30  ;;  %v7846_v30 = vld [vmem:[%s9997_s0 + $0xb04] ss:$16 sps:$4 sm:$0xff]  }
 0x1fe   : > { %5714 = vmatpush1.bf16.msra.mxu0 %v7763_v31  ;;  %v7841_v31 = vld [vmem:[%s9997_s0 + $0x900] ss:$16 sps:$4 sm:$0xff]  }
 0x1ff   : > { %5755 = vmatpush1.bf16.msra.mxu1 %v7766_v32  ;;  %5715 = vmatprep.subr.bf16.mxu0 %v7771_v33  ;;  %v7844_v32 = vld [vmem:[%s9997_s0 + $0xb00] ss:$16 sps:$4 sm:$0xff]   ;;  %v7853_v33 = vld [vmem:[%s9997_s0 + $0xce4] ss:$16 sps:$4 sm:$0xff]  }
 0x200   : > { %5756 = vmatprep.subr.bf16.mxu1 %v7774_v34  ;;  %v7856_v34 = vld [vmem:[%s9997_s0 + $0xee4] ss:$16 sps:$4 sm:$0xff]  }
 0x202   : > { %5716 = vmatpush1.bf16.msra.mxu0 %v7769_v35  ;;  %v7851_v35 = vld [vmem:[%s9997_s0 + $0xce0] ss:$16 sps:$4 sm:$0xff]  }
 0x203   : > { %5757 = vmatpush1.bf16.msra.mxu1 %v7772_v36  ;;  %5717 = vmatprep.subr.bf16.mxu0 %v7777_v39  ;;  %v7854_v36 = vld [vmem:[%s9997_s0 + $0xee0] ss:$16 sps:$4 sm:$0xff]   ;;  %v10254_v39 = vcombine.low %v10173_v23, %v10173_v23 }
 0x204   : > { %5758 = vmatprep.subr.bf16.mxu1 %v7780_v40  ;;  %v10258_v40 = vcombine.low %v10176_v24, %v10176_v24 }
 0x206   : > { %5718 = vmatpush1.bf16.msra.mxu0 %v7775_v41  ;;  %v10261_v41 = vld [vmem:[%s9973_s8 + $0x30] sm:$0xff] }
 0x207   : > { %5759 = vmatpush1.bf16.msra.mxu1 %v7778_v42  ;;  %5719 = vmatprep.subr.bf16.mxu0 %v7783_v43  ;;  %v10264_v42 = vld [vmem:[%s9973_s8 + $0x38] sm:$0xff]  ;;  %v7859_v43 = vld [vmem:[%s9997_s0 + $0xcc4] ss:$16 sps:$4 sm:$0xff]   ;;  %v10270_v23 = vcombine.high %v10261_v41, %v10261_v41 }
 0x208   : > { %5760 = vmatprep.subr.bf16.mxu1 %v7786_v44  ;;  %v7862_v44 = vld [vmem:[%s9997_s0 + $0xec4] ss:$16 sps:$4 sm:$0xff]   ;;  %v10274_v24 = vcombine.high %v10264_v42, %v10264_v42 }
 0x20a   : > { %5720 = vmatpush1.bf16.msra.mxu0 %v7781_v45  ;;  %v7857_v45 = vld [vmem:[%s9997_s0 + $0xcc0] ss:$16 sps:$4 sm:$0xff]  }
 0x20b   : > { %5761 = vmatpush1.bf16.msra.mxu1 %v7784_v46  ;;  %5721 = vmatprep.subr.bf16.mxu0 %v7789_v47  ;;  %v7860_v46 = vld [vmem:[%s9997_s0 + $0xec0] ss:$16 sps:$4 sm:$0xff]   ;;  %v7865_v47 = vld [vmem:[%s9997_s0 + $0xca4] ss:$16 sps:$4 sm:$0xff]  }
 0x20c   : > { %5762 = vmatprep.subr.bf16.mxu1 %v7792_v49  ;;  %v7868_v49 = vld [vmem:[%s9997_s0 + $0xea4] ss:$16 sps:$4 sm:$0xff]  }
 0x20e   : > { %5722 = vmatpush1.bf16.msra.mxu0 %v7787_v50  ;;  %v7863_v50 = vld [vmem:[%s9997_s0 + $0xca0] ss:$16 sps:$4 sm:$0xff]  }
 0x20f   : > { %5763 = vmatpush1.bf16.msra.mxu1 %v7790_v51  ;;  %5723 = vmatprep.subr.bf16.mxu0 %v7795_v53  ;;  %v7866_v51 = vld [vmem:[%s9997_s0 + $0xea0] ss:$16 sps:$4 sm:$0xff]   ;;  %v7871_v53 = vld [vmem:[%s9997_s0 + $0xc84] ss:$16 sps:$4 sm:$0xff]  }
 0x210   : > { %5764 = vmatprep.subr.bf16.mxu1 %v7798_v54  ;;  %v7874_v54 = vld [vmem:[%s9997_s0 + $0xe84] ss:$16 sps:$4 sm:$0xff]  }
 0x212   : > { %5724 = vmatpush1.bf16.msra.mxu0 %v7793_v55  ;;  %v7869_v55 = vld [vmem:[%s9997_s0 + $0xc80] ss:$16 sps:$4 sm:$0xff]  }
 0x213   : > { %5765 = vmatpush1.bf16.msra.mxu1 %v7796_v56  ;;  %5725 = vmatprep.subr.bf16.mxu0 %v7801_v57  ;;  %v7872_v56 = vld [vmem:[%s9997_s0 + $0xe80] ss:$16 sps:$4 sm:$0xff]   ;;  %v7877_v57 = vld [vmem:[%s9997_s0 + $0xc64] ss:$16 sps:$4 sm:$0xff]  }
 0x214   : > { %5766 = vmatprep.subr.bf16.mxu1 %v7804_v58  ;;  %v7880_v58 = vld [vmem:[%s9997_s0 + $0xe64] ss:$16 sps:$4 sm:$0xff]  }
 0x216   : > { %5726 = vmatpush2.bf16.msra.mxu0 %v7799_v59  ;;  %v7875_v59 = vld [vmem:[%s9997_s0 + $0xc60] ss:$16 sps:$4 sm:$0xff]  }
 0x217   : > { %5767 = vmatpush2.bf16.msra.mxu1 %v7802_v60  ;;  %5727 = vmatprep.subr.bf16.mxu0 %v7807_v61  ;;  %v7878_v60 = vld [vmem:[%s9997_s0 + $0xe60] ss:$16 sps:$4 sm:$0xff]   ;;  %v7883_v61 = vld [vmem:[%s9997_s0 + $0xc44] ss:$16 sps:$4 sm:$0xff]  }
 0x218   : > { %5768 = vmatprep.subr.bf16.mxu1 %v7810_v62  ;;  %v7886_v62 = vld [vmem:[%s9997_s0 + $0xe44] ss:$16 sps:$4 sm:$0xff]  }
 0x21a   : > { %5728 = vmatpush2.bf16.msra.mxu0 %v7805_v63  ;;  %v7881_v63 = vld [vmem:[%s9997_s0 + $0xc40] ss:$16 sps:$4 sm:$0xff]  }
 0x21b   : > { %5769 = vmatpush2.bf16.msra.mxu1 %v7808_v0  ;;  %5729 = vmatprep.subr.bf16.mxu0 %v7813_v1  ;;  %v7884_v0 = vld [vmem:[%s9997_s0 + $0xe40] ss:$16 sps:$4 sm:$0xff]   ;;  %v7889_v1 = vld [vmem:[%s9997_s0 + $0xc24] ss:$16 sps:$4 sm:$0xff]  }
 0x21c   : > { %5770 = vmatprep.subr.bf16.mxu1 %v7816_v2  ;;  %v7892_v2 = vld [vmem:[%s9997_s0 + $0xe24] ss:$16 sps:$4 sm:$0xff]  }
 0x21e   : > { %5730 = vmatpush2.bf16.msra.mxu0 %v7811_v3  ;;  %v7887_v3 = vld [vmem:[%s9997_s0 + $0xc20] ss:$16 sps:$4 sm:$0xff]  }
 0x21f   : > { %5771 = vmatpush2.bf16.msra.mxu1 %v7814_v4  ;;  %5731 = vmatprep.subr.bf16.mxu0 %v7819_v5  ;;  %v7890_v4 = vld [vmem:[%s9997_s0 + $0xe20] ss:$16 sps:$4 sm:$0xff]   ;;  %v7895_v5 = vld [vmem:[%s9997_s0 + $0xc04] ss:$16 sps:$4 sm:$0xff]  }
 0x220   : > { %5772 = vmatprep.subr.bf16.mxu1 %v7822_v6  ;;  %v7898_v6 = vld [vmem:[%s9997_s0 + $0xe04] ss:$16 sps:$4 sm:$0xff]  }
 0x222   : > { %5732 = vmatpush2.bf16.msra.mxu0 %v7817_v9  ;;  %v7893_v9 = vld [vmem:[%s9997_s0 + $0xc00] ss:$16 sps:$4 sm:$0xff]  }
 0x223   : > { %5773 = vmatpush2.bf16.msra.mxu1 %v7820_v10  ;;  %5733 = vmatprep.subr.bf16.mxu0 %v7825_v11  ;;  %v7896_v10 = vld [vmem:[%s9997_s0 + $0xe00] ss:$16 sps:$4 sm:$0xff]   ;;  %v7901_v11 = vld [vmem:[%s9997_s0 + $0xde4] ss:$16 sps:$4 sm:$0xff]  }
 0x224   : > { %5774 = vmatprep.subr.bf16.mxu1 %v7828_v12  ;;  %v7904_v12 = vld [vmem:[%s9997_s0 + $0xfe4] ss:$16 sps:$4 sm:$0xff]  }
 0x226   : > { %5734 = vmatpush2.bf16.msra.mxu0 %v7823_v13  ;;  %v7899_v13 = vld [vmem:[%s9997_s0 + $0xde0] ss:$16 sps:$4 sm:$0xff]  }
 0x227   : > { %5775 = vmatpush2.bf16.msra.mxu1 %v7826_v14  ;;  %5735 = vmatprep.subr.bf16.mxu0 %v7831_v15  ;;  %v7902_v14 = vld [vmem:[%s9997_s0 + $0xfe0] ss:$16 sps:$4 sm:$0xff]   ;;  %v7907_v15 = vld [vmem:[%s9997_s0 + $0xdc4] ss:$16 sps:$4 sm:$0xff]  }
 0x228   : > { %5776 = vmatprep.subr.bf16.mxu1 %v7834_v16  ;;  %v7910_v16 = vld [vmem:[%s9997_s0 + $0xfc4] ss:$16 sps:$4 sm:$0xff]  }
 0x22a   : > { %5736 = vmatpush2.bf16.msra.mxu0 %v7829_v19  ;;  %v7905_v19 = vld [vmem:[%s9997_s0 + $0xdc0] ss:$16 sps:$4 sm:$0xff]  }
 0x22b   : > { %5777 = vmatpush2.bf16.msra.mxu1 %v7832_v20  ;;  %5737 = vmatprep.subr.bf16.mxu0 %v7837_v21  ;;  %v7908_v20 = vld [vmem:[%s9997_s0 + $0xfc0] ss:$16 sps:$4 sm:$0xff]   ;;  %v7913_v21 = vld [vmem:[%s9997_s0 + $0xda4] ss:$16 sps:$4 sm:$0xff]  }
 0x22c   : > { %5778 = vmatprep.subr.bf16.mxu1 %v7840_v22  ;;  %v7916_v22 = vld [vmem:[%s9997_s0 + $0xfa4] ss:$16 sps:$4 sm:$0xff]  }
 0x22e   : > { %5738 = vmatpush2.bf16.msra.mxu0 %v7835_v27  ;;  %v7911_v27 = vld [vmem:[%s9997_s0 + $0xda0] ss:$16 sps:$4 sm:$0xff]  }
 0x22f   : > { %5779 = vmatpush2.bf16.msra.mxu1 %v7838_v28  ;;  %5739 = vmatprep.subr.bf16.mxu0 %v7843_v29  ;;  %v7914_v28 = vld [vmem:[%s9997_s0 + $0xfa0] ss:$16 sps:$4 sm:$0xff]   ;;  %v7919_v29 = vld [vmem:[%s9997_s0 + $0xd84] ss:$16 sps:$4 sm:$0xff]  }
 0x230   : > { %5780 = vmatprep.subr.bf16.mxu1 %v7846_v30  ;;  %v7922_v30 = vld [vmem:[%s9997_s0 + $0xf84] ss:$16 sps:$4 sm:$0xff]  }
 0x232   : > { %5740 = vmatpush2.bf16.msra.mxu0 %v7841_v31  ;;  %v7917_v31 = vld [vmem:[%s9997_s0 + $0xd80] ss:$16 sps:$4 sm:$0xff]  }
 0x233   : > { %5781 = vmatpush2.bf16.msra.mxu1 %v7844_v32  ;;  %5791 = vmatprep.subr.bf16.mxu0 %v7853_v33  ;;  %v7920_v32 = vld [vmem:[%s9997_s0 + $0xf80] ss:$16 sps:$4 sm:$0xff]   ;;  %v7925_v33 = vld [vmem:[%s9997_s0 + $0xd64] ss:$16 sps:$4 sm:$0xff]  }
 0x234   : > { %5832 = vmatprep.subr.bf16.mxu1 %v7856_v34  ;;  %v7928_v34 = vld [vmem:[%s9997_s0 + $0xf64] ss:$16 sps:$4 sm:$0xff]  }
 0x235   : > { %5742 = vmatmul.mubr.bf16.vlgmr.msra.gmra.mxu0 %v10254_v39 }
 0x236   : > { %5783 = vmatmul.mubr.bf16.vlgmr.msra.gmra.mxu1 %v10258_v40  ;;  %5792 = vmatpush1.bf16.msra.mxu0 %v7851_v35  ;;  %v7923_v35 = vld [vmem:[%s9997_s0 + $0xd60] ss:$16 sps:$4 sm:$0xff]  }
 0x237   : > { %5833 = vmatpush1.bf16.msra.mxu1 %v7854_v36  ;;  %5793 = vmatprep.subr.bf16.mxu0 %v7859_v43  ;;  %v7926_v36 = vld [vmem:[%s9997_s0 + $0xf60] ss:$16 sps:$4 sm:$0xff]   ;;  %v7931_v43 = vld [vmem:[%s9997_s0 + $0xd44] ss:$16 sps:$4 sm:$0xff]  }
 0x238   : > { %5834 = vmatprep.subr.bf16.mxu1 %v7862_v44  ;;  %5823 = vmatprep.mubr.bf16.mxu0 %v10270_v23  ;;  %v7934_v44 = vld [vmem:[%s9997_s0 + $0xf44] ss:$16 sps:$4 sm:$0xff]  }
 0x239   : > { %5864 = vmatprep.mubr.bf16.mxu1 %v10274_v24 }
 0x23a   : > { %5794 = vmatpush1.bf16.msra.mxu0 %v7857_v45  ;;  %v7929_v45 = vld [vmem:[%s9997_s0 + $0xd40] ss:$16 sps:$4 sm:$0xff]  }
 0x23b   : > { %5835 = vmatpush1.bf16.msra.mxu1 %v7860_v46  ;;  %5795 = vmatprep.subr.bf16.mxu0 %v7865_v47  ;;  %v7932_v46 = vld [vmem:[%s9997_s0 + $0xf40] ss:$16 sps:$4 sm:$0xff]   ;;  %v7937_v47 = vld [vmem:[%s9997_s0 + $0xd24] ss:$16 sps:$4 sm:$0xff]  }
 0x23c   : > { %5836 = vmatprep.subr.bf16.mxu1 %v7868_v49  ;;  %v7940_v49 = vld [vmem:[%s9997_s0 + $0xf24] ss:$16 sps:$4 sm:$0xff]  }
 0x23e   : > { %5796 = vmatpush1.bf16.msra.mxu0 %v7863_v50  ;;  %v7935_v50 = vld [vmem:[%s9997_s0 + $0xd20] ss:$16 sps:$4 sm:$0xff]  }
 0x23f   : > { %5837 = vmatpush1.bf16.msra.mxu1 %v7866_v51  ;;  %5797 = vmatprep.subr.bf16.mxu0 %v7871_v53  ;;  %v7938_v51 = vld [vmem:[%s9997_s0 + $0xf20] ss:$16 sps:$4 sm:$0xff]   ;;  %v7943_v53 = vld [vmem:[%s9997_s0 + $0xd04] ss:$16 sps:$4 sm:$0xff]  }
 0x240   : > { %5838 = vmatprep.subr.bf16.mxu1 %v7874_v54  ;;  %v7946_v54 = vld [vmem:[%s9997_s0 + $0xf04] ss:$16 sps:$4 sm:$0xff]  }
 0x242   : > { %5798 = vmatpush1.bf16.msra.mxu0 %v7869_v55  ;;  %v7941_v55 = vld [vmem:[%s9997_s0 + $0xd00] ss:$16 sps:$4 sm:$0xff]  }
 0x243   : > { %5839 = vmatpush1.bf16.msra.mxu1 %v7872_v56  ;;  %5799 = vmatprep.subr.bf16.mxu0 %v7877_v57  ;;  %v7944_v56 = vld [vmem:[%s9997_s0 + $0xf00] ss:$16 sps:$4 sm:$0xff]   ;;  %v7953_v57 = vld [vmem:[%s9997_s0 + $0x10e4] ss:$16 sps:$4 sm:$0xff]  }
 0x244   : > { %5840 = vmatprep.subr.bf16.mxu1 %v7880_v58  ;;  %v7956_v58 = vld [vmem:[%s9997_s0 + $0x12e4] ss:$16 sps:$4 sm:$0xff]  }
 0x246   : > { %5800 = vmatpush1.bf16.msra.mxu0 %v7875_v59  ;;  %v10341_v59 = vld [vmem:[%s9973_s8 + $0x40] sm:$0xff] }
 0x247   : > { %5841 = vmatpush1.bf16.msra.mxu1 %v7878_v60  ;;  %5801 = vmatprep.subr.bf16.mxu0 %v7883_v61  ;;  %v10345_v60 = vcombine.low %v10261_v41, %v10261_v41  ;;  %v10349_v61 = vcombine.low %v10264_v42, %v10264_v42  ;;  %v10360_v41 = vcombine.high %v10341_v59, %v10341_v59 }
 0x248   : > { %5842 = vmatprep.subr.bf16.mxu1 %v7886_v62  ;;  %v10352_v62 = vld [vmem:[%s9973_s8 + $0x48] sm:$0xff] }
 0x249   : > { %v10364_v42 = vcombine.high %v10352_v62, %v10352_v62 }
 0x24a   : > { %5802 = vmatpush1.bf16.msra.mxu0 %v7881_v63  ;;  %v7951_v63 = vld [vmem:[%s9997_s0 + $0x10e0] ss:$16 sps:$4 sm:$0xff]  }
 0x24b   : > { %5843 = vmatpush1.bf16.msra.mxu1 %v7884_v0  ;;  %5803 = vmatprep.subr.bf16.mxu0 %v7889_v1  ;;  %v7954_v0 = vld [vmem:[%s9997_s0 + $0x12e0] ss:$16 sps:$4 sm:$0xff]   ;;  %v7959_v1 = vld [vmem:[%s9997_s0 + $0x10c4] ss:$16 sps:$4 sm:$0xff]  }
 0x24c   : > { %5844 = vmatprep.subr.bf16.mxu1 %v7892_v2  ;;  %v7962_v2 = vld [vmem:[%s9997_s0 + $0x12c4] ss:$16 sps:$4 sm:$0xff]  }
 0x24e   : > { %5804 = vmatpush1.bf16.msra.mxu0 %v7887_v3 }
 0x24f   : > { %5845 = vmatpush1.bf16.msra.mxu1 %v7890_v4  ;;  %5805 = vmatprep.subr.bf16.mxu0 %v7895_v5 }
 0x250   : > { %5846 = vmatprep.subr.bf16.mxu1 %v7898_v6  ;;  %v7957_v6 = vld [vmem:[%s9997_s0 + $0x10c0] ss:$16 sps:$4 sm:$0xff]  }
 0x252   : > { %5806 = vmatpush1.bf16.msra.mxu0 %v7893_v9  ;;  %v7960_v9 = vld [vmem:[%s9997_s0 + $0x12c0] ss:$16 sps:$4 sm:$0xff]  }
 0x253   : > { %5847 = vmatpush1.bf16.msra.mxu1 %v7896_v10  ;;  %5807 = vmatprep.subr.bf16.mxu0 %v7901_v11 }
 0x254   : > { %5848 = vmatprep.subr.bf16.mxu1 %v7904_v12  ;;  %v7965_v12 = vld [vmem:[%s9997_s0 + $0x10a4] ss:$16 sps:$4 sm:$0xff]  }
 0x256   : > { %5808 = vmatpush2.bf16.msra.mxu0 %v7899_v13  ;;  %v7968_v13 = vld [vmem:[%s9997_s0 + $0x12a4] ss:$16 sps:$4 sm:$0xff]  }
 0x257   : > { %5849 = vmatpush2.bf16.msra.mxu1 %v7902_v14  ;;  %5809 = vmatprep.subr.bf16.mxu0 %v7907_v15 }
 0x258   : > { %5850 = vmatprep.subr.bf16.mxu1 %v7910_v16 }
 0x25a   : > { %5810 = vmatpush2.bf16.msra.mxu0 %v7905_v19  ;;  %v7963_v19 = vld [vmem:[%s9997_s0 + $0x10a0] ss:$16 sps:$4 sm:$0xff]  }
 0x25b   : > { %5851 = vmatpush2.bf16.msra.mxu1 %v7908_v20  ;;  %5811 = vmatprep.subr.bf16.mxu0 %v7913_v21  ;;  %v7966_v20 = vld [vmem:[%s9997_s0 + $0x12a0] ss:$16 sps:$4 sm:$0xff]  }
 0x25c   : > { %5852 = vmatprep.subr.bf16.mxu1 %v7916_v22 }
 0x25e   : > { %5812 = vmatpush2.bf16.msra.mxu0 %v7911_v27  ;;  %v7971_v27 = vld [vmem:[%s9997_s0 + $0x1084] ss:$16 sps:$4 sm:$0xff]  }
 0x25f   : > { %5853 = vmatpush2.bf16.msra.mxu1 %v7914_v28  ;;  %5813 = vmatprep.subr.bf16.mxu0 %v7919_v29  ;;  %v7974_v28 = vld [vmem:[%s9997_s0 + $0x1284] ss:$16 sps:$4 sm:$0xff]   ;;  %v7969_v29 = vld [vmem:[%s9997_s0 + $0x1080] ss:$16 sps:$4 sm:$0xff]  }
 0x260   : > { %5854 = vmatprep.subr.bf16.mxu1 %v7922_v30  ;;  %v7972_v30 = vld [vmem:[%s9997_s0 + $0x1280] ss:$16 sps:$4 sm:$0xff]  }
 0x262   : > { %5814 = vmatpush2.bf16.msra.mxu0 %v7917_v31  ;;  %v7977_v31 = vld [vmem:[%s9997_s0 + $0x1064] ss:$16 sps:$4 sm:$0xff]  }
 0x263   : > { %5855 = vmatpush2.bf16.msra.mxu1 %v7920_v32  ;;  %5815 = vmatprep.subr.bf16.mxu0 %v7925_v33  ;;  %v7980_v32 = vld [vmem:[%s9997_s0 + $0x1264] ss:$16 sps:$4 sm:$0xff]   ;;  %v7975_v33 = vld [vmem:[%s9997_s0 + $0x1060] ss:$16 sps:$4 sm:$0xff]  }
 0x264   : > { %5856 = vmatprep.subr.bf16.mxu1 %v7928_v34  ;;  %v7978_v34 = vld [vmem:[%s9997_s0 + $0x1260] ss:$16 sps:$4 sm:$0xff]  }
 0x266   : > { %5816 = vmatpush2.bf16.msra.mxu0 %v7923_v35  ;;  %v7983_v35 = vld [vmem:[%s9997_s0 + $0x1044] ss:$16 sps:$4 sm:$0xff]  }
 0x267   : > { %5857 = vmatpush2.bf16.msra.mxu1 %v7926_v36  ;;  %5817 = vmatprep.subr.bf16.mxu0 %v7931_v43  ;;  %v7986_v36 = vld [vmem:[%s9997_s0 + $0x1244] ss:$16 sps:$4 sm:$0xff]   ;;  %v7981_v43 = vld [vmem:[%s9997_s0 + $0x1040] ss:$16 sps:$4 sm:$0xff]  }
 0x268   : > { %5858 = vmatprep.subr.bf16.mxu1 %v7934_v44  ;;  %v7984_v44 = vld [vmem:[%s9997_s0 + $0x1240] ss:$16 sps:$4 sm:$0xff]  }
 0x26a   : > { %5818 = vmatpush2.bf16.msra.mxu0 %v7929_v45  ;;  %v7989_v45 = vld [vmem:[%s9997_s0 + $0x1024] ss:$16 sps:$4 sm:$0xff]  }
 0x26b   : > { %5859 = vmatpush2.bf16.msra.mxu1 %v7932_v46  ;;  %5819 = vmatprep.subr.bf16.mxu0 %v7937_v47  ;;  %v7992_v46 = vld [vmem:[%s9997_s0 + $0x1224] ss:$16 sps:$4 sm:$0xff]   ;;  %v7987_v47 = vld [vmem:[%s9997_s0 + $0x1020] ss:$16 sps:$4 sm:$0xff]  }
 0x26c   : > { %5860 = vmatprep.subr.bf16.mxu1 %v7940_v49  ;;  %v7990_v49 = vld [vmem:[%s9997_s0 + $0x1220] ss:$16 sps:$4 sm:$0xff]  }
 0x26e   : > { %5820 = vmatpush2.bf16.msra.mxu0 %v7935_v50  ;;  %v7995_v50 = vld [vmem:[%s9997_s0 + $0x1004] ss:$16 sps:$4 sm:$0xff]  }
 0x26f   : > { %5861 = vmatpush2.bf16.msra.mxu1 %v7938_v51  ;;  %5821 = vmatprep.subr.bf16.mxu0 %v7943_v53  ;;  %v7998_v51 = vld [vmem:[%s9997_s0 + $0x1204] ss:$16 sps:$4 sm:$0xff]   ;;  %v7993_v53 = vld [vmem:[%s9997_s0 + $0x1000] ss:$16 sps:$4 sm:$0xff]  }
 0x270   : > { %5862 = vmatprep.subr.bf16.mxu1 %v7946_v54  ;;  %v7996_v54 = vld [vmem:[%s9997_s0 + $0x1200] ss:$16 sps:$4 sm:$0xff]  }
 0x272   : > { %5822 = vmatpush2.bf16.msra.mxu0 %v7941_v55  ;;  %v8001_v55 = vld [vmem:[%s9997_s0 + $0x11e4] ss:$16 sps:$4 sm:$0xff]  }
 0x273   : > { %5863 = vmatpush2.bf16.msra.mxu1 %v7944_v56  ;;  %5873 = vmatprep.subr.bf16.mxu0 %v7953_v57  ;;  %v8004_v56 = vld [vmem:[%s9997_s0 + $0x13e4] ss:$16 sps:$4 sm:$0xff]   ;;  %v7999_v57 = vld [vmem:[%s9997_s0 + $0x11e0] ss:$16 sps:$4 sm:$0xff]  }
 0x274   : > { %5914 = vmatprep.subr.bf16.mxu1 %v7956_v58  ;;  %v8002_v58 = vld [vmem:[%s9997_s0 + $0x13e0] ss:$16 sps:$4 sm:$0xff]  }
 0x275   : > { %v5579_v3 = vpop.f32.mrf.mxu0  ;;  %5824 = vmatmul.mubr.bf16.vlgmr.msra.gmra.mxu0 %v10345_v60 }
 0x276   : > { %v5620_v4 = vpop.f32.mrf.mxu1  ;;  %5865 = vmatmul.mubr.bf16.vlgmr.msra.gmra.mxu1 %v10349_v61  ;;  %5874 = vmatpush1.bf16.msra.mxu0 %v7951_v63  ;;  %v8007_v63 = vld [vmem:[%s9997_s0 + $0x11c4] ss:$16 sps:$4 sm:$0xff]  }
 0x277   : > { %v10368_v5 = vadd.f32 %v5620_v4, %v5579_v3  ;;  %5915 = vmatpush1.bf16.msra.mxu1 %v7954_v0  ;;  %v5581_v10 = vpop.f32.mrf.mxu0  ;;  %5875 = vmatprep.subr.bf16.mxu0 %v7959_v1  ;;  %v8010_v0 = vld [vmem:[%s9997_s0 + $0x13c4] ss:$16 sps:$4 sm:$0xff]   ;;  %v8005_v1 = vld [vmem:[%s9997_s0 + $0x11c0] ss:$16 sps:$4 sm:$0xff]  }
 0x278   : > { %v5622_v11 = vpop.f32.mrf.mxu1  ;;  %5916 = vmatprep.subr.bf16.mxu1 %v7962_v2  ;;  %5905 = vmatprep.mubr.bf16.mxu0 %v10360_v41  ;;  %v8008_v2 = vld [vmem:[%s9997_s0 + $0x13c0] ss:$16 sps:$4 sm:$0xff]   ;;  %v8013_v3 = vld [vmem:[%s9997_s0 + $0x11a4] ss:$16 sps:$4 sm:$0xff]  }
 0x279   : > { %v10374_v14 = vadd.f32 %v5622_v11, %v5581_v10  ;;  %5946 = vmatprep.mubr.bf16.mxu1 %v10364_v42  ;;  %v5583_v15 = vpop.f32.mrf.mxu0  ;;  %v8016_v4 = vld [vmem:[%s9997_s0 + $0x13a4] ss:$16 sps:$4 sm:$0xff]  }
 0x27a   : > { %v5624_v16 = vpop.f32.mrf.mxu1  ;;  %5876 = vmatpush1.bf16.msra.mxu0 %v7957_v6  ;;  %v8011_v6 = vld [vmem:[%s9997_s0 + $0x11a0] ss:$16 sps:$4 sm:$0xff]   ;;  %v8019_v10 = vld [vmem:[%s9997_s0 + $0x1184] ss:$16 sps:$4 sm:$0xff]  }
 0x27b   : > { %5917 = vmatpush1.bf16.msra.mxu1 %v7960_v9  ;;  %v5584_v21 = vpop.f32.mrf.mxu0  ;;  %5877 = vmatprep.subr.bf16.mxu0 %v7965_v12  ;;  %v8014_v9 = vld [vmem:[%s9997_s0 + $0x13a0] ss:$16 sps:$4 sm:$0xff]   ;;  %v8022_v11 = vld [vmem:[%s9997_s0 + $0x1384] ss:$16 sps:$4 sm:$0xff]  }
 0x27c   : > { %v5625_v22 = vpop.f32.mrf.mxu1  ;;  %5918 = vmatprep.subr.bf16.mxu1 %v7968_v13  ;;  %v8017_v12 = vld [vmem:[%s9997_s0 + $0x1180] ss:$16 sps:$4 sm:$0xff]   ;;  %v8025_v15 = vld [vmem:[%s9997_s0 + $0x1164] ss:$16 sps:$4 sm:$0xff]  }
 0x27d   : > { %v8020_v13 = vld [vmem:[%s9997_s0 + $0x1380] ss:$16 sps:$4 sm:$0xff]   ;;  %v8028_v16 = vld [vmem:[%s9997_s0 + $0x1364] ss:$16 sps:$4 sm:$0xff]  }
 0x27e   : > { %5878 = vmatpush1.bf16.msra.mxu0 %v7963_v19  ;;  %v8023_v19 = vld [vmem:[%s9997_s0 + $0x1160] ss:$16 sps:$4 sm:$0xff]   ;;  %v8031_v21 = vld [vmem:[%s9997_s0 + $0x1144] ss:$16 sps:$4 sm:$0xff]  }
 0x27f   : > { %5919 = vmatpush1.bf16.msra.mxu1 %v7966_v20  ;;  %5879 = vmatprep.subr.bf16.mxu0 %v7971_v27  ;;  %v8026_v20 = vld [vmem:[%s9997_s0 + $0x1360] ss:$16 sps:$4 sm:$0xff]   ;;  %v8034_v22 = vld [vmem:[%s9997_s0 + $0x1344] ss:$16 sps:$4 sm:$0xff]  }
 0x280   : > { %5920 = vmatprep.subr.bf16.mxu1 %v7974_v28  ;;  %v8029_v27 = vld [vmem:[%s9997_s0 + $0x1140] ss:$16 sps:$4 sm:$0xff]  }
 0x281   : > { %v8032_v28 = vld [vmem:[%s9997_s0 + $0x1340] ss:$16 sps:$4 sm:$0xff]  }
 0x282   : > { %5880 = vmatpush1.bf16.msra.mxu0 %v7969_v29  ;;  %v8037_v29 = vld [vmem:[%s9997_s0 + $0x1124] ss:$16 sps:$4 sm:$0xff]  }
 0x283   : > { %5921 = vmatpush1.bf16.msra.mxu1 %v7972_v30  ;;  %5881 = vmatprep.subr.bf16.mxu0 %v7977_v31  ;;  %v8040_v30 = vld [vmem:[%s9997_s0 + $0x1324] ss:$16 sps:$4 sm:$0xff]   ;;  %v8035_v31 = vld [vmem:[%s9997_s0 + $0x1120] ss:$16 sps:$4 sm:$0xff]  }
 0x284   : > { %5922 = vmatprep.subr.bf16.mxu1 %v7980_v32  ;;  %v8038_v32 = vld [vmem:[%s9997_s0 + $0x1320] ss:$16 sps:$4 sm:$0xff]  }
 0x286   : > { %5882 = vmatpush1.bf16.msra.mxu0 %v7975_v33  ;;  %v8043_v33 = vld [vmem:[%s9997_s0 + $0x1104] ss:$16 sps:$4 sm:$0xff]  }
 0x287   : > { %5923 = vmatpush1.bf16.msra.mxu1 %v7978_v34  ;;  %5883 = vmatprep.subr.bf16.mxu0 %v7983_v35  ;;  %v8046_v34 = vld [vmem:[%s9997_s0 + $0x1304] ss:$16 sps:$4 sm:$0xff]   ;;  %v8041_v35 = vld [vmem:[%s9997_s0 + $0x1100] ss:$16 sps:$4 sm:$0xff]  }
 0x288   : > { %5924 = vmatprep.subr.bf16.mxu1 %v7986_v36  ;;  %v8044_v36 = vld [vmem:[%s9997_s0 + $0x1300] ss:$16 sps:$4 sm:$0xff]  }
 0x28a   : > { %5884 = vmatpush1.bf16.msra.mxu0 %v7981_v43  ;;  %v8053_v43 = vld [vmem:[%s9997_s0 + $0xec] ss:$16 sps:$4 sm:$0xff]  }
 0x28b   : > { %5925 = vmatpush1.bf16.msra.mxu1 %v7984_v44  ;;  %5885 = vmatprep.subr.bf16.mxu0 %v7989_v45  ;;  %v8056_v44 = vld [vmem:[%s9997_s0 + $0x2ec] ss:$16 sps:$4 sm:$0xff]   ;;  %v8051_v45 = vld [vmem:[%s9997_s0 + $0xe8] ss:$16 sps:$4 sm:$0xff]  }
 0x28c   : > { %5926 = vmatprep.subr.bf16.mxu1 %v7992_v46  ;;  %v8054_v46 = vld [vmem:[%s9997_s0 + $0x2e8] ss:$16 sps:$4 sm:$0xff]  }
 0x28e   : > { %5886 = vmatpush1.bf16.msra.mxu0 %v7987_v47  ;;  %v10438_v47 = vcombine.low %v10341_v59, %v10341_v59 }
 0x28f   : > { %5927 = vmatpush1.bf16.msra.mxu1 %v7990_v49  ;;  %5887 = vmatprep.subr.bf16.mxu0 %v7995_v50  ;;  %v10442_v49 = vcombine.low %v10352_v62, %v10352_v62  ;;  %v8059_v50 = vld [vmem:[%s9997_s0 + $0xcc] ss:$16 sps:$4 sm:$0xff]  }
 0x290   : > { %5928 = vmatprep.subr.bf16.mxu1 %v7998_v51  ;;  %v8062_v51 = vld [vmem:[%s9997_s0 + $0x2cc] ss:$16 sps:$4 sm:$0xff]  }
 0x292   : > { %5888 = vmatpush1.bf16.msra.mxu0 %v7993_v53  ;;  %v8057_v53 = vld [vmem:[%s9997_s0 + $0xc8] ss:$16 sps:$4 sm:$0xff]  }
 0x293   : > { %5929 = vmatpush1.bf16.msra.mxu1 %v7996_v54  ;;  %5889 = vmatprep.subr.bf16.mxu0 %v8001_v55  ;;  %v8060_v54 = vld [vmem:[%s9997_s0 + $0x2c8] ss:$16 sps:$4 sm:$0xff]  }
 0x294   : > { %5930 = vmatprep.subr.bf16.mxu1 %v8004_v56 }
 0x296   : > { %5890 = vmatpush2.bf16.msra.mxu0 %v7999_v57 }
 0x297   : > { %5931 = vmatpush2.bf16.msra.mxu1 %v8002_v58  ;;  %5891 = vmatprep.subr.bf16.mxu0 %v8007_v63  ;;  %v8065_v58 = vld [vmem:[%s9997_s0 + $0xac] ss:$16 sps:$4 sm:$0xff]  }
 0x298   : > { %5932 = vmatprep.subr.bf16.mxu1 %v8010_v0  ;;  %v8068_v63 = vld [vmem:[%s9997_s0 + $0x2ac] ss:$16 sps:$4 sm:$0xff]  }
 0x29a   : > { %5892 = vmatpush2.bf16.msra.mxu0 %v8005_v1 }
 0x29b   : > { %5933 = vmatpush2.bf16.msra.mxu1 %v8008_v2  ;;  %5893 = vmatprep.subr.bf16.mxu0 %v8013_v3  ;;  %v8063_v2 = vld [vmem:[%s9997_s0 + $0xa8] ss:$16 sps:$4 sm:$0xff]  }
 0x29c   : > { %5934 = vmatprep.subr.bf16.mxu1 %v8016_v4  ;;  %v8066_v3 = vld [vmem:[%s9997_s0 + $0x2a8] ss:$16 sps:$4 sm:$0xff]  }
 0x29e   : > { %5894 = vmatpush2.bf16.msra.mxu0 %v8011_v6 }
 0x29f   : > { %5935 = vmatpush2.bf16.msra.mxu1 %v8014_v9  ;;  %5895 = vmatprep.subr.bf16.mxu0 %v8019_v10 }
 0x2a0   : > { %5936 = vmatprep.subr.bf16.mxu1 %v8022_v11  ;;  %v8072_v11 = vld [vmem:[%s9997_s0 + $0x288] ss:$16 sps:$4 sm:$0xff]  }
 0x2a2   : > { %5896 = vmatpush2.bf16.msra.mxu0 %v8017_v12  ;;  %v8077_v12 = vld [vmem:[%s9997_s0 + $0x6c] ss:$16 sps:$4 sm:$0xff]  }
 0x2a3   : > { %5937 = vmatpush2.bf16.msra.mxu1 %v8020_v13  ;;  %5897 = vmatprep.subr.bf16.mxu0 %v8025_v15  ;;  %v8080_v13 = vld [vmem:[%s9997_s0 + $0x26c] ss:$16 sps:$4 sm:$0xff]   ;;  %v8075_v15 = vld [vmem:[%s9997_s0 + $0x68] ss:$16 sps:$4 sm:$0xff]  }
 0x2a4   : > { %5938 = vmatprep.subr.bf16.mxu1 %v8028_v16  ;;  %v8078_v16 = vld [vmem:[%s9997_s0 + $0x268] ss:$16 sps:$4 sm:$0xff]  }
 0x2a6   : > { %5898 = vmatpush2.bf16.msra.mxu0 %v8023_v19  ;;  %v8083_v19 = vld [vmem:[%s9997_s0 + $0x4c] ss:$16 sps:$4 sm:$0xff]  }
 0x2a7   : > { %5939 = vmatpush2.bf16.msra.mxu1 %v8026_v20  ;;  %5899 = vmatprep.subr.bf16.mxu0 %v8031_v21  ;;  %v8086_v20 = vld [vmem:[%s9997_s0 + $0x24c] ss:$16 sps:$4 sm:$0xff]   ;;  %v8081_v21 = vld [vmem:[%s9997_s0 + $0x48] ss:$16 sps:$4 sm:$0xff]  }
 0x2a8   : > { %5940 = vmatprep.subr.bf16.mxu1 %v8034_v22  ;;  %v8084_v22 = vld [vmem:[%s9997_s0 + $0x248] ss:$16 sps:$4 sm:$0xff]  }
 0x2aa   : > { %5900 = vmatpush2.bf16.msra.mxu0 %v8029_v27  ;;  %v8089_v27 = vld [vmem:[%s9997_s0 + $0x2c] ss:$16 sps:$4 sm:$0xff]  }
 0x2ab   : > { %5941 = vmatpush2.bf16.msra.mxu1 %v8032_v28  ;;  %5901 = vmatprep.subr.bf16.mxu0 %v8037_v29  ;;  %v8092_v28 = vld [vmem:[%s9997_s0 + $0x22c] ss:$16 sps:$4 sm:$0xff]   ;;  %v8087_v29 = vld [vmem:[%s9997_s0 + $0x28] ss:$16 sps:$4 sm:$0xff]  }
 0x2ac   : > { %5942 = vmatprep.subr.bf16.mxu1 %v8040_v30  ;;  %v8090_v30 = vld [vmem:[%s9997_s0 + $0x228] ss:$16 sps:$4 sm:$0xff]  }
 0x2ae   : > { %5902 = vmatpush2.bf16.msra.mxu0 %v8035_v31  ;;  %v8095_v31 = vld [vmem:[%s9997_s0 + $0xc] ss:$16 sps:$4 sm:$0xff]  }
 0x2af   : > { %5943 = vmatpush2.bf16.msra.mxu1 %v8038_v32  ;;  %5903 = vmatprep.subr.bf16.mxu0 %v8043_v33  ;;  %v8098_v32 = vld [vmem:[%s9997_s0 + $0x20c] ss:$16 sps:$4 sm:$0xff]   ;;  %v8093_v33 = vld [vmem:[%s9997_s0 + $0x8] ss:$16 sps:$4 sm:$0xff]  }
 0x2b0   : > { %5944 = vmatprep.subr.bf16.mxu1 %v8046_v34  ;;  %v8096_v34 = vld [vmem:[%s9997_s0 + $0x208] ss:$16 sps:$4 sm:$0xff]  }
 0x2b2   : > { %5904 = vmatpush2.bf16.msra.mxu0 %v8041_v35  ;;  %v8101_v35 = vld [vmem:[%s9997_s0 + $0x1ec] ss:$16 sps:$4 sm:$0xff]  }
 0x2b3   : > { %5945 = vmatpush2.bf16.msra.mxu1 %v8044_v36  ;;  %5955 = vmatprep.subr.bf16.mxu0 %v8053_v43  ;;  %v8104_v36 = vld [vmem:[%s9997_s0 + $0x3ec] ss:$16 sps:$4 sm:$0xff]   ;;  %v8099_v43 = vld [vmem:[%s9997_s0 + $0x1e8] ss:$16 sps:$4 sm:$0xff]  }
 0x2b4   : > { %5996 = vmatprep.subr.bf16.mxu1 %v8056_v44  ;;  %v8102_v44 = vld [vmem:[%s9997_s0 + $0x3e8] ss:$16 sps:$4 sm:$0xff]  }
 0x2b5   : > { %v5661_v55 = vpop.f32.mrf.mxu0  ;;  %5906 = vmatmul.mubr.bf16.vlgmr.msra.gmra.mxu0 %v10438_v47 }
 0x2b6   : > { %v5702_v56 = vpop.f32.mrf.mxu1  ;;  %5947 = vmatmul.mubr.bf16.vlgmr.msra.gmra.mxu1 %v10442_v49  ;;  %v5662_v59 = vadd.f32 %v5661_v55, %v10368_v5  ;;  %5956 = vmatpush1.bf16.msra.mxu0 %v8051_v45  ;;  %v8107_v45 = vld [vmem:[%s9997_s0 + $0x1cc] ss:$16 sps:$4 sm:$0xff]   ;;  %v8111_v55 = vld [vmem:[%s9997_s0 + $0x1a8] ss:$16 sps:$4 sm:$0xff]  }
 0x2b7   : > { %5997 = vmatpush1.bf16.msra.mxu1 %v8054_v46  ;;  %v5663_v62 = vpop.f32.mrf.mxu0  ;;  %5957 = vmatprep.subr.bf16.mxu0 %v8059_v50  ;;  %v8110_v46 = vld [vmem:[%s9997_s0 + $0x3cc] ss:$16 sps:$4 sm:$0xff]   ;;  %v8105_v50 = vld [vmem:[%s9997_s0 + $0x1c8] ss:$16 sps:$4 sm:$0xff]  }
 0x2b8   : > { %v5704_v57 = vpop.f32.mrf.mxu1  ;;  %5998 = vmatprep.subr.bf16.mxu1 %v8062_v51  ;;  %v10453_v0 = vadd.f32 %v5702_v56, %v5662_v59  ;;  %v5664_v1 = vadd.f32 %v5663_v62, %v10374_v14  ;;  %5987 = vmatprep.mubr.bf16.mxu0 %v10047_v48  ;;  %v8071_v14 = vld [vmem:[%s9997_s0 + $0x8c] ss:$16 sps:$4 sm:$0xff]   ;;  %v8108_v51 = vld [vmem:[%s9997_s0 + $0x3c8] ss:$16 sps:$4 sm:$0xff]  }
 0x2b9   : > { %6028 = vmatprep.mubr.bf16.mxu1 %v10052_v52  ;;  %v5665_v5 = vpop.f32.mrf.mxu0  ;;  %v8074_v48 = vld [vmem:[%s9997_s0 + $0x28c] ss:$16 sps:$4 sm:$0xff]   ;;  %v8069_v52 = vld [vmem:[%s9997_s0 + $0x88] ss:$16 sps:$4 sm:$0xff]  }
 0x2ba   : > { %v5706_v4 = vpop.f32.mrf.mxu1  ;;  %v10460_v6 = vadd.f32 %v5704_v57, %v5664_v1  ;;  %5958 = vmatpush1.bf16.msra.mxu0 %v8057_v53  ;;  %v8113_v53 = vld [vmem:[%s9997_s0 + $0x1ac] ss:$16 sps:$4 sm:$0xff]   ;;  %v8114_v56 = vld [vmem:[%s9997_s0 + $0x3a8] ss:$16 sps:$4 sm:$0xff]  }
 0x2bb   : > { %5999 = vmatpush1.bf16.msra.mxu1 %v8060_v54  ;;  %v5666_v9 = vpop.f32.mrf.mxu0  ;;  %5959 = vmatprep.subr.bf16.mxu0 %v8065_v58  ;;  %v8116_v54 = vld [vmem:[%s9997_s0 + $0x3ac] ss:$16 sps:$4 sm:$0xff]   ;;  %v8117_v57 = vld [vmem:[%s9997_s0 + $0x188] ss:$16 sps:$4 sm:$0xff]  }
 0x2bc   : > { %v5707_v10 = vpop.f32.mrf.mxu1  ;;  %6000 = vmatprep.subr.bf16.mxu1 %v8068_v63  ;;  %v8119_v59 = vld [vmem:[%s9997_s0 + $0x18c] ss:$16 sps:$4 sm:$0xff]   ;;  %v8120_v58 = vld [vmem:[%s9997_s0 + $0x388] ss:$16 sps:$4 sm:$0xff]  }
 0x2bd   : > { %v8122_v62 = vld [vmem:[%s9997_s0 + $0x38c] ss:$16 sps:$4 sm:$0xff]   ;;  %v8129_v9 = vld [vmem:[%s9997_s0 + $0x148] ss:$16 sps:$4 sm:$0xff]  }
 0x2be   : > { %5960 = vmatpush1.bf16.msra.mxu0 %v8063_v2  ;;  %v8125_v63 = vld [vmem:[%s9997_s0 + $0x16c] ss:$16 sps:$4 sm:$0xff]   ;;  %v8123_v2 = vld [vmem:[%s9997_s0 + $0x168] ss:$16 sps:$4 sm:$0xff]  }
 0x2bf   : > { %6001 = vmatpush1.bf16.msra.mxu1 %v8066_v3  ;;  %5961 = vmatprep.subr.bf16.mxu0 %v8071_v14  ;;  %v8128_v1 = vld [vmem:[%s9997_s0 + $0x36c] ss:$16 sps:$4 sm:$0xff]   ;;  %v8126_v3 = vld [vmem:[%s9997_s0 + $0x368] ss:$16 sps:$4 sm:$0xff]  }
 0x2c0   : > { %6002 = vmatprep.subr.bf16.mxu1 %v8074_v48  ;;  %v8131_v5 = vld [vmem:[%s9997_s0 + $0x14c] ss:$16 sps:$4 sm:$0xff]   ;;  %v8132_v10 = vld [vmem:[%s9997_s0 + $0x348] ss:$16 sps:$4 sm:$0xff]  }
 0x2c1   : > { %v8134_v4 = vld [vmem:[%s9997_s0 + $0x34c] ss:$16 sps:$4 sm:$0xff]  }
 0x2c2   : > { %5962 = vmatpush1.bf16.msra.mxu0 %v8069_v52  ;;  %v8137_v14 = vld [vmem:[%s9997_s0 + $0x12c] ss:$16 sps:$4 sm:$0xff]   ;;  %v8135_v52 = vld [vmem:[%s9997_s0 + $0x128] ss:$16 sps:$4 sm:$0xff]  }
 0x2c3   : > { %6003 = vmatpush1.bf16.msra.mxu1 %v8072_v11  ;;  %5963 = vmatprep.subr.bf16.mxu0 %v8077_v12  ;;  %v8140_v48 = vld [vmem:[%s9997_s0 + $0x32c] ss:$16 sps:$4 sm:$0xff]   ;;  %v8138_v11 = vld [vmem:[%s9997_s0 + $0x328] ss:$16 sps:$4 sm:$0xff]  }
 0x2c4   : > { %6004 = vmatprep.subr.bf16.mxu1 %v8080_v13  ;;  %v8143_v12 = vld [vmem:[%s9997_s0 + $0x10c] ss:$16 sps:$4 sm:$0xff]  }
 0x2c5   : > { %v8146_v13 = vld [vmem:[%s9997_s0 + $0x30c] ss:$16 sps:$4 sm:$0xff]  }
 0x2c6   : > { %5964 = vmatpush1.bf16.msra.mxu0 %v8075_v15  ;;  %v8141_v15 = vld [vmem:[%s9997_s0 + $0x108] ss:$16 sps:$4 sm:$0xff]  }
 0x2c7   : > { %6005 = vmatpush1.bf16.msra.mxu1 %v8078_v16  ;;  %5965 = vmatprep.subr.bf16.mxu0 %v8083_v19  ;;  %v8144_v16 = vld [vmem:[%s9997_s0 + $0x308] ss:$16 sps:$4 sm:$0xff]   ;;  %v8149_v19 = vld [vmem:[%s9997_s0 + $0x4ec] ss:$16 sps:$4 sm:$0xff]  }
 0x2c8   : > { %6006 = vmatprep.subr.bf16.mxu1 %v8086_v20  ;;  %v8152_v20 = vld [vmem:[%s9997_s0 + $0x6ec] ss:$16 sps:$4 sm:$0xff]  }
 0x2ca   : > { %5966 = vmatpush1.bf16.msra.mxu0 %v8081_v21  ;;  %v8147_v21 = vld [vmem:[%s9997_s0 + $0x4e8] ss:$16 sps:$4 sm:$0xff]  }
 0x2cb   : > { %6007 = vmatpush1.bf16.msra.mxu1 %v8084_v22  ;;  %5967 = vmatprep.subr.bf16.mxu0 %v8089_v27  ;;  %v8150_v22 = vld [vmem:[%s9997_s0 + $0x6e8] ss:$16 sps:$4 sm:$0xff]   ;;  %v8155_v27 = vld [vmem:[%s9997_s0 + $0x4cc] ss:$16 sps:$4 sm:$0xff]  }
 0x2cc   : > { %6008 = vmatprep.subr.bf16.mxu1 %v8092_v28  ;;  %v8158_v28 = vld [vmem:[%s9997_s0 + $0x6cc] ss:$16 sps:$4 sm:$0xff]  }
 0x2ce   : > { %5968 = vmatpush1.bf16.msra.mxu0 %v8087_v29  ;;  %v8153_v29 = vld [vmem:[%s9997_s0 + $0x4c8] ss:$16 sps:$4 sm:$0xff]  }
 0x2cf   : > { %6009 = vmatpush1.bf16.msra.mxu1 %v8090_v30  ;;  %5969 = vmatprep.subr.bf16.mxu0 %v8095_v31 }
 0x2d0   : > { %6010 = vmatprep.subr.bf16.mxu1 %v8098_v32 }
 0x2d2   : > { %5970 = vmatpush1.bf16.msra.mxu0 %v8093_v33  ;;  %v8156_v33 = vld [vmem:[%s9997_s0 + $0x6c8] ss:$16 sps:$4 sm:$0xff]  }
 0x2d3   : > { %6011 = vmatpush1.bf16.msra.mxu1 %v8096_v34  ;;  %5971 = vmatprep.subr.bf16.mxu0 %v8101_v35 }
 0x2d4   : > { %6012 = vmatprep.subr.bf16.mxu1 %v8104_v36  ;;  %v8161_v36 = vld [vmem:[%s9997_s0 + $0x4ac] ss:$16 sps:$4 sm:$0xff]  }
 0x2d6   : > { %5972 = vmatpush2.bf16.msra.mxu0 %v8099_v43  ;;  %v8164_v43 = vld [vmem:[%s9997_s0 + $0x6ac] ss:$16 sps:$4 sm:$0xff]  }
 0x2d7   : > { %6013 = vmatpush2.bf16.msra.mxu1 %v8102_v44  ;;  %5973 = vmatprep.subr.bf16.mxu0 %v8107_v45 }
 0x2d8   : > { %6014 = vmatprep.subr.bf16.mxu1 %v8110_v46  ;;  %v8159_v46 = vld [vmem:[%s9997_s0 + $0x4a8] ss:$16 sps:$4 sm:$0xff]  }
 0x2da   : > { %5974 = vmatpush2.bf16.msra.mxu0 %v8105_v50  ;;  %v8162_v50 = vld [vmem:[%s9997_s0 + $0x6a8] ss:$16 sps:$4 sm:$0xff]  }
 0x2db   : > { %6015 = vmatpush2.bf16.msra.mxu1 %v8108_v51  ;;  %5975 = vmatprep.subr.bf16.mxu0 %v8113_v53 }
 0x2dc   : > { %6016 = vmatprep.subr.bf16.mxu1 %v8116_v54  ;;  %v8168_v54 = vld [vmem:[%s9997_s0 + $0x688] ss:$16 sps:$4 sm:$0xff]  }
 0x2de   : > { %5976 = vmatpush2.bf16.msra.mxu0 %v8111_v55  ;;  %v8173_v55 = vld [vmem:[%s9997_s0 + $0x46c] ss:$16 sps:$4 sm:$0xff]  }
 0x2df   : > { %6017 = vmatpush2.bf16.msra.mxu1 %v8114_v56  ;;  %5977 = vmatprep.subr.bf16.mxu0 %v8119_v59  ;;  %v8176_v56 = vld [vmem:[%s9997_s0 + $0x66c] ss:$16 sps:$4 sm:$0xff]   ;;  %v8171_v59 = vld [vmem:[%s9997_s0 + $0x468] ss:$16 sps:$4 sm:$0xff]  }
 0x2e0   : > { %6018 = vmatprep.subr.bf16.mxu1 %v8122_v62  ;;  %v8174_v62 = vld [vmem:[%s9997_s0 + $0x668] ss:$16 sps:$4 sm:$0xff]  }
 0x2e2   : > { %5978 = vmatpush2.bf16.msra.mxu0 %v8117_v57  ;;  %v8179_v57 = vld [vmem:[%s9997_s0 + $0x44c] ss:$16 sps:$4 sm:$0xff]  }
 0x2e3   : > { %6019 = vmatpush2.bf16.msra.mxu1 %v8120_v58  ;;  %5979 = vmatprep.subr.bf16.mxu0 %v8125_v63  ;;  %v8182_v58 = vld [vmem:[%s9997_s0 + $0x64c] ss:$16 sps:$4 sm:$0xff]   ;;  %v8177_v63 = vld [vmem:[%s9997_s0 + $0x448] ss:$16 sps:$4 sm:$0xff]  }
 0x2e4   : > { %6020 = vmatprep.subr.bf16.mxu1 %v8128_v1  ;;  %v8180_v1 = vld [vmem:[%s9997_s0 + $0x648] ss:$16 sps:$4 sm:$0xff]  }
 0x2e6   : > { %5980 = vmatpush2.bf16.msra.mxu0 %v8123_v2  ;;  %v8185_v2 = vld [vmem:[%s9997_s0 + $0x42c] ss:$16 sps:$4 sm:$0xff]  }
 0x2e7   : > { %6021 = vmatpush2.bf16.msra.mxu1 %v8126_v3  ;;  %5981 = vmatprep.subr.bf16.mxu0 %v8131_v5  ;;  %v8188_v3 = vld [vmem:[%s9997_s0 + $0x62c] ss:$16 sps:$4 sm:$0xff]   ;;  %v8183_v5 = vld [vmem:[%s9997_s0 + $0x428] ss:$16 sps:$4 sm:$0xff]  }
 0x2e8   : > { %6022 = vmatprep.subr.bf16.mxu1 %v8134_v4  ;;  %v8186_v4 = vld [vmem:[%s9997_s0 + $0x628] ss:$16 sps:$4 sm:$0xff]  }
 0x2ea   : > { %5982 = vmatpush2.bf16.msra.mxu0 %v8129_v9  ;;  %v8191_v9 = vld [vmem:[%s9997_s0 + $0x40c] ss:$16 sps:$4 sm:$0xff]  }
 0x2eb   : > { %6023 = vmatpush2.bf16.msra.mxu1 %v8132_v10  ;;  %5983 = vmatprep.subr.bf16.mxu0 %v8137_v14  ;;  %v8194_v10 = vld [vmem:[%s9997_s0 + $0x60c] ss:$16 sps:$4 sm:$0xff]   ;;  %v8189_v14 = vld [vmem:[%s9997_s0 + $0x408] ss:$16 sps:$4 sm:$0xff]  }
 0x2ec   : > { %6024 = vmatprep.subr.bf16.mxu1 %v8140_v48  ;;  %v8192_v48 = vld [vmem:[%s9997_s0 + $0x608] ss:$16 sps:$4 sm:$0xff]  }
 0x2ee   : > { %5984 = vmatpush2.bf16.msra.mxu0 %v8135_v52  ;;  %v8197_v52 = vld [vmem:[%s9997_s0 + $0x5ec] ss:$16 sps:$4 sm:$0xff]  }
 0x2ef   : > { %6025 = vmatpush2.bf16.msra.mxu1 %v8138_v11  ;;  %5985 = vmatprep.subr.bf16.mxu0 %v8143_v12  ;;  %v8200_v11 = vld [vmem:[%s9997_s0 + $0x7ec] ss:$16 sps:$4 sm:$0xff]   ;;  %v8195_v12 = vld [vmem:[%s9997_s0 + $0x5e8] ss:$16 sps:$4 sm:$0xff]  }
 0x2f0   : > { %6026 = vmatprep.subr.bf16.mxu1 %v8146_v13  ;;  %v8198_v13 = vld [vmem:[%s9997_s0 + $0x7e8] ss:$16 sps:$4 sm:$0xff]  }
 0x2f2   : > { %5986 = vmatpush2.bf16.msra.mxu0 %v8141_v15  ;;  %v8203_v15 = vld [vmem:[%s9997_s0 + $0x5cc] ss:$16 sps:$4 sm:$0xff]  }
 0x2f3   : > { %6027 = vmatpush2.bf16.msra.mxu1 %v8144_v16  ;;  %6037 = vmatprep.subr.bf16.mxu0 %v8149_v19  ;;  %v8206_v16 = vld [vmem:[%s9997_s0 + $0x7cc] ss:$16 sps:$4 sm:$0xff]   ;;  %v8201_v19 = vld [vmem:[%s9997_s0 + $0x5c8] ss:$16 sps:$4 sm:$0xff]  }
 0x2f4   : > { %6078 = vmatprep.subr.bf16.mxu1 %v8152_v20  ;;  %v8204_v20 = vld [vmem:[%s9997_s0 + $0x7c8] ss:$16 sps:$4 sm:$0xff]  }
 0x2f5   : > { %v5743_v30 = vpop.f32.mrf.mxu0  ;;  %5988 = vmatmul.mubr.bf16.vlgmr.msra.gmra.mxu0 %v10074_v7 }
 0x2f6   : > { %v5784_v31 = vpop.f32.mrf.mxu1  ;;  %6029 = vmatmul.mubr.bf16.vlgmr.msra.gmra.mxu1 %v10076_v8  ;;  %v5744_v32 = vadd.f32 %v5743_v30, %v10453_v0  ;;  %6038 = vmatpush1.bf16.msra.mxu0 %v8147_v21  ;;  %v8209_v21 = vld [vmem:[%s9997_s0 + $0x5ac] ss:$16 sps:$4 sm:$0xff]  }
 0x2f7   : > { %6079 = vmatpush1.bf16.msra.mxu1 %v8150_v22  ;;  %v5745_v34 = vpop.f32.mrf.mxu0  ;;  %6039 = vmatprep.subr.bf16.mxu0 %v8155_v27  ;;  %v8212_v22 = vld [vmem:[%s9997_s0 + $0x7ac] ss:$16 sps:$4 sm:$0xff]   ;;  %v8207_v27 = vld [vmem:[%s9997_s0 + $0x5a8] ss:$16 sps:$4 sm:$0xff]  }
 0x2f8   : > { %v5786_v35 = vpop.f32.mrf.mxu1  ;;  %6080 = vmatprep.subr.bf16.mxu1 %v8158_v28  ;;  %v10527_v44 = vadd.f32 %v5784_v31, %v5744_v32  ;;  %v5746_v7 = vadd.f32 %v5745_v34, %v10460_v6  ;;  %6069 = vmatprep.mubr.bf16.mxu0 %v10114_v37  ;;  %v8167_v37 = vld [vmem:[%s9997_s0 + $0x48c] ss:$16 sps:$4 sm:$0xff]   ;;  %v8165_v6 = vld [vmem:[%s9997_s0 + $0x488] ss:$16 sps:$4 sm:$0xff]  }
 0x2f9   : > { %6110 = vmatprep.mubr.bf16.mxu1 %v10118_v38  ;;  %v5747_v8 = vpop.f32.mrf.mxu0  ;;  %v8170_v38 = vld [vmem:[%s9997_s0 + $0x68c] ss:$16 sps:$4 sm:$0xff]   ;;  %v8210_v28 = vld [vmem:[%s9997_s0 + $0x7a8] ss:$16 sps:$4 sm:$0xff]  }
 0x2fa   : > { %v5788_v0 = vpop.f32.mrf.mxu1  ;;  %v10532_v45 = vadd.f32 %v5786_v35, %v5746_v7  ;;  %6040 = vmatpush1.bf16.msra.mxu0 %v8153_v29  ;;  %v8215_v29 = vld [vmem:[%s9997_s0 + $0x58c] ss:$16 sps:$4 sm:$0xff]   ;;  %v8213_v31 = vld [vmem:[%s9997_s0 + $0x588] ss:$16 sps:$4 sm:$0xff]  }
 0x2fb   : > { %6081 = vmatpush1.bf16.msra.mxu1 %v8156_v33  ;;  %v5748_v51 = vpop.f32.mrf.mxu0  ;;  %6041 = vmatprep.subr.bf16.mxu0 %v8161_v36  ;;  %v8218_v30 = vld [vmem:[%s9997_s0 + $0x78c] ss:$16 sps:$4 sm:$0xff]   ;;  %v8216_v32 = vld [vmem:[%s9997_s0 + $0x788] ss:$16 sps:$4 sm:$0xff]  }
 0x2fc   : > { %v5789_v53 = vpop.f32.mrf.mxu1  ;;  %6082 = vmatprep.subr.bf16.mxu1 %v8164_v43  ;;  %v8221_v33 = vld [vmem:[%s9997_s0 + $0x56c] ss:$16 sps:$4 sm:$0xff]   ;;  %v8219_v35 = vld [vmem:[%s9997_s0 + $0x568] ss:$16 sps:$4 sm:$0xff]  }
 0x2fd   : > { %v8224_v34 = vld [vmem:[%s9997_s0 + $0x76c] ss:$16 sps:$4 sm:$0xff]   ;;  %v8222_v36 = vld [vmem:[%s9997_s0 + $0x768] ss:$16 sps:$4 sm:$0xff]  }
 0x2fe   : > { %6042 = vmatpush1.bf16.msra.mxu0 %v8159_v46  ;;  %v8227_v43 = vld [vmem:[%s9997_s0 + $0x54c] ss:$16 sps:$4 sm:$0xff]   ;;  %v8225_v8 = vld [vmem:[%s9997_s0 + $0x548] ss:$16 sps:$4 sm:$0xff]  }
 0x2ff   : > { %6083 = vmatpush1.bf16.msra.mxu1 %v8162_v50  ;;  %6043 = vmatprep.subr.bf16.mxu0 %v8167_v37  ;;  %v8230_v7 = vld [vmem:[%s9997_s0 + $0x74c] ss:$16 sps:$4 sm:$0xff]   ;;  %v8228_v0 = vld [vmem:[%s9997_s0 + $0x748] ss:$16 sps:$4 sm:$0xff]  }
 0x300   : > { %6084 = vmatprep.subr.bf16.mxu1 %v8170_v38  ;;  %v8233_v46 = vld [vmem:[%s9997_s0 + $0x52c] ss:$16 sps:$4 sm:$0xff]   ;;  %v8231_v51 = vld [vmem:[%s9997_s0 + $0x528] ss:$16 sps:$4 sm:$0xff]  }
 0x301   : > { %v8236_v50 = vld [vmem:[%s9997_s0 + $0x72c] ss:$16 sps:$4 sm:$0xff]   ;;  %v8234_v53 = vld [vmem:[%s9997_s0 + $0x728] ss:$16 sps:$4 sm:$0xff]  }
 0x302   : > { %6044 = vmatpush1.bf16.msra.mxu0 %v8165_v6  ;;  %v8239_v37 = vld [vmem:[%s9997_s0 + $0x50c] ss:$16 sps:$4 sm:$0xff]   ;;  %v8237_v6 = vld [vmem:[%s9997_s0 + $0x508] ss:$16 sps:$4 sm:$0xff]  }
 0x303   : > { %6085 = vmatpush1.bf16.msra.mxu1 %v8168_v54  ;;  %6045 = vmatprep.subr.bf16.mxu0 %v8173_v55  ;;  %v8242_v38 = vld [vmem:[%s9997_s0 + $0x70c] ss:$16 sps:$4 sm:$0xff]   ;;  %v8240_v54 = vld [vmem:[%s9997_s0 + $0x708] ss:$16 sps:$4 sm:$0xff]  }
 0x304   : > { %6086 = vmatprep.subr.bf16.mxu1 %v8176_v56  ;;  %v8245_v55 = vld [vmem:[%s9997_s0 + $0x8ec] ss:$16 sps:$4 sm:$0xff]  }
 0x305   : > { %v8248_v56 = vld [vmem:[%s9997_s0 + $0xaec] ss:$16 sps:$4 sm:$0xff]  }
 0x306   : > { %6046 = vmatpush1.bf16.msra.mxu0 %v8171_v59  ;;  %v8243_v59 = vld [vmem:[%s9997_s0 + $0x8e8] ss:$16 sps:$4 sm:$0xff]  }
 0x307   : > { %6087 = vmatpush1.bf16.msra.mxu1 %v8174_v62  ;;  %6047 = vmatprep.subr.bf16.mxu0 %v8179_v57  ;;  %v8246_v62 = vld [vmem:[%s9997_s0 + $0xae8] ss:$16 sps:$4 sm:$0xff]   ;;  %v8251_v57 = vld [vmem:[%s9997_s0 + $0x8cc] ss:$16 sps:$4 sm:$0xff]  }
 0x308   : > { %6088 = vmatprep.subr.bf16.mxu1 %v8182_v58  ;;  %v8254_v58 = vld [vmem:[%s9997_s0 + $0xacc] ss:$16 sps:$4 sm:$0xff]  }
 0x30a   : > { %6048 = vmatpush1.bf16.msra.mxu0 %v8177_v63 }
 0x30b   : > { %6089 = vmatpush1.bf16.msra.mxu1 %v8180_v1  ;;  %6049 = vmatprep.subr.bf16.mxu0 %v8185_v2  ;;  %v8249_v2 = vld [vmem:[%s9997_s0 + $0x8c8] ss:$16 sps:$4 sm:$0xff]  }
 0x30c   : > { %6090 = vmatprep.subr.bf16.mxu1 %v8188_v3  ;;  %v8252_v3 = vld [vmem:[%s9997_s0 + $0xac8] ss:$16 sps:$4 sm:$0xff]  }
 0x30e   : > { %6050 = vmatpush1.bf16.msra.mxu0 %v8183_v5 }
 0x30f   : > { %6091 = vmatpush1.bf16.msra.mxu1 %v8186_v4  ;;  %6051 = vmatprep.subr.bf16.mxu0 %v8191_v9  ;;  %v8257_v9 = vld [vmem:[%s9997_s0 + $0x8ac] ss:$16 sps:$4 sm:$0xff]  }
 0x310   : > { %6092 = vmatprep.subr.bf16.mxu1 %v8194_v10  ;;  %v8260_v10 = vld [vmem:[%s9997_s0 + $0xaac] ss:$16 sps:$4 sm:$0xff]  }
 0x312   : > { %6052 = vmatpush1.bf16.msra.mxu0 %v8189_v14  ;;  %v8255_v14 = vld [vmem:[%s9997_s0 + $0x8a8] ss:$16 sps:$4 sm:$0xff]  }
 0x313   : > { %6093 = vmatpush1.bf16.msra.mxu1 %v8192_v48  ;;  %6053 = vmatprep.subr.bf16.mxu0 %v8197_v52  ;;  %v8258_v48 = vld [vmem:[%s9997_s0 + $0xaa8] ss:$16 sps:$4 sm:$0xff]  }
 0x314   : > { %6094 = vmatprep.subr.bf16.mxu1 %v8200_v11 }
 0x316   : > { %6054 = vmatpush2.bf16.msra.mxu0 %v8195_v12  ;;  %v8263_v12 = vld [vmem:[%s9997_s0 + $0x88c] ss:$16 sps:$4 sm:$0xff]  }
 0x317   : > { %6095 = vmatpush2.bf16.msra.mxu1 %v8198_v13  ;;  %6055 = vmatprep.subr.bf16.mxu0 %v8203_v15  ;;  %v8264_v13 = vld [vmem:[%s9997_s0 + $0xa88] ss:$16 sps:$4 sm:$0xff]   ;;  %v8269_v15 = vld [vmem:[%s9997_s0 + $0x86c] ss:$16 sps:$4 sm:$0xff]  }
 0x318   : > { %6096 = vmatprep.subr.bf16.mxu1 %v8206_v16  ;;  %v8272_v16 = vld [vmem:[%s9997_s0 + $0xa6c] ss:$16 sps:$4 sm:$0xff]  }
 0x31a   : > { %6056 = vmatpush2.bf16.msra.mxu0 %v8201_v19  ;;  %v8267_v19 = vld [vmem:[%s9997_s0 + $0x868] ss:$16 sps:$4 sm:$0xff]  }
 0x31b   : > { %6097 = vmatpush2.bf16.msra.mxu1 %v8204_v20  ;;  %6057 = vmatprep.subr.bf16.mxu0 %v8209_v21  ;;  %v8270_v20 = vld [vmem:[%s9997_s0 + $0xa68] ss:$16 sps:$4 sm:$0xff]   ;;  %v8275_v21 = vld [vmem:[%s9997_s0 + $0x84c] ss:$16 sps:$4 sm:$0xff]  }
 0x31c   : > { %6098 = vmatprep.subr.bf16.mxu1 %v8212_v22  ;;  %v8278_v22 = vld [vmem:[%s9997_s0 + $0xa4c] ss:$16 sps:$4 sm:$0xff]  }
 0x31e   : > { %6058 = vmatpush2.bf16.msra.mxu0 %v8207_v27  ;;  %v8273_v27 = vld [vmem:[%s9997_s0 + $0x848] ss:$16 sps:$4 sm:$0xff]  }
 0x31f   : > { %6099 = vmatpush2.bf16.msra.mxu1 %v8210_v28  ;;  %6059 = vmatprep.subr.bf16.mxu0 %v8215_v29  ;;  %v8276_v28 = vld [vmem:[%s9997_s0 + $0xa48] ss:$16 sps:$4 sm:$0xff]   ;;  %v8281_v29 = vld [vmem:[%s9997_s0 + $0x82c] ss:$16 sps:$4 sm:$0xff]  }
 0x320   : > { %6100 = vmatprep.subr.bf16.mxu1 %v8218_v30  ;;  %v8284_v30 = vld [vmem:[%s9997_s0 + $0xa2c] ss:$16 sps:$4 sm:$0xff]  }
 0x322   : > { %6060 = vmatpush2.bf16.msra.mxu0 %v8213_v31  ;;  %v8279_v31 = vld [vmem:[%s9997_s0 + $0x828] ss:$16 sps:$4 sm:$0xff]  }
 0x323   : > { %6101 = vmatpush2.bf16.msra.mxu1 %v8216_v32  ;;  %6061 = vmatprep.subr.bf16.mxu0 %v8221_v33  ;;  %v8282_v32 = vld [vmem:[%s9997_s0 + $0xa28] ss:$16 sps:$4 sm:$0xff]   ;;  %v8287_v33 = vld [vmem:[%s9997_s0 + $0x80c] ss:$16 sps:$4 sm:$0xff]  }
 0x324   : > { %6102 = vmatprep.subr.bf16.mxu1 %v8224_v34  ;;  %v8290_v34 = vld [vmem:[%s9997_s0 + $0xa0c] ss:$16 sps:$4 sm:$0xff]  }
 0x326   : > { %6062 = vmatpush2.bf16.msra.mxu0 %v8219_v35  ;;  %v8285_v35 = vld [vmem:[%s9997_s0 + $0x808] ss:$16 sps:$4 sm:$0xff]  }
 0x327   : > { %6103 = vmatpush2.bf16.msra.mxu1 %v8222_v36  ;;  %6063 = vmatprep.subr.bf16.mxu0 %v8227_v43  ;;  %v8288_v36 = vld [vmem:[%s9997_s0 + $0xa08] ss:$16 sps:$4 sm:$0xff]   ;;  %v8293_v43 = vld [vmem:[%s9997_s0 + $0x9ec] ss:$16 sps:$4 sm:$0xff]  }
 0x328   : > { %6104 = vmatprep.subr.bf16.mxu1 %v8230_v7  ;;  %v8296_v7 = vld [vmem:[%s9997_s0 + $0xbec] ss:$16 sps:$4 sm:$0xff]  }
 0x32a   : > { %6064 = vmatpush2.bf16.msra.mxu0 %v8225_v8  ;;  %v8291_v8 = vld [vmem:[%s9997_s0 + $0x9e8] ss:$16 sps:$4 sm:$0xff]  }
 0x32b   : > { %6105 = vmatpush2.bf16.msra.mxu1 %v8228_v0  ;;  %6065 = vmatprep.subr.bf16.mxu0 %v8233_v46  ;;  %v8294_v0 = vld [vmem:[%s9997_s0 + $0xbe8] ss:$16 sps:$4 sm:$0xff]   ;;  %v8299_v46 = vld [vmem:[%s9997_s0 + $0x9cc] ss:$16 sps:$4 sm:$0xff]  }
 0x32c   : > { %6106 = vmatprep.subr.bf16.mxu1 %v8236_v50  ;;  %v8302_v50 = vld [vmem:[%s9997_s0 + $0xbcc] ss:$16 sps:$4 sm:$0xff]  }
 0x32e   : > { %6066 = vmatpush2.bf16.msra.mxu0 %v8231_v51  ;;  %v8297_v51 = vld [vmem:[%s9997_s0 + $0x9c8] ss:$16 sps:$4 sm:$0xff]  }
 0x32f   : > { %6107 = vmatpush2.bf16.msra.mxu1 %v8234_v53  ;;  %6067 = vmatprep.subr.bf16.mxu0 %v8239_v37  ;;  %v8300_v53 = vld [vmem:[%s9997_s0 + $0xbc8] ss:$16 sps:$4 sm:$0xff]   ;;  %v8305_v37 = vld [vmem:[%s9997_s0 + $0x9ac] ss:$16 sps:$4 sm:$0xff]  }
 0x330   : > { %6108 = vmatprep.subr.bf16.mxu1 %v8242_v38  ;;  %v8308_v38 = vld [vmem:[%s9997_s0 + $0xbac] ss:$16 sps:$4 sm:$0xff]  }
 0x332   : > { %6068 = vmatpush2.bf16.msra.mxu0 %v8237_v6  ;;  %v8303_v6 = vld [vmem:[%s9997_s0 + $0x9a8] ss:$16 sps:$4 sm:$0xff]  }
 0x333   : > { %6109 = vmatpush2.bf16.msra.mxu1 %v8240_v54  ;;  %6119 = vmatprep.subr.bf16.mxu0 %v8245_v55  ;;  %v8306_v54 = vld [vmem:[%s9997_s0 + $0xba8] ss:$16 sps:$4 sm:$0xff]   ;;  %v8311_v55 = vld [vmem:[%s9997_s0 + $0x98c] ss:$16 sps:$4 sm:$0xff]  }
 0x334   : > { %6160 = vmatprep.subr.bf16.mxu1 %v8248_v56  ;;  %v8314_v56 = vld [vmem:[%s9997_s0 + $0xb8c] ss:$16 sps:$4 sm:$0xff]  }
 0x335   : > { %v10594_v63 = vpop.f32.mrf.mxu0  ;;  %6070 = vmatmul.mubr.bf16.vlgmr.msra.gmra.mxu0 %v10162_v17 }
 0x336   : > { %v10596_v1 = vpop.f32.mrf.mxu1  ;;  %6111 = vmatmul.mubr.bf16.vlgmr.msra.gmra.mxu1 %v10166_v18  ;;  %6120 = vmatpush1.bf16.msra.mxu0 %v8243_v59  ;;  %v8309_v59 = vld [vmem:[%s9997_s0 + $0x988] ss:$16 sps:$4 sm:$0xff]  }
 0x337   : > { %6161 = vmatpush1.bf16.msra.mxu1 %v8246_v62  ;;  %v10602_v5 = vpop.f32.mrf.mxu0  ;;  %6121 = vmatprep.subr.bf16.mxu0 %v8251_v57  ;;  %v8312_v62 = vld [vmem:[%s9997_s0 + $0xb88] ss:$16 sps:$4 sm:$0xff]   ;;  %v8317_v57 = vld [vmem:[%s9997_s0 + $0x96c] ss:$16 sps:$4 sm:$0xff]  }
 0x338   : > { %v10604_v4 = vpop.f32.mrf.mxu1  ;;  %6162 = vmatprep.subr.bf16.mxu1 %v8254_v58  ;;  %6151 = vmatprep.mubr.bf16.mxu0 %v10180_v25  ;;  %v8266_v25 = vld [vmem:[%s9997_s0 + $0xa8c] ss:$16 sps:$4 sm:$0xff]  }
 0x339   : > { %6192 = vmatprep.mubr.bf16.mxu1 %v10184_v26  ;;  %v5829_v17 = vpop.f32.mrf.mxu0  ;;  %v8261_v26 = vld [vmem:[%s9997_s0 + $0x888] ss:$16 sps:$4 sm:$0xff]   ;;  %v8320_v58 = vld [vmem:[%s9997_s0 + $0xb6c] ss:$16 sps:$4 sm:$0xff]  }
 0x33a   : > { %v5870_v18 = vpop.f32.mrf.mxu1  ;;  %6122 = vmatpush1.bf16.msra.mxu0 %v8249_v2  ;;  %v8315_v2 = vld [vmem:[%s9997_s0 + $0x968] ss:$16 sps:$4 sm:$0xff]  }
 0x33b   : > { %6163 = vmatpush1.bf16.msra.mxu1 %v8252_v3  ;;  %v5830_v52 = vpop.f32.mrf.mxu0  ;;  %6123 = vmatprep.subr.bf16.mxu0 %v8257_v9  ;;  %v8318_v3 = vld [vmem:[%s9997_s0 + $0xb68] ss:$16 sps:$4 sm:$0xff]   ;;  %v8323_v9 = vld [vmem:[%s9997_s0 + $0x94c] ss:$16 sps:$4 sm:$0xff]  }
 0x33c   : > { %v5871_v11 = vpop.f32.mrf.mxu1  ;;  %6164 = vmatprep.subr.bf16.mxu1 %v8260_v10  ;;  %v8326_v10 = vld [vmem:[%s9997_s0 + $0xb4c] ss:$16 sps:$4 sm:$0xff]   ;;  %v8321_v17 = vld [vmem:[%s9997_s0 + $0x948] ss:$16 sps:$4 sm:$0xff]  }
 0x33d   : > { %v8324_v18 = vld [vmem:[%s9997_s0 + $0xb48] ss:$16 sps:$4 sm:$0xff]  }
 0x33e   : > { %6124 = vmatpush1.bf16.msra.mxu0 %v8255_v14  ;;  %v8329_v14 = vld [vmem:[%s9997_s0 + $0x92c] ss:$16 sps:$4 sm:$0xff]   ;;  %v8327_v52 = vld [vmem:[%s9997_s0 + $0x928] ss:$16 sps:$4 sm:$0xff]  }
 0x33f   : > { %6165 = vmatpush1.bf16.msra.mxu1 %v8258_v48  ;;  %6125 = vmatprep.subr.bf16.mxu0 %v8263_v12  ;;  %v8332_v48 = vld [vmem:[%s9997_s0 + $0xb2c] ss:$16 sps:$4 sm:$0xff]   ;;  %v8330_v11 = vld [vmem:[%s9997_s0 + $0xb28] ss:$16 sps:$4 sm:$0xff]  }
 0x340   : > { %6166 = vmatprep.subr.bf16.mxu1 %v8266_v25  ;;  %v8335_v12 = vld [vmem:[%s9997_s0 + $0x90c] ss:$16 sps:$4 sm:$0xff]  }
 0x341   : > { %v8338_v25 = vld [vmem:[%s9997_s0 + $0xb0c] ss:$16 sps:$4 sm:$0xff]  }
 0x342   : > { %6126 = vmatpush1.bf16.msra.mxu0 %v8261_v26  ;;  %v8333_v26 = vld [vmem:[%s9997_s0 + $0x908] ss:$16 sps:$4 sm:$0xff]  }
 0x343   : > { %6167 = vmatpush1.bf16.msra.mxu1 %v8264_v13  ;;  %6127 = vmatprep.subr.bf16.mxu0 %v8269_v15  ;;  %v8336_v13 = vld [vmem:[%s9997_s0 + $0xb08] ss:$16 sps:$4 sm:$0xff]   ;;  %v8341_v15 = vld [vmem:[%s9997_s0 + $0xcec] ss:$16 sps:$4 sm:$0xff]  }
 0x344   : > { %6168 = vmatprep.subr.bf16.mxu1 %v8272_v16  ;;  %v8344_v16 = vld [vmem:[%s9997_s0 + $0xeec] ss:$16 sps:$4 sm:$0xff]  }
 0x346   : > { %6128 = vmatpush1.bf16.msra.mxu0 %v8267_v19  ;;  %v5826_v19 = vadd.f32 %v10594_v63, %v10527_v44  ;;  %v8345_v63 = vld [vmem:[%s9997_s0 + $0xcc8] ss:$16 sps:$4 sm:$0xff]  }
 0x347   : > { %6169 = vmatpush1.bf16.msra.mxu1 %v8270_v20  ;;  %6129 = vmatprep.subr.bf16.mxu0 %v8275_v21  ;;  %v5828_v20 = vadd.f32 %v10602_v5, %v10532_v45  ;;  %v8339_v21 = vld [vmem:[%s9997_s0 + $0xce8] ss:$16 sps:$4 sm:$0xff]  }
 0x348   : > { %6170 = vmatprep.subr.bf16.mxu1 %v8278_v22  ;;  %v8342_v22 = vld [vmem:[%s9997_s0 + $0xee8] ss:$16 sps:$4 sm:$0xff]  }
 0x349   : > { %v5869_v44 = vadd.f32 %v10604_v4, %v5828_v20  ;;  %v8348_v5 = vld [vmem:[%s9997_s0 + $0xec8] ss:$16 sps:$4 sm:$0xff]   ;;  %v8404_v20 = vld [vmem:[%s9997_s0 + $0xfac] ss:$16 sps:$4 sm:$0xff]  }
 0x34a   : > { %6130 = vmatpush1.bf16.msra.mxu0 %v8273_v27  ;;  %v8347_v27 = vld [vmem:[%s9997_s0 + $0xccc] ss:$16 sps:$4 sm:$0xff]  }
 0x34b   : > { %6171 = vmatpush1.bf16.msra.mxu1 %v8276_v28  ;;  %6131 = vmatprep.subr.bf16.mxu0 %v8281_v29  ;;  %v8350_v28 = vld [vmem:[%s9997_s0 + $0xecc] ss:$16 sps:$4 sm:$0xff]   ;;  %v5867_v29 = vadd.f32 %v10596_v1, %v5826_v19 }
 0x34c   : > { %6172 = vmatprep.subr.bf16.mxu1 %v8284_v30  ;;  %v8353_v1 = vld [vmem:[%s9997_s0 + $0xcac] ss:$16 sps:$4 sm:$0xff]  }
 0x34d   : > { %v8401_v19 = vld [vmem:[%s9997_s0 + $0xdac] ss:$16 sps:$4 sm:$0xff]  }
 0x34e   : > { %6132 = vmatpush1.bf16.msra.mxu0 %v8279_v31 }
 0x34f   : > { %6173 = vmatpush1.bf16.msra.mxu1 %v8282_v32  ;;  %6133 = vmatprep.subr.bf16.mxu0 %v8287_v33  ;;  %v1621_v32 = vld [vmem:[#allocation2 + $0x10] sm:$0xff] }
 0x350   : > { %6174 = vmatprep.subr.bf16.mxu1 %v8290_v34 }
 0x352   : > { %6134 = vmatpush1.bf16.msra.mxu0 %v8285_v35  ;;  %v8356_v35 = vld [vmem:[%s9997_s0 + $0xeac] ss:$16 sps:$4 sm:$0xff]  }
 0x353   : > { %6175 = vmatpush1.bf16.msra.mxu1 %v8288_v36  ;;  %6135 = vmatprep.subr.bf16.mxu0 %v8293_v43 }
 0x354   : > { %6176 = vmatprep.subr.bf16.mxu1 %v8296_v7 }
 0x356   : > { %6136 = vmatpush2.bf16.msra.mxu0 %v8291_v8 }
 0x357   : > { %6177 = vmatpush2.bf16.msra.mxu1 %v8294_v0  ;;  %6137 = vmatprep.subr.bf16.mxu0 %v8299_v46  ;;  %v8351_v0 = vld [vmem:[%s9997_s0 + $0xca8] ss:$16 sps:$4 sm:$0xff]  }
 0x358   : > { %6178 = vmatprep.subr.bf16.mxu1 %v8302_v50  ;;  %v8354_v46 = vld [vmem:[%s9997_s0 + $0xea8] ss:$16 sps:$4 sm:$0xff]  }
 0x35a   : > { %6138 = vmatpush2.bf16.msra.mxu0 %v8297_v51 }
 0x35b   : > { %6179 = vmatpush2.bf16.msra.mxu1 %v8300_v53  ;;  %6139 = vmatprep.subr.bf16.mxu0 %v8305_v37  ;;  %v8357_v37 = vld [vmem:[%s9997_s0 + $0xc88] ss:$16 sps:$4 sm:$0xff]  }
 0x35c   : > { %6180 = vmatprep.subr.bf16.mxu1 %v8308_v38  ;;  %v8360_v38 = vld [vmem:[%s9997_s0 + $0xe88] ss:$16 sps:$4 sm:$0xff]  }
 0x35e   : > { %6140 = vmatpush2.bf16.msra.mxu0 %v8303_v6  ;;  %v8365_v6 = vld [vmem:[%s9997_s0 + $0xc6c] ss:$16 sps:$4 sm:$0xff]  }
 0x35f   : > { %6181 = vmatpush2.bf16.msra.mxu1 %v8306_v54  ;;  %6141 = vmatprep.subr.bf16.mxu0 %v8311_v55  ;;  %v8368_v54 = vld [vmem:[%s9997_s0 + $0xe6c] ss:$16 sps:$4 sm:$0xff]   ;;  %v8363_v55 = vld [vmem:[%s9997_s0 + $0xc68] ss:$16 sps:$4 sm:$0xff]  }
 0x360   : > { %6182 = vmatprep.subr.bf16.mxu1 %v8314_v56  ;;  %v8366_v56 = vld [vmem:[%s9997_s0 + $0xe68] ss:$16 sps:$4 sm:$0xff]  }
 0x362   : > { %6142 = vmatpush2.bf16.msra.mxu0 %v8309_v59  ;;  %v8371_v59 = vld [vmem:[%s9997_s0 + $0xc4c] ss:$16 sps:$4 sm:$0xff]  }
 0x363   : > { %6183 = vmatpush2.bf16.msra.mxu1 %v8312_v62  ;;  %6143 = vmatprep.subr.bf16.mxu0 %v8317_v57  ;;  %v8374_v62 = vld [vmem:[%s9997_s0 + $0xe4c] ss:$16 sps:$4 sm:$0xff]   ;;  %v8369_v57 = vld [vmem:[%s9997_s0 + $0xc48] ss:$16 sps:$4 sm:$0xff]  }
 0x364   : > { %6184 = vmatprep.subr.bf16.mxu1 %v8320_v58  ;;  %v8372_v58 = vld [vmem:[%s9997_s0 + $0xe48] ss:$16 sps:$4 sm:$0xff]  }
 0x366   : > { %6144 = vmatpush2.bf16.msra.mxu0 %v8315_v2  ;;  %v8377_v2 = vld [vmem:[%s9997_s0 + $0xc2c] ss:$16 sps:$4 sm:$0xff]  }
 0x367   : > { %6185 = vmatpush2.bf16.msra.mxu1 %v8318_v3  ;;  %6145 = vmatprep.subr.bf16.mxu0 %v8323_v9  ;;  %v8380_v3 = vld [vmem:[%s9997_s0 + $0xe2c] ss:$16 sps:$4 sm:$0xff]   ;;  %v8375_v9 = vld [vmem:[%s9997_s0 + $0xc28] ss:$16 sps:$4 sm:$0xff]  }
 0x368   : > { %6186 = vmatprep.subr.bf16.mxu1 %v8326_v10  ;;  %v8378_v10 = vld [vmem:[%s9997_s0 + $0xe28] ss:$16 sps:$4 sm:$0xff]  }
 0x36a   : > { %6146 = vmatpush2.bf16.msra.mxu0 %v8321_v17  ;;  %v8383_v17 = vld [vmem:[%s9997_s0 + $0xc0c] ss:$16 sps:$4 sm:$0xff]  }
 0x36b   : > { %6187 = vmatpush2.bf16.msra.mxu1 %v8324_v18  ;;  %6147 = vmatprep.subr.bf16.mxu0 %v8329_v14  ;;  %v8386_v18 = vld [vmem:[%s9997_s0 + $0xe0c] ss:$16 sps:$4 sm:$0xff]   ;;  %v8381_v14 = vld [vmem:[%s9997_s0 + $0xc08] ss:$16 sps:$4 sm:$0xff]  }
 0x36c   : > { %6188 = vmatprep.subr.bf16.mxu1 %v8332_v48  ;;  %v8384_v48 = vld [vmem:[%s9997_s0 + $0xe08] ss:$16 sps:$4 sm:$0xff]  }
 0x36e   : > { %6148 = vmatpush2.bf16.msra.mxu0 %v8327_v52  ;;  %v8389_v52 = vld [vmem:[%s9997_s0 + $0xdec] ss:$16 sps:$4 sm:$0xff]  }
 0x36f   : > { %6189 = vmatpush2.bf16.msra.mxu1 %v8330_v11  ;;  %6149 = vmatprep.subr.bf16.mxu0 %v8335_v12  ;;  %v8392_v11 = vld [vmem:[%s9997_s0 + $0xfec] ss:$16 sps:$4 sm:$0xff]   ;;  %v8387_v12 = vld [vmem:[%s9997_s0 + $0xde8] ss:$16 sps:$4 sm:$0xff]  }
 0x370   : > { %6190 = vmatprep.subr.bf16.mxu1 %v8338_v25  ;;  %v8390_v25 = vld [vmem:[%s9997_s0 + $0xfe8] ss:$16 sps:$4 sm:$0xff]  }
 0x372   : > { %6150 = vmatpush2.bf16.msra.mxu0 %v8333_v26  ;;  %v8395_v26 = vld [vmem:[%s9997_s0 + $0xdcc] ss:$16 sps:$4 sm:$0xff]  }
 0x373   : > { %6191 = vmatpush2.bf16.msra.mxu1 %v8336_v13  ;;  %6201 = vmatprep.subr.bf16.mxu0 %v8341_v15  ;;  %v8398_v13 = vld [vmem:[%s9997_s0 + $0xfcc] ss:$16 sps:$4 sm:$0xff]   ;;  %v8393_v15 = vld [vmem:[%s9997_s0 + $0xdc8] ss:$16 sps:$4 sm:$0xff]  }
 0x374   : > { %6242 = vmatprep.subr.bf16.mxu1 %v8344_v16  ;;  %v8396_v16 = vld [vmem:[%s9997_s0 + $0xfc8] ss:$16 sps:$4 sm:$0xff]  }
 0x375   : > { %v5907_v30 = vpop.f32.mrf.mxu0  ;;  %6152 = vmatmul.mubr.bf16.vlgmr.msra.gmra.mxu0 %v10254_v39 }
 0x376   : > { %v5948_v31 = vpop.f32.mrf.mxu1  ;;  %6193 = vmatmul.mubr.bf16.vlgmr.msra.gmra.mxu1 %v10258_v40  ;;  %v5908_v45 = vadd.f32 %v5907_v30, %v5867_v29  ;;  %6202 = vmatpush1.bf16.msra.mxu0 %v8339_v21  ;;  %v1622_v40 = vld [vmem:[#allocation2] sm:$0xff]  ;;  %v8399_v21 = vld [vmem:[%s9997_s0 + $0xda8] ss:$16 sps:$4 sm:$0xff]  }
 0x377   : > { %6243 = vmatpush1.bf16.msra.mxu1 %v8342_v22  ;;  %v5909_v33 = vpop.f32.mrf.mxu0  ;;  %6203 = vmatprep.subr.bf16.mxu0 %v8347_v27  ;;  %v8402_v22 = vld [vmem:[%s9997_s0 + $0xfa8] ss:$16 sps:$4 sm:$0xff]   ;;  %v8407_v27 = vld [vmem:[%s9997_s0 + $0xd8c] ss:$16 sps:$4 sm:$0xff]  }
 0x378   : > { %v5950_v34 = vpop.f32.mrf.mxu1  ;;  %6244 = vmatprep.subr.bf16.mxu1 %v8350_v28  ;;  %v5949_v36 = vadd.f32 %v5948_v31, %v5908_v45  ;;  %v5910_v39 = vadd.f32 %v5909_v33, %v5869_v44  ;;  %6233 = vmatprep.mubr.bf16.mxu0 %v10270_v23  ;;  %v8359_v23 = vld [vmem:[%s9997_s0 + $0xc8c] ss:$16 sps:$4 sm:$0xff]   ;;  %v8405_v29 = vld [vmem:[%s9997_s0 + $0xd88] ss:$16 sps:$4 sm:$0xff]  }
 0x379   : > { %6274 = vmatprep.mubr.bf16.mxu1 %v10274_v24  ;;  %v5911_v4 = vpop.f32.mrf.mxu0  ;;  %v8362_v24 = vld [vmem:[%s9997_s0 + $0xe8c] ss:$16 sps:$4 sm:$0xff]   ;;  %v8408_v30 = vld [vmem:[%s9997_s0 + $0xf88] ss:$16 sps:$4 sm:$0xff]  }
 0x37a   : > { %v5952_v43 = vpop.f32.mrf.mxu1  ;;  %v6365_v7 = vadd.f32 %v5949_v36, %v1621_v32  ;;  %v5951_v8 = vadd.f32 %v5950_v34, %v5910_v39  ;;  %6204 = vmatpush1.bf16.msra.mxu0 %v8345_v63  ;;  %v8410_v28 = vld [vmem:[%s9997_s0 + $0xf8c] ss:$16 sps:$4 sm:$0xff]   ;;  %v8411_v45 = vld [vmem:[%s9997_s0 + $0xd68] ss:$16 sps:$4 sm:$0xff]  }
 0x37b   : > { %6245 = vmatpush1.bf16.msra.mxu1 %v8348_v5  ;;  %v5912_v50 = vpop.f32.mrf.mxu0  ;;  %6205 = vmatprep.subr.bf16.mxu0 %v8353_v1  ;;  %v8413_v31 = vld [vmem:[%s9997_s0 + $0xd6c] ss:$16 sps:$4 sm:$0xff]   ;;  %v8414_v63 = vld [vmem:[%s9997_s0 + $0xf68] ss:$16 sps:$4 sm:$0xff]  }
 0x37c   : > { %v5953_v51 = vpop.f32.mrf.mxu1  ;;  %6246 = vmatprep.subr.bf16.mxu1 %v8356_v35  ;;  %6369 = vst [vmem:[#allocation2 + $0x10] sm:$0xff] %v6365_v7  ;;  %v6366_v53 = vadd.f32 %v5951_v8, %v1622_v40  ;;  %v8416_v44 = vld [vmem:[%s9997_s0 + $0xf6c] ss:$16 sps:$4 sm:$0xff]   ;;  %v8417_v33 = vld [vmem:[%s9997_s0 + $0xd48] ss:$16 sps:$4 sm:$0xff]  }
 0x37d   : > { %v8419_v5 = vld [vmem:[%s9997_s0 + $0xd4c] ss:$16 sps:$4 sm:$0xff]   ;;  %v8420_v34 = vld [vmem:[%s9997_s0 + $0xf48] ss:$16 sps:$4 sm:$0xff]  }
 0x37e   : > { %6370 = vst [vmem:[#allocation2] sm:$0xff] %v6366_v53  ;;  %6206 = vmatpush1.bf16.msra.mxu0 %v8351_v0  ;;  %v8422_v32 = vld [vmem:[%s9997_s0 + $0xf4c] ss:$16 sps:$4 sm:$0xff]   ;;  %v8423_v36 = vld [vmem:[%s9997_s0 + $0xd28] ss:$16 sps:$4 sm:$0xff]  }
 0x37f   : > { %6247 = vmatpush1.bf16.msra.mxu1 %v8354_v46  ;;  %6207 = vmatprep.subr.bf16.mxu0 %v8359_v23  ;;  %v8425_v1 = vld [vmem:[%s9997_s0 + $0xd2c] ss:$16 sps:$4 sm:$0xff]   ;;  %v8426_v39 = vld [vmem:[%s9997_s0 + $0xf28] ss:$16 sps:$4 sm:$0xff]  }
 0x380   : > { %6248 = vmatprep.subr.bf16.mxu1 %v8362_v24  ;;  %v8428_v35 = vld [vmem:[%s9997_s0 + $0xf2c] ss:$16 sps:$4 sm:$0xff]   ;;  %v8429_v43 = vld [vmem:[%s9997_s0 + $0xd08] ss:$16 sps:$4 sm:$0xff]  }
 0x381   : > { %v8431_v40 = vld [vmem:[%s9997_s0 + $0xd0c] ss:$16 sps:$4 sm:$0xff]   ;;  %v8432_v7 = vld [vmem:[%s9997_s0 + $0xf08] ss:$16 sps:$4 sm:$0xff]  }
 0x382   : > { %6208 = vmatpush1.bf16.msra.mxu0 %v8357_v37  ;;  %v8434_v4 = vld [vmem:[%s9997_s0 + $0xf0c] ss:$16 sps:$4 sm:$0xff]   ;;  %v8435_v46 = vld [vmem:[%s9997_s0 + $0x10e8] ss:$16 sps:$4 sm:$0xff]  }
 0x383   : > { %6249 = vmatpush1.bf16.msra.mxu1 %v8360_v38  ;;  %6209 = vmatprep.subr.bf16.mxu0 %v8365_v6  ;;  %v8437_v8 = vld [vmem:[%s9997_s0 + $0x10ec] ss:$16 sps:$4 sm:$0xff]   ;;  %v8438_v50 = vld [vmem:[%s9997_s0 + $0x12e8] ss:$16 sps:$4 sm:$0xff]  }
 0x384   : > { %6250 = vmatprep.subr.bf16.mxu1 %v8368_v54  ;;  %v8440_v0 = vld [vmem:[%s9997_s0 + $0x12ec] ss:$16 sps:$4 sm:$0xff]   ;;  %v8441_v38 = vld [vmem:[%s9997_s0 + $0x10c8] ss:$16 sps:$4 sm:$0xff]  }
 0x385   : > { %v8443_v51 = vld [vmem:[%s9997_s0 + $0x10cc] ss:$16 sps:$4 sm:$0xff]   ;;  %v8444_v6 = vld [vmem:[%s9997_s0 + $0x12c8] ss:$16 sps:$4 sm:$0xff]  }
 0x386   : > { %6210 = vmatpush1.bf16.msra.mxu0 %v8363_v55  ;;  %v8446_v23 = vld [vmem:[%s9997_s0 + $0x12cc] ss:$16 sps:$4 sm:$0xff]  }
 0x387   : > { %6251 = vmatpush1.bf16.msra.mxu1 %v8366_v56  ;;  %6211 = vmatprep.subr.bf16.mxu0 %v8371_v59  ;;  %v8449_v56 = vld [vmem:[%s9997_s0 + $0x10ac] ss:$16 sps:$4 sm:$0xff]  }
 0x388   : > { %6252 = vmatprep.subr.bf16.mxu1 %v8374_v62  ;;  %v8452_v59 = vld [vmem:[%s9997_s0 + $0x12ac] ss:$16 sps:$4 sm:$0xff]  }
 0x38a   : > { %6212 = vmatpush1.bf16.msra.mxu0 %v8369_v57  ;;  %v8447_v57 = vld [vmem:[%s9997_s0 + $0x10a8] ss:$16 sps:$4 sm:$0xff]  }
 0x38b   : > { %6253 = vmatpush1.bf16.msra.mxu1 %v8372_v58  ;;  %6213 = vmatprep.subr.bf16.mxu0 %v8377_v2  ;;  %v8450_v58 = vld [vmem:[%s9997_s0 + $0x12a8] ss:$16 sps:$4 sm:$0xff]  }
 0x38c   : > { %6254 = vmatprep.subr.bf16.mxu1 %v8380_v3 }
 0x38e   : > { %6214 = vmatpush1.bf16.msra.mxu0 %v8375_v9  ;;  %v8455_v9 = vld [vmem:[%s9997_s0 + $0x108c] ss:$16 sps:$4 sm:$0xff]  }
 0x38f   : > { %6255 = vmatpush1.bf16.msra.mxu1 %v8378_v10  ;;  %6215 = vmatprep.subr.bf16.mxu0 %v8383_v17  ;;  %v8456_v10 = vld [vmem:[%s9997_s0 + $0x1288] ss:$16 sps:$4 sm:$0xff]   ;;  %v8461_v17 = vld [vmem:[%s9997_s0 + $0x106c] ss:$16 sps:$4 sm:$0xff]  }
 0x390   : > { %6256 = vmatprep.subr.bf16.mxu1 %v8386_v18  ;;  %v8464_v18 = vld [vmem:[%s9997_s0 + $0x126c] ss:$16 sps:$4 sm:$0xff]  }
 0x392   : > { %6216 = vmatpush1.bf16.msra.mxu0 %v8381_v14  ;;  %v8459_v14 = vld [vmem:[%s9997_s0 + $0x1068] ss:$16 sps:$4 sm:$0xff]  }
 0x393   : > { %6257 = vmatpush1.bf16.msra.mxu1 %v8384_v48  ;;  %6217 = vmatprep.subr.bf16.mxu0 %v8389_v52  ;;  %v8462_v48 = vld [vmem:[%s9997_s0 + $0x1268] ss:$16 sps:$4 sm:$0xff]   ;;  %v8467_v52 = vld [vmem:[%s9997_s0 + $0x104c] ss:$16 sps:$4 sm:$0xff]  }
 0x394   : > { %6258 = vmatprep.subr.bf16.mxu1 %v8392_v11  ;;  %v8470_v11 = vld [vmem:[%s9997_s0 + $0x124c] ss:$16 sps:$4 sm:$0xff]  }
 0x396   : > { %6218 = vmatpush2.bf16.msra.mxu0 %v8387_v12  ;;  %v8465_v12 = vld [vmem:[%s9997_s0 + $0x1048] ss:$16 sps:$4 sm:$0xff]  }
 0x397   : > { %6259 = vmatpush2.bf16.msra.mxu1 %v8390_v25  ;;  %6219 = vmatprep.subr.bf16.mxu0 %v8395_v26  ;;  %v8468_v25 = vld [vmem:[%s9997_s0 + $0x1248] ss:$16 sps:$4 sm:$0xff]   ;;  %v8473_v26 = vld [vmem:[%s9997_s0 + $0x102c] ss:$16 sps:$4 sm:$0xff]  }
 0x398   : > { %6260 = vmatprep.subr.bf16.mxu1 %v8398_v13  ;;  %v8476_v13 = vld [vmem:[%s9997_s0 + $0x122c] ss:$16 sps:$4 sm:$0xff]  }
 0x39a   : > { %6220 = vmatpush2.bf16.msra.mxu0 %v8393_v15  ;;  %v8471_v15 = vld [vmem:[%s9997_s0 + $0x1028] ss:$16 sps:$4 sm:$0xff]  }
 0x39b   : > { %6261 = vmatpush2.bf16.msra.mxu1 %v8396_v16  ;;  %6221 = vmatprep.subr.bf16.mxu0 %v8401_v19  ;;  %v8474_v16 = vld [vmem:[%s9997_s0 + $0x1228] ss:$16 sps:$4 sm:$0xff]   ;;  %v8479_v19 = vld [vmem:[%s9997_s0 + $0x100c] ss:$16 sps:$4 sm:$0xff]  }
 0x39c   : > { %6262 = vmatprep.subr.bf16.mxu1 %v8404_v20  ;;  %v8482_v20 = vld [vmem:[%s9997_s0 + $0x120c] ss:$16 sps:$4 sm:$0xff]  }
 0x39e   : > { %6222 = vmatpush2.bf16.msra.mxu0 %v8399_v21  ;;  %v8477_v21 = vld [vmem:[%s9997_s0 + $0x1008] ss:$16 sps:$4 sm:$0xff]  }
 0x39f   : > { %6263 = vmatpush2.bf16.msra.mxu1 %v8402_v22  ;;  %6223 = vmatprep.subr.bf16.mxu0 %v8407_v27  ;;  %v8480_v22 = vld [vmem:[%s9997_s0 + $0x1208] ss:$16 sps:$4 sm:$0xff]   ;;  %v8485_v27 = vld [vmem:[%s9997_s0 + $0x11ec] ss:$16 sps:$4 sm:$0xff]  }
 0x3a0   : > { %6264 = vmatprep.subr.bf16.mxu1 %v8410_v28  ;;  %v8488_v28 = vld [vmem:[%s9997_s0 + $0x13ec] ss:$16 sps:$4 sm:$0xff]  }
 0x3a2   : > { %6224 = vmatpush2.bf16.msra.mxu0 %v8405_v29  ;;  %v8483_v29 = vld [vmem:[%s9997_s0 + $0x11e8] ss:$16 sps:$4 sm:$0xff]  }
 0x3a3   : > { %6265 = vmatpush2.bf16.msra.mxu1 %v8408_v30  ;;  %6225 = vmatprep.subr.bf16.mxu0 %v8413_v31  ;;  %v8486_v30 = vld [vmem:[%s9997_s0 + $0x13e8] ss:$16 sps:$4 sm:$0xff]   ;;  %v8491_v31 = vld [vmem:[%s9997_s0 + $0x11cc] ss:$16 sps:$4 sm:$0xff]  }
 0x3a4   : > { %6266 = vmatprep.subr.bf16.mxu1 %v8416_v44  ;;  %v8494_v44 = vld [vmem:[%s9997_s0 + $0x13cc] ss:$16 sps:$4 sm:$0xff]  }
 0x3a6   : > { %6226 = vmatpush2.bf16.msra.mxu0 %v8411_v45  ;;  %v8489_v45 = vld [vmem:[%s9997_s0 + $0x11c8] ss:$16 sps:$4 sm:$0xff]  }
 0x3a7   : > { %6267 = vmatpush2.bf16.msra.mxu1 %v8414_v63  ;;  %6227 = vmatprep.subr.bf16.mxu0 %v8419_v5  ;;  %v8492_v63 = vld [vmem:[%s9997_s0 + $0x13c8] ss:$16 sps:$4 sm:$0xff]   ;;  %v8497_v5 = vld [vmem:[%s9997_s0 + $0x11ac] ss:$16 sps:$4 sm:$0xff]  }
 0x3a8   : > { %6268 = vmatprep.subr.bf16.mxu1 %v8422_v32  ;;  %v8500_v32 = vld [vmem:[%s9997_s0 + $0x13ac] ss:$16 sps:$4 sm:$0xff]  }
 0x3aa   : > { %6228 = vmatpush2.bf16.msra.mxu0 %v8417_v33  ;;  %v8495_v33 = vld [vmem:[%s9997_s0 + $0x11a8] ss:$16 sps:$4 sm:$0xff]  }
 0x3ab   : > { %6269 = vmatpush2.bf16.msra.mxu1 %v8420_v34  ;;  %6229 = vmatprep.subr.bf16.mxu0 %v8425_v1  ;;  %v8498_v34 = vld [vmem:[%s9997_s0 + $0x13a8] ss:$16 sps:$4 sm:$0xff]   ;;  %v8503_v1 = vld [vmem:[%s9997_s0 + $0x118c] ss:$16 sps:$4 sm:$0xff]  }
 0x3ac   : > { %6270 = vmatprep.subr.bf16.mxu1 %v8428_v35  ;;  %v8506_v35 = vld [vmem:[%s9997_s0 + $0x138c] ss:$16 sps:$4 sm:$0xff]  }
 0x3ae   : > { %6230 = vmatpush2.bf16.msra.mxu0 %v8423_v36  ;;  %v8501_v36 = vld [vmem:[%s9997_s0 + $0x1188] ss:$16 sps:$4 sm:$0xff]  }
 0x3af   : > { %6271 = vmatpush2.bf16.msra.mxu1 %v8426_v39  ;;  %6231 = vmatprep.subr.bf16.mxu0 %v8431_v40  ;;  %v8504_v39 = vld [vmem:[%s9997_s0 + $0x1388] ss:$16 sps:$4 sm:$0xff]   ;;  %v8509_v40 = vld [vmem:[%s9997_s0 + $0x116c] ss:$16 sps:$4 sm:$0xff]  }
 0x3b0   : > { %6272 = vmatprep.subr.bf16.mxu1 %v8434_v4  ;;  %v8512_v4 = vld [vmem:[%s9997_s0 + $0x136c] ss:$16 sps:$4 sm:$0xff]  }
 0x3b2   : > { %6232 = vmatpush2.bf16.msra.mxu0 %v8429_v43  ;;  %v8507_v43 = vld [vmem:[%s9997_s0 + $0x1168] ss:$16 sps:$4 sm:$0xff]  }
 0x3b3   : > { %6273 = vmatpush2.bf16.msra.mxu1 %v8432_v7  ;;  %6283 = vmatprep.subr.bf16.mxu0 %v8437_v8  ;;  %v8510_v7 = vld [vmem:[%s9997_s0 + $0x1368] ss:$16 sps:$4 sm:$0xff]   ;;  %v8515_v8 = vld [vmem:[%s9997_s0 + $0x114c] ss:$16 sps:$4 sm:$0xff]  }
 0x3b4   : > { %6324 = vmatprep.subr.bf16.mxu1 %v8440_v0  ;;  %v8518_v0 = vld [vmem:[%s9997_s0 + $0x134c] ss:$16 sps:$4 sm:$0xff]  }
 0x3b5   : > { %v5989_v24 = vpop.f32.mrf.mxu0  ;;  %6234 = vmatmul.mubr.bf16.vlgmr.msra.gmra.mxu0 %v10345_v60 }
 0x3b6   : > { %v6030_v53 = vpop.f32.mrf.mxu1  ;;  %6275 = vmatmul.mubr.bf16.vlgmr.msra.gmra.mxu1 %v10349_v61  ;;  %6284 = vmatpush1.bf16.msra.mxu0 %v8435_v46  ;;  %v8513_v46 = vld [vmem:[%s9997_s0 + $0x1148] ss:$16 sps:$4 sm:$0xff]  }
 0x3b7   : > { %v10746_v37 = vadd.f32 %v6030_v53, %v5989_v24  ;;  %6325 = vmatpush1.bf16.msra.mxu1 %v8438_v50  ;;  %v5991_v54 = vpop.f32.mrf.mxu0  ;;  %6285 = vmatprep.subr.bf16.mxu0 %v8443_v51  ;;  %v8516_v50 = vld [vmem:[%s9997_s0 + $0x1348] ss:$16 sps:$4 sm:$0xff]   ;;  %v8521_v51 = vld [vmem:[%s9997_s0 + $0x112c] ss:$16 sps:$4 sm:$0xff]  }
 0x3b8   : > { %v6032_v55 = vpop.f32.mrf.mxu1  ;;  %6326 = vmatprep.subr.bf16.mxu1 %v8446_v23  ;;  %6315 = vmatprep.mubr.bf16.mxu0 %v10360_v41  ;;  %v8458_v41 = vld [vmem:[%s9997_s0 + $0x128c] ss:$16 sps:$4 sm:$0xff]   ;;  %v8519_v24 = vld [vmem:[%s9997_s0 + $0x1128] ss:$16 sps:$4 sm:$0xff]  }
 0x3b9   : > { %v10752_v62 = vadd.f32 %v6032_v55, %v5991_v54  ;;  %6356 = vmatprep.mubr.bf16.mxu1 %v10364_v42  ;;  %v5993_v60 = vpop.f32.mrf.mxu0  ;;  %v8453_v42 = vld [vmem:[%s9997_s0 + $0x1088] ss:$16 sps:$4 sm:$0xff]   ;;  %v8524_v23 = vld [vmem:[%s9997_s0 + $0x132c] ss:$16 sps:$4 sm:$0xff]  }
 0x3ba   : > { %v6034_v61 = vpop.f32.mrf.mxu1  ;;  %6286 = vmatpush1.bf16.msra.mxu0 %v8441_v38  ;;  %v8522_v53 = vld [vmem:[%s9997_s0 + $0x1328] ss:$16 sps:$4 sm:$0xff]   ;;  %v8527_v38 = vld [vmem:[%s9997_s0 + $0x110c] ss:$16 sps:$4 sm:$0xff]  }
 0x3bb   : > { %6327 = vmatpush1.bf16.msra.mxu1 %v8444_v6  ;;  %v5994_v2 = vpop.f32.mrf.mxu0  ;;  %6287 = vmatprep.subr.bf16.mxu0 %v8449_v56  ;;  %v8530_v6 = vld [vmem:[%s9997_s0 + $0x130c] ss:$16 sps:$4 sm:$0xff]   ;;  %v8525_v54 = vld [vmem:[%s9997_s0 + $0x1108] ss:$16 sps:$4 sm:$0xff]  }
 0x3bc   : > { %v6035_v3 = vpop.f32.mrf.mxu1  ;;  %6328 = vmatprep.subr.bf16.mxu1 %v8452_v59  ;;  %v8528_v55 = vld [vmem:[%s9997_s0 + $0x1308] ss:$16 sps:$4 sm:$0xff]  }
 0x3be   : > { %6288 = vmatpush1.bf16.msra.mxu0 %v8447_v57 }
 0x3bf   : > { %6329 = vmatpush1.bf16.msra.mxu1 %v8450_v58  ;;  %6289 = vmatprep.subr.bf16.mxu0 %v8455_v9 }
 0x3c0   : > { %6330 = vmatprep.subr.bf16.mxu1 %v8458_v41 }
 0x3c2   : > { %6290 = vmatpush1.bf16.msra.mxu0 %v8453_v42 }
 0x3c3   : > { %6331 = vmatpush1.bf16.msra.mxu1 %v8456_v10  ;;  %6291 = vmatprep.subr.bf16.mxu0 %v8461_v17 }
 0x3c4   : > { %6332 = vmatprep.subr.bf16.mxu1 %v8464_v18 }
 0x3c6   : > { %6292 = vmatpush1.bf16.msra.mxu0 %v8459_v14 }
 0x3c7   : > { %6333 = vmatpush1.bf16.msra.mxu1 %v8462_v48  ;;  %6293 = vmatprep.subr.bf16.mxu0 %v8467_v52 }
 0x3c8   : > { %6334 = vmatprep.subr.bf16.mxu1 %v8470_v11 }
 0x3ca   : > { %6294 = vmatpush1.bf16.msra.mxu0 %v8465_v12 }
 0x3cb   : > { %6335 = vmatpush1.bf16.msra.mxu1 %v8468_v25  ;;  %6295 = vmatprep.subr.bf16.mxu0 %v8473_v26 }
 0x3cc   : > { %6336 = vmatprep.subr.bf16.mxu1 %v8476_v13 }
 0x3ce   : > { %6296 = vmatpush1.bf16.msra.mxu0 %v8471_v15 }
 0x3cf   : > { %6337 = vmatpush1.bf16.msra.mxu1 %v8474_v16  ;;  %6297 = vmatprep.subr.bf16.mxu0 %v8479_v19 }
 0x3d0   : > { %6338 = vmatprep.subr.bf16.mxu1 %v8482_v20 }
 0x3d2   : > { %6298 = vmatpush1.bf16.msra.mxu0 %v8477_v21 }
 0x3d3   : > { %6339 = vmatpush1.bf16.msra.mxu1 %v8480_v22  ;;  %6299 = vmatprep.subr.bf16.mxu0 %v8485_v27 }
 0x3d4   : > { %6340 = vmatprep.subr.bf16.mxu1 %v8488_v28 }
 0x3d6   : > { %6300 = vmatpush2.bf16.msra.mxu0 %v8483_v29 }
 0x3d7   : > { %6341 = vmatpush2.bf16.msra.mxu1 %v8486_v30  ;;  %6301 = vmatprep.subr.bf16.mxu0 %v8491_v31 }
 0x3d8   : > { %6342 = vmatprep.subr.bf16.mxu1 %v8494_v44 }
 0x3da   : > { %6302 = vmatpush2.bf16.msra.mxu0 %v8489_v45 }
 0x3db   : > { %6343 = vmatpush2.bf16.msra.mxu1 %v8492_v63  ;;  %6303 = vmatprep.subr.bf16.mxu0 %v8497_v5  ;;  %v1623_v63 = vld [vmem:[#allocation2 + $0x18] sm:$0xff] }
 0x3dc   : > { %6344 = vmatprep.subr.bf16.mxu1 %v8500_v32 }
 0x3de   : > { %6304 = vmatpush2.bf16.msra.mxu0 %v8495_v33 }
 0x3df   : > { %6345 = vmatpush2.bf16.msra.mxu1 %v8498_v34  ;;  %6305 = vmatprep.subr.bf16.mxu0 %v8503_v1  ;;  %v1624_v1 = vld [vmem:[#allocation2 + $0x8] sm:$0xff] }
 0x3e0   : > { %6346 = vmatprep.subr.bf16.mxu1 %v8506_v35 }
 0x3e2   : > { %6306 = vmatpush2.bf16.msra.mxu0 %v8501_v36 }
 0x3e3   : > { %6347 = vmatpush2.bf16.msra.mxu1 %v8504_v39  ;;  %6307 = vmatprep.subr.bf16.mxu0 %v8509_v40 }
 0x3e4   : > { %6348 = vmatprep.subr.bf16.mxu1 %v8512_v4 }
 0x3e6   : > { %6308 = vmatpush2.bf16.msra.mxu0 %v8507_v43 }
 0x3e7   : > { %6349 = vmatpush2.bf16.msra.mxu1 %v8510_v7  ;;  %6309 = vmatprep.subr.bf16.mxu0 %v8515_v8 }
 0x3e8   : > { %6350 = vmatprep.subr.bf16.mxu1 %v8518_v0 }
 0x3ea   : > { %6310 = vmatpush2.bf16.msra.mxu0 %v8513_v46 }
 0x3eb   : > { %6351 = vmatpush2.bf16.msra.mxu1 %v8516_v50  ;;  %6311 = vmatprep.subr.bf16.mxu0 %v8521_v51 }
 0x3ec   : > { %6352 = vmatprep.subr.bf16.mxu1 %v8524_v23 }
 0x3ee   : > { %6312 = vmatpush2.bf16.msra.mxu0 %v8519_v24 }
 0x3ef   : > { %6353 = vmatpush2.bf16.msra.mxu1 %v8522_v53  ;;  %6313 = vmatprep.subr.bf16.mxu0 %v8527_v38 }
 0x3f0   : > { %6354 = vmatprep.subr.bf16.mxu1 %v8530_v6 }
 0x3f2   : > { %6314 = vmatpush2.bf16.msra.mxu0 %v8525_v54 }
 0x3f3   : > { %6355 = vmatpush2.bf16.msra.mxu1 %v8528_v55 }
 0x3f5   : > { %v6071_v56 = vpop.f32.mrf.mxu0  ;;  %6316 = vmatmul.mubr.bf16.vlgmr.msra.gmra.mxu0 %v10438_v47 }
 0x3f6   : > { %v6112_v59 = vpop.f32.mrf.mxu1  ;;  %6357 = vmatmul.mubr.bf16.vlgmr.msra.gmra.mxu1 %v10442_v49  ;;  %v6072_v60 = vadd.f32 %v6071_v56, %v10746_v37 }
 0x3f7   : > { %v6073_v61 = vpop.f32.mrf.mxu0 }
 0x3f8   : > { %v6114_v57 = vpop.f32.mrf.mxu1  ;;  %v6113_v58 = vadd.f32 %v6112_v59, %v6072_v60  ;;  %v6074_v2 = vadd.f32 %v6073_v61, %v10752_v62 }
 0x3f9   : > { %v6075_v3 = vpop.f32.mrf.mxu0 }
 0x3fa   : > { %v6116_v9 = vpop.f32.mrf.mxu1  ;;  %v6115_v41 = vadd.f32 %v6114_v57, %v6074_v2 }
 0x3fb   : > { %v6076_v42 = vpop.f32.mrf.mxu0 }
 0x3fc   : > { %v6117_v10 = vpop.f32.mrf.mxu1 }
 0x435   : > { %v6153_v17 = vpop.f32.mrf.mxu0 }
 0x436   : > { %v6194_v18 = vpop.f32.mrf.mxu1  ;;  %v6154_v14 = vadd.f32 %v6153_v17, %v6113_v58 }
 0x437   : > { %v6155_v48 = vpop.f32.mrf.mxu0 }
 0x438   : > { %v6196_v52 = vpop.f32.mrf.mxu1  ;;  %v6195_v47 = vadd.f32 %v6194_v18, %v6154_v14  ;;  %v6156_v11 = vadd.f32 %v6155_v48, %v6115_v41 }
 0x439   : > { %v6157_v49 = vpop.f32.mrf.mxu0 }
 0x43a   : > { %v6198_v12 = vpop.f32.mrf.mxu1  ;;  %v6197_v37 = vadd.f32 %v6196_v52, %v6156_v11 }
 0x43b   : > { %v6158_v25 = vpop.f32.mrf.mxu0 }
 0x43c   : > { %v6199_v26 = vpop.f32.mrf.mxu1 }
 0x475   : > { %v6235_v13 = vpop.f32.mrf.mxu0 }
 0x476   : > { %v6276_v15 = vpop.f32.mrf.mxu1  ;;  %v6236_v27 = vadd.f32 %v6235_v13, %v6195_v47 }
 0x477   : > { %v6237_v62 = vpop.f32.mrf.mxu0 }
 0x478   : > { %v6278_v16 = vpop.f32.mrf.mxu1  ;;  %v6238_v28 = vadd.f32 %v6237_v62, %v6197_v37  ;;  %v6277_v29 = vadd.f32 %v6276_v15, %v6236_v27 }
 0x479   : > { %v6239_v19 = vpop.f32.mrf.mxu0 }
 0x47a   : > { %v6280_v20 = vpop.f32.mrf.mxu1  ;;  %v6279_v44 = vadd.f32 %v6278_v16, %v6238_v28 }
 0x47b   : > { %v6240_v21 = vpop.f32.mrf.mxu0 }
 0x47c   : > { %v6281_v22 = vpop.f32.mrf.mxu1 }
 0x4b5   : > { %v6317_v30 = vpop.f32.mrf.mxu0 }
 0x4b6   : > { %v6358_v31 = vpop.f32.mrf.mxu1  ;;  %v6318_v45 = vadd.f32 %v6317_v30, %v6277_v29 }
 0x4b7   : > { %v6319_v5 = vpop.f32.mrf.mxu0 }
 0x4b8   : > { %v6360_v32 = vpop.f32.mrf.mxu1  ;;  %v6359_v33 = vadd.f32 %v6358_v31, %v6318_v45  ;;  %v6320_v34 = vadd.f32 %v6319_v5, %v6279_v44 }
 0x4b9   : > { %v6321_v35 = vpop.f32.mrf.mxu0 }
 0x4ba   : > { %v6362_v36 = vpop.f32.mrf.mxu1  ;;  %v6367_v39 = vadd.f32 %v6359_v33, %v1623_v63  ;;  %v6361_v40 = vadd.f32 %v6360_v32, %v6320_v34  ;;  %6376 = sbr.rel (%p7416_p13) target bundleno = 1452 (0x5ac), region = 71 }
 0x4bb   : > { %v6322_v4 = vpop.f32.mrf.mxu0 }
 0x4bc   : > { %v6363_v43 = vpop.f32.mrf.mxu1  ;;  %6371 = vst [vmem:[#allocation2 + $0x18] sm:$0xff] %v6367_v39  ;;  %v6368_v7 = vadd.f32 %v6361_v40, %v1624_v1 }
 0x4be   : > { %6372 = vst [vmem:[#allocation2 + $0x8] sm:$0xff] %v6368_v7 }
 0x4bf   : > { %v6442_v8 = vld [vmem:[%s9985_s15 + $0xf8] sm:$0xff]  ;;  %v6441_v51 = vld [vmem:[%s9985_s15 + $0xf0] sm:$0xff]  ;;  %v6440_v38 = vld [vmem:[%s9985_s15 + $0xe8] sm:$0xff]  ;;  %v6383_v14 = vlaneseq  ;;  %vm6622_vm0 = vcmask 64512  }
 0x4c0   : > { %v6474_v0 = vld [vmem:[%s9985_s15 + $0x1f8] sm:$0xff]  ;;  %7422 = vmatprep.subr.mxu0 %v6442_v8  ;;  %v6473_v23 = vld [vmem:[%s9985_s15 + $0x1f0] sm:$0xff]  ;;  %v6472_v6 = vld [vmem:[%s9985_s15 + $0x1e8] sm:$0xff] }
 0x4c1   : > { %v6426_v46 = vld [vmem:[%s9985_s15 + $0x78] sm:$0xff]  ;;  %7457 = vmatprep.subr.mxu1 %v6474_v0  ;;  %v6425_v24 = vld [vmem:[%s9985_s15 + $0x70] sm:$0xff]  ;;  %v6424_v54 = vld [vmem:[%s9985_s15 + $0x68] sm:$0xff]  ;;  %v6384_v26 = vshrl.u32 %v6383_v14, 7 }
 0x4c2   : > { %v6458_v50 = vld [vmem:[%s9985_s15 + $0x178] sm:$0xff]  ;;  %7423 = vmatpush3.msra.mxu0 %v6426_v46  ;;  %v6457_v53 = vld [vmem:[%s9985_s15 + $0x170] sm:$0xff]  ;;  %v6456_v55 = vld [vmem:[%s9985_s15 + $0x168] sm:$0xff] }
 0x4c3   : > { %7458 = vmatpush3.msra.mxu1 %v6458_v50  ;;  %7424 = vmatprep.subr.mxu0 %v6441_v51  ;;  %v6439_v56 = vld [vmem:[%s9985_s15 + $0xe0] sm:$0xff]  ;;  %v6438_v57 = vld [vmem:[%s9985_s15 + $0xd8] sm:$0xff]  ;;  %v6437_v9 = vld [vmem:[%s9985_s15 + $0xd0] sm:$0xff]  ;;  %v6389_v27 = vsub.s32 1, %v6384_v26  ;;  %v6397_v28 = vsub.s32 3, %v6384_v26  ;;  %v6385_v29 = vsub.s32 0, %v6384_v26 }
 0x4c4   : > { %7459 = vmatprep.subr.mxu1 %v6473_v23  ;;  %7425 = vmatpush3.msra.mxu0 %v6425_v24  ;;  %v6471_v59 = vld [vmem:[%s9985_s15 + $0x1e0] sm:$0xff]  ;;  %v6470_v58 = vld [vmem:[%s9985_s15 + $0x1d8] sm:$0xff]  ;;  %v6469_v41 = vld [vmem:[%s9985_s15 + $0x1d0] sm:$0xff]  ;;  %v6393_v45 = vsub.s32 2, %v6384_v26 }
 0x4c5   : > { %7460 = vmatpush3.msra.mxu1 %v6457_v53  ;;  %7426 = vmatprep.subr.mxu0 %v6440_v38  ;;  %v6423_v60 = vld [vmem:[%s9985_s15 + $0x60] sm:$0xff]  ;;  %v6422_v2 = vld [vmem:[%s9985_s15 + $0x58] sm:$0xff]  ;;  %v6421_v42 = vld [vmem:[%s9985_s15 + $0x50] sm:$0xff] }
 0x4c6   : > { %7461 = vmatprep.subr.mxu1 %v6472_v6  ;;  %v6455_v61 = vld [vmem:[%s9985_s15 + $0x160] sm:$0xff]  ;;  %7427 = vmatpush3.msra.mxu0 %v6424_v54  ;;  %v6454_v3 = vld [vmem:[%s9985_s15 + $0x158] sm:$0xff]  ;;  %v6453_v10 = vld [vmem:[%s9985_s15 + $0x150] sm:$0xff] }
 0x4c7   : > { %7462 = vmatpush3.msra.mxu1 %v6456_v55  ;;  %7428 = vmatprep.subr.mxu0 %v6439_v56  ;;  %v6436_v17 = vld [vmem:[%s9985_s15 + $0xc8] sm:$0xff]  ;;  %v6435_v47 = vld [vmem:[%s9985_s15 + $0xc0] sm:$0xff]  ;;  %v6434_v37 = vld [vmem:[%s9985_s15 + $0xb8] sm:$0xff] }
 0x4c8   : > { %7463 = vmatprep.subr.mxu1 %v6471_v59  ;;  %7429 = vmatpush3.msra.mxu0 %v6423_v60  ;;  %v6468_v18 = vld [vmem:[%s9985_s15 + $0x1c8] sm:$0xff]  ;;  %v6467_v11 = vld [vmem:[%s9985_s15 + $0x1c0] sm:$0xff]  ;;  %v6466_v25 = vld [vmem:[%s9985_s15 + $0x1b8] sm:$0xff] }
 0x4c9   : > { %7464 = vmatpush3.msra.mxu1 %v6455_v61  ;;  %7430 = vmatprep.subr.mxu0 %v6438_v57  ;;  %v6420_v48 = vld [vmem:[%s9985_s15 + $0x48] sm:$0xff]  ;;  %v6419_v49 = vld [vmem:[%s9985_s15 + $0x40] sm:$0xff]  ;;  %v6418_v13 = vld [vmem:[%s9985_s15 + $0x38] sm:$0xff] }
 0x4ca   : > { %7465 = vmatprep.subr.mxu1 %v6470_v58  ;;  %7431 = vmatpush3.msra.mxu0 %v6422_v2  ;;  %v6452_v52 = vld [vmem:[%s9985_s15 + $0x148] sm:$0xff]  ;;  %v6451_v12 = vld [vmem:[%s9985_s15 + $0x140] sm:$0xff]  ;;  %v6450_v15 = vld [vmem:[%s9985_s15 + $0x138] sm:$0xff] }
 0x4cb   : > { %7466 = vmatpush3.msra.mxu1 %v6454_v3  ;;  %7432 = vmatprep.subr.mxu0 %v6437_v9  ;;  %v6433_v62 = vld [vmem:[%s9985_s15 + $0xb0] sm:$0xff]  ;;  %v6432_v21 = vld [vmem:[%s9985_s15 + $0xa8] sm:$0xff]  ;;  %v6431_v44 = vld [vmem:[%s9985_s15 + $0xa0] sm:$0xff] }
 0x4cc   : > { %7467 = vmatprep.subr.mxu1 %v6469_v41  ;;  %7433 = vmatpush3.msra.mxu0 %v6421_v42  ;;  %v6465_v16 = vld [vmem:[%s9985_s15 + $0x1b0] sm:$0xff]  ;;  %v6464_v22 = vld [vmem:[%s9985_s15 + $0x1a8] sm:$0xff]  ;;  %v6463_v63 = vld [vmem:[%s9985_s15 + $0x1a0] sm:$0xff] }
 0x4cd   : > { %7468 = vmatpush3.msra.mxu1 %v6453_v10  ;;  %7434 = vmatprep.subr.mxu0 %v6436_v17  ;;  %v6417_v19 = vld [vmem:[%s9985_s15 + $0x30] sm:$0xff]  ;;  %v6416_v30 = vld [vmem:[%s9985_s15 + $0x28] sm:$0xff]  ;;  %v6415_v5 = vld [vmem:[%s9985_s15 + $0x20] sm:$0xff] }
 0x4ce   : > { %7469 = vmatprep.subr.mxu1 %v6468_v18  ;;  %7435 = vmatpush3.msra.mxu0 %v6420_v48  ;;  %v6449_v20 = vld [vmem:[%s9985_s15 + $0x130] sm:$0xff]  ;;  %v6448_v31 = vld [vmem:[%s9985_s15 + $0x128] sm:$0xff]  ;;  %v6447_v32 = vld [vmem:[%s9985_s15 + $0x120] sm:$0xff] }
 0x4cf   : > { %7470 = vmatpush3.msra.mxu1 %v6452_v52  ;;  %7436 = vmatprep.subr.mxu0 %v6435_v47  ;;  %v6430_v33 = vld [vmem:[%s9985_s15 + $0x98] sm:$0xff]  ;;  %v6378_v34 = vld [vmem:[#allocation2] sm:$0xff]  ;;  %v6380_v40 = vld [vmem:[#allocation2 + $0x8] sm:$0xff] }
 0x4d0   : > { %7471 = vmatprep.subr.mxu1 %v6467_v11  ;;  %7437 = vmatpush3.msra.mxu0 %v6419_v49  ;;  %v6381_v1 = vld [vmem:[%s9979_s11] sm:$0xf]  ;;  %v6462_v35 = vld [vmem:[%s9985_s15 + $0x198] sm:$0xff]  ;;  %v6377_v8 = vld [vmem:[#allocation2 + $0x10] sm:$0xff] }
 0x4d1   : > { %7472 = vmatpush3.msra.mxu1 %v6451_v12  ;;  %7438 = vmatprep.subr.mxu0 %v6434_v37  ;;  %v6414_v36 = vld [vmem:[%s9985_s15 + $0x18] sm:$0xff]  ;;  %v6390_v39 = vrot.slane %v6381_v1, %v6389_v27  ;;  %v6398_v4 = vrot.slane %v6381_v1, %v6397_v28  ;;  %v6386_v43 = vrot.slane %v6381_v1, %v6385_v29  ;;  %v6429_v50 = vld [vmem:[%s9985_s15 + $0x90] sm:$0xff]  ;;  %v6428_v6 = vld [vmem:[%s9985_s15 + $0x88] sm:$0xff] }
 0x4d2   : > { %7473 = vmatprep.subr.mxu1 %v6466_v25  ;;  %7439 = vmatpush3.msra.mxu0 %v6418_v13  ;;  %v6446_v7 = vld [vmem:[%s9985_s15 + $0x118] sm:$0xff]  ;;  %v6394_v46 = vrot.slane %v6381_v1, %v6393_v45  ;;  %v6461_v51 = vld [vmem:[%s9985_s15 + $0x190] sm:$0xff]  ;;  %v6460_v54 = vld [vmem:[%s9985_s15 + $0x188] sm:$0xff] }
 0x4d3   : > { %7474 = vmatpush3.msra.mxu1 %v6450_v15  ;;  %7440 = vmatprep.subr.mxu0 %v6433_v62  ;;  %v6379_v0 = vld [vmem:[#allocation2 + $0x18] sm:$0xff]  ;;  %v6404_v23 = vadd.f32 %v6390_v39, %v6378_v34  ;;  %v6413_v24 = vld [vmem:[%s9985_s15 + $0x10] sm:$0xff]  ;;  %v6406_v38 = vadd.f32 %v6398_v4, %v6380_v40  ;;  %v6403_v55 = vadd.f32 %v6386_v43, %v6377_v8  ;;  %v6412_v59 = vld [vmem:[%s9985_s15 + $0x8] sm:$0xff] }
 0x4d4   : > { %7475 = vmatprep.subr.mxu1 %v6465_v16  ;;  %7441 = vmatpush3.msra.mxu0 %v6417_v19  ;;  %v6445_v53 = vld [vmem:[%s9985_s15 + $0x110] sm:$0xff]  ;;  %v6405_v56 = vadd.f32 %v6394_v46, %v6379_v0  ;;  %v6444_v60 = vld [vmem:[%s9985_s15 + $0x108] sm:$0xff]  ;;  %v6427_v61 = vld [vmem:[%s9985_s15 + $0x80] sm:$0xff] }
 0x4d5   : > { %7476 = vmatpush3.msra.mxu1 %v6449_v20  ;;  %7442 = vmatprep.subr.mxu0 %v6432_v21  ;;  %v6459_v57 = vld [vmem:[%s9985_s15 + $0x180] sm:$0xff]  ;;  %v6408_v58 = vmax.f32 %v6404_v23, 0.0  ;;  %v6410_v3 = vmax.f32 %v6406_v38, 0.0  ;;  %v6407_v41 = vmax.f32 %v6403_v55, 0.0 }
 0x4d6   : > { %7477 = vmatprep.subr.mxu1 %v6464_v22  ;;  %7443 = vmatpush3.msra.mxu0 %v6416_v30  ;;  %v6411_v2 = vld [vmem:[%s9985_s15] sm:$0xff]  ;;  %v6409_v42 = vmax.f32 %v6405_v56, 0.0 }
 0x4d7   : > { %7478 = vmatpush3.msra.mxu1 %v6448_v31  ;;  %7444 = vmatprep.subr.mxu0 %v6431_v44  ;;  %v6443_v9 = vld [vmem:[%s9985_s15 + $0x100] sm:$0xff] }
 0x4d8   : > { %7479 = vmatprep.subr.mxu1 %v6463_v63  ;;  %7445 = vmatpush3.msra.mxu0 %v6415_v5  ;;  %v7417_v18 = vld [vmem:[%s1608_s27] ss:$0 sm:$0xff] }
 0x4d9   : > { %7480 = vmatpush3.msra.mxu1 %v6447_v32  ;;  %7446 = vmatprep.subr.mxu0 %v6430_v33 }
 0x4da   : > { %7481 = vmatprep.subr.mxu1 %v6462_v35  ;;  %7447 = vmatpush3.msra.mxu0 %v6414_v36 }
 0x4db   : > { %7482 = vmatpush3.msra.mxu1 %v6446_v7  ;;  %7448 = vmatprep.subr.mxu0 %v6429_v50 }
 0x4dc   : > { %7483 = vmatprep.subr.mxu1 %v6461_v51  ;;  %7449 = vmatpush3.msra.mxu0 %v6413_v24 }
 0x4dd   : > { %7484 = vmatpush3.msra.mxu1 %v6445_v53  ;;  %7450 = vmatprep.subr.mxu0 %v6428_v6 }
 0x4de   : > { %7485 = vmatprep.subr.mxu1 %v6460_v54  ;;  %7451 = vmatpush3.msra.mxu0 %v6412_v59 }
 0x4df   : > { %7486 = vmatpush3.msra.mxu1 %v6444_v60  ;;  %7452 = vmatprep.subr.mxu0 %v6427_v61 }
 0x4e0   : > { %7487 = vmatprep.subr.mxu1 %v6459_v57  ;;  %7453 = vmatpush3.msra.mxu0 %v6411_v2 }
 0x4e1   : > { %6546 = vmatprep.mubr.f32.mxu0 %v6408_v58  ;;  %7488 = vmatpush3.msra.mxu1 %v6443_v9 }
 0x4e2   : > { %6616 = vmatprep.mubr.f32.mxu1 %v6410_v3  ;;  %6547 = vmatmul.mubr.f32.vlgmr.msra.gmra.mxu0 %v6407_v41 }
 0x4e3   : > { %6617 = vmatmul.mubr.f32.vlgmr.msra.gmra.mxu1 %v6409_v42 }
 0x5a2   : > { %v7454_v10 = vpop.f32.mrf.mxu0 }
 0x5a3   : > { %v7489_v17 = vpop.f32.mrf.mxu1 }
 0x5a4   : > { %v7455_v14 = vpop.f32.mrf.mxu0 }
 0x5a5   : > { %v7490_v48 = vpop.f32.mrf.mxu1  ;;  %v7456_v52 = vadd.f32 %v7455_v14, %v7454_v10 }
 0x5a6   : > { %v7491_v11 = vadd.f32 %v7490_v48, %v7489_v17 }
 0x5a7   : > { %v6549_v47 = vadd.f32 %v7456_v52, %v7417_v18 }
 0x5a9   : > { %v6619_v49 = vadd.f32 %v7491_v11, %v6549_v47 }
 0x5ab   : > { %6623 = vst.msk [vmem:[%s9995_s7] sm:$0xff] %vm6622_vm0, %v6619_v49 }
 0x5ac PF: > { %s15_s24 = sadd.s32 1, %s8585_s24   ;;  %s10917_s18 = smov %s8565_s19 }
 0x5ad   : > { %p12_p0 = scmp.ge.s32.totalorder %s15_s24, 6   ;;  %s10918_s19 = smov %s8669_s6 }
 0x5ae   : > { %s10919_s20 = smov %s8577_s22  ;;  %s10920_s21 = smov %s8581_s23 }
 0x5af   : > { %s10921_s22 = smov %s10924_s25  ;;  %s10922_s23 = smov %s10928_s26 }
 0x5b0   :  { %14 = sbr.rel (!%p12_p0) target bundleno = 7 (0x7), region = 118 }

</bundles_post_ra>
